<compile_context>
chip_gen: v7x
topology: tpu7x:2x2x1
jax: 0.10.0
libtpu: 0.0.40
codegen_flags: <defaults>
</compile_context>

<pallas_src>
import functools

import jax
import jax.numpy as jnp
from jax.experimental import pallas as pl
from jax.experimental.pallas import tpu as pltpu

IN_DIM = 28 * 28          # 784
LATENT = 3
OUT_DIM = 28 * 28         # 784
ENC_DIMS = [IN_DIM, 128, 64, 12, LATENT]
DEC_DIMS = [LATENT, 12, 64, 128, OUT_DIM]


def _autoencoder_kernel(x_ref,
                        ew0, eb0, ew1, eb1, ew2, eb2, ew3, eb3,
                        wf, bf_, dw1, db1, dw2, db2, dw3, db3,
                        enc_ref, dec_ref):
    # ---------------- encoder ----------------
    # x arrives f32 from HBM; cast the block to bf16 on the VPU (hidden under
    # the DMA) so the wide first matmul runs with bf16 operands, f32 accum.
    x_bf = x_ref[...].astype(jnp.bfloat16)
    h = jnp.dot(x_bf, ew0[...], preferred_element_type=jnp.float32) + eb0[...]
    h = jnp.tanh(h)
    # Encoder mid layers stay f32 so `encoded` matches the reference tightly.
    h = jnp.dot(h, ew1[...], preferred_element_type=jnp.float32) + eb1[...]
    h = jnp.tanh(h)
    h = jnp.dot(h, ew2[...], preferred_element_type=jnp.float32) + eb2[...]
    h = jnp.tanh(h)                                    # (bm, 12) f32

    # encoded, exact width 3 (tiny stream; masked store is fine).
    enc = jnp.dot(h, ew3[...], preferred_element_type=jnp.float32) + eb3[...]
    enc_ref[...] = enc.astype(enc_ref.dtype)

    # ---------------- decoder ----------------
    # Fused bottleneck: encoded @ dw0 + db0 == h @ (ew3 @ dw0) + (eb3 @ dw0 + db0)
    d = jnp.dot(h.astype(jnp.bfloat16), wf[...],
                preferred_element_type=jnp.float32) + bf_[...]
    d = jnp.tanh(d)
    d = jnp.dot(d.astype(jnp.bfloat16), dw1[...],
                preferred_element_type=jnp.float32) + db1[...]
    d = jnp.tanh(d)
    d = jnp.dot(d.astype(jnp.bfloat16), dw2[...],
                preferred_element_type=jnp.float32) + db2[...]
    d = jnp.tanh(d)                                    # (bm, 128)
    d = jnp.dot(d.astype(jnp.bfloat16), dw3[...],
                preferred_element_type=jnp.float32) + db3[...]
    dec_ref[...] = jax.nn.sigmoid(d).astype(dec_ref.dtype)


def _vmem_limit_bytes():
    """Per-generation VMEM limit: 3/4 of physical, capped at 64 MiB."""
    default = 48 * 1024 * 1024
    try:
        cap = getattr(pltpu.get_tpu_info(), "vmem_capacity_bytes", None)
        if cap is None:
            return default
        return min(int(cap) * 3 // 4, 64 * 1024 * 1024)
    except Exception:
        return default


@functools.partial(jax.jit, static_argnames=("block_m",))
def autoencoder_forward(x, kparams, *, block_m=512):
    """x: (B, 784) float32. kparams: output of prepare_kernel_params.
    Returns (encoded (B, 3) f32, decoded (B, 784) f32)."""
    B, D = x.shape
    assert D == IN_DIM

    n_blocks = pl.cdiv(B, block_m)
    b_pad = n_blocks * block_m
    if b_pad != B:
        # Only for ragged batches; costs nothing when B % block_m == 0.
        x = jnp.pad(x, ((0, b_pad - B), (0, 0)))

    const_map = lambda i: (0, 0)
    in_specs = [pl.BlockSpec((block_m, IN_DIM), lambda i: (i, 0))]
    in_specs += [pl.BlockSpec(p.shape, const_map) for p in kparams]
    out_specs = [
        pl.BlockSpec((block_m, LATENT), lambda i: (i, 0)),
        pl.BlockSpec((block_m, OUT_DIM), lambda i: (i, 0)),
    ]
    out_shape = (
        jax.ShapeDtypeStruct((b_pad, LATENT), jnp.float32),
        jax.ShapeDtypeStruct((b_pad, OUT_DIM), jnp.float32),
    )

    enc, dec = pl.pallas_call(
        _autoencoder_kernel,
        out_shape=out_shape,
        grid_spec=pltpu.PrefetchScalarGridSpec(
            num_scalar_prefetch=0,
            grid=(n_blocks,),
            in_specs=in_specs,
            out_specs=out_specs,
        ),
        compiler_params=pltpu.CompilerParams(
            dimension_semantics=("parallel",),
            vmem_limit_bytes=_vmem_limit_bytes(),
        ),
    )(x, *kparams)

    if b_pad != B:
        enc = enc[:B]
        dec = dec[:B]
    return enc, dec


def init_params(key):
    """Deterministic PyTorch-style (uniform +/- 1/sqrt(fan_in)) init.
    Weights stored as (in, out); biases as (1, out). All f32."""
    params = []
    dims = list(zip(ENC_DIMS[:-1], ENC_DIMS[1:])) + list(zip(DEC_DIMS[:-1], DEC_DIMS[1:]))
    keys = jax.random.split(key, 2 * len(dims))
    for idx, (fan_in, fan_out) in enumerate(dims):
        bound = 1.0 / (fan_in ** 0.5)
        w = jax.random.uniform(keys[2 * idx], (fan_in, fan_out),
                               minval=-bound, maxval=bound, dtype=jnp.float32)
        b = jax.random.uniform(keys[2 * idx + 1], (1, fan_out),
                               minval=-bound, maxval=bound, dtype=jnp.float32)
        params += [w, b]
    return tuple(params)


def prepare_kernel_params(params):
    """Repack PyTorch-layout params for the kernel: bf16 storage for the wide
    encoder layer-0 weight and the decoder-path weights, fused bottleneck."""
    (ew0, eb0, ew1, eb1, ew2, eb2, ew3, eb3,
     dw0, db0, dw1, db1, dw2, db2, dw3, db3) = params
    # Fold Linear(12,3) -> Linear(3,12) (no activation between them).
    wf = (ew3 @ dw0).astype(jnp.bfloat16)   # (12, 12)
    bfu = eb3 @ dw0 + db0                   # (1, 12) f32
    return (ew0.astype(jnp.bfloat16), eb0,
            ew1, eb1, ew2, eb2, ew3, eb3,
            wf, bfu,
            dw1.astype(jnp.bfloat16), db1,
            dw2.astype(jnp.bfloat16), db2,
            dw3.astype(jnp.bfloat16), db3)


def reference_forward(x, params):
    """Pure-JAX reference matching the PyTorch module."""
    p = list(params)
    h = x
    for li in range(4):
        w, b = p[2 * li], p[2 * li + 1]
        h = h @ w + b
        if li < 3:
            h = jnp.tanh(h)
    encoded = h
    d = encoded
    for li in range(4):
        w, b = p[8 + 2 * li], p[8 + 2 * li + 1]
        d = d @ w + b
        if li < 3:
            d = jnp.tanh(d)
    decoded = jax.nn.sigmoid(d)
    return encoded, decoded


if __name__ == "__main__":
    key = jax.random.PRNGKey(0)
    pkey, xkey = jax.random.split(key)
    params = init_params(pkey)
    kparams = prepare_kernel_params(params)

    block_m = 512
    B = 2 * block_m    # even number of grid blocks -> both v7x TensorCores run
    x = jax.random.uniform(xkey, (B, IN_DIM), dtype=jnp.float32)

    encoded, decoded = autoencoder_forward(x, kparams, block_m=block_m)
    jax.block_until_ready((encoded, decoded))

    assert encoded.shape == (B, LATENT) and decoded.shape == (B, OUT_DIM)

    # Reference with the same bf16-rounded weight storage (ew0, dw1, dw2, dw3).
    def bf16_round(a):
        return a.astype(jnp.bfloat16).astype(jnp.float32)
    ref_params = list(params)
    ref_params[0] = bf16_round(ref_params[0])     # ew0
    ref_params[10] = bf16_round(ref_params[10])   # dw1
    ref_params[12] = bf16_round(ref_params[12])   # dw2
    ref_params[14] = bf16_round(ref_params[14])   # dw3
    x_ref32 = bf16_round(x)                       # kernel casts x to bf16 in-block
    enc_expect, dec_expect = reference_forward(x_ref32, tuple(ref_params))

    # Encoder path is f32 (only x / ew0 are bf16, matched in the reference).
    assert jnp.allclose(encoded, enc_expect, atol=1e-3, rtol=1e-3), (
        float(jnp.max(jnp.abs(encoded - enc_expect))))
    # Decoder path uses bf16 operands (f32 accumulation) + fused bottleneck.
    assert jnp.allclose(decoded, dec_expect, atol=3e-2, rtol=2e-2), (
        float(jnp.max(jnp.abs(decoded - dec_expect))))

    print("KERNEL_OK")
</pallas_src>

<mosaic_0001>
module attributes {stable_mosaic.version = 11 : i64} {
  func.func @_autoencoder_kernel(%arg0: i32, %arg1: memref<512x784xf32, #tpu.memory_space<vmem>>, %arg2: memref<784x128xbf16, #tpu.memory_space<vmem>>, %arg3: memref<1x128xf32, #tpu.memory_space<vmem>>, %arg4: memref<128x64xf32, #tpu.memory_space<vmem>>, %arg5: memref<1x64xf32, #tpu.memory_space<vmem>>, %arg6: memref<64x12xf32, #tpu.memory_space<vmem>>, %arg7: memref<1x12xf32, #tpu.memory_space<vmem>>, %arg8: memref<12x3xf32, #tpu.memory_space<vmem>>, %arg9: memref<1x3xf32, #tpu.memory_space<vmem>>, %arg10: memref<12x12xbf16, #tpu.memory_space<vmem>>, %arg11: memref<1x12xf32, #tpu.memory_space<vmem>>, %arg12: memref<12x64xbf16, #tpu.memory_space<vmem>>, %arg13: memref<1x64xf32, #tpu.memory_space<vmem>>, %arg14: memref<64x128xbf16, #tpu.memory_space<vmem>>, %arg15: memref<1x128xf32, #tpu.memory_space<vmem>>, %arg16: memref<128x784xbf16, #tpu.memory_space<vmem>>, %arg17: memref<1x784xf32, #tpu.memory_space<vmem>>, %arg18: memref<512x3xf32, #tpu.memory_space<vmem>>, %arg19: memref<512x784xf32, #tpu.memory_space<vmem>>) attributes {dimension_semantics = [#tpu.dimension_semantics<parallel>], iteration_bounds = array<i64: 2>, scalar_prefetch = 0 : i64, scratch_operands = 0 : i64, tpu.core_type = #tpu.core_type<tc>, window_params = [{transform_indices = @transform_0, window_bounds = array<i64: 512, 784>}, {pipeline_mode = #tpu.pipeline_mode<synchronous>, transform_indices = @transform_1, window_bounds = array<i64: 784, 128>}, {pipeline_mode = #tpu.pipeline_mode<synchronous>, transform_indices = @transform_2, window_bounds = array<i64: 1, 128>}, {pipeline_mode = #tpu.pipeline_mode<synchronous>, transform_indices = @transform_3, window_bounds = array<i64: 128, 64>}, {pipeline_mode = #tpu.pipeline_mode<synchronous>, transform_indices = @transform_4, window_bounds = array<i64: 1, 64>}, {pipeline_mode = #tpu.pipeline_mode<synchronous>, transform_indices = @transform_5, window_bounds = array<i64: 64, 12>}, {pipeline_mode = #tpu.pipeline_mode<synchronous>, transform_indices = @transform_6, window_bounds = array<i64: 1, 12>}, {pipeline_mode = #tpu.pipeline_mode<synchronous>, transform_indices = @transform_7, window_bounds = array<i64: 12, 3>}, {pipeline_mode = #tpu.pipeline_mode<synchronous>, transform_indices = @transform_8, window_bounds = array<i64: 1, 3>}, {pipeline_mode = #tpu.pipeline_mode<synchronous>, transform_indices = @transform_9, window_bounds = array<i64: 12, 12>}, {pipeline_mode = #tpu.pipeline_mode<synchronous>, transform_indices = @transform_10, window_bounds = array<i64: 1, 12>}, {pipeline_mode = #tpu.pipeline_mode<synchronous>, transform_indices = @transform_11, window_bounds = array<i64: 12, 64>}, {pipeline_mode = #tpu.pipeline_mode<synchronous>, transform_indices = @transform_12, window_bounds = array<i64: 1, 64>}, {pipeline_mode = #tpu.pipeline_mode<synchronous>, transform_indices = @transform_13, window_bounds = array<i64: 64, 128>}, {pipeline_mode = #tpu.pipeline_mode<synchronous>, transform_indices = @transform_14, window_bounds = array<i64: 1, 128>}, {pipeline_mode = #tpu.pipeline_mode<synchronous>, transform_indices = @transform_15, window_bounds = array<i64: 128, 784>}, {pipeline_mode = #tpu.pipeline_mode<synchronous>, transform_indices = @transform_16, window_bounds = array<i64: 1, 784>}, {transform_indices = @transform_17, window_bounds = array<i64: 512, 3>}, {transform_indices = @transform_18, window_bounds = array<i64: 512, 784>}]} {
    %c0 = arith.constant 0 : index
    %c0_0 = arith.constant 0 : index
    %0 = vector.load %arg1[%c0, %c0_0] : memref<512x784xf32, #tpu.memory_space<vmem>>, vector<512x784xf32>
    %1 = arith.truncf %0 : vector<512x784xf32> to vector<512x784xbf16>
    %c0_1 = arith.constant 0 : index
    %c0_2 = arith.constant 0 : index
    %2 = vector.load %arg2[%c0_1, %c0_2] : memref<784x128xbf16, #tpu.memory_space<vmem>>, vector<784x128xbf16>
    %cst = arith.constant dense<0.000000e+00> : vector<512x128xf32>
    %3 = tpu.matmul %1, %2, %cst {dimension_numbers = #tpu.dot_dimension_numbers<[1], [0], [0], [1], [0, 0, 1, 1], [], []>} : vector<512x784xbf16>, vector<784x128xbf16>, vector<512x128xf32> -> vector<512x128xf32>
    %c0_3 = arith.constant 0 : index
    %c0_4 = arith.constant 0 : index
    %4 = vector.load %arg3[%c0_3, %c0_4] : memref<1x128xf32, #tpu.memory_space<vmem>>, vector<1x128xf32>
    %5 = vector.broadcast %4 : vector<1x128xf32> to vector<512x128xf32>
    %6 = arith.addf %3, %5 : vector<512x128xf32>
    %7 = math.tanh %6 : vector<512x128xf32>
    %c0_5 = arith.constant 0 : index
    %c0_6 = arith.constant 0 : index
    %8 = vector.load %arg4[%c0_5, %c0_6] : memref<128x64xf32, #tpu.memory_space<vmem>>, vector<128x64xf32>
    %cst_7 = arith.constant dense<0.000000e+00> : vector<512x64xf32>
    %9 = tpu.matmul %7, %8, %cst_7 {dimension_numbers = #tpu.dot_dimension_numbers<[1], [0], [0], [1], [0, 0, 1, 1], [], []>} : vector<512x128xf32>, vector<128x64xf32>, vector<512x64xf32> -> vector<512x64xf32>
    %c0_8 = arith.constant 0 : index
    %c0_9 = arith.constant 0 : index
    %10 = vector.load %arg5[%c0_8, %c0_9] : memref<1x64xf32, #tpu.memory_space<vmem>>, vector<1x64xf32>
    %11 = vector.broadcast %10 : vector<1x64xf32> to vector<512x64xf32>
    %12 = arith.addf %9, %11 : vector<512x64xf32>
    %13 = math.tanh %12 : vector<512x64xf32>
    %c0_10 = arith.constant 0 : index
    %c0_11 = arith.constant 0 : index
    %14 = vector.load %arg6[%c0_10, %c0_11] : memref<64x12xf32, #tpu.memory_space<vmem>>, vector<64x12xf32>
    %cst_12 = arith.constant dense<0.000000e+00> : vector<512x12xf32>
    %15 = tpu.matmul %13, %14, %cst_12 {dimension_numbers = #tpu.dot_dimension_numbers<[1], [0], [0], [1], [0, 0, 1, 1], [], []>} : vector<512x64xf32>, vector<64x12xf32>, vector<512x12xf32> -> vector<512x12xf32>
    %c0_13 = arith.constant 0 : index
    %c0_14 = arith.constant 0 : index
    %16 = vector.load %arg7[%c0_13, %c0_14] : memref<1x12xf32, #tpu.memory_space<vmem>>, vector<1x12xf32>
    %17 = vector.broadcast %16 : vector<1x12xf32> to vector<512x12xf32>
    %18 = arith.addf %15, %17 : vector<512x12xf32>
    %19 = math.tanh %18 : vector<512x12xf32>
    %c0_15 = arith.constant 0 : index
    %c0_16 = arith.constant 0 : index
    %20 = vector.load %arg8[%c0_15, %c0_16] : memref<12x3xf32, #tpu.memory_space<vmem>>, vector<12x3xf32>
    %cst_17 = arith.constant dense<0.000000e+00> : vector<512x3xf32>
    %21 = tpu.matmul %19, %20, %cst_17 {dimension_numbers = #tpu.dot_dimension_numbers<[1], [0], [0], [1], [0, 0, 1, 1], [], []>} : vector<512x12xf32>, vector<12x3xf32>, vector<512x3xf32> -> vector<512x3xf32>
    %c0_18 = arith.constant 0 : index
    %c0_19 = arith.constant 0 : index
    %22 = vector.load %arg9[%c0_18, %c0_19] : memref<1x3xf32, #tpu.memory_space<vmem>>, vector<1x3xf32>
    %23 = vector.broadcast %22 : vector<1x3xf32> to vector<512x3xf32>
    %24 = arith.addf %21, %23 : vector<512x3xf32>
    %c0_20 = arith.constant 0 : index
    %c0_21 = arith.constant 0 : index
    %25 = vector.load %arg18[%c0_20, %c0_21] : memref<512x3xf32, #tpu.memory_space<vmem>>, vector<512x3xf32>
    tpu.vector_store %arg18[%c0_20, %c0_21], %24 {strides = array<i32>} : memref<512x3xf32, #tpu.memory_space<vmem>>, vector<512x3xf32>,
    %26 = arith.truncf %19 : vector<512x12xf32> to vector<512x12xbf16>
    %c0_22 = arith.constant 0 : index
    %c0_23 = arith.constant 0 : index
    %27 = vector.load %arg10[%c0_22, %c0_23] : memref<12x12xbf16, #tpu.memory_space<vmem>>, vector<12x12xbf16>
    %cst_24 = arith.constant dense<0.000000e+00> : vector<512x12xf32>
    %28 = tpu.matmul %26, %27, %cst_24 {dimension_numbers = #tpu.dot_dimension_numbers<[1], [0], [0], [1], [0, 0, 1, 1], [], []>} : vector<512x12xbf16>, vector<12x12xbf16>, vector<512x12xf32> -> vector<512x12xf32>
    %c0_25 = arith.constant 0 : index
    %c0_26 = arith.constant 0 : index
    %29 = vector.load %arg11[%c0_25, %c0_26] : memref<1x12xf32, #tpu.memory_space<vmem>>, vector<1x12xf32>
    %30 = vector.broadcast %29 : vector<1x12xf32> to vector<512x12xf32>
    %31 = arith.addf %28, %30 : vector<512x12xf32>
    %32 = math.tanh %31 : vector<512x12xf32>
    %33 = arith.truncf %32 : vector<512x12xf32> to vector<512x12xbf16>
    %c0_27 = arith.constant 0 : index
    %c0_28 = arith.constant 0 : index
    %34 = vector.load %arg12[%c0_27, %c0_28] : memref<12x64xbf16, #tpu.memory_space<vmem>>, vector<12x64xbf16>
    %cst_29 = arith.constant dense<0.000000e+00> : vector<512x64xf32>
    %35 = tpu.matmul %33, %34, %cst_29 {dimension_numbers = #tpu.dot_dimension_numbers<[1], [0], [0], [1], [0, 0, 1, 1], [], []>} : vector<512x12xbf16>, vector<12x64xbf16>, vector<512x64xf32> -> vector<512x64xf32>
    %c0_30 = arith.constant 0 : index
    %c0_31 = arith.constant 0 : index
    %36 = vector.load %arg13[%c0_30, %c0_31] : memref<1x64xf32, #tpu.memory_space<vmem>>, vector<1x64xf32>
    %37 = vector.broadcast %36 : vector<1x64xf32> to vector<512x64xf32>
    %38 = arith.addf %35, %37 : vector<512x64xf32>
    %39 = math.tanh %38 : vector<512x64xf32>
    %40 = arith.truncf %39 : vector<512x64xf32> to vector<512x64xbf16>
    %c0_32 = arith.constant 0 : index
    %c0_33 = arith.constant 0 : index
    %41 = vector.load %arg14[%c0_32, %c0_33] : memref<64x128xbf16, #tpu.memory_space<vmem>>, vector<64x128xbf16>
    %cst_34 = arith.constant dense<0.000000e+00> : vector<512x128xf32>
    %42 = tpu.matmul %40, %41, %cst_34 {dimension_numbers = #tpu.dot_dimension_numbers<[1], [0], [0], [1], [0, 0, 1, 1], [], []>} : vector<512x64xbf16>, vector<64x128xbf16>, vector<512x128xf32> -> vector<512x128xf32>
    %c0_35 = arith.constant 0 : index
    %c0_36 = arith.constant 0 : index
    %43 = vector.load %arg15[%c0_35, %c0_36] : memref<1x128xf32, #tpu.memory_space<vmem>>, vector<1x128xf32>
    %44 = vector.broadcast %43 : vector<1x128xf32> to vector<512x128xf32>
    %45 = arith.addf %42, %44 : vector<512x128xf32>
    %46 = math.tanh %45 : vector<512x128xf32>
    %47 = arith.truncf %46 : vector<512x128xf32> to vector<512x128xbf16>
    %c0_37 = arith.constant 0 : index
    %c0_38 = arith.constant 0 : index
    %48 = vector.load %arg16[%c0_37, %c0_38] : memref<128x784xbf16, #tpu.memory_space<vmem>>, vector<128x784xbf16>
    %cst_39 = arith.constant dense<0.000000e+00> : vector<512x784xf32>
    %49 = tpu.matmul %47, %48, %cst_39 {dimension_numbers = #tpu.dot_dimension_numbers<[1], [0], [0], [1], [0, 0, 1, 1], [], []>} : vector<512x128xbf16>, vector<128x784xbf16>, vector<512x784xf32> -> vector<512x784xf32>
    %c0_40 = arith.constant 0 : index
    %c0_41 = arith.constant 0 : index
    %50 = vector.load %arg17[%c0_40, %c0_41] : memref<1x784xf32, #tpu.memory_space<vmem>>, vector<1x784xf32>
    %51 = vector.broadcast %50 : vector<1x784xf32> to vector<512x784xf32>
    %52 = arith.addf %49, %51 : vector<512x784xf32>
    %53 = arith.negf %52 : vector<512x784xf32>
    %54 = math.exp %53 : vector<512x784xf32>
    %cst_42 = arith.constant 1.000000e+00 : f32
    %55 = vector.broadcast %cst_42 : f32 to vector<512x784xf32>
    %56 = arith.addf %55, %54 : vector<512x784xf32>
    %57 = arith.divf %55, %56 : vector<512x784xf32>
    %c0_43 = arith.constant 0 : index
    %c0_44 = arith.constant 0 : index
    %58 = vector.load %arg19[%c0_43, %c0_44] : memref<512x784xf32, #tpu.memory_space<vmem>>, vector<512x784xf32>
    tpu.vector_store %arg19[%c0_43, %c0_44], %57 {strides = array<i32>} : memref<512x784xf32, #tpu.memory_space<vmem>>, vector<512x784xf32>,
    return
  }
  func.func @transform_0(%arg0: i32) -> (i32, i32) {
    %c0_i32 = arith.constant 0 : i32
    %c0_i32_0 = arith.constant 0 : i32
    return %arg0, %c0_i32 : i32, i32
  }
  func.func @transform_1(%arg0: i32) -> (i32, i32) {
    %c0_i32 = arith.constant 0 : i32
    %c0_i32_0 = arith.constant 0 : i32
    %c0_i32_1 = arith.constant 0 : i32
    return %c0_i32, %c0_i32_0 : i32, i32
  }
  func.func @transform_2(%arg0: i32) -> (i32, i32) {
    %c0_i32 = arith.constant 0 : i32
    %c0_i32_0 = arith.constant 0 : i32
    %c0_i32_1 = arith.constant 0 : i32
    return %c0_i32, %c0_i32_0 : i32, i32
  }
  func.func @transform_3(%arg0: i32) -> (i32, i32) {
    %c0_i32 = arith.constant 0 : i32
    %c0_i32_0 = arith.constant 0 : i32
    %c0_i32_1 = arith.constant 0 : i32
    return %c0_i32, %c0_i32_0 : i32, i32
  }
  func.func @transform_4(%arg0: i32) -> (i32, i32) {
    %c0_i32 = arith.constant 0 : i32
    %c0_i32_0 = arith.constant 0 : i32
    %c0_i32_1 = arith.constant 0 : i32
    return %c0_i32, %c0_i32_0 : i32, i32
  }
  func.func @transform_5(%arg0: i32) -> (i32, i32) {
    %c0_i32 = arith.constant 0 : i32
    %c0_i32_0 = arith.constant 0 : i32
    %c0_i32_1 = arith.constant 0 : i32
    return %c0_i32, %c0_i32_0 : i32, i32
  }
  func.func @transform_6(%arg0: i32) -> (i32, i32) {
    %c0_i32 = arith.constant 0 : i32
    %c0_i32_0 = arith.constant 0 : i32
    %c0_i32_1 = arith.constant 0 : i32
    return %c0_i32, %c0_i32_0 : i32, i32
  }
  func.func @transform_7(%arg0: i32) -> (i32, i32) {
    %c0_i32 = arith.constant 0 : i32
    %c0_i32_0 = arith.constant 0 : i32
    %c0_i32_1 = arith.constant 0 : i32
    return %c0_i32, %c0_i32_0 : i32, i32
  }
  func.func @transform_8(%arg0: i32) -> (i32, i32) {
    %c0_i32 = arith.constant 0 : i32
    %c0_i32_0 = arith.constant 0 : i32
    %c0_i32_1 = arith.constant 0 : i32
    return %c0_i32, %c0_i32_0 : i32, i32
  }
  func.func @transform_9(%arg0: i32) -> (i32, i32) {
    %c0_i32 = arith.constant 0 : i32
    %c0_i32_0 = arith.constant 0 : i32
    %c0_i32_1 = arith.constant 0 : i32
    return %c0_i32, %c0_i32_0 : i32, i32
  }
  func.func @transform_10(%arg0: i32) -> (i32, i32) {
    %c0_i32 = arith.constant 0 : i32
    %c0_i32_0 = arith.constant 0 : i32
    %c0_i32_1 = arith.constant 0 : i32
    return %c0_i32, %c0_i32_0 : i32, i32
  }
  func.func @transform_11(%arg0: i32) -> (i32, i32) {
    %c0_i32 = arith.constant 0 : i32
    %c0_i32_0 = arith.constant 0 : i32
    %c0_i32_1 = arith.constant 0 : i32
    return %c0_i32, %c0_i32_0 : i32, i32
  }
  func.func @transform_12(%arg0: i32) -> (i32, i32) {
    %c0_i32 = arith.constant 0 : i32
    %c0_i32_0 = arith.constant 0 : i32
    %c0_i32_1 = arith.constant 0 : i32
    return %c0_i32, %c0_i32_0 : i32, i32
  }
  func.func @transform_13(%arg0: i32) -> (i32, i32) {
    %c0_i32 = arith.constant 0 : i32
    %c0_i32_0 = arith.constant 0 : i32
    %c0_i32_1 = arith.constant 0 : i32
    return %c0_i32, %c0_i32_0 : i32, i32
  }
  func.func @transform_14(%arg0: i32) -> (i32, i32) {
    %c0_i32 = arith.constant 0 : i32
    %c0_i32_0 = arith.constant 0 : i32
    %c0_i32_1 = arith.constant 0 : i32
    return %c0_i32, %c0_i32_0 : i32, i32
  }
  func.func @transform_15(%arg0: i32) -> (i32, i32) {
    %c0_i32 = arith.constant 0 : i32
    %c0_i32_0 = arith.constant 0 : i32
    %c0_i32_1 = arith.constant 0 : i32
    return %c0_i32, %c0_i32_0 : i32, i32
  }
  func.func @transform_16(%arg0: i32) -> (i32, i32) {
    %c0_i32 = arith.constant 0 : i32
    %c0_i32_0 = arith.constant 0 : i32
    %c0_i32_1 = arith.constant 0 : i32
    return %c0_i32, %c0_i32_0 : i32, i32
  }
  func.func @transform_17(%arg0: i32) -> (i32, i32) {
    %c0_i32 = arith.constant 0 : i32
    %c0_i32_0 = arith.constant 0 : i32
    return %arg0, %c0_i32 : i32, i32
  }
  func.func @transform_18(%arg0: i32) -> (i32, i32) {
    %c0_i32 = arith.constant 0 : i32
    %c0_i32_0 = arith.constant 0 : i32
    return %arg0, %c0_i32 : i32, i32
  }
}

</mosaic_0001>

<bundles_post_ra>
// kernel: autoencoder_forward.1
= control target key start
LH: loop header
LB: loop body
LE: loop exit
PB: predicated region body
PF: predicated region fallthrough
CT: control target
= control target key end

     0   :  { %s16394_s27 = smov 0   ;;  %s21314_s0 = inlined_call_operand.vmem [shape: f32[1024,784], index: 0, kind: input, shape index: {}]   ;;  %s21315_s1 = inlined_call_operand.vmem [shape: bf16[784,128], index: 1, kind: input, shape index: {}]   ;;  %s21316_s2 = inlined_call_operand.vmem [shape: f32[1,128], index: 2, kind: input, shape index: {}]   ;;  %s21317_s3 = inlined_call_operand.vmem [shape: f32[128,64], index: 3, kind: input, shape index: {}]   ;;  %s21318_s4 = inlined_call_operand.vmem [shape: f32[1,64], index: 4, kind: input, shape index: {}]   ;;  %s21319_s5 = inlined_call_operand.vmem [shape: f32[64,12], index: 5, kind: input, shape index: {}]   ;;  %s21320_s6 = inlined_call_operand.vmem [shape: f32[1,12], index: 6, kind: input, shape index: {}]   ;;  %s21321_s7 = inlined_call_operand.vmem [shape: f32[12,3], index: 7, kind: input, shape index: {}]   ;;  %s21322_s8 = inlined_call_operand.vmem [shape: f32[1,3], index: 8, kind: input, shape index: {}]   ;;  %s21323_s9 = inlined_call_operand.vmem [shape: bf16[12,12], index: 9, kind: input, shape index: {}]   ;;  %s21324_s10 = inlined_call_operand.vmem [shape: f32[1,12], index: 10, kind: input, shape index: {}]   ;;  %s21325_s11 = inlined_call_operand.vmem [shape: bf16[12,64], index: 11, kind: input, shape index: {}]   ;;  %s21326_s12 = inlined_call_operand.vmem [shape: f32[1,64], index: 12, kind: input, shape index: {}]   ;;  %s21327_s13 = inlined_call_operand.vmem [shape: bf16[64,128], index: 13, kind: input, shape index: {}]   ;;  %s21328_s14 = inlined_call_operand.vmem [shape: f32[1,128], index: 14, kind: input, shape index: {}]   ;;  %s21329_s15 = inlined_call_operand.vmem [shape: bf16[128,784], index: 15, kind: input, shape index: {}]   ;;  %s21330_s16 = inlined_call_operand.vmem [shape: f32[1,784], index: 16, kind: input, shape index: {}]   ;;  %s21331_s17 = inlined_call_operand.vmem [shape: f32[1024,3], index: 17, kind: output, shape index: {0}]   ;;  %s21332_s18 = inlined_call_operand.vmem [shape: f32[1024,784], index: 18, kind: output, shape index: {1}]  }
   0x1   :  { %21377 = sst [smem:[#allocation47_spill]] %s21314_s0 }
   0x2   :  { %21378 = sst [smem:[#allocation48_spill]] %s21315_s1 }
   0x3   :  { %21379 = sst [smem:[#allocation49_spill]] %s21316_s2 }
   0x4 LB: > { %s11286_s28 = sadd.s32 4294967295, %s16295_s27   ;;  %p11290_p0 = scmp.ge.s32.totalorder %s16295_s27, 1  ;;  %s16295_s27 = sphi %s16394_s27, %s29_s27  }
   0x5   : > { %p517_p1 = scmp.lt.s32.totalorder %s16295_s27, 3 }
   0x7   : > { %p518_p2 = pnand %p11290_p0, %p517_p1 }
   0x9   : > { %521 = sbr.rel (%p518_p2) target bundleno = 3360 (0xd20), region = 88 }
  0x10   : > { %s21380_s0 = sld [smem:[#allocation48_spill]]  ;;  %v21335_v1 = vmov 0   ;;  %s11291_s19 = sshll.u32 %s11286_s28, 6  ;;  %vm1670_vm0 = vcmask 130048   ;;  %vm3474_vm1 = vcmask 523264   ;;  %vm4318_vm2 = vcmask 1043456  }
  0x11   : > { %1767 = vmatprep.subr.bf16.mxu0 %v21335_v1  ;;  %p579_p3 = scmp.lt.s32.totalorder %s11291_s19, 127  ;;  %s21381_s28 = sld [smem:[#allocation47_spill]]  ;;  %vm16298_vm3 = vmmov 1   ;;  %vm4914_vm5 = vcmask 1045504   ;;  %vm4125_vm6 = vcmask 97280   ;;  %vm4707_vm7 = vcmask 23552  }
  0x12   : > { %s21382_s22 = sld [smem:[#allocation49_spill]]  ;;  %vm13254_vm4 = vmpackc.low %vm4318_vm2, %vm16298_vm3 }
  0x13   : > { %s21741_s19 = smov (!%p579_p3, %s11291_s19), 127 }
  0x14   : > { %s13581_s2 = smul.u32 56, %s21741_s19 }
  0x16   : > { %v13592_v0 = vld [vmem:[%s21380_s0] sm:$0xff]   ;;  %v13593_v2 = vld [vmem:[%s21380_s0 + $0x8] sm:$0xff]   ;;  %v13594_v3 = vld [vmem:[%s21380_s0 + $0x10] sm:$0xff]   ;;  %s18980_s30 = scalar_lea.vmem %s21332_s18, %s13581_s2 }
  0x17   : > { %1768 = vmatpush1.bf16.msra.mxu0 %v13592_v0  ;;  %v13595_v4 = vld [vmem:[%s21380_s0 + $0x18] sm:$0xff]   ;;  %s16426_s29 = scalar_lea.vmem %s21381_s28, %s13581_s2  ;;  %v13596_v5 = vld [vmem:[%s21380_s0 + $0x20] sm:$0xff]   ;;  %v13597_v9 = vld [vmem:[%s21380_s0 + $0x28] sm:$0xff]  }
  0x18   : > { %1769 = vmatprep.subr.bf16.mxu0 %v21335_v1  ;;  %v600_v6 = vld [vmem:[%s16426_s29 + $0x8] sm:$0xff]  ;;  %v607_v7 = vld [vmem:[%s16426_s29 + $0x40] sm:$0xff]  ;;  %v13598_v10 = vld [vmem:[%s21380_s0 + $0x30] sm:$0xff]  }
  0x19   : > { %v1048_v8 = vpack.c.bf16 %v607_v7, %v600_v6  ;;  %v13599_v11 = vld [vmem:[%s21380_s0 + $0x38] sm:$0xff]   ;;  %v13600_v12 = vld [vmem:[%s21380_s0 + $0x40] sm:$0xff]   ;;  %v13601_v13 = vld [vmem:[%s21380_s0 + $0x48] sm:$0xff]  }
  0x1a   : > { %v13602_v14 = vld [vmem:[%s21380_s0 + $0x50] sm:$0xff]   ;;  %v13603_v15 = vld [vmem:[%s21380_s0 + $0x58] sm:$0xff]   ;;  %v13604_v16 = vld [vmem:[%s21380_s0 + $0x60] sm:$0xff]  }
  0x1b   : > { %1770 = vmatpush1.bf16.msra.mxu0 %v13593_v2  ;;  %1799 = vmatprep.mubr.bf16.mxu0 %v1048_v8  ;;  %v13605_v17 = vld [vmem:[%s21380_s0 + $0x68] sm:$0xff]   ;;  %v13606_v18 = vld [vmem:[%s21380_s0 + $0x70] sm:$0xff]   ;;  %v13607_v19 = vld [vmem:[%s21380_s0 + $0x78] sm:$0xff]  }
  0x1c   : > { %1771 = vmatprep.subr.bf16.mxu0 %v21335_v1  ;;  %v599_v20 = vld [vmem:[%s16426_s29] sm:$0xff]  ;;  %v606_v21 = vld [vmem:[%s16426_s29 + $0x38] sm:$0xff]  ;;  %v621_v23 = vld [vmem:[%s16426_s29 + $0xb0] sm:$0xff] }
  0x1d   : > { %v614_v22 = vld [vmem:[%s16426_s29 + $0x78] sm:$0xff]  ;;  %v13608_v24 = vld [vmem:[%s21380_s0 + $0x80] sm:$0xff]   ;;  %v1047_v25 = vpack.c.bf16 %v606_v21, %v599_v20  ;;  %v613_v27 = vld [vmem:[%s16426_s29 + $0x70] sm:$0xff] }
  0x1e   : > { %v1055_v26 = vpack.c.bf16 %v621_v23, %v614_v22  ;;  %v620_v28 = vld [vmem:[%s16426_s29 + $0xa8] sm:$0xff]  ;;  %v635_v30 = vld [vmem:[%s16426_s29 + $0x120] sm:$0xff]  ;;  %v13610_v32 = vld [vmem:[%s21380_s0 + $0x90] sm:$0xff]  }
  0x1f   : > { %1772 = vmatpush1.bf16.msra.mxu0 %v13594_v3  ;;  %v628_v29 = vld [vmem:[%s16426_s29 + $0xe8] sm:$0xff]  ;;  %v1054_v33 = vpack.c.bf16 %v620_v28, %v613_v27  ;;  %v627_v35 = vld [vmem:[%s16426_s29 + $0xe0] sm:$0xff]  ;;  %v634_v36 = vld [vmem:[%s16426_s29 + $0x118] sm:$0xff] }
  0x20   : > { %1773 = vmatprep.subr.bf16.mxu0 %v21335_v1  ;;  %v13609_v31 = vld [vmem:[%s21380_s0 + $0x88] sm:$0xff]   ;;  %v1062_v34 = vpack.c.bf16 %v635_v30, %v628_v29  ;;  %v642_v37 = vld [vmem:[%s16426_s29 + $0x158] sm:$0xff]  ;;  %v649_v38 = vld [vmem:[%s16426_s29 + $0x190] sm:$0xff]  ;;  %v1061_v41 = vpack.c.bf16 %v634_v36, %v627_v35 }
  0x21   : > { %v13611_v39 = vld [vmem:[%s21380_s0 + $0x98] sm:$0xff]   ;;  %v13612_v40 = vld [vmem:[%s21380_s0 + $0xa0] sm:$0xff]   ;;  %v1069_v42 = vpack.c.bf16 %v649_v38, %v642_v37  ;;  %v641_v43 = vld [vmem:[%s16426_s29 + $0x150] sm:$0xff] }
  0x22   : > { %v648_v44 = vld [vmem:[%s16426_s29 + $0x188] sm:$0xff]  ;;  %v663_v46 = vld [vmem:[%s16426_s29 + $0x200] sm:$0xff]  ;;  %v13614_v48 = vld [vmem:[%s21380_s0 + $0xb0] sm:$0xff]  }
  0x23   : > { %1774 = vmatpush1.bf16.msra.mxu0 %v13595_v4  ;;  %v656_v45 = vld [vmem:[%s16426_s29 + $0x1c8] sm:$0xff]  ;;  %v1068_v49 = vpack.c.bf16 %v648_v44, %v641_v43  ;;  %v655_v51 = vld [vmem:[%s16426_s29 + $0x1c0] sm:$0xff]  ;;  %v662_v52 = vld [vmem:[%s16426_s29 + $0x1f8] sm:$0xff] }
  0x24   : > { %1775 = vmatprep.subr.bf16.mxu0 %v21335_v1  ;;  %v13613_v47 = vld [vmem:[%s21380_s0 + $0xa8] sm:$0xff]   ;;  %v1076_v50 = vpack.c.bf16 %v663_v46, %v656_v45  ;;  %v670_v53 = vld [vmem:[%s16426_s29 + $0x238] sm:$0xff]  ;;  %v677_v54 = vld [vmem:[%s16426_s29 + $0x270] sm:$0xff]  ;;  %v1075_v56 = vpack.c.bf16 %v662_v52, %v655_v51 }
  0x25   : > { %v13615_v55 = vld [vmem:[%s21380_s0 + $0xb8] sm:$0xff]   ;;  %v1083_v57 = vpack.c.bf16 %v677_v54, %v670_v53  ;;  %v13616_v58 = vld [vmem:[%s21380_s0 + $0xc0] sm:$0xff]   ;;  %v669_v59 = vld [vmem:[%s16426_s29 + $0x230] sm:$0xff] }
  0x26   : > { %v676_v60 = vld [vmem:[%s16426_s29 + $0x268] sm:$0xff]  ;;  %v691_v63 = vld [vmem:[%s16426_s29 + $0x2e0] sm:$0xff]  ;;  %v13618_v3 = vld [vmem:[%s21380_s0 + $0xd0] sm:$0xff]  }
  0x27   : > { %1776 = vmatpush1.bf16.msra.mxu0 %v13596_v5  ;;  %v13617_v61 = vld [vmem:[%s21380_s0 + $0xc8] sm:$0xff]   ;;  %v1082_v0 = vpack.c.bf16 %v676_v60, %v669_v59  ;;  %v683_v4 = vld [vmem:[%s16426_s29 + $0x2a0] sm:$0xff]  ;;  %v690_v5 = vld [vmem:[%s16426_s29 + $0x2d8] sm:$0xff] }
  0x28   : > { %1777 = vmatprep.subr.bf16.mxu0 %v21335_v1  ;;  %v684_v62 = vld [vmem:[%s16426_s29 + $0x2a8] sm:$0xff]  ;;  %v698_v6 = vld [vmem:[%s16426_s29 + $0x318] sm:$0xff]  ;;  %v705_v7 = vld [vmem:[%s16426_s29 + $0x350] sm:$0xff]  ;;  %v1089_v8 = vpack.c.bf16 %v690_v5, %v683_v4 }
  0x29   : > { %v1090_v2 = vpack.c.bf16 %v691_v63, %v684_v62  ;;  %v733_v20 = vld [vmem:[%s16426_s29 + $0x430] sm:$0xff]  ;;  %v13620_v23 = vld [vmem:[%s21380_s0 + $0xe0] sm:$0xff]   ;;  %v13621_v36 = vld [vmem:[%s21380_s0 + $0xe8] sm:$0xff]  }
  0x2a   : > { %v747_v27 = vld [vmem:[%s16426_s29 + $0x4a0] sm:$0xff]  ;;  %v753_v37 = vld [vmem:[%s16426_s29 + $0x4d0] sm:$0xff]  ;;  %v760_v38 = vld [vmem:[%s16426_s29 + $0x508] sm:$0xff] }
  0x2b   : > { %1778 = vmatpush1.bf16.msra.mxu0 %v13597_v9  ;;  %v1097_v9 = vpack.c.bf16 %v705_v7, %v698_v6  ;;  %v739_v30 = vld [vmem:[%s16426_s29 + $0x460] sm:$0xff]  ;;  %v774_v44 = vld [vmem:[%s16426_s29 + $0x578] sm:$0xff]  ;;  %v789_v46 = vld [vmem:[%s16426_s29 + $0x5f0] sm:$0xff] }
  0x2c   : > { %1779 = vmatprep.subr.bf16.mxu0 %v21335_v1  ;;  %v767_v43 = vld [vmem:[%s16426_s29 + $0x540] sm:$0xff]  ;;  %v782_v45 = vld [vmem:[%s16426_s29 + $0x5b8] sm:$0xff]  ;;  %v788_v51 = vld [vmem:[%s16426_s29 + $0x5e8] sm:$0xff] }
  0x2d   : > { %v796_v52 = vld [vmem:[%s16426_s29 + $0x628] sm:$0xff]  ;;  %v803_v53 = vld [vmem:[%s16426_s29 + $0x660] sm:$0xff]  ;;  %v817_v59 = vld [vmem:[%s16426_s29 + $0x6d0] sm:$0xff] }
  0x2e   : > { %v13623_v62 = vld [vmem:[%s21380_s0 + $0xf8] sm:$0xff]   ;;  %v809_v63 = vld [vmem:[%s16426_s29 + $0x690] sm:$0xff]  ;;  %v823_v6 = vld [vmem:[%s16426_s29 + $0x700] sm:$0xff] }
  0x2f   : > { %1780 = vmatpush1.bf16.msra.mxu0 %v13598_v10  ;;  %v13619_v10 = vld [vmem:[%s21380_s0 + $0xd8] sm:$0xff]  }
  0x30   : > { %1781 = vmatprep.subr.bf16.mxu0 %v21335_v1  ;;  %v830_v7 = vld [vmem:[%s16426_s29 + $0x738] sm:$0xff] }
  0x33   : > { %1782 = vmatpush1.bf16.msra.mxu0 %v13599_v11  ;;  %v697_v11 = vld [vmem:[%s16426_s29 + $0x310] sm:$0xff] }
  0x34   : > { %1783 = vmatprep.subr.bf16.mxu0 %v21335_v1 }
  0x37   : > { %1784 = vmatpush1.bf16.msra.mxu0 %v13600_v12  ;;  %v704_v12 = vld [vmem:[%s16426_s29 + $0x348] sm:$0xff] }
  0x38   : > { %1785 = vmatprep.subr.bf16.mxu0 %v21335_v1 }
  0x3b   : > { %1786 = vmatpush1.bf16.msra.mxu0 %v13601_v13  ;;  %v712_v13 = vld [vmem:[%s16426_s29 + $0x388] sm:$0xff] }
  0x3c   : > { %1787 = vmatprep.subr.bf16.mxu0 %v21335_v1 }
  0x3f   : > { %1788 = vmatpush1.bf16.msra.mxu0 %v13602_v14  ;;  %v719_v14 = vld [vmem:[%s16426_s29 + $0x3c0] sm:$0xff] }
  0x40   : > { %1789 = vmatprep.subr.bf16.mxu0 %v21335_v1 }
  0x43   : > { %1790 = vmatpush1.bf16.msra.mxu0 %v13603_v15  ;;  %v1096_v15 = vpack.c.bf16 %v704_v12, %v697_v11  ;;  %v837_v12 = vld [vmem:[%s16426_s29 + $0x770] sm:$0xff] }
  0x44   : > { %1791 = vmatprep.subr.bf16.mxu0 %v21335_v1 }
  0x47   : > { %1792 = vmatpush1.bf16.msra.mxu0 %v13604_v16  ;;  %v1104_v16 = vpack.c.bf16 %v719_v14, %v712_v13  ;;  %v844_v13 = vld [vmem:[%s16426_s29 + $0x7a8] sm:$0xff] }
  0x48   : > { %1793 = vmatprep.subr.bf16.mxu0 %v21335_v1  ;;  %v852_v14 = vld [vmem:[%s16426_s29 + $0x7e8] sm:$0xff] }
  0x4b   : > { %1794 = vmatpush1.bf16.msra.mxu0 %v13605_v17  ;;  %v711_v17 = vld [vmem:[%s16426_s29 + $0x380] sm:$0xff] }
  0x4c   : > { %1795 = vmatprep.subr.bf16.mxu0 %v21335_v1 }
  0x4f   : > { %1796 = vmatpush1.bf16.msra.mxu0 %v13606_v18  ;;  %v718_v18 = vld [vmem:[%s16426_s29 + $0x3b8] sm:$0xff] }
  0x50   : > { %1797 = vmatprep.subr.bf16.mxu0 %v21335_v1  ;;  %v1103_v21 = vpack.c.bf16 %v718_v18, %v711_v17  ;;  %v851_v18 = vld [vmem:[%s16426_s29 + $0x7e0] sm:$0xff] }
  0x53   : > { %1798 = vmatpush1.bf16.msra.mxu0 %v13607_v19  ;;  %v726_v19 = vld [vmem:[%s16426_s29 + $0x3f8] sm:$0xff] }
  0x54   : > { %2056 = vmatprep.subr.bf16.mxu0 %v21335_v1  ;;  %v1111_v22 = vpack.c.bf16 %v733_v20, %v726_v19  ;;  %v858_v19 = vld [vmem:[%s16426_s29 + $0x818] sm:$0xff] }
  0x55   : > { %v866_v20 = vld [vmem:[%s16426_s29 + $0x858] sm:$0xff] }
  0x56   : > { %1800 = vmatmul.mubr.bf16.vlgmr.msra.gmra.mrb[0].mxu0 %v1047_v25  ;;  %v732_v25 = vld [vmem:[%s16426_s29 + $0x428] sm:$0xff] }
  0x57   : > { %2057 = vmatpush1.bf16.msra.mxu0 %v13608_v24  ;;  %1807 = vmatprep.mubr.bf16.mxu0 %v1055_v26  ;;  %v725_v24 = vld [vmem:[%s16426_s29 + $0x3f0] sm:$0xff]  ;;  %v740_v26 = vld [vmem:[%s16426_s29 + $0x468] sm:$0xff] }
  0x58   : > { %2058 = vmatprep.subr.bf16.mxu0 %v21335_v1  ;;  %v1110_v28 = vpack.c.bf16 %v732_v25, %v725_v24  ;;  %v1118_v29 = vpack.c.bf16 %v747_v27, %v740_v26  ;;  %v865_v24 = vld [vmem:[%s16426_s29 + $0x850] sm:$0xff]  ;;  %v872_v25 = vld [vmem:[%s16426_s29 + $0x888] sm:$0xff]  ;;  %v887_v27 = vld [vmem:[%s16426_s29 + $0x900] sm:$0xff] }
  0x59   : > { %v880_v26 = vld [vmem:[%s16426_s29 + $0x8c8] sm:$0xff] }
  0x5b   : > { %2059 = vmatpush1.bf16.msra.mxu0 %v13609_v31  ;;  %v746_v31 = vld [vmem:[%s16426_s29 + $0x498] sm:$0xff] }
  0x5c   : > { %2060 = vmatprep.subr.bf16.mxu0 %v21335_v1 }
  0x5e   : > { %1808 = vmatmul.mubr.bf16.gmra.mrb[4].mxu0 %v1054_v33  ;;  %v761_v33 = vld [vmem:[%s16426_s29 + $0x510] sm:$0xff] }
  0x5f   : > { %1815 = vmatprep.mubr.bf16.mxu0 %v1062_v34  ;;  %2061 = vmatpush1.bf16.msra.mxu0 %v13610_v32  ;;  %v754_v32 = vld [vmem:[%s16426_s29 + $0x4d8] sm:$0xff]  ;;  %v1117_v34 = vpack.c.bf16 %v746_v31, %v739_v30  ;;  %v879_v30 = vld [vmem:[%s16426_s29 + $0x8c0] sm:$0xff] }
  0x60   : > { %2062 = vmatprep.subr.bf16.mxu0 %v21335_v1  ;;  %v1125_v35 = vpack.c.bf16 %v761_v33, %v754_v32  ;;  %v886_v31 = vld [vmem:[%s16426_s29 + $0x8f8] sm:$0xff]  ;;  %v901_v33 = vld [vmem:[%s16426_s29 + $0x970] sm:$0xff] }
  0x61   : > { %v894_v32 = vld [vmem:[%s16426_s29 + $0x938] sm:$0xff] }
  0x63   : > { %2063 = vmatpush1.bf16.msra.mxu0 %v13611_v39  ;;  %v768_v39 = vld [vmem:[%s16426_s29 + $0x548] sm:$0xff] }
  0x64   : > { %2064 = vmatprep.subr.bf16.mxu0 %v21335_v1 }
  0x66   : > { %1816 = vmatmul.mubr.bf16.gmra.mrb[8].mxu0 %v1061_v41  ;;  %v1124_v41 = vpack.c.bf16 %v760_v38, %v753_v37  ;;  %v900_v37 = vld [vmem:[%s16426_s29 + $0x968] sm:$0xff] }
  0x67   : > { %1823 = vmatprep.mubr.bf16.mxu0 %v1069_v42  ;;  %2065 = vmatpush1.bf16.msra.mxu0 %v13612_v40  ;;  %v775_v40 = vld [vmem:[%s16426_s29 + $0x580] sm:$0xff]  ;;  %v908_v38 = vld [vmem:[%s16426_s29 + $0x9a8] sm:$0xff] }
  0x68   : > { %2066 = vmatprep.subr.bf16.mxu0 %v21335_v1  ;;  %v1132_v42 = vpack.c.bf16 %v775_v40, %v768_v39  ;;  %v915_v39 = vld [vmem:[%s16426_s29 + $0x9e0] sm:$0xff] }
  0x6b   : > { %2067 = vmatpush1.bf16.msra.mxu0 %v13613_v47  ;;  %v1131_v47 = vpack.c.bf16 %v774_v44, %v767_v43  ;;  %v914_v43 = vld [vmem:[%s16426_s29 + $0x9d8] sm:$0xff] }
  0x6c   : > { %2068 = vmatprep.subr.bf16.mxu0 %v21335_v1  ;;  %v922_v44 = vld [vmem:[%s16426_s29 + $0xa18] sm:$0xff] }
  0x6e   : > { %1824 = vmatmul.mubr.bf16.gmra.mrb[12].mxu0 %v1068_v49  ;;  %v13622_v49 = vld [vmem:[%s21380_s0 + $0xf0] sm:$0xff]  }
  0x6f   : > { %1831 = vmatprep.mubr.bf16.mxu0 %v1076_v50  ;;  %2069 = vmatpush1.bf16.msra.mxu0 %v13614_v48  ;;  %v1139_v48 = vpack.c.bf16 %v789_v46, %v782_v45  ;;  %v781_v50 = vld [vmem:[%s16426_s29 + $0x5b0] sm:$0xff] }
  0x70   : > { %2070 = vmatprep.subr.bf16.mxu0 %v21335_v1  ;;  %v1138_v54 = vpack.c.bf16 %v788_v51, %v781_v50  ;;  %v929_v45 = vld [vmem:[%s16426_s29 + $0xa50] sm:$0xff]  ;;  %v936_v50 = vld [vmem:[%s16426_s29 + $0xa88] sm:$0xff]  ;;  %v943_v51 = vld [vmem:[%s16426_s29 + $0xac0] sm:$0xff] }
  0x73   : > { %2071 = vmatpush1.bf16.msra.mxu0 %v13615_v55  ;;  %v1146_v55 = vpack.c.bf16 %v803_v53, %v796_v52  ;;  %v1216_v53 = vpack.c.bf16 %v943_v51, %v936_v50  ;;  %v637_v50 = vld [vmem:[%s16426_s29 + $0x130] sm:$0xff] }
  0x74   : > { %2072 = vmatprep.subr.bf16.mxu0 %v21335_v1 }
  0x76   : > { %1832 = vmatmul.mubr.bf16.gmra.mrb[16].mxu0 %v1075_v56  ;;  %v795_v56 = vld [vmem:[%s16426_s29 + $0x620] sm:$0xff] }
  0x77   : > { %1839 = vmatprep.mubr.bf16.mxu0 %v1083_v57  ;;  %2073 = vmatpush1.bf16.msra.mxu0 %v13616_v58  ;;  %v802_v57 = vld [vmem:[%s16426_s29 + $0x658] sm:$0xff] }
  0x78   : > { %2074 = vmatprep.subr.bf16.mxu0 %v21335_v1  ;;  %v810_v58 = vld [vmem:[%s16426_s29 + $0x698] sm:$0xff]  ;;  %v1145_v60 = vpack.c.bf16 %v802_v57, %v795_v56  ;;  %v957_v57 = vld [vmem:[%s16426_s29 + $0xb30] sm:$0xff] }
  0x79   : > { %v950_v56 = vld [vmem:[%s16426_s29 + $0xaf8] sm:$0xff] }
  0x7b   : > { %2075 = vmatpush1.bf16.msra.mxu0 %v13617_v61  ;;  %v1153_v61 = vpack.c.bf16 %v817_v59, %v810_v58  ;;  %v1223_v59 = vpack.c.bf16 %v957_v57, %v950_v56  ;;  %v13627_v56 = vld [vmem:[%s21380_s0 + $0x118] sm:$0xff]   ;;  %v644_v57 = vld [vmem:[%s16426_s29 + $0x168] sm:$0xff] }
  0x7c   : > { %2076 = vmatprep.subr.bf16.mxu0 %v21335_v1 }
  0x7e   : > { %1840 = vmatmul.mubr.bf16.gmra.mrb[20].mxu0 %v1082_v0  ;;  %v816_v0 = vld [vmem:[%s16426_s29 + $0x6c8] sm:$0xff] }
  0x7f   : > { %1847 = vmatprep.mubr.bf16.mxu0 %v1090_v2  ;;  %2077 = vmatpush1.bf16.msra.mxu0 %v13618_v3  ;;  %v824_v2 = vld [vmem:[%s16426_s29 + $0x708] sm:$0xff]  ;;  %v831_v3 = vld [vmem:[%s16426_s29 + $0x740] sm:$0xff]  ;;  %v1152_v4 = vpack.c.bf16 %v816_v0, %v809_v63 }
  0x80   : > { %2078 = vmatprep.subr.bf16.mxu0 %v21335_v1  ;;  %v1160_v5 = vpack.c.bf16 %v831_v3, %v824_v2  ;;  %v971_v63 = vld [vmem:[%s16426_s29 + $0xba0] sm:$0xff] }
  0x81   : > { %v963_v3 = vld [vmem:[%s16426_s29 + $0xb60] sm:$0xff] }
  0x83   : > { %2079 = vmatpush1.bf16.msra.mxu0 %v13619_v10  ;;  %v1159_v10 = vpack.c.bf16 %v830_v7, %v823_v6  ;;  %v985_v6 = vld [vmem:[%s16426_s29 + $0xc10] sm:$0xff] }
  0x84   : > { %2080 = vmatprep.subr.bf16.mxu0 %v21335_v1 }
  0x86   : > { %1848 = vmatmul.mubr.bf16.gmra.mrb[24].mxu0 %v1089_v8  ;;  %v838_v8 = vld [vmem:[%s16426_s29 + $0x778] sm:$0xff] }
  0x87   : > { %1855 = vmatprep.mubr.bf16.mxu0 %v1097_v9  ;;  %2081 = vmatpush1.bf16.msra.mxu0 %v13620_v23  ;;  %v845_v9 = vld [vmem:[%s16426_s29 + $0x7b0] sm:$0xff] }
  0x88   : > { %2082 = vmatprep.subr.bf16.mxu0 %v21335_v1  ;;  %v1167_v11 = vpack.c.bf16 %v845_v9, %v838_v8  ;;  %v977_v9 = vld [vmem:[%s16426_s29 + $0xbd0] sm:$0xff] }
  0x8b   : > { %2083 = vmatpush1.bf16.msra.mxu0 %v13621_v36  ;;  %v893_v36 = vld [vmem:[%s16426_s29 + $0x930] sm:$0xff] }
  0x8c   : > { %2084 = vmatprep.subr.bf16.mxu0 %v21335_v1  ;;  %v1194_v40 = vpack.c.bf16 %v900_v37, %v893_v36  ;;  %v609_v36 = vld [vmem:[%s16426_s29 + $0x50] sm:$0xff] }
  0x8e   : > { %1856 = vmatmul.mubr.bf16.gmra.mrb[28].mxu0 %v1096_v15  ;;  %v859_v15 = vld [vmem:[%s16426_s29 + $0x820] sm:$0xff] }
  0x8f   : > { %1863 = vmatprep.mubr.bf16.mxu0 %v1104_v16  ;;  %2085 = vmatpush1.bf16.msra.mxu0 %v13622_v49  ;;  %v1166_v16 = vpack.c.bf16 %v844_v13, %v837_v12  ;;  %v1174_v17 = vpack.c.bf16 %v859_v15, %v852_v14  ;;  %v928_v49 = vld [vmem:[%s16426_s29 + $0xa48] sm:$0xff]  ;;  %v999_v12 = vld [vmem:[%s16426_s29 + $0xc80] sm:$0xff] }
  0x90   : > { %2086 = vmatprep.subr.bf16.mxu0 %v21335_v1  ;;  %v991_v15 = vld [vmem:[%s16426_s29 + $0xc40] sm:$0xff] }
  0x93   : > { %2087 = vmatpush1.bf16.msra.mxu0 %v13623_v62  ;;  %v964_v62 = vld [vmem:[%s16426_s29 + $0xb68] sm:$0xff] }
  0x94   : > { %2345 = vmatprep.subr.bf16.mxu0 %v21335_v1  ;;  %v1230_v2 = vpack.c.bf16 %v971_v63, %v964_v62  ;;  %v643_v62 = vld [vmem:[%s16426_s29 + $0x160] sm:$0xff]  ;;  %v650_v63 = vld [vmem:[%s16426_s29 + $0x198] sm:$0xff] }
  0x96   : > { %1864 = vmatmul.mubr.bf16.gmra.mrb[32].mxu0 %v1103_v21  ;;  %v873_v21 = vld [vmem:[%s16426_s29 + $0x890] sm:$0xff] }
  0x97   : > { %1871 = vmatprep.mubr.bf16.mxu0 %v1111_v22  ;;  %v1173_v22 = vpack.c.bf16 %v858_v19, %v851_v18  ;;  %v1181_v23 = vpack.c.bf16 %v873_v21, %v866_v20  ;;  %v1013_v18 = vld [vmem:[%s16426_s29 + $0xcf0] sm:$0xff] }
  0x98   : > { %v1005_v21 = vld [vmem:[%s16426_s29 + $0xcb0] sm:$0xff] }
  0x9e   : > { %1872 = vmatmul.mubr.bf16.gmra.mrb[36].mxu0 %v1110_v28  ;;  %v1180_v28 = vpack.c.bf16 %v872_v25, %v865_v24  ;;  %v1027_v24 = vld [vmem:[%s16426_s29 + $0xd60] sm:$0xff] }
  0x9f   : > { %1879 = vmatprep.mubr.bf16.mxu0 %v1118_v29  ;;  %v1188_v29 = vpack.c.bf16 %v887_v27, %v880_v26  ;;  %v1019_v27 = vld [vmem:[%s16426_s29 + $0xd20] sm:$0xff] }
  0xa6   : > { %1880 = vmatmul.mubr.bf16.gmra.mrb[40].mxu0 %v1117_v34  ;;  %v1187_v34 = vpack.c.bf16 %v886_v31, %v879_v30  ;;  %v1041_v30 = vld [vmem:[%s16426_s29 + $0xdd0] sm:$0xff] }
  0xa7   : > { %1887 = vmatprep.mubr.bf16.mxu0 %v1125_v35  ;;  %v1195_v35 = vpack.c.bf16 %v901_v33, %v894_v32  ;;  %v1033_v33 = vld [vmem:[%s16426_s29 + $0xd90] sm:$0xff] }
  0xae   : > { %1888 = vmatmul.mubr.bf16.gmra.mrb[44].mxu0 %v1124_v41  ;;  %v1202_v41 = vpack.c.bf16 %v915_v39, %v908_v38  ;;  %v601_v39 = vld [vmem:[%s16426_s29 + $0x10] sm:$0xff] }
  0xaf   : > { %1895 = vmatprep.mubr.bf16.mxu0 %v1132_v42  ;;  %v907_v42 = vld [vmem:[%s16426_s29 + $0x9a0] sm:$0xff] }
  0xb0   : > { %v1201_v46 = vpack.c.bf16 %v914_v43, %v907_v42  ;;  %v623_v42 = vld [vmem:[%s16426_s29 + $0xc0] sm:$0xff] }
  0xb6   : > { %1896 = vmatmul.mubr.bf16.gmra.mrb[48].mxu0 %v1131_v47  ;;  %v1209_v47 = vpack.c.bf16 %v929_v45, %v922_v44  ;;  %v13624_v44 = vld [vmem:[%s21380_s0 + $0x100] sm:$0xff]  }
  0xb7   : > { %1903 = vmatprep.mubr.bf16.mxu0 %v1139_v48  ;;  %v921_v48 = vld [vmem:[%s16426_s29 + $0xa10] sm:$0xff] }
  0xb8   : > { %v1208_v52 = vpack.c.bf16 %v928_v49, %v921_v48  ;;  %v13625_v48 = vld [vmem:[%s21380_s0 + $0x108] sm:$0xff]   ;;  %v630_v49 = vld [vmem:[%s16426_s29 + $0xf8] sm:$0xff] }
  0xbe   : > { %1904 = vmatmul.mubr.bf16.gmra.mrb[52].mxu0 %v1138_v54  ;;  %v935_v54 = vld [vmem:[%s16426_s29 + $0xa80] sm:$0xff] }
  0xbf   : > { %1911 = vmatprep.mubr.bf16.mxu0 %v1146_v55  ;;  %v942_v55 = vld [vmem:[%s16426_s29 + $0xab8] sm:$0xff] }
  0xc0   : > { %v1215_v58 = vpack.c.bf16 %v942_v55, %v935_v54  ;;  %v629_v54 = vld [vmem:[%s16426_s29 + $0xf0] sm:$0xff]  ;;  %v636_v55 = vld [vmem:[%s16426_s29 + $0x128] sm:$0xff] }
  0xc6   : > { %1912 = vmatmul.mubr.bf16.gmra.mrb[56].mxu0 %v1145_v60  ;;  %v949_v60 = vld [vmem:[%s16426_s29 + $0xaf0] sm:$0xff] }
  0xc7   : > { %1919 = vmatprep.mubr.bf16.mxu0 %v1153_v61  ;;  %v956_v61 = vld [vmem:[%s16426_s29 + $0xb28] sm:$0xff] }
  0xc8   : > { %v1222_v0 = vpack.c.bf16 %v956_v61, %v949_v60  ;;  %v13628_v61 = vld [vmem:[%s21380_s0 + $0x120] sm:$0xff]  }
  0xce   : > { %1920 = vmatmul.mubr.bf16.gmra.mrb[60].mxu0 %v1152_v4  ;;  %v970_v4 = vld [vmem:[%s16426_s29 + $0xb98] sm:$0xff] }
  0xcf   : > { %1927 = vmatprep.mubr.bf16.mxu0 %v1160_v5  ;;  %v978_v5 = vld [vmem:[%s16426_s29 + $0xbd8] sm:$0xff]  ;;  %v1229_v7 = vpack.c.bf16 %v970_v4, %v963_v3  ;;  %v665_v3 = vld [vmem:[%s16426_s29 + $0x210] sm:$0xff]  ;;  %v1070_v4 = vpack.c.bf16 %v650_v63, %v643_v62  ;;  %v776_v63 = vld [vmem:[%s16426_s29 + $0x588] sm:$0xff] }
  0xd0   : > { %v1237_v8 = vpack.c.bf16 %v985_v6, %v978_v5  ;;  %v13630_v6 = vld [vmem:[%s21380_s0 + $0x130] sm:$0xff]  }
  0xd1   : > { %v769_v62 = vld [vmem:[%s16426_s29 + $0x550] sm:$0xff] }
  0xd6   : > { %1928 = vmatmul.mubr.bf16.gmra.mrb[64].mxu0 %v1159_v10  ;;  %v984_v10 = vld [vmem:[%s16426_s29 + $0xc08] sm:$0xff] }
  0xd7   : > { %1935 = vmatprep.mubr.bf16.mxu0 %v1167_v11  ;;  %v992_v11 = vld [vmem:[%s16426_s29 + $0xc48] sm:$0xff]  ;;  %v1236_v13 = vpack.c.bf16 %v984_v10, %v977_v9  ;;  %v13631_v9 = vld [vmem:[%s21380_s0 + $0x138] sm:$0xff]  }
  0xd8   : > { %v1244_v14 = vpack.c.bf16 %v999_v12, %v992_v11  ;;  %v672_v10 = vld [vmem:[%s16426_s29 + $0x248] sm:$0xff]  ;;  %v679_v11 = vld [vmem:[%s16426_s29 + $0x280] sm:$0xff] }
  0xde   : > { %1936 = vmatmul.mubr.bf16.gmra.mrb[68].mxu0 %v1166_v16  ;;  %v998_v16 = vld [vmem:[%s16426_s29 + $0xc78] sm:$0xff] }
  0xdf   : > { %1943 = vmatprep.mubr.bf16.mxu0 %v1174_v17  ;;  %v1006_v17 = vld [vmem:[%s16426_s29 + $0xcb8] sm:$0xff]  ;;  %v1243_v19 = vpack.c.bf16 %v998_v16, %v991_v15  ;;  %v671_v15 = vld [vmem:[%s16426_s29 + $0x240] sm:$0xff] }
  0xe0   : > { %v1251_v20 = vpack.c.bf16 %v1013_v18, %v1006_v17  ;;  %v678_v16 = vld [vmem:[%s16426_s29 + $0x278] sm:$0xff]  ;;  %v13633_v17 = vld [vmem:[%s21380_s0 + $0x148] sm:$0xff]  }
  0xe1   : > { %v686_v18 = vld [vmem:[%s16426_s29 + $0x2b8] sm:$0xff] }
  0xe6   : > { %1944 = vmatmul.mubr.bf16.gmra.mrb[72].mxu0 %v1173_v22  ;;  %v1012_v22 = vld [vmem:[%s16426_s29 + $0xce8] sm:$0xff] }
  0xe7   : > { %1951 = vmatprep.mubr.bf16.mxu0 %v1181_v23  ;;  %v1020_v23 = vld [vmem:[%s16426_s29 + $0xd28] sm:$0xff]  ;;  %v1250_v25 = vpack.c.bf16 %v1012_v22, %v1005_v21  ;;  %v13634_v22 = vld [vmem:[%s21380_s0 + $0x150] sm:$0xff]  }
  0xe8   : > { %v1258_v26 = vpack.c.bf16 %v1027_v24, %v1020_v23  ;;  %v685_v23 = vld [vmem:[%s16426_s29 + $0x2b0] sm:$0xff]  ;;  %v692_v24 = vld [vmem:[%s16426_s29 + $0x2e8] sm:$0xff] }
  0xee   : > { %1952 = vmatmul.mubr.bf16.gmra.mrb[76].mxu0 %v1180_v28  ;;  %v1026_v28 = vld [vmem:[%s16426_s29 + $0xd58] sm:$0xff] }
  0xef   : > { %1959 = vmatprep.mubr.bf16.mxu0 %v1188_v29  ;;  %v1034_v29 = vld [vmem:[%s16426_s29 + $0xd98] sm:$0xff]  ;;  %v1257_v31 = vpack.c.bf16 %v1026_v28, %v1019_v27  ;;  %v1091_v27 = vpack.c.bf16 %v692_v24, %v685_v23 }
  0xf0   : > { %v1265_v32 = vpack.c.bf16 %v1041_v30, %v1034_v29  ;;  %v13635_v29 = vld [vmem:[%s21380_s0 + $0x158] sm:$0xff]   ;;  %v699_v30 = vld [vmem:[%s16426_s29 + $0x320] sm:$0xff] }
  0xf6   : > { %1960 = vmatmul.mubr.bf16.gmra.mrb[80].mxu0 %v1187_v34  ;;  %v1040_v34 = vld [vmem:[%s16426_s29 + $0xdc8] sm:$0xff] }
  0xf7   : > { %1967 = vmatprep.mubr.bf16.mxu0 %v1195_v35  ;;  %v602_v35 = vld [vmem:[%s16426_s29 + $0x18] sm:$0xff]  ;;  %v1264_v37 = vpack.c.bf16 %v1040_v34, %v1033_v33  ;;  %v721_v33 = vld [vmem:[%s16426_s29 + $0x3d0] sm:$0xff] }
  0xf8   : > { %v1050_v38 = vpack.c.bf16 %v609_v36, %v602_v35  ;;  %v713_v36 = vld [vmem:[%s16426_s29 + $0x390] sm:$0xff] }
  0xfe   : > { %1968 = vmatmul.mubr.bf16.gmra.mrb[84].mxu0 %v1194_v40  ;;  %v608_v40 = vld [vmem:[%s16426_s29 + $0x48] sm:$0xff] }
  0xff   : > { %1975 = vmatprep.mubr.bf16.mxu0 %v1202_v41  ;;  %v616_v41 = vld [vmem:[%s16426_s29 + $0x88] sm:$0xff]  ;;  %v1049_v43 = vpack.c.bf16 %v608_v40, %v601_v39  ;;  %v735_v39 = vld [vmem:[%s16426_s29 + $0x440] sm:$0xff] }
 0x100   : > { %v1057_v45 = vpack.c.bf16 %v623_v42, %v616_v41  ;;  %v13636_v42 = vld [vmem:[%s21380_s0 + $0x160] sm:$0xff]  }
 0x106   : > { %1976 = vmatmul.mubr.bf16.gmra.mrb[88].mxu0 %v1201_v46  ;;  %v615_v46 = vld [vmem:[%s16426_s29 + $0x80] sm:$0xff] }
 0x107   : > { %1983 = vmatprep.mubr.bf16.mxu0 %v1209_v47  ;;  %v622_v47 = vld [vmem:[%s16426_s29 + $0xb8] sm:$0xff] }
 0x108   : > { %v1056_v51 = vpack.c.bf16 %v622_v47, %v615_v46  ;;  %v749_v46 = vld [vmem:[%s16426_s29 + $0x4b0] sm:$0xff] }
 0x10e   : > { %1984 = vmatmul.mubr.bf16.gmra.mrb[92].mxu0 %v1208_v52  ;;  %v1064_v52 = vpack.c.bf16 %v637_v50, %v630_v49  ;;  %v741_v49 = vld [vmem:[%s16426_s29 + $0x470] sm:$0xff]  ;;  %v748_v50 = vld [vmem:[%s16426_s29 + $0x4a8] sm:$0xff] }
 0x10f   : > { %1991 = vmatprep.mubr.bf16.mxu0 %v1216_v53  ;;  %v13626_v53 = vld [vmem:[%s21380_s0 + $0x110] sm:$0xff]  }
 0x116   : > { %1992 = vmatmul.mubr.bf16.gmra.mrb[96].mxu0 %v1215_v58  ;;  %v651_v58 = vld [vmem:[%s16426_s29 + $0x1a0] sm:$0xff] }
 0x117   : > { %1999 = vmatprep.mubr.bf16.mxu0 %v1223_v59  ;;  %v1063_v59 = vpack.c.bf16 %v636_v55, %v629_v54  ;;  %v1071_v60 = vpack.c.bf16 %v651_v58, %v644_v57  ;;  %v13637_v55 = vld [vmem:[%s21380_s0 + $0x168] sm:$0xff]   ;;  %v762_v57 = vld [vmem:[%s16426_s29 + $0x518] sm:$0xff] }
 0x118   : > { %v770_v58 = vld [vmem:[%s16426_s29 + $0x558] sm:$0xff] }
 0x11e   : > { %2000 = vmatmul.mubr.bf16.gmra.mrb[100].mxu0 %v1222_v0  ;;  %v13629_v0 = vld [vmem:[%s21380_s0 + $0x128] sm:$0xff]  }
 0x11f   : > { %2007 = vmatprep.mubr.bf16.mxu0 %v1230_v2  ;;  %v658_v2 = vld [vmem:[%s16426_s29 + $0x1d8] sm:$0xff] }
 0x120   : > { %v1078_v5 = vpack.c.bf16 %v665_v3, %v658_v2  ;;  %v791_v2 = vld [vmem:[%s16426_s29 + $0x600] sm:$0xff]  ;;  %v1133_v3 = vpack.c.bf16 %v776_v63, %v769_v62  ;;  %v881_v62 = vld [vmem:[%s16426_s29 + $0x8d0] sm:$0xff]  ;;  %v888_v63 = vld [vmem:[%s16426_s29 + $0x908] sm:$0xff] }
 0x126   : > { %2008 = vmatmul.mubr.bf16.gmra.mrb[104].mxu0 %v1229_v7  ;;  %v657_v7 = vld [vmem:[%s16426_s29 + $0x1d0] sm:$0xff] }
 0x127   : > { %2015 = vmatprep.mubr.bf16.mxu0 %v1237_v8  ;;  %v664_v8 = vld [vmem:[%s16426_s29 + $0x208] sm:$0xff] }
 0x128   : > { %v1077_v12 = vpack.c.bf16 %v664_v8, %v657_v7  ;;  %v790_v7 = vld [vmem:[%s16426_s29 + $0x5f8] sm:$0xff] }
 0x129   : > { %v798_v8 = vld [vmem:[%s16426_s29 + $0x638] sm:$0xff] }
 0x12e   : > { %2016 = vmatmul.mubr.bf16.gmra.mrb[108].mxu0 %v1236_v13  ;;  %v1085_v13 = vpack.c.bf16 %v679_v11, %v672_v10 }
 0x12f   : > { %2023 = vmatprep.mubr.bf16.mxu0 %v1244_v14  ;;  %v13632_v14 = vld [vmem:[%s21380_s0 + $0x140] sm:$0xff]  }
 0x136   : > { %2024 = vmatmul.mubr.bf16.gmra.mrb[112].mxu0 %v1243_v19  ;;  %v693_v19 = vld [vmem:[%s16426_s29 + $0x2f0] sm:$0xff] }
 0x137   : > { %2031 = vmatprep.mubr.bf16.mxu0 %v1251_v20  ;;  %v1084_v20 = vpack.c.bf16 %v678_v16, %v671_v15  ;;  %v1092_v21 = vpack.c.bf16 %v693_v19, %v686_v18  ;;  %v819_v15 = vld [vmem:[%s16426_s29 + $0x6e0] sm:$0xff]  ;;  %v13639_v18 = vld [vmem:[%s21380_s0 + $0x178] sm:$0xff]  }
 0x138   : > { %v811_v19 = vld [vmem:[%s16426_s29 + $0x6a0] sm:$0xff] }
 0x13e   : > { %2032 = vmatmul.mubr.bf16.gmra.mrb[116].mxu0 %v1250_v25  ;;  %v700_v25 = vld [vmem:[%s16426_s29 + $0x328] sm:$0xff] }
 0x13f   : > { %2039 = vmatprep.mubr.bf16.mxu0 %v1258_v26  ;;  %v707_v26 = vld [vmem:[%s16426_s29 + $0x360] sm:$0xff] }
 0x140   : > { %v1099_v28 = vpack.c.bf16 %v707_v26, %v700_v25  ;;  %v13640_v25 = vld [vmem:[%s21380_s0 + $0x180] sm:$0xff]   ;;  %v825_v26 = vld [vmem:[%s16426_s29 + $0x710] sm:$0xff] }
 0x141   : > { %12515 = vmatprep.subr.bf16.mxu1 %v13640_v25 }
 0x142   : > { %12516 = vmatpush3.bf16.msra.mxu1 %v13640_v25 }
 0x146   : > { %2040 = vmatmul.mubr.bf16.gmra.mrb[120].mxu0 %v1257_v31  ;;  %v706_v31 = vld [vmem:[%s16426_s29 + $0x358] sm:$0xff] }
 0x147   : > { %2047 = vmatprep.mubr.bf16.mxu0 %v1265_v32  ;;  %v714_v32 = vld [vmem:[%s16426_s29 + $0x398] sm:$0xff]  ;;  %v1098_v34 = vpack.c.bf16 %v706_v31, %v699_v30 }
 0x148   : > { %v1106_v35 = vpack.c.bf16 %v721_v33, %v714_v32  ;;  %v605_v32 = vld [vmem:[%s16426_s29 + $0x30] sm:$0xff]  ;;  %v612_v33 = vld [vmem:[%s16426_s29 + $0x68] sm:$0xff] }
 0x14e   : > { %2048 = vmatmul.mubr.bf16.gmra.mrb[124].mxu0 %v1264_v37  ;;  %v720_v37 = vld [vmem:[%s16426_s29 + $0x3c8] sm:$0xff] }
 0x14f   : > { %2088 = vmatprep.mubr.bf16.mxu0 %v1050_v38  ;;  %v728_v38 = vld [vmem:[%s16426_s29 + $0x408] sm:$0xff]  ;;  %v1105_v40 = vpack.c.bf16 %v720_v37, %v713_v36  ;;  %v626_v36 = vld [vmem:[%s16426_s29 + $0xd8] sm:$0xff] }
 0x150   : > { %v1113_v41 = vpack.c.bf16 %v735_v39, %v728_v38  ;;  %v839_v38 = vld [vmem:[%s16426_s29 + $0x780] sm:$0xff]  ;;  %v846_v39 = vld [vmem:[%s16426_s29 + $0x7b8] sm:$0xff] }
 0x156   : > { %2089 = vmatmul.mubr.bf16.vlgmr.msra.gmra.mrb[0].mxu0 %v1049_v43  ;;  %v727_v43 = vld [vmem:[%s16426_s29 + $0x400] sm:$0xff] }
 0x157   : > { %2346 = vmatpush1.bf16.msra.mxu0 %v13624_v44  ;;  %2096 = vmatprep.mubr.bf16.mxu0 %v1057_v45  ;;  %v734_v44 = vld [vmem:[%s16426_s29 + $0x438] sm:$0xff] }
 0x158   : > { %2347 = vmatprep.subr.bf16.mxu0 %v21335_v1  ;;  %v742_v45 = vld [vmem:[%s16426_s29 + $0x478] sm:$0xff]  ;;  %v1112_v47 = vpack.c.bf16 %v734_v44, %v727_v43  ;;  %v853_v44 = vld [vmem:[%s16426_s29 + $0x7f0] sm:$0xff] }
 0x15b   : > { %2348 = vmatpush1.bf16.msra.mxu0 %v13625_v48  ;;  %v1120_v48 = vpack.c.bf16 %v749_v46, %v742_v45  ;;  %v860_v45 = vld [vmem:[%s16426_s29 + $0x828] sm:$0xff] }
 0x15c   : > { %2349 = vmatprep.subr.bf16.mxu0 %v21335_v1  ;;  %v868_v46 = vld [vmem:[%s16426_s29 + $0x868] sm:$0xff] }
 0x15e   : > { %2097 = vmatmul.mubr.bf16.gmra.mrb[4].mxu0 %v1056_v51  ;;  %v756_v51 = vld [vmem:[%s16426_s29 + $0x4e8] sm:$0xff] }
 0x15f   : > { %2104 = vmatprep.mubr.bf16.mxu0 %v1064_v52  ;;  %2350 = vmatpush1.bf16.msra.mxu0 %v13626_v53  ;;  %v763_v52 = vld [vmem:[%s16426_s29 + $0x520] sm:$0xff]  ;;  %v1119_v53 = vpack.c.bf16 %v748_v50, %v741_v49  ;;  %v633_v50 = vld [vmem:[%s16426_s29 + $0x110] sm:$0xff] }
 0x160   : > { %2351 = vmatprep.subr.bf16.mxu0 %v21335_v1  ;;  %v1127_v54 = vpack.c.bf16 %v763_v52, %v756_v51  ;;  %v640_v51 = vld [vmem:[%s16426_s29 + $0x148] sm:$0xff] }
 0x161   : > { %v1067_v52 = vpack.c.bf16 %v640_v51, %v633_v50  ;;  %v973_v50 = vld [vmem:[%s16426_s29 + $0xbb0] sm:$0xff] }
 0x163   : > { %2352 = vmatpush1.bf16.msra.mxu0 %v13627_v56  ;;  %v755_v56 = vld [vmem:[%s16426_s29 + $0x4e0] sm:$0xff] }
 0x164   : > { %2353 = vmatprep.subr.bf16.mxu0 %v21335_v1 }
 0x166   : > { %2105 = vmatmul.mubr.bf16.gmra.mrb[8].mxu0 %v1063_v59  ;;  %v777_v59 = vld [vmem:[%s16426_s29 + $0x590] sm:$0xff] }
 0x167   : > { %2112 = vmatprep.mubr.bf16.mxu0 %v1071_v60  ;;  %2354 = vmatpush1.bf16.msra.mxu0 %v13628_v61  ;;  %v1126_v60 = vpack.c.bf16 %v762_v57, %v755_v56  ;;  %v1134_v61 = vpack.c.bf16 %v777_v59, %v770_v58  ;;  %v867_v56 = vld [vmem:[%s16426_s29 + $0x860] sm:$0xff]  ;;  %v874_v57 = vld [vmem:[%s16426_s29 + $0x898] sm:$0xff]  ;;  %v889_v59 = vld [vmem:[%s16426_s29 + $0x910] sm:$0xff] }
 0x168   : > { %2355 = vmatprep.subr.bf16.mxu0 %v21335_v1  ;;  %v882_v58 = vld [vmem:[%s16426_s29 + $0x8d8] sm:$0xff] }
 0x16b   : > { %2356 = vmatpush1.bf16.msra.mxu0 %v13629_v0  ;;  %v784_v0 = vld [vmem:[%s16426_s29 + $0x5c8] sm:$0xff] }
 0x16c   : > { %2357 = vmatprep.subr.bf16.mxu0 %v21335_v1 }
 0x16e   : > { %2113 = vmatmul.mubr.bf16.gmra.mrb[12].mxu0 %v1070_v4  ;;  %v1141_v4 = vpack.c.bf16 %v791_v2, %v784_v0  ;;  %v896_v0 = vld [vmem:[%s16426_s29 + $0x948] sm:$0xff]  ;;  %v903_v2 = vld [vmem:[%s16426_s29 + $0x980] sm:$0xff] }
 0x16f   : > { %2120 = vmatprep.mubr.bf16.mxu0 %v1078_v5  ;;  %2358 = vmatpush1.bf16.msra.mxu0 %v13630_v6  ;;  %v13638_v5 = vld [vmem:[%s21380_s0 + $0x170] sm:$0xff]   ;;  %v783_v6 = vld [vmem:[%s16426_s29 + $0x5c0] sm:$0xff] }
 0x170   : > { %2359 = vmatprep.subr.bf16.mxu0 %v21335_v1  ;;  %v1140_v10 = vpack.c.bf16 %v790_v7, %v783_v6  ;;  %v668_v6 = vld [vmem:[%s16426_s29 + $0x228] sm:$0xff] }
 0x173   : > { %2360 = vmatpush1.bf16.msra.mxu0 %v13631_v9  ;;  %v805_v9 = vld [vmem:[%s16426_s29 + $0x670] sm:$0xff] }
 0x174   : > { %2361 = vmatprep.subr.bf16.mxu0 %v21335_v1  ;;  %v1148_v11 = vpack.c.bf16 %v805_v9, %v798_v8  ;;  %v675_v8 = vld [vmem:[%s16426_s29 + $0x260] sm:$0xff]  ;;  %v682_v9 = vld [vmem:[%s16426_s29 + $0x298] sm:$0xff] }
 0x176   : > { %2121 = vmatmul.mubr.bf16.gmra.mrb[16].mxu0 %v1077_v12  ;;  %v797_v12 = vld [vmem:[%s16426_s29 + $0x630] sm:$0xff] }
 0x177   : > { %2128 = vmatprep.mubr.bf16.mxu0 %v1085_v13  ;;  %2362 = vmatpush1.bf16.msra.mxu0 %v13632_v14  ;;  %v804_v13 = vld [vmem:[%s16426_s29 + $0x668] sm:$0xff] }
 0x178   : > { %2363 = vmatprep.subr.bf16.mxu0 %v21335_v1  ;;  %v812_v14 = vld [vmem:[%s16426_s29 + $0x6a8] sm:$0xff]  ;;  %v1147_v16 = vpack.c.bf16 %v804_v13, %v797_v12  ;;  %v902_v12 = vld [vmem:[%s16426_s29 + $0x978] sm:$0xff] }
 0x179   : > { %v910_v13 = vld [vmem:[%s16426_s29 + $0x9b8] sm:$0xff] }
 0x17b   : > { %2364 = vmatpush1.bf16.msra.mxu0 %v13633_v17  ;;  %v1155_v17 = vpack.c.bf16 %v819_v15, %v812_v14  ;;  %v917_v14 = vld [vmem:[%s16426_s29 + $0x9f0] sm:$0xff] }
 0x17c   : > { %2365 = vmatprep.subr.bf16.mxu0 %v21335_v1 }
 0x17e   : > { %2129 = vmatmul.mubr.bf16.gmra.mrb[20].mxu0 %v1084_v20  ;;  %v818_v20 = vld [vmem:[%s16426_s29 + $0x6d8] sm:$0xff] }
 0x17f   : > { %2136 = vmatprep.mubr.bf16.mxu0 %v1092_v21  ;;  %2366 = vmatpush1.bf16.msra.mxu0 %v13634_v22  ;;  %v826_v21 = vld [vmem:[%s16426_s29 + $0x718] sm:$0xff]  ;;  %v833_v22 = vld [vmem:[%s16426_s29 + $0x750] sm:$0xff]  ;;  %v1154_v23 = vpack.c.bf16 %v818_v20, %v811_v19  ;;  %v924_v19 = vld [vmem:[%s16426_s29 + $0xa28] sm:$0xff] }
 0x180   : > { %2367 = vmatprep.subr.bf16.mxu0 %v21335_v1  ;;  %v1162_v24 = vpack.c.bf16 %v833_v22, %v826_v21  ;;  %v931_v20 = vld [vmem:[%s16426_s29 + $0xa60] sm:$0xff] }
 0x181   : > { %v1211_v22 = vpack.c.bf16 %v931_v20, %v924_v19  ;;  %v1007_v20 = vld [vmem:[%s16426_s29 + $0xcc0] sm:$0xff] }
 0x183   : > { %2368 = vmatpush1.bf16.msra.mxu0 %v13635_v29  ;;  %v847_v29 = vld [vmem:[%s16426_s29 + $0x7c0] sm:$0xff] }
 0x184   : > { %2369 = vmatprep.subr.bf16.mxu0 %v21335_v1 }
 0x186   : > { %2137 = vmatmul.mubr.bf16.gmra.mrb[24].mxu0 %v1091_v27  ;;  %v832_v27 = vld [vmem:[%s16426_s29 + $0x748] sm:$0xff] }
 0x187   : > { %2144 = vmatprep.mubr.bf16.mxu0 %v1099_v28  ;;  %2370 = vmatpush1.bf16.msra.mxu0 %v13636_v42  ;;  %v840_v28 = vld [vmem:[%s16426_s29 + $0x788] sm:$0xff]  ;;  %v1161_v30 = vpack.c.bf16 %v832_v27, %v825_v26  ;;  %v1168_v42 = vpack.c.bf16 %v846_v39, %v839_v38  ;;  %v703_v26 = vld [vmem:[%s16426_s29 + $0x340] sm:$0xff]  ;;  %v710_v27 = vld [vmem:[%s16426_s29 + $0x378] sm:$0xff] }
 0x188   : > { %2371 = vmatprep.subr.bf16.mxu0 %v21335_v1  ;;  %v1169_v31 = vpack.c.bf16 %v847_v29, %v840_v28  ;;  %v1102_v28 = vpack.c.bf16 %v710_v27, %v703_v26  ;;  %v923_v29 = vld [vmem:[%s16426_s29 + $0xa20] sm:$0xff]  ;;  %v1021_v26 = vld [vmem:[%s16426_s29 + $0xd30] sm:$0xff]  ;;  %v1028_v27 = vld [vmem:[%s16426_s29 + $0xd68] sm:$0xff] }
 0x189   : > { %v959_v38 = vld [vmem:[%s16426_s29 + $0xb40] sm:$0xff] }
 0x18b   : > { %2372 = vmatpush1.bf16.msra.mxu0 %v13637_v55 }
 0x18c   : > { %2373 = vmatprep.subr.bf16.mxu0 %v21335_v1 }
 0x18e   : > { %2145 = vmatmul.mubr.bf16.gmra.mrb[28].mxu0 %v1098_v34  ;;  %v1053_v34 = vpack.c.bf16 %v612_v33, %v605_v32  ;;  %v945_v32 = vld [vmem:[%s16426_s29 + $0xad0] sm:$0xff] }
 0x18f   : > { %2152 = vmatprep.mubr.bf16.mxu0 %v1106_v35  ;;  %2374 = vmatpush1.bf16.msra.mxu0 %v13638_v5  ;;  %v619_v35 = vld [vmem:[%s16426_s29 + $0xa0] sm:$0xff]  ;;  %v661_v5 = vld [vmem:[%s16426_s29 + $0x1f0] sm:$0xff] }
 0x190   : > { %2375 = vmatprep.subr.bf16.mxu0 %v21335_v1  ;;  %v1060_v37 = vpack.c.bf16 %v626_v36, %v619_v35  ;;  %12517 = vmatprep.mubr.msk.bf16.mxu1 %vm1670_vm0, %v1053_v34  ;;  %v1081_v7 = vpack.c.bf16 %v668_v6, %v661_v5  ;;  %v937_v35 = vld [vmem:[%s16426_s29 + $0xa90] sm:$0xff]  ;;  %v944_v36 = vld [vmem:[%s16426_s29 + $0xac8] sm:$0xff] }
 0x191   : > { %v1217_v39 = vpack.c.bf16 %v944_v36, %v937_v35  ;;  %v1001_v5 = vld [vmem:[%s16426_s29 + $0xc90] sm:$0xff]  ;;  %v815_v35 = vld [vmem:[%s16426_s29 + $0x6c0] sm:$0xff]  ;;  %v822_v36 = vld [vmem:[%s16426_s29 + $0x6f8] sm:$0xff] }
 0x192   : > { %12518 = vmatmul.mubr.msk.bf16.vlgmr.msra.gmra.mrb[0].mxu1 %vm1670_vm0, %v1060_v37  ;;  %v952_v37 = vld [vmem:[%s16426_s29 + $0xb08] sm:$0xff] }
 0x193   : > { %2376 = vmatpush1.bf16.msra.mxu0 %v13639_v18  ;;  %12521 = vmatprep.mubr.msk.bf16.mxu1 %vm1670_vm0, %v1067_v52  ;;  %v916_v18 = vld [vmem:[%s16426_s29 + $0x9e8] sm:$0xff] }
 0x196   : > { %2153 = vmatmul.mubr.bf16.gmra.mrb[32].mxu0 %v1105_v40  ;;  %v854_v40 = vld [vmem:[%s16426_s29 + $0x7f8] sm:$0xff] }
 0x197   : > { %2160 = vmatprep.mubr.bf16.mxu0 %v1113_v41  ;;  %v861_v41 = vld [vmem:[%s16426_s29 + $0x830] sm:$0xff] }
 0x198   : > { %v1176_v43 = vpack.c.bf16 %v861_v41, %v854_v40  ;;  %v1225_v40 = vpack.c.bf16 %v959_v38, %v952_v37  ;;  %v717_v41 = vld [vmem:[%s16426_s29 + $0x3b0] sm:$0xff]  ;;  %v1158_v37 = vpack.c.bf16 %v822_v36, %v815_v35  ;;  %v1035_v38 = vld [vmem:[%s16426_s29 + $0xda0] sm:$0xff]  ;;  %v694_v36 = vld [vmem:[%s16426_s29 + $0x2f8] sm:$0xff] }
 0x199   : > { %v687_v35 = vld [vmem:[%s16426_s29 + $0x2c0] sm:$0xff] }
 0x19e   : > { %2161 = vmatmul.mubr.bf16.gmra.mrb[36].mxu0 %v1112_v47  ;;  %v875_v47 = vld [vmem:[%s16426_s29 + $0x8a0] sm:$0xff] }
 0x19f   : > { %2168 = vmatprep.mubr.bf16.mxu0 %v1120_v48  ;;  %v1175_v48 = vpack.c.bf16 %v860_v45, %v853_v44  ;;  %v1183_v49 = vpack.c.bf16 %v875_v47, %v868_v46  ;;  %v731_v44 = vld [vmem:[%s16426_s29 + $0x420] sm:$0xff]  ;;  %v738_v45 = vld [vmem:[%s16426_s29 + $0x458] sm:$0xff] }
 0x1a0   : > { %v1116_v46 = vpack.c.bf16 %v738_v45, %v731_v44  ;;  %v951_v47 = vld [vmem:[%s16426_s29 + $0xb00] sm:$0xff]  ;;  %v610_v45 = vld [vmem:[%s16426_s29 + $0x58] sm:$0xff] }
 0x1a1   : > { %v603_v44 = vld [vmem:[%s16426_s29 + $0x20] sm:$0xff] }
 0x1a6   : > { %2169 = vmatmul.mubr.bf16.gmra.mrb[40].mxu0 %v1119_v53  ;;  %v647_v53 = vld [vmem:[%s16426_s29 + $0x180] sm:$0xff] }
 0x1a7   : > { %2176 = vmatprep.mubr.bf16.mxu0 %v1127_v54  ;;  %v654_v54 = vld [vmem:[%s16426_s29 + $0x1b8] sm:$0xff] }
 0x1a8   : > { %v1074_v55 = vpack.c.bf16 %v654_v54, %v647_v53  ;;  %v965_v53 = vld [vmem:[%s16426_s29 + $0xb70] sm:$0xff]  ;;  %v972_v54 = vld [vmem:[%s16426_s29 + $0xba8] sm:$0xff] }
 0x1aa   : > { %12522 = vmatmul.mubr.msk.bf16.gmra.mrb[4].mxu1 %vm1670_vm0, %v1074_v55  ;;  %v980_v55 = vld [vmem:[%s16426_s29 + $0xbe8] sm:$0xff] }
 0x1ab   : > { %12525 = vmatprep.mubr.msk.bf16.mxu1 %vm1670_vm0, %v1081_v7 }
 0x1ae   : > { %2177 = vmatmul.mubr.bf16.gmra.mrb[44].mxu0 %v1126_v60  ;;  %v1182_v60 = vpack.c.bf16 %v874_v57, %v867_v56  ;;  %v987_v56 = vld [vmem:[%s16426_s29 + $0xc20] sm:$0xff]  ;;  %v1231_v57 = vpack.c.bf16 %v972_v54, %v965_v53  ;;  %v850_v54 = vld [vmem:[%s16426_s29 + $0x7d8] sm:$0xff] }
 0x1af   : > { %2184 = vmatprep.mubr.bf16.mxu0 %v1134_v61  ;;  %v1190_v61 = vpack.c.bf16 %v889_v59, %v882_v58  ;;  %v1239_v58 = vpack.c.bf16 %v987_v56, %v980_v55  ;;  %v745_v59 = vld [vmem:[%s16426_s29 + $0x490] sm:$0xff]  ;;  %v843_v53 = vld [vmem:[%s16426_s29 + $0x7a0] sm:$0xff] }
 0x1b0   : > { %v1172_v55 = vpack.c.bf16 %v850_v54, %v843_v53  ;;  %v617_v56 = vld [vmem:[%s16426_s29 + $0x90] sm:$0xff]  ;;  %v715_v53 = vld [vmem:[%s16426_s29 + $0x3a0] sm:$0xff]  ;;  %v722_v54 = vld [vmem:[%s16426_s29 + $0x3d8] sm:$0xff] }
 0x1b6   : > { %2185 = vmatmul.mubr.bf16.gmra.mrb[48].mxu0 %v1133_v3  ;;  %v1189_v3 = vpack.c.bf16 %v888_v63, %v881_v62  ;;  %v759_v62 = vld [vmem:[%s16426_s29 + $0x500] sm:$0xff]  ;;  %v766_v63 = vld [vmem:[%s16426_s29 + $0x538] sm:$0xff] }
 0x1b7   : > { %2192 = vmatprep.mubr.bf16.mxu0 %v1141_v4  ;;  %v1197_v4 = vpack.c.bf16 %v903_v2, %v896_v0  ;;  %v1130_v0 = vpack.c.bf16 %v766_v63, %v759_v62  ;;  %v979_v2 = vld [vmem:[%s16426_s29 + $0xbe0] sm:$0xff]  ;;  %v638_v63 = vld [vmem:[%s16426_s29 + $0x138] sm:$0xff] }
 0x1b8   : > { %v631_v62 = vld [vmem:[%s16426_s29 + $0x100] sm:$0xff] }
 0x1be   : > { %2193 = vmatmul.mubr.bf16.gmra.mrb[52].mxu0 %v1140_v10  ;;  %v1088_v10 = vpack.c.bf16 %v682_v9, %v675_v8  ;;  %v993_v8 = vld [vmem:[%s16426_s29 + $0xc50] sm:$0xff]  ;;  %v1000_v9 = vld [vmem:[%s16426_s29 + $0xc88] sm:$0xff] }
 0x1bf   : > { %2200 = vmatprep.mubr.bf16.mxu0 %v1148_v11  ;;  %v895_v11 = vld [vmem:[%s16426_s29 + $0x940] sm:$0xff] }
 0x1c0   : > { %12526 = vmatmul.mubr.msk.bf16.gmra.mrb[8].mxu1 %vm1670_vm0, %v1088_v10  ;;  %v1196_v15 = vpack.c.bf16 %v902_v12, %v895_v11  ;;  %v1008_v10 = vld [vmem:[%s16426_s29 + $0xcc8] sm:$0xff]  ;;  %v1015_v11 = vld [vmem:[%s16426_s29 + $0xd00] sm:$0xff]  ;;  %v1245_v12 = vpack.c.bf16 %v1000_v9, %v993_v8  ;;  %v878_v9 = vld [vmem:[%s16426_s29 + $0x8b8] sm:$0xff] }
 0x1c1   : > { %v871_v8 = vld [vmem:[%s16426_s29 + $0x880] sm:$0xff] }
 0x1c6   : > { %2201 = vmatmul.mubr.bf16.gmra.mrb[56].mxu0 %v1147_v16  ;;  %v1204_v16 = vpack.c.bf16 %v917_v14, %v910_v13  ;;  %v1253_v13 = vpack.c.bf16 %v1015_v11, %v1008_v10  ;;  %v773_v14 = vld [vmem:[%s16426_s29 + $0x570] sm:$0xff]  ;;  %v1186_v10 = vpack.c.bf16 %v878_v9, %v871_v8  ;;  %v751_v8 = vld [vmem:[%s16426_s29 + $0x4c0] sm:$0xff] }
 0x1c7   : > { %2208 = vmatprep.mubr.bf16.mxu0 %v1155_v17  ;;  %v909_v17 = vld [vmem:[%s16426_s29 + $0x9b0] sm:$0xff] }
 0x1c8   : > { %v1203_v21 = vpack.c.bf16 %v916_v18, %v909_v17  ;;  %v787_v17 = vld [vmem:[%s16426_s29 + $0x5e0] sm:$0xff]  ;;  %v794_v18 = vld [vmem:[%s16426_s29 + $0x618] sm:$0xff]  ;;  %v645_v11 = vld [vmem:[%s16426_s29 + $0x170] sm:$0xff] }
 0x1c9   : > { %v1144_v19 = vpack.c.bf16 %v794_v18, %v787_v17  ;;  %v659_v17 = vld [vmem:[%s16426_s29 + $0x1e0] sm:$0xff]  ;;  %v666_v18 = vld [vmem:[%s16426_s29 + $0x218] sm:$0xff] }
 0x1ce   : > { %2209 = vmatmul.mubr.bf16.gmra.mrb[60].mxu0 %v1154_v23  ;;  %v689_v23 = vld [vmem:[%s16426_s29 + $0x2d0] sm:$0xff] }
 0x1cf   : > { %2216 = vmatprep.mubr.bf16.mxu0 %v1162_v24  ;;  %v696_v24 = vld [vmem:[%s16426_s29 + $0x308] sm:$0xff] }
 0x1d0   : > { %v1095_v25 = vpack.c.bf16 %v696_v24, %v689_v23  ;;  %v1029_v23 = vld [vmem:[%s16426_s29 + $0xd70] sm:$0xff] }
 0x1d2   : > { %12529 = vmatprep.mubr.msk.bf16.mxu1 %vm1670_vm0, %v1095_v25 }
 0x1d3   : > { %12530 = vmatmul.mubr.msk.bf16.gmra.mrb[12].mxu1 %vm1670_vm0, %v1102_v28  ;;  %v1036_v28 = vld [vmem:[%s16426_s29 + $0xda8] sm:$0xff] }
 0x1d6   : > { %2217 = vmatmul.mubr.bf16.gmra.mrb[64].mxu0 %v1161_v30  ;;  %v930_v30 = vld [vmem:[%s16426_s29 + $0xa58] sm:$0xff] }
 0x1d7   : > { %2224 = vmatprep.mubr.bf16.mxu0 %v1169_v31  ;;  %v938_v31 = vld [vmem:[%s16426_s29 + $0xa98] sm:$0xff]  ;;  %v1210_v33 = vpack.c.bf16 %v930_v30, %v923_v29  ;;  %v1043_v29 = vld [vmem:[%s16426_s29 + $0xde0] sm:$0xff]  ;;  %v1259_v30 = vpack.c.bf16 %v1028_v27, %v1021_v26 }
 0x1d8   : > { %v1218_v34 = vpack.c.bf16 %v945_v32, %v938_v31  ;;  %v1267_v31 = vpack.c.bf16 %v1043_v29, %v1036_v28  ;;  %v801_v32 = vld [vmem:[%s16426_s29 + $0x650] sm:$0xff]  ;;  %v899_v26 = vld [vmem:[%s16426_s29 + $0x960] sm:$0xff]  ;;  %v906_v27 = vld [vmem:[%s16426_s29 + $0x998] sm:$0xff] }
 0x1d9   : > { %v1200_v28 = vpack.c.bf16 %v906_v27, %v899_v26  ;;  %v673_v29 = vld [vmem:[%s16426_s29 + $0x250] sm:$0xff] }
 0x1de   : > { %2225 = vmatmul.mubr.bf16.gmra.mrb[68].mxu0 %v1168_v42  ;;  %v724_v42 = vld [vmem:[%s16426_s29 + $0x3e8] sm:$0xff] }
 0x1df   : > { %2232 = vmatprep.mubr.bf16.mxu0 %v1176_v43  ;;  %v1109_v43 = vpack.c.bf16 %v724_v42, %v717_v41  ;;  %v611_v41 = vld [vmem:[%s16426_s29 + $0x60] sm:$0xff] }
 0x1e1   : > { %12533 = vmatprep.mubr.msk.bf16.mxu1 %vm1670_vm0, %v1109_v43 }
 0x1e2   : > { %12534 = vmatmul.mubr.msk.bf16.gmra.mrb[16].mxu1 %vm1670_vm0, %v1116_v46  ;;  %v618_v46 = vld [vmem:[%s16426_s29 + $0x98] sm:$0xff] }
 0x1e6   : > { %2233 = vmatmul.mubr.bf16.gmra.mrb[72].mxu0 %v1175_v48  ;;  %v958_v48 = vld [vmem:[%s16426_s29 + $0xb38] sm:$0xff] }
 0x1e7   : > { %2240 = vmatprep.mubr.bf16.mxu0 %v1183_v49  ;;  %v966_v49 = vld [vmem:[%s16426_s29 + $0xb78] sm:$0xff]  ;;  %v1224_v51 = vpack.c.bf16 %v958_v48, %v951_v47  ;;  %v625_v47 = vld [vmem:[%s16426_s29 + $0xd0] sm:$0xff]  ;;  %v1051_v48 = vpack.c.bf16 %v610_v45, %v603_v44  ;;  %v927_v44 = vld [vmem:[%s16426_s29 + $0xa40] sm:$0xff] }
 0x1e8   : > { %v1232_v52 = vpack.c.bf16 %v973_v50, %v966_v49  ;;  %v1059_v49 = vpack.c.bf16 %v625_v47, %v618_v46  ;;  %v829_v50 = vld [vmem:[%s16426_s29 + $0x730] sm:$0xff]  ;;  %v934_v45 = vld [vmem:[%s16426_s29 + $0xa78] sm:$0xff] }
 0x1e9   : > { %v1214_v46 = vpack.c.bf16 %v934_v45, %v927_v44  ;;  %v701_v47 = vld [vmem:[%s16426_s29 + $0x330] sm:$0xff] }
 0x1ee   : > { %2241 = vmatmul.mubr.bf16.gmra.mrb[76].mxu0 %v1182_v60  ;;  %v752_v60 = vld [vmem:[%s16426_s29 + $0x4c8] sm:$0xff] }
 0x1ef   : > { %2248 = vmatprep.mubr.bf16.mxu0 %v1190_v61  ;;  %v1123_v61 = vpack.c.bf16 %v752_v60, %v745_v59  ;;  %v639_v59 = vld [vmem:[%s16426_s29 + $0x140] sm:$0xff] }
 0x1f1   : > { %12537 = vmatprep.mubr.msk.bf16.mxu1 %vm1670_vm0, %v1123_v61 }
 0x1f2   : > { %12538 = vmatmul.mubr.msk.bf16.gmra.mrb[20].mxu1 %vm1670_vm0, %v1130_v0  ;;  %v646_v0 = vld [vmem:[%s16426_s29 + $0x178] sm:$0xff] }
 0x1f6   : > { %2249 = vmatmul.mubr.bf16.gmra.mrb[80].mxu0 %v1189_v3  ;;  %v986_v3 = vld [vmem:[%s16426_s29 + $0xc18] sm:$0xff] }
 0x1f7   : > { %2256 = vmatprep.mubr.bf16.mxu0 %v1197_v4  ;;  %v994_v4 = vld [vmem:[%s16426_s29 + $0xc58] sm:$0xff]  ;;  %v1238_v6 = vpack.c.bf16 %v986_v3, %v979_v2  ;;  %v653_v2 = vld [vmem:[%s16426_s29 + $0x1b0] sm:$0xff]  ;;  %v1065_v3 = vpack.c.bf16 %v638_v63, %v631_v62  ;;  %v955_v62 = vld [vmem:[%s16426_s29 + $0xb20] sm:$0xff] }
 0x1f8   : > { %v1246_v7 = vpack.c.bf16 %v1001_v5, %v994_v4  ;;  %v1073_v4 = vpack.c.bf16 %v653_v2, %v646_v0  ;;  %v857_v5 = vld [vmem:[%s16426_s29 + $0x810] sm:$0xff]  ;;  %v962_v63 = vld [vmem:[%s16426_s29 + $0xb58] sm:$0xff]  ;;  %v2987_v2 = vld [vmem:[%s21317_s3] sm:$0xff] }
 0x1f9   : > { %v1228_v0 = vpack.c.bf16 %v962_v63, %v955_v62  ;;  %v1046_v62 = vld [vmem:[%s16426_s29 + $0xdf8] sm:$0xff]  ;;  %v2999_v63 = vld [vmem:[%s21317_s3 + $0x60] sm:$0xff] }
 0x1fe   : > { %2257 = vmatmul.mubr.bf16.gmra.mrb[84].mxu0 %v1196_v15  ;;  %v780_v15 = vld [vmem:[%s16426_s29 + $0x5a8] sm:$0xff] }
 0x1ff   : > { %2264 = vmatprep.mubr.bf16.mxu0 %v1204_v16  ;;  %v1137_v16 = vpack.c.bf16 %v780_v15, %v773_v14  ;;  %v667_v14 = vld [vmem:[%s16426_s29 + $0x220] sm:$0xff] }
 0x201   : > { %12541 = vmatprep.mubr.msk.bf16.mxu1 %vm1670_vm0, %v1137_v16 }
 0x202   : > { %12542 = vmatmul.mubr.msk.bf16.gmra.mrb[24].mxu1 %vm1670_vm0, %v1144_v19  ;;  %v674_v19 = vld [vmem:[%s16426_s29 + $0x258] sm:$0xff] }
 0x206   : > { %2265 = vmatmul.mubr.bf16.gmra.mrb[88].mxu0 %v1203_v21  ;;  %v1014_v21 = vld [vmem:[%s16426_s29 + $0xcf8] sm:$0xff] }
 0x207   : > { %2272 = vmatprep.mubr.bf16.mxu0 %v1211_v22  ;;  %v1022_v22 = vld [vmem:[%s16426_s29 + $0xd38] sm:$0xff]  ;;  %v1252_v24 = vpack.c.bf16 %v1014_v21, %v1007_v20  ;;  %v681_v20 = vld [vmem:[%s16426_s29 + $0x290] sm:$0xff]  ;;  %v1079_v21 = vpack.c.bf16 %v666_v18, %v659_v17  ;;  %v976_v17 = vld [vmem:[%s16426_s29 + $0xbc8] sm:$0xff] }
 0x208   : > { %v1260_v25 = vpack.c.bf16 %v1029_v23, %v1022_v22  ;;  %v1087_v22 = vpack.c.bf16 %v681_v20, %v674_v19  ;;  %v885_v23 = vld [vmem:[%s16426_s29 + $0x8f0] sm:$0xff]  ;;  %v983_v18 = vld [vmem:[%s16426_s29 + $0xc00] sm:$0xff]  ;;  %v990_v20 = vld [vmem:[%s16426_s29 + $0xc38] sm:$0xff] }
 0x20e   : > { %2273 = vmatmul.mubr.bf16.gmra.mrb[92].mxu0 %v1210_v33  ;;  %v808_v33 = vld [vmem:[%s16426_s29 + $0x688] sm:$0xff] }
 0x20f   : > { %2280 = vmatprep.mubr.bf16.mxu0 %v1218_v34  ;;  %v1151_v34 = vpack.c.bf16 %v808_v33, %v801_v32  ;;  %v695_v32 = vld [vmem:[%s16426_s29 + $0x300] sm:$0xff] }
 0x211   : > { %12545 = vmatprep.mubr.msk.bf16.mxu1 %vm1670_vm0, %v1151_v34 }
 0x212   : > { %12546 = vmatmul.mubr.msk.bf16.gmra.mrb[28].mxu1 %vm1670_vm0, %v1158_v37  ;;  %v702_v37 = vld [vmem:[%s16426_s29 + $0x338] sm:$0xff] }
 0x216   : > { %2281 = vmatmul.mubr.bf16.gmra.mrb[96].mxu0 %v1217_v39  ;;  %v1042_v39 = vld [vmem:[%s16426_s29 + $0xdd8] sm:$0xff] }
 0x217   : > { %2288 = vmatprep.mubr.bf16.mxu0 %v1225_v40  ;;  %v604_v40 = vld [vmem:[%s16426_s29 + $0x28] sm:$0xff]  ;;  %v1266_v42 = vpack.c.bf16 %v1042_v39, %v1035_v38  ;;  %v709_v38 = vld [vmem:[%s16426_s29 + $0x370] sm:$0xff]  ;;  %v1093_v39 = vpack.c.bf16 %v694_v36, %v687_v35  ;;  %v779_v35 = vld [vmem:[%s16426_s29 + $0x5a0] sm:$0xff] }
 0x218   : > { %v1052_v43 = vpack.c.bf16 %v611_v41, %v604_v40  ;;  %v1101_v40 = vpack.c.bf16 %v709_v38, %v702_v37  ;;  %v913_v41 = vld [vmem:[%s16426_s29 + $0x9d0] sm:$0xff]  ;;  %v1004_v37 = vld [vmem:[%s16426_s29 + $0xca8] sm:$0xff] }
 0x219   : > { %v997_v36 = vld [vmem:[%s16426_s29 + $0xc70] sm:$0xff] }
 0x21a   : > { %v1249_v38 = vpack.c.bf16 %v1004_v37, %v997_v36  ;;  %v834_v36 = vld [vmem:[%s16426_s29 + $0x758] sm:$0xff] }
 0x21b   : > { %v842_v37 = vld [vmem:[%s16426_s29 + $0x798] sm:$0xff] }
 0x21e   : > { %2289 = vmatmul.mubr.bf16.gmra.mrb[100].mxu0 %v1224_v51  ;;  %v836_v51 = vld [vmem:[%s16426_s29 + $0x768] sm:$0xff] }
 0x21f   : > { %2296 = vmatprep.mubr.bf16.mxu0 %v1232_v52  ;;  %v1165_v52 = vpack.c.bf16 %v836_v51, %v829_v50  ;;  %v723_v50 = vld [vmem:[%s16426_s29 + $0x3e0] sm:$0xff] }
 0x221   : > { %12549 = vmatprep.mubr.msk.bf16.mxu1 %vm1670_vm0, %v1165_v52 }
 0x222   : > { %12550 = vmatmul.mubr.msk.bf16.gmra.mrb[32].mxu1 %vm1670_vm0, %v1172_v55  ;;  %v730_v55 = vld [vmem:[%s16426_s29 + $0x418] sm:$0xff] }
 0x226   : > { %2297 = vmatmul.mubr.bf16.gmra.mrb[104].mxu0 %v1231_v57  ;;  %v624_v57 = vld [vmem:[%s16426_s29 + $0xc8] sm:$0xff] }
 0x227   : > { %2304 = vmatprep.mubr.bf16.mxu0 %v1239_v58  ;;  %v632_v58 = vld [vmem:[%s16426_s29 + $0x108] sm:$0xff]  ;;  %v1058_v60 = vpack.c.bf16 %v624_v57, %v617_v56  ;;  %v737_v56 = vld [vmem:[%s16426_s29 + $0x450] sm:$0xff]  ;;  %v1107_v57 = vpack.c.bf16 %v722_v54, %v715_v53  ;;  %v771_v54 = vld [vmem:[%s16426_s29 + $0x560] sm:$0xff] }
 0x228   : > { %v1066_v61 = vpack.c.bf16 %v639_v59, %v632_v58  ;;  %v1115_v58 = vpack.c.bf16 %v737_v56, %v730_v55  ;;  %v941_v59 = vld [vmem:[%s16426_s29 + $0xab0] sm:$0xff]  ;;  %v778_v55 = vld [vmem:[%s16426_s29 + $0x598] sm:$0xff] }
 0x229   : > { %v786_v56 = vld [vmem:[%s16426_s29 + $0x5d8] sm:$0xff] }
 0x22e   : > { %2305 = vmatmul.mubr.bf16.gmra.mrb[108].mxu0 %v1238_v6  ;;  %v864_v6 = vld [vmem:[%s16426_s29 + $0x848] sm:$0xff] }
 0x22f   : > { %2312 = vmatprep.mubr.bf16.mxu0 %v1246_v7  ;;  %v1179_v7 = vpack.c.bf16 %v864_v6, %v857_v5  ;;  %v736_v5 = vld [vmem:[%s16426_s29 + $0x448] sm:$0xff] }
 0x231   : > { %12553 = vmatprep.mubr.msk.bf16.mxu1 %vm1670_vm0, %v1179_v7  ;;  %v744_v7 = vld [vmem:[%s16426_s29 + $0x488] sm:$0xff] }
 0x232   : > { %12554 = vmatmul.mubr.msk.bf16.gmra.mrb[36].mxu1 %vm1670_vm0, %v1186_v10  ;;  %v1122_v10 = vpack.c.bf16 %v751_v8, %v744_v7  ;;  %v3002_v7 = vld [vmem:[%s21317_s3 + $0x78] sm:$0xff] }
 0x236   : > { %2313 = vmatmul.mubr.bf16.gmra.mrb[112].mxu0 %v1245_v12  ;;  %v652_v12 = vld [vmem:[%s16426_s29 + $0x1a8] sm:$0xff] }
 0x237   : > { %2320 = vmatprep.mubr.bf16.mxu0 %v1253_v13  ;;  %v660_v13 = vld [vmem:[%s16426_s29 + $0x1e8] sm:$0xff]  ;;  %v1072_v15 = vpack.c.bf16 %v652_v12, %v645_v11  ;;  %v2989_v11 = vld [vmem:[%s21317_s3 + $0x10] sm:$0xff]  ;;  %v2990_v12 = vld [vmem:[%s21317_s3 + $0x18] sm:$0xff] }
 0x238   : > { %v1080_v16 = vpack.c.bf16 %v667_v14, %v660_v13  ;;  %v743_v13 = vld [vmem:[%s16426_s29 + $0x480] sm:$0xff]  ;;  %v750_v14 = vld [vmem:[%s16426_s29 + $0x4b8] sm:$0xff] }
 0x239   : > { %v1121_v27 = vpack.c.bf16 %v750_v14, %v743_v13 }
 0x23e   : > { %2321 = vmatmul.mubr.bf16.gmra.mrb[116].mxu0 %v1252_v24  ;;  %v892_v24 = vld [vmem:[%s16426_s29 + $0x928] sm:$0xff] }
 0x23f   : > { %2328 = vmatprep.mubr.bf16.mxu0 %v1260_v25  ;;  %v1193_v25 = vpack.c.bf16 %v892_v24, %v885_v23  ;;  %v758_v23 = vld [vmem:[%s16426_s29 + $0x4f8] sm:$0xff]  ;;  %v765_v24 = vld [vmem:[%s16426_s29 + $0x530] sm:$0xff] }
 0x241   : > { %12557 = vmatprep.mubr.msk.bf16.mxu1 %vm1670_vm0, %v1193_v25  ;;  %v1242_v25 = vpack.c.bf16 %v990_v20, %v983_v18  ;;  %v806_v20 = vld [vmem:[%s16426_s29 + $0x678] sm:$0xff] }
 0x242   : > { %12558 = vmatmul.mubr.msk.bf16.gmra.mrb[40].mxu1 %vm1670_vm0, %v1200_v28  ;;  %v1129_v28 = vpack.c.bf16 %v765_v24, %v758_v23 }
 0x246   : > { %2329 = vmatmul.mubr.bf16.gmra.mrb[120].mxu0 %v1259_v30  ;;  %v680_v30 = vld [vmem:[%s16426_s29 + $0x288] sm:$0xff] }
 0x247   : > { %2336 = vmatprep.mubr.bf16.mxu0 %v1267_v31  ;;  %v688_v31 = vld [vmem:[%s16426_s29 + $0x2c8] sm:$0xff]  ;;  %v1086_v33 = vpack.c.bf16 %v680_v30, %v673_v29  ;;  %v2993_v29 = vld [vmem:[%s21317_s3 + $0x30] sm:$0xff]  ;;  %v2994_v30 = vld [vmem:[%s21317_s3 + $0x38] sm:$0xff] }
 0x248   : > { %v1094_v34 = vpack.c.bf16 %v695_v32, %v688_v31  ;;  %v13217_v31 = vpack.c.bf16 %v2994_v30, %v2993_v29  ;;  %v757_v32 = vld [vmem:[%s16426_s29 + $0x4f0] sm:$0xff] }
 0x24e   : > { %2337 = vmatmul.mubr.bf16.gmra.mrb[124].mxu0 %v1266_v42  ;;  %v920_v42 = vld [vmem:[%s16426_s29 + $0xa08] sm:$0xff] }
 0x24f   : > { %2377 = vmatprep.mubr.bf16.mxu0 %v1052_v43  ;;  %v1207_v43 = vpack.c.bf16 %v920_v42, %v913_v41  ;;  %v2995_v41 = vld [vmem:[%s21317_s3 + $0x40] sm:$0xff] }
 0x251   : > { %12561 = vmatprep.mubr.msk.bf16.mxu1 %vm1670_vm0, %v1207_v43  ;;  %v2996_v43 = vld [vmem:[%s21317_s3 + $0x48] sm:$0xff] }
 0x252   : > { %12562 = vmatmul.mubr.msk.bf16.gmra.mrb[44].mxu1 %vm1670_vm0, %v1214_v46  ;;  %v13221_v46 = vpack.c.bf16 %v2996_v43, %v2995_v41  ;;  %v841_v41 = vld [vmem:[%s16426_s29 + $0x790] sm:$0xff]  ;;  %v856_v43 = vld [vmem:[%s16426_s29 + $0x808] sm:$0xff] }
 0x256   : > { %2378 = vmatmul.mubr.bf16.vlgmr.msra.gmra.mrb[0].mxu0 %v1051_v48  ;;  %v708_v48 = vld [vmem:[%s16426_s29 + $0x368] sm:$0xff] }
 0x257   : > { %2385 = vmatprep.mubr.bf16.mxu0 %v1059_v49  ;;  %v716_v49 = vld [vmem:[%s16426_s29 + $0x3a8] sm:$0xff]  ;;  %v1100_v51 = vpack.c.bf16 %v708_v48, %v701_v47 }
 0x258   : > { %v1108_v52 = vpack.c.bf16 %v723_v50, %v716_v49  ;;  %v2997_v50 = vld [vmem:[%s21317_s3 + $0x50] sm:$0xff] }
 0x25e   : > { %2386 = vmatmul.mubr.bf16.gmra.mrb[4].mxu0 %v1058_v60  ;;  %v948_v60 = vld [vmem:[%s16426_s29 + $0xae8] sm:$0xff] }
 0x25f   : > { %2393 = vmatprep.mubr.bf16.mxu0 %v1066_v61  ;;  %v1221_v61 = vpack.c.bf16 %v948_v60, %v941_v59  ;;  %v1032_v59 = vld [vmem:[%s16426_s29 + $0xd88] sm:$0xff] }
 0x261   : > { %12565 = vmatprep.mubr.msk.bf16.mxu1 %vm1670_vm0, %v1221_v61  ;;  %v1039_v61 = vld [vmem:[%s16426_s29 + $0xdc0] sm:$0xff] }
 0x262   : > { %12566 = vmatmul.mubr.msk.bf16.gmra.mrb[48].mxu1 %vm1670_vm0, %v1228_v0  ;;  %v1270_v0 = vpack.c.bf16 %v1046_v62, %v1039_v61  ;;  %v869_v61 = vld [vmem:[%s16426_s29 + $0x870] sm:$0xff]  ;;  %v876_v62 = vld [vmem:[%s16426_s29 + $0x8a8] sm:$0xff] }
 0x265   : > { %v17031_v45 = vpop.f32.mrb[0].mxu1 }
 0x266   : > { %2394 = vmatmul.mubr.bf16.gmra.mrb[8].mxu0 %v1065_v3  ;;  %v2988_v3 = vld [vmem:[%s21317_s3 + $0x8] sm:$0xff]  ;;  %v17034_v48 = vpop.f32.mrb[1].mxu1 }
 0x267   : > { %2401 = vmatprep.mubr.bf16.mxu0 %v1073_v4  ;;  %v729_v4 = vld [vmem:[%s16426_s29 + $0x410] sm:$0xff]  ;;  %v13205_v6 = vpack.c.bf16 %v2988_v3, %v2987_v2  ;;  %v17037_v49 = vpop.f32.mrb[2].mxu1  ;;  %v3000_v2 = vld [vmem:[%s21317_s3 + $0x68] sm:$0xff]  ;;  %v1135_v3 = vpack.c.bf16 %v778_v55, %v771_v54  ;;  %v855_v55 = vld [vmem:[%s16426_s29 + $0x800] sm:$0xff] }
 0x268   : > { %v1114_v9 = vpack.c.bf16 %v736_v5, %v729_v4  ;;  %v13229_v4 = vpack.c.bf16 %v3000_v2, %v2999_v63  ;;  %v884_v63 = vld [vmem:[%s16426_s29 + $0x8e8] sm:$0xff]  ;;  %v1184_v2 = vpack.c.bf16 %v876_v62, %v869_v61  ;;  %v953_v62 = vld [vmem:[%s16426_s29 + $0xb10] sm:$0xff] }
 0x269   : > { %13206 = vmatprep.subr.bf16.mxu1 %v13205_v6 }
 0x26a   : > { %13208 = vmatpush3.bf16.msra.mxu1 %v13205_v6  ;;  %v3001_v6 = vld [vmem:[%s21317_s3 + $0x70] sm:$0xff] }
 0x26b   : > { %v13233_v8 = vpack.c.bf16 %v3002_v7, %v3001_v6 }
 0x26e   : > { %2402 = vmatmul.mubr.bf16.gmra.mrb[12].mxu0 %v1072_v15  ;;  %v13209_v15 = vpack.c.bf16 %v2990_v12, %v2989_v11  ;;  %v800_v11 = vld [vmem:[%s16426_s29 + $0x648] sm:$0xff]  ;;  %v807_v12 = vld [vmem:[%s16426_s29 + $0x680] sm:$0xff] }
 0x26f   : > { %2409 = vmatprep.mubr.bf16.mxu0 %v1080_v16  ;;  %v969_v16 = vld [vmem:[%s16426_s29 + $0xb90] sm:$0xff] }
 0x270   : > { %13210 = vmatprep.subr.bf16.mxu1 %v13209_v15  ;;  %v1235_v19 = vpack.c.bf16 %v976_v17, %v969_v16 }
 0x271   : > { %13212 = vmatpush3.bf16.msra.mxu1 %v13209_v15  ;;  %v1150_v15 = vpack.c.bf16 %v807_v12, %v800_v11  ;;  %v905_v11 = vld [vmem:[%s16426_s29 + $0x990] sm:$0xff] }
 0x272   : > { %12569 = vmatprep.mubr.msk.bf16.mxu1 %vm1670_vm0, %v1235_v19  ;;  %v799_v19 = vld [vmem:[%s16426_s29 + $0x640] sm:$0xff] }
 0x273   : > { %12570 = vmatmul.mubr.msk.bf16.gmra.mrb[52].mxu1 %vm1670_vm0, %v1242_v25  ;;  %v1149_v23 = vpack.c.bf16 %v806_v20, %v799_v19  ;;  %v813_v25 = vld [vmem:[%s16426_s29 + $0x6b0] sm:$0xff]  ;;  %v904_v19 = vld [vmem:[%s16426_s29 + $0x988] sm:$0xff] }
 0x274   : > { %12573 = vmatprep.mubr.msk.bf16.mxu1 %vm1670_vm0, %v1249_v38  ;;  %v849_v38 = vld [vmem:[%s16426_s29 + $0x7d0] sm:$0xff]  ;;  %v912_v20 = vld [vmem:[%s16426_s29 + $0x9c8] sm:$0xff] }
 0x276   : > { %2410 = vmatmul.mubr.bf16.gmra.mrb[16].mxu0 %v1079_v21  ;;  %v2991_v21 = vld [vmem:[%s21317_s3 + $0x20] sm:$0xff] }
 0x277   : > { %2417 = vmatprep.mubr.bf16.mxu0 %v1087_v22  ;;  %v2992_v22 = vld [vmem:[%s21317_s3 + $0x28] sm:$0xff] }
 0x278   : > { %v13213_v26 = vpack.c.bf16 %v2992_v22, %v2991_v21  ;;  %v814_v21 = vld [vmem:[%s16426_s29 + $0x6b8] sm:$0xff]  ;;  %v821_v22 = vld [vmem:[%s16426_s29 + $0x6f0] sm:$0xff] }
 0x279   : > { %v1157_v24 = vpack.c.bf16 %v821_v22, %v814_v21  ;;  %v919_v21 = vld [vmem:[%s16426_s29 + $0xa00] sm:$0xff] }
 0x27a   : > { %13214 = vmatprep.subr.bf16.mxu1 %v13213_v26 }
 0x27b   : > { %13216 = vmatpush3.bf16.msra.mxu1 %v13213_v26  ;;  %v820_v26 = vld [vmem:[%s16426_s29 + $0x6e8] sm:$0xff] }
 0x27c   : > { %13218 = vmatprep.subr.bf16.mxu1 %v13217_v31  ;;  %v1156_v29 = vpack.c.bf16 %v820_v26, %v813_v25 }
 0x27e   : > { %2418 = vmatmul.mubr.bf16.gmra.mrb[20].mxu0 %v1086_v33  ;;  %v764_v33 = vld [vmem:[%s16426_s29 + $0x528] sm:$0xff] }
 0x27f   : > { %2425 = vmatprep.mubr.bf16.mxu0 %v1094_v34  ;;  %v772_v34 = vld [vmem:[%s16426_s29 + $0x568] sm:$0xff]  ;;  %13220 = vmatpush3.bf16.msra.mxu1 %v13217_v31  ;;  %v1128_v44 = vpack.c.bf16 %v764_v33, %v757_v32 }
 0x280   : > { %v1136_v47 = vpack.c.bf16 %v779_v35, %v772_v34  ;;  %13222 = vmatprep.subr.bf16.mxu1 %v13221_v46  ;;  %v827_v35 = vld [vmem:[%s16426_s29 + $0x720] sm:$0xff] }
 0x283   : > { %13224 = vmatpush3.bf16.msra.mxu1 %v13221_v46 }
 0x286   : > { %2426 = vmatmul.mubr.bf16.gmra.mrb[24].mxu0 %v1093_v39  ;;  %v1011_v39 = vld [vmem:[%s16426_s29 + $0xce0] sm:$0xff] }
 0x287   : > { %2433 = vmatprep.mubr.bf16.mxu0 %v1101_v40  ;;  %v1018_v40 = vld [vmem:[%s16426_s29 + $0xd18] sm:$0xff] }
 0x288   : > { %v1256_v42 = vpack.c.bf16 %v1018_v40, %v1011_v39  ;;  %v1163_v39 = vpack.c.bf16 %v834_v36, %v827_v35  ;;  %v1171_v40 = vpack.c.bf16 %v849_v38, %v842_v37  ;;  %v933_v35 = vld [vmem:[%s16426_s29 + $0xa70] sm:$0xff] }
 0x289   : > { %v925_v38 = vld [vmem:[%s16426_s29 + $0xa30] sm:$0xff] }
 0x28a   : > { %12574 = vmatmul.mubr.msk.bf16.gmra.mrb[56].mxu1 %vm1670_vm0, %v1256_v42  ;;  %v848_v42 = vld [vmem:[%s16426_s29 + $0x7c8] sm:$0xff] }
 0x28b   : > { %v1170_v46 = vpack.c.bf16 %v848_v42, %v841_v41  ;;  %v947_v41 = vld [vmem:[%s16426_s29 + $0xae0] sm:$0xff] }
 0x28e   : > { %2434 = vmatmul.mubr.bf16.gmra.mrb[28].mxu0 %v1100_v51  ;;  %v2998_v51 = vld [vmem:[%s21317_s3 + $0x58] sm:$0xff] }
 0x28f   : > { %2441 = vmatprep.mubr.bf16.mxu0 %v1108_v52  ;;  %v17045_v52 = vpop.f32.mrb[3].mxu1  ;;  %v13225_v53 = vpack.c.bf16 %v2998_v51, %v2997_v50 }
 0x290   : > { %v17073_v14 = vpop.f32.mrb[4].mxu1 }
 0x291   : > { %13226 = vmatprep.subr.bf16.mxu1 %v13225_v53  ;;  %v17075_v16 = vpop.f32.mrb[5].mxu1 }
 0x292   : > { %13228 = vmatpush3.bf16.msra.mxu1 %v13225_v53  ;;  %v17077_v17 = vpop.f32.mrb[6].mxu1 }
 0x293   : > { %13230 = vmatprep.subr.bf16.mxu1 %v13229_v4  ;;  %v17079_v18 = vpop.f32.mrb[7].mxu1 }
 0x294   : > { %v17089_v30 = vpop.f32.mrb[8].mxu1 }
 0x295   : > { %v17091_v32 = vpop.f32.mrb[9].mxu1 }
 0x296   : > { %2442 = vmatmul.mubr.bf16.gmra.mrb[32].mxu0 %v1107_v57  ;;  %v793_v57 = vld [vmem:[%s16426_s29 + $0x610] sm:$0xff]  ;;  %13232 = vmatpush3.bf16.msra.mxu1 %v13229_v4  ;;  %v17093_v33 = vpop.f32.mrb[10].mxu1 }
 0x297   : > { %2449 = vmatprep.mubr.bf16.mxu0 %v1115_v58  ;;  %v1025_v58 = vld [vmem:[%s16426_s29 + $0xd50] sm:$0xff]  ;;  %v1143_v5 = vpack.c.bf16 %v793_v57, %v786_v56  ;;  %13234 = vmatprep.subr.bf16.mxu1 %v13233_v8  ;;  %v17095_v34 = vpop.f32.mrb[11].mxu1  ;;  %v862_v56 = vld [vmem:[%s16426_s29 + $0x838] sm:$0xff] }
 0x298   : > { %v1263_v60 = vpack.c.bf16 %v1032_v59, %v1025_v58  ;;  %v870_v57 = vld [vmem:[%s16426_s29 + $0x878] sm:$0xff]  ;;  %v877_v58 = vld [vmem:[%s16426_s29 + $0x8b0] sm:$0xff]  ;;  %v1177_v59 = vpack.c.bf16 %v862_v56, %v855_v55  ;;  %v939_v56 = vld [vmem:[%s16426_s29 + $0xaa0] sm:$0xff] }
 0x29a   : > { %12577 = vmatprep.mubr.msk.bf16.mxu1 %vm1670_vm0, %v1263_v60  ;;  %13236 = vmatpush3.bf16.msra.mxu1 %v13233_v8  ;;  %v1185_v60 = vpack.c.bf16 %v877_v58, %v870_v57  ;;  %v883_v8 = vld [vmem:[%s16426_s29 + $0x8e0] sm:$0xff]  ;;  %v946_v57 = vld [vmem:[%s16426_s29 + $0xad8] sm:$0xff] }
 0x29b   : > { %12578 = vmatmul.mubr.msk.bf16.gmra.mrb[60].mxu1 %vm1670_vm0, %v1270_v0  ;;  %v891_v0 = vld [vmem:[%s16426_s29 + $0x920] sm:$0xff]  ;;  %v954_v58 = vld [vmem:[%s16426_s29 + $0xb18] sm:$0xff] }
 0x29c   : > { %v1192_v4 = vpack.c.bf16 %v891_v0, %v884_v63  ;;  %v960_v63 = vld [vmem:[%s16426_s29 + $0xb48] sm:$0xff] }
 0x29d   : > { %v968_v0 = vld [vmem:[%s16426_s29 + $0xb88] sm:$0xff] }
 0x29e   : > { %2450 = vmatmul.mubr.bf16.gmra.mrb[36].mxu0 %v1114_v9  ;;  %v785_v9 = vld [vmem:[%s16426_s29 + $0x5d0] sm:$0xff] }
 0x29f   : > { %2457 = vmatprep.mubr.bf16.mxu0 %v1122_v10  ;;  %v792_v10 = vld [vmem:[%s16426_s29 + $0x608] sm:$0xff] }
 0x2a0   : > { %v1142_v13 = vpack.c.bf16 %v792_v10, %v785_v9  ;;  %v890_v9 = vld [vmem:[%s16426_s29 + $0x918] sm:$0xff] }
 0x2a1   : > { %v898_v10 = vld [vmem:[%s16426_s29 + $0x958] sm:$0xff]  ;;  %v1191_v12 = vpack.c.bf16 %v890_v9, %v883_v8 }
 0x2a6   : > { %2458 = vmatmul.mubr.bf16.gmra.mrb[40].mxu0 %v1121_v27  ;;  %v828_v27 = vld [vmem:[%s16426_s29 + $0x728] sm:$0xff] }
 0x2a7   : > { %2465 = vmatprep.mubr.bf16.mxu0 %v1129_v28  ;;  %v835_v28 = vld [vmem:[%s16426_s29 + $0x760] sm:$0xff] }
 0x2a8   : > { %v1164_v31 = vpack.c.bf16 %v835_v28, %v828_v27  ;;  %v911_v28 = vld [vmem:[%s16426_s29 + $0x9c0] sm:$0xff] }
 0x2ae   : > { %2466 = vmatmul.mubr.bf16.gmra.mrb[44].mxu0 %v1128_v44  ;;  %v863_v44 = vld [vmem:[%s16426_s29 + $0x840] sm:$0xff] }
 0x2af   : > { %2473 = vmatprep.mubr.bf16.mxu0 %v1136_v47  ;;  %v17105_v47 = vpop.f32.mrb[12].mxu1  ;;  %v1178_v50 = vpack.c.bf16 %v863_v44, %v856_v43 }
 0x2b0   : > { %v17107_v51 = vpop.f32.mrb[13].mxu1 }
 0x2b1   : > { %v17109_v53 = vpop.f32.mrb[14].mxu1 }
 0x2b2   : > { %v17111_v54 = vpop.f32.mrb[15].mxu1 }
 0x2b6   : > { %2474 = vmatmul.mubr.bf16.gmra.mrb[48].mxu0 %v1135_v3  ;;  %v17121_v3 = vpop.f32.mrb[16].mxu1 }
 0x2b7   : > { %2481 = vmatprep.mubr.bf16.mxu0 %v1143_v5  ;;  %v17123_v5 = vpop.f32.mrb[17].mxu1 }
 0x2b8   : > { %v17125_v6 = vpop.f32.mrb[18].mxu1 }
 0x2b9   : > { %v17127_v7 = vpop.f32.mrb[19].mxu1 }
 0x2be   : > { %2482 = vmatmul.mubr.bf16.gmra.mrb[52].mxu0 %v1142_v13  ;;  %v1199_v13 = vpack.c.bf16 %v905_v11, %v898_v10 }
 0x2bf   : > { %2489 = vmatprep.mubr.bf16.mxu0 %v1150_v15  ;;  %v897_v15 = vld [vmem:[%s16426_s29 + $0x950] sm:$0xff] }
 0x2c0   : > { %v1198_v22 = vpack.c.bf16 %v904_v19, %v897_v15  ;;  %v974_v15 = vld [vmem:[%s16426_s29 + $0xbb8] sm:$0xff] }
 0x2c1   : > { %v982_v19 = vld [vmem:[%s16426_s29 + $0xbf8] sm:$0xff] }
 0x2c6   : > { %2490 = vmatmul.mubr.bf16.gmra.mrb[56].mxu0 %v1149_v23  ;;  %v17137_v23 = vpop.f32.mrb[20].mxu1 }
 0x2c7   : > { %2497 = vmatprep.mubr.bf16.mxu0 %v1157_v24  ;;  %v1206_v24 = vpack.c.bf16 %v919_v21, %v912_v20  ;;  %v17139_v25 = vpop.f32.mrb[21].mxu1  ;;  %v989_v20 = vld [vmem:[%s16426_s29 + $0xc30] sm:$0xff] }
 0x2c8   : > { %v17141_v26 = vpop.f32.mrb[22].mxu1 }
 0x2c9   : > { %v17143_v27 = vpop.f32.mrb[23].mxu1 }
 0x2ce   : > { %2498 = vmatmul.mubr.bf16.gmra.mrb[60].mxu0 %v1156_v29  ;;  %v918_v29 = vld [vmem:[%s16426_s29 + $0x9f8] sm:$0xff] }
 0x2cf   : > { %2505 = vmatprep.mubr.bf16.mxu0 %v1164_v31  ;;  %v926_v31 = vld [vmem:[%s16426_s29 + $0xa38] sm:$0xff]  ;;  %v1205_v36 = vpack.c.bf16 %v918_v29, %v911_v28  ;;  %v981_v28 = vld [vmem:[%s16426_s29 + $0xbf0] sm:$0xff]  ;;  %v988_v29 = vld [vmem:[%s16426_s29 + $0xc28] sm:$0xff] }
 0x2d0   : > { %v1213_v37 = vpack.c.bf16 %v933_v35, %v926_v31  ;;  %v996_v31 = vld [vmem:[%s16426_s29 + $0xc68] sm:$0xff]  ;;  %v1003_v35 = vld [vmem:[%s16426_s29 + $0xca0] sm:$0xff] }
 0x2d5   : > { %v17153_v43 = vpop.f32.mrb[24].mxu1 }
 0x2d6   : > { %2506 = vmatmul.mubr.bf16.gmra.mrb[64].mxu0 %v1163_v39  ;;  %v932_v39 = vld [vmem:[%s16426_s29 + $0xa68] sm:$0xff] }
 0x2d7   : > { %2513 = vmatprep.mubr.bf16.mxu0 %v1171_v40  ;;  %v940_v40 = vld [vmem:[%s16426_s29 + $0xaa8] sm:$0xff]  ;;  %v1212_v42 = vpack.c.bf16 %v932_v39, %v925_v38  ;;  %v1240_v39 = vpack.c.bf16 %v988_v29, %v981_v28  ;;  %v1009_v28 = vld [vmem:[%s16426_s29 + $0xcd0] sm:$0xff] }
 0x2d8   : > { %v1220_v44 = vpack.c.bf16 %v947_v41, %v940_v40  ;;  %v1016_v29 = vld [vmem:[%s16426_s29 + $0xd08] sm:$0xff] }
 0x2de   : > { %2514 = vmatmul.mubr.bf16.gmra.mrb[68].mxu0 %v1170_v46  ;;  %v17155_v46 = vpop.f32.mrb[25].mxu1 }
 0x2df   : > { %2521 = vmatprep.mubr.bf16.mxu0 %v1178_v50  ;;  %v17157_v50 = vpop.f32.mrb[26].mxu1 }
 0x2e0   : > { %v17159_v55 = vpop.f32.mrb[27].mxu1 }
 0x2e5   : > { %v17169_v8 = vpop.f32.mrb[28].mxu1 }
 0x2e6   : > { %2522 = vmatmul.mubr.bf16.gmra.mrb[72].mxu0 %v1177_v59  ;;  %v961_v59 = vld [vmem:[%s16426_s29 + $0xb50] sm:$0xff]  ;;  %v17171_v10 = vpop.f32.mrb[29].mxu1 }
 0x2e7   : > { %2529 = vmatprep.mubr.bf16.mxu0 %v1185_v60  ;;  %v1219_v60 = vpack.c.bf16 %v946_v57, %v939_v56  ;;  %v1227_v61 = vpack.c.bf16 %v961_v59, %v954_v58  ;;  %v17173_v11 = vpop.f32.mrb[30].mxu1 }
 0x2ee   : > { %2530 = vmatmul.mubr.bf16.gmra.mrb[76].mxu0 %v1184_v2  ;;  %v975_v2 = vld [vmem:[%s16426_s29 + $0xbc0] sm:$0xff] }
 0x2ef   : > { %2537 = vmatprep.mubr.bf16.mxu0 %v1192_v4  ;;  %v1226_v4 = vpack.c.bf16 %v960_v63, %v953_v62  ;;  %v1234_v9 = vpack.c.bf16 %v975_v2, %v968_v0  ;;  %v995_v62 = vld [vmem:[%s16426_s29 + $0xc60] sm:$0xff]  ;;  %v1002_v63 = vld [vmem:[%s16426_s29 + $0xc98] sm:$0xff]  ;;  %v1017_v2 = vld [vmem:[%s16426_s29 + $0xd10] sm:$0xff] }
 0x2f0   : > { %v1010_v0 = vld [vmem:[%s16426_s29 + $0xcd8] sm:$0xff] }
 0x2f6   : > { %2538 = vmatmul.mubr.bf16.gmra.mrb[80].mxu0 %v1191_v12  ;;  %v17175_v12 = vpop.f32.mrb[31].mxu1 }
 0x2f7   : > { %2545 = vmatprep.mubr.bf16.mxu0 %v1199_v13  ;;  %v967_v13 = vld [vmem:[%s16426_s29 + $0xb80] sm:$0xff]  ;;  %v17191_v40 = vpop.f32.mrb[32].mxu1 }
 0x2f8   : > { %v1233_v21 = vpack.c.bf16 %v974_v15, %v967_v13  ;;  %v1247_v13 = vpack.c.bf16 %v1002_v63, %v995_v62 }
 0x2fe   : > { %2546 = vmatmul.mubr.bf16.gmra.mrb[84].mxu0 %v1198_v22  ;;  %v1241_v22 = vpack.c.bf16 %v989_v20, %v982_v19  ;;  %v1255_v19 = vpack.c.bf16 %v1017_v2, %v1010_v0 }
 0x2ff   : > { %2553 = vmatprep.mubr.bf16.mxu0 %v1206_v24  ;;  %v17184_v24 = vld [vmem:[%s21382_s22] ss:$0 sm:$0xff] }
 0x306   : > { %2554 = vmatmul.mubr.bf16.gmra.mrb[88].mxu0 %v1205_v36 }
 0x307   : > { %2561 = vmatprep.mubr.bf16.mxu0 %v1213_v37 }
 0x30e   : > { %2562 = vmatmul.mubr.bf16.gmra.mrb[92].mxu0 %v1212_v42  ;;  %v1248_v42 = vpack.c.bf16 %v1003_v35, %v996_v31  ;;  %v1024_v35 = vld [vmem:[%s16426_s29 + $0xd48] sm:$0xff] }
 0x30f   : > { %2569 = vmatprep.mubr.bf16.mxu0 %v1220_v44  ;;  %v17193_v44 = vpop.f32.mrb[33].mxu1 }
 0x310   : > { %v17197_v59 = vpop.f32.mrb[34].mxu1 }
 0x316   : > { %2570 = vmatmul.mubr.bf16.gmra.mrb[96].mxu0 %v1219_v60  ;;  %v17199_v60 = vpop.f32.mrb[35].mxu1 }
 0x317   : > { %2577 = vmatprep.mubr.bf16.mxu0 %v1227_v61 }
 0x31e   : > { %2578 = vmatmul.mubr.bf16.gmra.mrb[100].mxu0 %v1226_v4 }
 0x31f   : > { %2585 = vmatprep.mubr.bf16.mxu0 %v1234_v9 }
 0x326   : > { %2586 = vmatmul.mubr.bf16.gmra.mrb[104].mxu0 %v1233_v21 }
 0x327   : > { %2593 = vmatprep.mubr.bf16.mxu0 %v1241_v22 }
 0x329   : > { %v2379_v36 = vpop.f32.mrb[0].mxu0 }
 0x32a   : > { %v13259_v37 = vadd.f32 %v17184_v24, %v2379_v36  ;;  %v2381_v38 = vpop.f32.mrb[1].mxu0  ;;  %v1031_v36 = vld [vmem:[%s16426_s29 + $0xd80] sm:$0xff] }
 0x32b   : > { %v2382_v41 = vpop.f32.mrb[2].mxu0 }
 0x32c   : > { %v13260_v56 = vadd.f32 %v17184_v24, %v2382_v41  ;;  %v2669_v57 = vadd.f32 %v13259_v37, %v17034_v48  ;;  %v2384_v58 = vpop.f32.mrb[3].mxu0  ;;  %v1254_v41 = vpack.c.bf16 %v1016_v29, %v1009_v28 }
 0x32e   : > { %13727 = vtanh.f32 %v2669_v57  ;;  %v2672_v61 = vadd.f32 %v13260_v56, %v17045_v52  ;;  %2594 = vmatmul.mubr.bf16.gmra.mrb[108].mxu0 %v1240_v39  ;;  %v1262_v56 = vpack.c.bf16 %v1031_v36, %v1024_v35  ;;  %v1037_v36 = vld [vmem:[%s16426_s29 + $0xdb0] sm:$0xff] }
 0x32f   : > { %2601 = vmatprep.mubr.bf16.mxu0 %v1248_v42  ;;  %v17215_v42 = vpop.f32.mrb[36].mxu1 }
 0x330   : > { %13729 = vtanh.f32 %v2672_v61  ;;  %v17217_v57 = vpop.f32.mrb[37].mxu1 }
 0x331   : > { %v2387_v4 = vpop.f32.mrb[4].mxu0  ;;  %v17221_v63 = vpop.f32.mrb[38].mxu1 }
 0x332   : > { %v13261_v48 = vadd.f32 %v17184_v24, %v2387_v4  ;;  %v2389_v9 = vpop.f32.mrb[5].mxu0  ;;  %v17223_v0 = vpop.f32.mrb[39].mxu1  ;;  %v1023_v4 = vld [vmem:[%s16426_s29 + $0xd40] sm:$0xff] }
 0x333   : > { %v2390_v15 = vpop.f32.mrb[6].mxu0 }
 0x334   : > { %v2677_v52 = vadd.f32 %v13261_v48, %v17031_v45  ;;  %v13262_v20 = vadd.f32 %v17184_v24, %v2390_v15  ;;  %v2392_v21 = vpop.f32.mrb[7].mxu0  ;;  %v1030_v48 = vld [vmem:[%s16426_s29 + $0xd78] sm:$0xff]  ;;  %v1045_v15 = vld [vmem:[%s16426_s29 + $0xdf0] sm:$0xff] }
 0x335   : > { %v1261_v21 = vpack.c.bf16 %v1030_v48, %v1023_v4 }
 0x336   : > { %13731 = vtanh.f32 %v2677_v52  ;;  %v2680_v22 = vadd.f32 %v13262_v20, %v17037_v49  ;;  %2602 = vmatmul.mubr.bf16.gmra.mrb[112].mxu0 %v1247_v13  ;;  %v1038_v13 = vld [vmem:[%s16426_s29 + $0xdb8] sm:$0xff] }
 0x337   : > { %2609 = vmatprep.mubr.bf16.mxu0 %v1255_v19 }
 0x338   : > { %v13728_v31 = vpop.eup %13727  ;;  %13733 = vtanh.f32 %v2680_v22 }
 0x339   : > { %v2395_v37 = vpop.f32.mrb[8].mxu0  ;;  %12613 = vmatprep.mubr.f32.mxu1 %v13728_v31 }
 0x33a   : > { %v13730_v38 = vpop.eup %13729  ;;  %v13263_v39 = vadd.f32 %v17184_v24, %v2395_v37  ;;  %v2397_v45 = vpop.f32.mrb[9].mxu0  ;;  %v1044_v37 = vld [vmem:[%s16426_s29 + $0xde8] sm:$0xff]  ;;  %s11294_s29 = sshll.u32 %s21741_s19, 3 }
 0x33b   : > { %v2398_v49 = vpop.f32.mrb[10].mxu0  ;;  %12614 = vmatmul.mubr.f32.vlgmr.msra.gmra.mrb[64].mxu1 %v13730_v38  ;;  %s17947_s28 = scalar_lea.vmem %s21331_s17, %s11294_s29 }
 0x33c   : > { %v13264_v58 = vadd.f32 %v17184_v24, %v2398_v49  ;;  %v2685_v61 = vadd.f32 %v13263_v39, %v17075_v16  ;;  %v2400_v62 = vpop.f32.mrb[11].mxu0 }
 0x33e   : > { %13735 = vtanh.f32 %v2685_v61  ;;  %v2688_v2 = vadd.f32 %v13264_v58, %v17079_v18  ;;  %2610 = vmatmul.mubr.bf16.gmra.mrb[116].mxu0 %v1254_v41  ;;  %v1269_v18 = vpack.c.bf16 %v1045_v15, %v1038_v13 }
 0x33f   : > { %2617 = vmatprep.mubr.bf16.mxu0 %v1262_v56  ;;  %v1268_v56 = vpack.c.bf16 %v1044_v37, %v1037_v36 }
 0x340   : > { %v13732_v9 = vpop.eup %13731  ;;  %13737 = vtanh.f32 %v2688_v2 }
 0x341   : > { %v2403_v19 = vpop.f32.mrb[12].mxu0  ;;  %12616 = vmatprep.mubr.f32.mxu1 %v13732_v9 }
 0x342   : > { %v13734_v16 = vpop.eup %13733  ;;  %v13265_v52 = vadd.f32 %v17184_v24, %v2403_v19  ;;  %v2405_v20 = vpop.f32.mrb[13].mxu0 }
 0x343   : > { %v2406_v22 = vpop.f32.mrb[14].mxu0  ;;  %12617 = vmatmul.mubr.f32.gmra.mrb[66].mxu1 %v13734_v16 }
 0x344   : > { %v2693_v28 = vadd.f32 %v13265_v52, %v17073_v14  ;;  %v13266_v29 = vadd.f32 %v17184_v24, %v2406_v22  ;;  %v2408_v31 = vpop.f32.mrb[15].mxu0  ;;  %v17237_v14 = vpop.f32.mrb[40].mxu1 }
 0x345   : > { %v17239_v61 = vpop.f32.mrb[41].mxu1 }
 0x346   : > { %13739 = vtanh.f32 %v2693_v28  ;;  %v2696_v35 = vadd.f32 %v13266_v29, %v17077_v17  ;;  %2618 = vmatmul.mubr.bf16.gmra.mrb[120].mxu0 %v1261_v21  ;;  %v17243_v4 = vpop.f32.mrb[42].mxu1 }
 0x347   : > { %2625 = vmatprep.mubr.bf16.mxu0 %v1269_v18  ;;  %v17245_v48 = vpop.f32.mrb[43].mxu1 }
 0x348   : > { %v13736_v38 = vpop.eup %13735  ;;  %13741 = vtanh.f32 %v2696_v35  ;;  %v17254_v36 = vpop.f32.mrb[44].mxu1 }
 0x349   : > { %v2411_v39 = vpop.f32.mrb[16].mxu0  ;;  %12619 = vmatprep.mubr.f32.mxu1 %v13736_v38  ;;  %v17256_v38 = vpop.f32.mrb[45].mxu1 }
 0x34a   : > { %v13738_v45 = vpop.eup %13737  ;;  %v13267_v41 = vadd.f32 %v17184_v24, %v2411_v39  ;;  %v2413_v49 = vpop.f32.mrb[17].mxu0 }
 0x34b   : > { %v2414_v58 = vpop.f32.mrb[18].mxu0  ;;  %12620 = vmatmul.mubr.f32.gmra.mrb[68].mxu1 %v13738_v45 }
 0x34c   : > { %v13268_v17 = vadd.f32 %v17184_v24, %v2414_v58  ;;  %v2701_v62 = vadd.f32 %v13267_v41, %v17091_v32  ;;  %v2416_v2 = vpop.f32.mrb[19].mxu0 }
 0x34e   : > { %13743 = vtanh.f32 %v2701_v62  ;;  %v2704_v9 = vadd.f32 %v13268_v17, %v17095_v34  ;;  %2626 = vmatmul.mubr.bf16.gmra.mrb[124].mxu0 %v1268_v56 }
 0x34f   : > { %6742 = vmatprep.mubr.bf16.mxu0 %v21335_v1 }
 0x350   : > { %v13740_v13 = vpop.eup %13739  ;;  %13745 = vtanh.f32 %v2704_v9 }
 0x351   : > { %v2419_v15 = vpop.f32.mrb[20].mxu0  ;;  %12622 = vmatprep.mubr.f32.mxu1 %v13740_v13 }
 0x352   : > { %v13742_v19 = vpop.eup %13741  ;;  %v13269_v16 = vadd.f32 %v17184_v24, %v2419_v15  ;;  %v2421_v52 = vpop.f32.mrb[21].mxu0 }
 0x353   : > { %v2422_v32 = vpop.f32.mrb[22].mxu0  ;;  %12623 = vmatmul.mubr.f32.gmra.mrb[70].mxu1 %v13742_v19 }
 0x354   : > { %v2709_v20 = vadd.f32 %v13269_v16, %v17089_v30  ;;  %v13270_v21 = vadd.f32 %v17184_v24, %v2422_v32  ;;  %v2424_v22 = vpop.f32.mrb[23].mxu0 }
 0x356   : > { %13747 = vtanh.f32 %v2709_v20  ;;  %v2712_v34 = vadd.f32 %v13270_v21, %v17093_v33  ;;  %v17260_v33 = vpop.f32.mrb[46].mxu1 }
 0x357   : > { %v17262_v41 = vpop.f32.mrb[47].mxu1 }
 0x358   : > { %v13744_v18 = vpop.eup %13743  ;;  %13749 = vtanh.f32 %v2712_v34  ;;  %v17270_v21 = vpop.f32.mrb[48].mxu1 }
 0x359   : > { %v2427_v28 = vpop.f32.mrb[24].mxu0  ;;  %12625 = vmatprep.mubr.f32.mxu1 %v13744_v18  ;;  %v17272_v34 = vpop.f32.mrb[49].mxu1 }
 0x35a   : > { %v13746_v29 = vpop.eup %13745  ;;  %v13271_v31 = vadd.f32 %v17184_v24, %v2427_v28  ;;  %v2429_v35 = vpop.f32.mrb[25].mxu0 }
 0x35b   : > { %v2430_v37 = vpop.f32.mrb[26].mxu0  ;;  %12626 = vmatmul.mubr.f32.gmra.mrb[72].mxu1 %v13746_v29 }
 0x35c   : > { %v13272_v30 = vadd.f32 %v17184_v24, %v2430_v37  ;;  %v2717_v39 = vadd.f32 %v13271_v31, %v17107_v51  ;;  %v2432_v45 = vpop.f32.mrb[27].mxu0 }
 0x35e   : > { %13751 = vtanh.f32 %v2717_v39  ;;  %v2720_v49 = vadd.f32 %v13272_v30, %v17111_v54 }
 0x360   : > { %v13748_v56 = vpop.eup %13747  ;;  %13753 = vtanh.f32 %v2720_v49 }
 0x361   : > { %v2435_v58 = vpop.f32.mrb[28].mxu0  ;;  %12628 = vmatprep.mubr.f32.mxu1 %v13748_v56 }
 0x362   : > { %v13750_v17 = vpop.eup %13749  ;;  %v13273_v62 = vadd.f32 %v17184_v24, %v2435_v58  ;;  %v2437_v2 = vpop.f32.mrb[29].mxu0 }
 0x363   : > { %v2438_v9 = vpop.f32.mrb[30].mxu0  ;;  %12629 = vmatmul.mubr.f32.gmra.mrb[74].mxu1 %v13750_v17 }
 0x364   : > { %v2725_v51 = vadd.f32 %v13273_v62, %v17105_v47  ;;  %v13274_v13 = vadd.f32 %v17184_v24, %v2438_v9  ;;  %v2440_v15 = vpop.f32.mrb[31].mxu0 }
 0x366   : > { %13755 = vtanh.f32 %v2725_v51  ;;  %v2728_v19 = vadd.f32 %v13274_v13, %v17109_v53  ;;  %v17276_v53 = vpop.f32.mrb[50].mxu1 }
 0x367   : > { %v17278_v29 = vpop.f32.mrb[51].mxu1 }
 0x368   : > { %v13752_v16 = vpop.eup %13751  ;;  %13757 = vtanh.f32 %v2728_v19  ;;  %v17286_v13 = vpop.f32.mrb[52].mxu1 }
 0x369   : > { %v2443_v54 = vpop.f32.mrb[32].mxu0  ;;  %12631 = vmatprep.mubr.f32.mxu1 %v13752_v16  ;;  %v17288_v19 = vpop.f32.mrb[53].mxu1 }
 0x36a   : > { %v13754_v52 = vpop.eup %13753  ;;  %v13275_v32 = vadd.f32 %v17184_v24, %v2443_v54  ;;  %v2445_v20 = vpop.f32.mrb[33].mxu0 }
 0x36b   : > { %v2446_v22 = vpop.f32.mrb[34].mxu0  ;;  %12632 = vmatmul.mubr.f32.gmra.mrb[76].mxu1 %v13754_v52 }
 0x36c   : > { %v13276_v47 = vadd.f32 %v17184_v24, %v2446_v22  ;;  %v2733_v18 = vadd.f32 %v13275_v32, %v17123_v5  ;;  %v2448_v28 = vpop.f32.mrb[35].mxu0 }
 0x36e   : > { %13759 = vtanh.f32 %v2733_v18  ;;  %v2736_v31 = vadd.f32 %v13276_v47, %v17127_v7 }
 0x370   : > { %v13756_v35 = vpop.eup %13755  ;;  %13761 = vtanh.f32 %v2736_v31 }
 0x371   : > { %v2451_v37 = vpop.f32.mrb[36].mxu0  ;;  %12634 = vmatprep.mubr.f32.mxu1 %v13756_v35 }
 0x372   : > { %v13758_v30 = vpop.eup %13757  ;;  %v13277_v39 = vadd.f32 %v17184_v24, %v2451_v37  ;;  %v2453_v45 = vpop.f32.mrb[37].mxu0 }
 0x373   : > { %v2454_v49 = vpop.f32.mrb[38].mxu0  ;;  %12635 = vmatmul.mubr.f32.gmra.mrb[78].mxu1 %v13758_v30 }
 0x374   : > { %v2741_v5 = vadd.f32 %v13277_v39, %v17121_v3  ;;  %v13278_v56 = vadd.f32 %v17184_v24, %v2454_v49  ;;  %v2456_v58 = vpop.f32.mrb[39].mxu0 }
 0x376   : > { %13763 = vtanh.f32 %v2741_v5  ;;  %v2744_v17 = vadd.f32 %v13278_v56, %v17125_v6  ;;  %v17292_v6 = vpop.f32.mrb[54].mxu1 }
 0x377   : > { %v17294_v52 = vpop.f32.mrb[55].mxu1 }
 0x378   : > { %v13760_v62 = vpop.eup %13759  ;;  %13765 = vtanh.f32 %v2744_v17  ;;  %v17301_v39 = vpop.f32.mrb[56].mxu1 }
 0x379   : > { %v2459_v7 = vpop.f32.mrb[40].mxu0  ;;  %12637 = vmatprep.mubr.f32.mxu1 %v13760_v62 }
 0x37a   : > { %v13762_v2 = vpop.eup %13761  ;;  %v13279_v9 = vadd.f32 %v17184_v24, %v2459_v7  ;;  %v2461_v51 = vpop.f32.mrb[41].mxu0 }
 0x37b   : > { %v2462_v15 = vpop.f32.mrb[42].mxu0  ;;  %12638 = vmatmul.mubr.f32.gmra.mrb[80].mxu1 %v13762_v2 }
 0x37c   : > { %v13280_v3 = vadd.f32 %v17184_v24, %v2462_v15  ;;  %v2749_v16 = vadd.f32 %v13279_v9, %v17139_v25  ;;  %v2464_v54 = vpop.f32.mrb[43].mxu0 }
 0x37e   : > { %13767 = vtanh.f32 %v2749_v16  ;;  %v2752_v32 = vadd.f32 %v13280_v3, %v17143_v27  ;;  %v17303_v27 = vpop.f32.mrb[57].mxu1 }
 0x37f   : > { %v17305_v49 = vpop.f32.mrb[58].mxu1 }
 0x380   : > { %v13764_v20 = vpop.eup %13763  ;;  %13769 = vtanh.f32 %v2752_v32  ;;  %v17307_v56 = vpop.f32.mrb[59].mxu1 }
 0x381   : > { %v2467_v22 = vpop.f32.mrb[44].mxu0  ;;  %12640 = vmatprep.mubr.f32.mxu1 %v13764_v20  ;;  %v17310_v62 = vpop.f32.mrb[60].mxu1 }
 0x382   : > { %v13766_v47 = vpop.eup %13765  ;;  %v13281_v18 = vadd.f32 %v17184_v24, %v2467_v22  ;;  %v2469_v28 = vpop.f32.mrb[45].mxu0 }
 0x383   : > { %v2470_v31 = vpop.f32.mrb[46].mxu0  ;;  %12641 = vmatmul.mubr.f32.gmra.mrb[82].mxu1 %v13766_v47 }
 0x384   : > { %v2757_v25 = vadd.f32 %v13281_v18, %v17137_v23  ;;  %v13282_v35 = vadd.f32 %v17184_v24, %v2470_v31  ;;  %v2472_v37 = vpop.f32.mrb[47].mxu0 }
 0x386   : > { %13771 = vtanh.f32 %v2757_v25  ;;  %v2760_v30 = vadd.f32 %v13282_v35, %v17141_v26  ;;  %v17312_v26 = vpop.f32.mrb[61].mxu1 }
 0x387   : > { %v17316_v15 = vpop.f32.mrb[62].mxu1 }
 0x388   : > { %v13768_v45 = vpop.eup %13767  ;;  %13773 = vtanh.f32 %v2760_v30  ;;  %v17318_v3 = vpop.f32.mrb[63].mxu1 }
 0x389   : > { %v2475_v5 = vpop.f32.mrb[48].mxu0  ;;  %12643 = vmatprep.mubr.f32.mxu1 %v13768_v45 }
 0x38a   : > { %v13770_v58 = vpop.eup %13769  ;;  %v13283_v23 = vadd.f32 %v17184_v24, %v2475_v5  ;;  %v2477_v17 = vpop.f32.mrb[49].mxu0 }
 0x38b   : > { %v2478_v7 = vpop.f32.mrb[50].mxu0  ;;  %12644 = vmatmul.mubr.f32.gmra.mrb[84].mxu1 %v13770_v58 }
 0x38c   : > { %v13284_v2 = vadd.f32 %v17184_v24, %v2478_v7  ;;  %v2765_v9 = vadd.f32 %v13283_v23, %v17155_v46  ;;  %v2480_v51 = vpop.f32.mrb[51].mxu0  ;;  %v3460_v7 = vld [vmem:[%s21319_s5 + $0x8] sm:$0xff] }
 0x38e   : > { %13775 = vtanh.f32 %v2765_v9  ;;  %v2768_v16 = vadd.f32 %v13284_v2, %v17159_v55 }
 0x390   : > { %v13772_v54 = vpop.eup %13771  ;;  %13777 = vtanh.f32 %v2768_v16 }
 0x391   : > { %v2483_v32 = vpop.f32.mrb[52].mxu0  ;;  %12646 = vmatprep.mubr.f32.mxu1 %v13772_v54 }
 0x392   : > { %v13774_v20 = vpop.eup %13773  ;;  %v13285_v22 = vadd.f32 %v17184_v24, %v2483_v32  ;;  %v2485_v47 = vpop.f32.mrb[53].mxu0 }
 0x393   : > { %v2486_v18 = vpop.f32.mrb[54].mxu0  ;;  %12647 = vmatmul.mubr.f32.gmra.mrb[86].mxu1 %v13774_v20 }
 0x394   : > { %v2773_v46 = vadd.f32 %v13285_v22, %v17153_v43  ;;  %v13286_v28 = vadd.f32 %v17184_v24, %v2486_v18  ;;  %v2488_v31 = vpop.f32.mrb[55].mxu0 }
 0x396   : > { %13779 = vtanh.f32 %v2773_v46  ;;  %v2776_v25 = vadd.f32 %v13286_v28, %v17157_v50  ;;  %v3459_v50 = vld [vmem:[%s21319_s5] sm:$0xff]  ;;  %v3461_v46 = vld [vmem:[%s21319_s5 + $0x10] sm:$0xff]  ;;  %v3462_v28 = vld [vmem:[%s21319_s5 + $0x18] sm:$0xff] }
 0x397   : > { %v13237_v2 = vpack.c.bf16 %v3460_v7, %v3459_v50  ;;  %v3466_v50 = vld [vmem:[%s21319_s5 + $0x38] sm:$0xff] }
 0x398   : > { %v13776_v35 = vpop.eup %13775  ;;  %13781 = vtanh.f32 %v2776_v25  ;;  %v13241_v25 = vpack.c.bf16 %v3462_v28, %v3461_v46 }
 0x399   : > { %v2491_v55 = vpop.f32.mrb[56].mxu0  ;;  %12649 = vmatprep.mubr.f32.mxu1 %v13776_v35  ;;  %13238 = vmatprep.subr.bf16.mxu1 %v13237_v2 }
 0x39a   : > { %v13778_v37 = vpop.eup %13777  ;;  %v13287_v30 = vadd.f32 %v17184_v24, %v2491_v55  ;;  %v2493_v45 = vpop.f32.mrb[57].mxu0  ;;  %13240 = vmatpush3.bf16.msra.mxu1 %v13237_v2 }
 0x39b   : > { %v2494_v5 = vpop.f32.mrb[58].mxu0  ;;  %12650 = vmatmul.mubr.f32.gmra.mrb[88].mxu1 %v13778_v37  ;;  %13242 = vmatprep.subr.bf16.mxu1 %v13241_v25 }
 0x39c   : > { %v13288_v58 = vadd.f32 %v17184_v24, %v2494_v5  ;;  %v2781_v43 = vadd.f32 %v13287_v30, %v17171_v10  ;;  %v2496_v23 = vpop.f32.mrb[59].mxu0  ;;  %v3463_v5 = vld [vmem:[%s21319_s5 + $0x20] sm:$0xff] }
 0x39e   : > { %13783 = vtanh.f32 %v2781_v43  ;;  %v2784_v17 = vadd.f32 %v13288_v58, %v17175_v12  ;;  %13244 = vmatpush3.bf16.msra.mxu1 %v13241_v25  ;;  %v3464_v58 = vld [vmem:[%s21319_s5 + $0x28] sm:$0xff] }
 0x39f   : > { %v13245_v43 = vpack.c.bf16 %v3464_v58, %v3463_v5 }
 0x3a0   : > { %v13780_v9 = vpop.eup %13779  ;;  %13785 = vtanh.f32 %v2784_v17 }
 0x3a1   : > { %v2499_v51 = vpop.f32.mrb[60].mxu0  ;;  %12652 = vmatprep.mubr.f32.mxu1 %v13780_v9  ;;  %13246 = vmatprep.subr.bf16.mxu1 %v13245_v43 }
 0x3a2   : > { %v13782_v16 = vpop.eup %13781  ;;  %v13289_v10 = vadd.f32 %v17184_v24, %v2499_v51  ;;  %v2501_v54 = vpop.f32.mrb[61].mxu0  ;;  %13248 = vmatpush3.bf16.msra.mxu1 %v13245_v43 }
 0x3a3   : > { %v2502_v12 = vpop.f32.mrb[62].mxu0  ;;  %12653 = vmatmul.mubr.f32.gmra.mrb[90].mxu1 %v13782_v16 }
 0x3a4   : > { %v2789_v32 = vadd.f32 %v13289_v10, %v17169_v8  ;;  %v13290_v20 = vadd.f32 %v17184_v24, %v2502_v12  ;;  %v2504_v22 = vpop.f32.mrb[63].mxu0 }
 0x3a6   : > { %13787 = vtanh.f32 %v2789_v32  ;;  %v2792_v47 = vadd.f32 %v13290_v20, %v17173_v11 }
 0x3a8   : > { %v13784_v18 = vpop.eup %13783  ;;  %13789 = vtanh.f32 %v2792_v47 }
 0x3a9   : > { %v2507_v31 = vpop.f32.mrb[64].mxu0  ;;  %12655 = vmatprep.mubr.f32.mxu1 %v13784_v18 }
 0x3aa   : > { %v13786_v8 = vpop.eup %13785  ;;  %v13291_v35 = vadd.f32 %v17184_v24, %v2507_v31  ;;  %v2509_v55 = vpop.f32.mrb[65].mxu0 }
 0x3ab   : > { %v2510_v37 = vpop.f32.mrb[66].mxu0  ;;  %12656 = vmatmul.mubr.f32.gmra.mrb[92].mxu1 %v13786_v8 }
 0x3ac   : > { %v13292_v11 = vadd.f32 %v17184_v24, %v2510_v37  ;;  %v2797_v30 = vadd.f32 %v13291_v35, %v17193_v44  ;;  %v2512_v45 = vpop.f32.mrb[67].mxu0  ;;  %v3465_v44 = vld [vmem:[%s21319_s5 + $0x30] sm:$0xff] }
 0x3ad   : > { %v13249_v2 = vpack.c.bf16 %v3466_v50, %v3465_v44 }
 0x3ae   : > { %13791 = vtanh.f32 %v2797_v30  ;;  %v2800_v23 = vadd.f32 %v13292_v11, %v17199_v60 }
 0x3af   : > { %13250 = vmatprep.subr.bf16.mxu1 %v13249_v2 }
 0x3b0   : > { %v13788_v17 = vpop.eup %13787  ;;  %13793 = vtanh.f32 %v2800_v23  ;;  %13252 = vmatpush3.bf16.msra.mxu1 %v13249_v2 }
 0x3b1   : > { %v2515_v7 = vpop.f32.mrb[68].mxu0  ;;  %12658 = vmatprep.mubr.f32.mxu1 %v13788_v17 }
 0x3b2   : > { %v13790_v9 = vpop.eup %13789  ;;  %v13293_v51 = vadd.f32 %v17184_v24, %v2515_v7  ;;  %v2517_v16 = vpop.f32.mrb[69].mxu0 }
 0x3b3   : > { %v2518_v60 = vpop.f32.mrb[70].mxu0  ;;  %12659 = vmatmul.mubr.f32.gmra.mrb[94].mxu1 %v13790_v9 }
 0x3b4   : > { %v2805_v10 = vadd.f32 %v13293_v51, %v17191_v40  ;;  %v13294_v54 = vadd.f32 %v17184_v24, %v2518_v60  ;;  %v2520_v12 = vpop.f32.mrb[71].mxu0 }
 0x3b6   : > { %13795 = vtanh.f32 %v2805_v10  ;;  %v2808_v32 = vadd.f32 %v13294_v54, %v17197_v59 }
 0x3b8   : > { %v13792_v20 = vpop.eup %13791  ;;  %13797 = vtanh.f32 %v2808_v32 }
 0x3b9   : > { %v2523_v22 = vpop.f32.mrb[72].mxu0  ;;  %12661 = vmatprep.mubr.f32.mxu1 %v13792_v20 }
 0x3ba   : > { %v13794_v47 = vpop.eup %13793  ;;  %v13295_v18 = vadd.f32 %v17184_v24, %v2523_v22  ;;  %v2525_v46 = vpop.f32.mrb[73].mxu0 }
 0x3bb   : > { %v2526_v28 = vpop.f32.mrb[74].mxu0  ;;  %12662 = vmatmul.mubr.f32.gmra.mrb[96].mxu1 %v13794_v47 }
 0x3bc   : > { %v13296_v31 = vadd.f32 %v17184_v24, %v2526_v28  ;;  %v2813_v40 = vadd.f32 %v13295_v18, %v17217_v57  ;;  %v2528_v25 = vpop.f32.mrb[75].mxu0 }
 0x3be   : > { %13799 = vtanh.f32 %v2813_v40  ;;  %v2816_v8 = vadd.f32 %v13296_v31, %v17223_v0 }
 0x3c0   : > { %v13796_v35 = vpop.eup %13795  ;;  %13801 = vtanh.f32 %v2816_v8 }
 0x3c1   : > { %v2531_v59 = vpop.f32.mrb[76].mxu0  ;;  %12664 = vmatprep.mubr.f32.mxu1 %v13796_v35 }
 0x3c2   : > { %v13798_v55 = vpop.eup %13797  ;;  %v13297_v37 = vadd.f32 %v17184_v24, %v2531_v59  ;;  %v2533_v11 = vpop.f32.mrb[77].mxu0 }
 0x3c3   : > { %v2534_v30 = vpop.f32.mrb[78].mxu0  ;;  %12665 = vmatmul.mubr.f32.gmra.mrb[98].mxu1 %v13798_v55 }
 0x3c4   : > { %v2821_v45 = vadd.f32 %v13297_v37, %v17215_v42  ;;  %v13298_v5 = vadd.f32 %v17184_v24, %v2534_v30  ;;  %v2536_v58 = vpop.f32.mrb[79].mxu0 }
 0x3c6   : > { %13803 = vtanh.f32 %v2821_v45  ;;  %v2824_v57 = vadd.f32 %v13298_v5, %v17221_v63 }
 0x3c8   : > { %v13800_v43 = vpop.eup %13799  ;;  %13805 = vtanh.f32 %v2824_v57 }
 0x3c9   : > { %v2539_v0 = vpop.f32.mrb[80].mxu0  ;;  %12667 = vmatprep.mubr.f32.mxu1 %v13800_v43 }
 0x3ca   : > { %v13802_v23 = vpop.eup %13801  ;;  %v13299_v17 = vadd.f32 %v17184_v24, %v2539_v0  ;;  %v2541_v44 = vpop.f32.mrb[81].mxu0 }
 0x3cb   : > { %v2542_v50 = vpop.f32.mrb[82].mxu0  ;;  %12668 = vmatmul.mubr.f32.gmra.mrb[100].mxu1 %v13802_v23 }
 0x3cc   : > { %v13300_v7 = vadd.f32 %v17184_v24, %v2542_v50  ;;  %v2829_v42 = vadd.f32 %v13299_v17, %v17239_v61  ;;  %v2544_v2 = vpop.f32.mrb[83].mxu0 }
 0x3ce   : > { %13807 = vtanh.f32 %v2829_v42  ;;  %v2832_v9 = vadd.f32 %v13300_v7, %v17245_v48 }
 0x3d0   : > { %v13804_v51 = vpop.eup %13803  ;;  %13809 = vtanh.f32 %v2832_v9 }
 0x3d1   : > { %v2547_v63 = vpop.f32.mrb[84].mxu0  ;;  %12670 = vmatprep.mubr.f32.mxu1 %v13804_v51 }
 0x3d2   : > { %v13806_v16 = vpop.eup %13805  ;;  %v13301_v60 = vadd.f32 %v17184_v24, %v2547_v63  ;;  %v2549_v10 = vpop.f32.mrb[85].mxu0 }
 0x3d3   : > { %v2550_v54 = vpop.f32.mrb[86].mxu0  ;;  %12671 = vmatmul.mubr.f32.gmra.mrb[102].mxu1 %v13806_v16 }
 0x3d4   : > { %v2837_v12 = vadd.f32 %v13301_v60, %v17237_v14  ;;  %v13302_v32 = vadd.f32 %v17184_v24, %v2550_v54  ;;  %v2552_v20 = vpop.f32.mrb[87].mxu0 }
 0x3d6   : > { %13811 = vtanh.f32 %v2837_v12  ;;  %v2840_v61 = vadd.f32 %v13302_v32, %v17243_v4 }
 0x3d8   : > { %v13808_v22 = vpop.eup %13807  ;;  %13813 = vtanh.f32 %v2840_v61 }
 0x3d9   : > { %v2555_v48 = vpop.f32.mrb[88].mxu0  ;;  %12673 = vmatprep.mubr.f32.mxu1 %v13808_v22 }
 0x3da   : > { %v13810_v47 = vpop.eup %13809  ;;  %v13303_v18 = vadd.f32 %v17184_v24, %v2555_v48  ;;  %v2557_v46 = vpop.f32.mrb[89].mxu0 }
 0x3db   : > { %v2558_v28 = vpop.f32.mrb[90].mxu0  ;;  %12674 = vmatmul.mubr.f32.gmra.mrb[104].mxu1 %v13810_v47 }
 0x3dc   : > { %v13304_v31 = vadd.f32 %v17184_v24, %v2558_v28  ;;  %v2845_v14 = vadd.f32 %v13303_v18, %v17256_v38  ;;  %v2560_v40 = vpop.f32.mrb[91].mxu0 }
 0x3de   : > { %13815 = vtanh.f32 %v2845_v14  ;;  %v2848_v25 = vadd.f32 %v13304_v31, %v17262_v41 }
 0x3e0   : > { %v13812_v8 = vpop.eup %13811  ;;  %13817 = vtanh.f32 %v2848_v25 }
 0x3e1   : > { %v2563_v4 = vpop.f32.mrb[92].mxu0  ;;  %12676 = vmatprep.mubr.f32.mxu1 %v13812_v8 }
 0x3e2   : > { %v13814_v35 = vpop.eup %13813  ;;  %v13305_v59 = vadd.f32 %v17184_v24, %v2563_v4  ;;  %v2565_v55 = vpop.f32.mrb[93].mxu0 }
 0x3e3   : > { %v2566_v37 = vpop.f32.mrb[94].mxu0  ;;  %12677 = vmatmul.mubr.f32.gmra.mrb[106].mxu1 %v13814_v35 }
 0x3e4   : > { %v2853_v11 = vadd.f32 %v13305_v59, %v17254_v36  ;;  %v13306_v30 = vadd.f32 %v17184_v24, %v2566_v37  ;;  %v2568_v45 = vpop.f32.mrb[95].mxu0 }
 0x3e6   : > { %13819 = vtanh.f32 %v2853_v11  ;;  %v2856_v38 = vadd.f32 %v13306_v30, %v17260_v33 }
 0x3e8   : > { %v13816_v5 = vpop.eup %13815  ;;  %13821 = vtanh.f32 %v2856_v38 }
 0x3e9   : > { %v2571_v41 = vpop.f32.mrb[96].mxu0  ;;  %12679 = vmatprep.mubr.f32.mxu1 %v13816_v5 }
 0x3ea   : > { %v13818_v58 = vpop.eup %13817  ;;  %v13307_v57 = vadd.f32 %v17184_v24, %v2571_v41  ;;  %v2573_v43 = vpop.f32.mrb[97].mxu0 }
 0x3eb   : > { %v2574_v0 = vpop.f32.mrb[98].mxu0  ;;  %12680 = vmatmul.mubr.f32.gmra.mrb[108].mxu1 %v13818_v58 }
 0x3ec   : > { %v13308_v23 = vadd.f32 %v17184_v24, %v2574_v0  ;;  %v2861_v36 = vadd.f32 %v13307_v57, %v17272_v34  ;;  %v2576_v17 = vpop.f32.mrb[99].mxu0 }
 0x3ee   : > { %13823 = vtanh.f32 %v2861_v36  ;;  %v2864_v44 = vadd.f32 %v13308_v23, %v17278_v29 }
 0x3f0   : > { %v13820_v50 = vpop.eup %13819  ;;  %13825 = vtanh.f32 %v2864_v44 }
 0x3f1   : > { %v2579_v33 = vpop.f32.mrb[100].mxu0  ;;  %12682 = vmatprep.mubr.f32.mxu1 %v13820_v50 }
 0x3f2   : > { %v13822_v7 = vpop.eup %13821  ;;  %v13309_v42 = vadd.f32 %v17184_v24, %v2579_v33  ;;  %v2581_v2 = vpop.f32.mrb[101].mxu0 }
 0x3f3   : > { %v2582_v9 = vpop.f32.mrb[102].mxu0  ;;  %12683 = vmatmul.mubr.f32.gmra.mrb[110].mxu1 %v13822_v7  ;;  %v16287_v2 = vld [vmem:[%s21382_s22] ss:$0 sm:$0xff] }
 0x3f4   : > { %v2869_v51 = vadd.f32 %v13309_v42, %v17270_v21  ;;  %v13310_v63 = vadd.f32 %v17184_v24, %v2582_v9  ;;  %v2584_v16 = vpop.f32.mrb[103].mxu0 }
 0x3f6   : > { %13827 = vtanh.f32 %v2869_v51  ;;  %v2872_v34 = vadd.f32 %v13310_v63, %v17276_v53 }
 0x3f8   : > { %v13824_v60 = vpop.eup %13823  ;;  %13829 = vtanh.f32 %v2872_v34 }
 0x3f9   : > { %v2587_v29 = vpop.f32.mrb[104].mxu0  ;;  %12685 = vmatprep.mubr.f32.mxu1 %v13824_v60 }
 0x3fa   : > { %v13826_v10 = vpop.eup %13825  ;;  %v13311_v54 = vadd.f32 %v17184_v24, %v2587_v29  ;;  %v2589_v12 = vpop.f32.mrb[105].mxu0 }
 0x3fb   : > { %v2590_v32 = vpop.f32.mrb[106].mxu0  ;;  %12686 = vmatmul.mubr.f32.gmra.mrb[112].mxu1 %v13826_v10 }
 0x3fc   : > { %v13312_v20 = vadd.f32 %v17184_v24, %v2590_v32  ;;  %v2877_v21 = vadd.f32 %v13311_v54, %v17288_v19  ;;  %v2592_v61 = vpop.f32.mrb[107].mxu0 }
 0x3fe   : > { %13831 = vtanh.f32 %v2877_v21  ;;  %v2880_v22 = vadd.f32 %v13312_v20, %v17294_v52 }
 0x400   : > { %v13828_v48 = vpop.eup %13827  ;;  %13833 = vtanh.f32 %v2880_v22 }
 0x401   : > { %v2595_v53 = vpop.f32.mrb[108].mxu0  ;;  %12688 = vmatprep.mubr.f32.mxu1 %v13828_v48 }
 0x402   : > { %v13830_v47 = vpop.eup %13829  ;;  %v13313_v18 = vadd.f32 %v17184_v24, %v2595_v53  ;;  %v2597_v46 = vpop.f32.mrb[109].mxu0 }
 0x403   : > { %v2598_v28 = vpop.f32.mrb[110].mxu0  ;;  %12689 = vmatmul.mubr.f32.gmra.mrb[114].mxu1 %v13830_v47 }
 0x404   : > { %v2885_v31 = vadd.f32 %v13313_v18, %v17286_v13  ;;  %v13314_v14 = vadd.f32 %v17184_v24, %v2598_v28  ;;  %v2600_v40 = vpop.f32.mrb[111].mxu0 }
 0x406   : > { %13835 = vtanh.f32 %v2885_v31  ;;  %v2888_v19 = vadd.f32 %v13314_v14, %v17292_v6 }
 0x408   : > { %v13832_v25 = vpop.eup %13831  ;;  %13837 = vtanh.f32 %v2888_v19 }
 0x409   : > { %v2603_v52 = vpop.f32.mrb[112].mxu0  ;;  %12691 = vmatprep.mubr.f32.mxu1 %v13832_v25 }
 0x40a   : > { %v13834_v8 = vpop.eup %13833  ;;  %v13315_v4 = vadd.f32 %v17184_v24, %v2603_v52  ;;  %v2605_v35 = vpop.f32.mrb[113].mxu0 }
 0x40b   : > { %v2606_v59 = vpop.f32.mrb[114].mxu0  ;;  %12692 = vmatmul.mubr.f32.gmra.mrb[116].mxu1 %v13834_v8 }
 0x40c   : > { %v2893_v55 = vadd.f32 %v13315_v4, %v17303_v27  ;;  %v13316_v13 = vadd.f32 %v17184_v24, %v2606_v59  ;;  %v2608_v37 = vpop.f32.mrb[115].mxu0 }
 0x40e   : > { %13839 = vtanh.f32 %v2893_v55  ;;  %v2896_v11 = vadd.f32 %v13316_v13, %v17307_v56  ;;  %v12615_v30 = vpop.f32.mrb[64].mxu1 }
 0x40f   : > { %v3076_v6 = vpop.f32.mrb[65].mxu1 }
 0x410   : > { %v13836_v45 = vpop.eup %13835  ;;  %13841 = vtanh.f32 %v2896_v11 }
 0x411   : > { %v2611_v38 = vpop.f32.mrb[116].mxu0  ;;  %12694 = vmatprep.mubr.f32.mxu1 %v13836_v45 }
 0x412   : > { %v13838_v5 = vpop.eup %13837  ;;  %v13317_v41 = vadd.f32 %v17184_v24, %v2611_v38  ;;  %v2613_v58 = vpop.f32.mrb[117].mxu0 }
 0x413   : > { %v2614_v57 = vpop.f32.mrb[118].mxu0  ;;  %12695 = vmatmul.mubr.f32.gmra.mrb[118].mxu1 %v13838_v5 }
 0x414   : > { %v2901_v27 = vadd.f32 %v13317_v41, %v17301_v39  ;;  %v13318_v43 = vadd.f32 %v17184_v24, %v2614_v57  ;;  %v2616_v0 = vpop.f32.mrb[119].mxu0 }
 0x416   : > { %13843 = vtanh.f32 %v2901_v27  ;;  %v2904_v56 = vadd.f32 %v13318_v43, %v17305_v49  ;;  %v12618_v23 = vpop.f32.mrb[66].mxu1 }
 0x417   : > { %v3086_v36 = vpop.f32.mrb[67].mxu1 }
 0x418   : > { %v13840_v17 = vpop.eup %13839  ;;  %13845 = vtanh.f32 %v2904_v56 }
 0x419   : > { %v2619_v44 = vpop.f32.mrb[120].mxu0  ;;  %12697 = vmatprep.mubr.f32.mxu1 %v13840_v17 }
 0x41a   : > { %v13842_v50 = vpop.eup %13841  ;;  %v13319_v33 = vadd.f32 %v17184_v24, %v2619_v44  ;;  %v2621_v7 = vpop.f32.mrb[121].mxu0 }
 0x41b   : > { %v2622_v42 = vpop.f32.mrb[122].mxu0  ;;  %12698 = vmatmul.mubr.f32.gmra.mrb[120].mxu1 %v13842_v50 }
 0x41c   : > { %v2909_v39 = vadd.f32 %v13319_v33, %v17312_v26  ;;  %v13320_v9 = vadd.f32 %v16287_v2, %v2622_v42  ;;  %v2624_v49 = vpop.f32.mrb[123].mxu0  ;;  %v17422_v26 = vld [vmem:[%s21318_s4] ss:$0 sm:$0xff] }
 0x41d   : > { %v3077_v20 = vadd.f32 %v17422_v26, %v3076_v6  ;;  %v3082_v53 = vadd.f32 %v12615_v30, %v17422_v26  ;;  %v3087_v47 = vadd.f32 %v17422_v26, %v3086_v36 }
 0x41e   : > { %13847 = vtanh.f32 %v2909_v39  ;;  %v2912_v51 = vadd.f32 %v13320_v9, %v17318_v3  ;;  %v12621_v63 = vpop.f32.mrb[68].mxu1 }
 0x41f   : > { %v3096_v16 = vpop.f32.mrb[69].mxu1  ;;  %v3102_v14 = vadd.f32 %v12621_v63, %v17422_v26 }
 0x420   : > { %v13844_v34 = vpop.eup %13843  ;;  %13849 = vtanh.f32 %v2912_v51  ;;  %v3097_v46 = vadd.f32 %v17422_v26, %v3096_v16 }
 0x421   : > { %v2627_v60 = vpop.f32.mrb[124].mxu0  ;;  %12700 = vmatprep.mubr.f32.mxu1 %v13844_v34 }
 0x422   : > { %v13846_v24 = vpop.eup %13845  ;;  %v13321_v29 = vadd.f32 %v16287_v2, %v2627_v60  ;;  %v2629_v10 = vpop.f32.mrb[125].mxu0 }
 0x423   : > { %v2630_v54 = vpop.f32.mrb[126].mxu0  ;;  %12701 = vmatmul.mubr.f32.gmra.mrb[122].mxu1 %v13846_v24 }
 0x424   : > { %v2917_v12 = vadd.f32 %v13321_v29, %v17310_v62  ;;  %v13322_v32 = vadd.f32 %v16287_v2, %v2630_v54  ;;  %v2632_v3 = vpop.f32.mrb[127].mxu0  ;;  %v3092_v62 = vadd.f32 %v12618_v23, %v17422_v26 }
 0x426   : > { %13851 = vtanh.f32 %v2917_v12  ;;  %v2920_v21 = vadd.f32 %v13322_v32, %v17316_v15  ;;  %v12624_v61 = vpop.f32.mrb[70].mxu1 }
 0x427   : > { %v3106_v22 = vpop.f32.mrb[71].mxu1  ;;  %v3112_v52 = vadd.f32 %v12624_v61, %v17422_v26 }
 0x428   : > { %v13848_v48 = vpop.eup %13847  ;;  %13853 = vtanh.f32 %v2920_v21  ;;  %v3107_v40 = vadd.f32 %v17422_v26, %v3106_v22 }
 0x429   : > { %13855 = vtanh.f32 %v3077_v20  ;;  %12703 = vmatprep.mubr.f32.mxu1 %v13848_v48 }
 0x42a   : > { %v13850_v18 = vpop.eup %13849  ;;  %13857 = vtanh.f32 %v3082_v53 }
 0x42b   : > { %12704 = vmatmul.mubr.f32.gmra.mrb[124].mxu1 %v13850_v18  ;;  %13859 = vtanh.f32 %v3087_v47 }
 0x42c   : > { %13861 = vtanh.f32 %v3092_v62 }
 0x42d   : > { %13863 = vtanh.f32 %v3097_v46 }
 0x42e   : > { %v12627_v28 = vpop.f32.mrb[72].mxu1  ;;  %13865 = vtanh.f32 %v3102_v14 }
 0x42f   : > { %v3116_v15 = vpop.f32.mrb[73].mxu1  ;;  %13867 = vtanh.f32 %v3107_v40  ;;  %v3122_v13 = vadd.f32 %v12627_v28, %v17422_v26 }
 0x430   : > { %v13852_v31 = vpop.eup %13851  ;;  %v3117_v8 = vadd.f32 %v17422_v26, %v3116_v15  ;;  %13869 = vtanh.f32 %v3112_v52 }
 0x431   : > { %12706 = vmatprep.mubr.f32.mxu1 %v13852_v31 }
 0x432   : > { %v13854_v19 = vpop.eup %13853  ;;  %13871 = vtanh.f32 %v3117_v8 }
 0x433   : > { %v13856_v25 = vpop.eup %13855  ;;  %12707 = vmatmul.mubr.f32.gmra.mrb[126].mxu1 %v13854_v19  ;;  %13873 = vtanh.f32 %v3122_v13 }
 0x434   : > { %12725 = vmatprep.mubr.msk.f32.mxu1 %vm3474_vm1, %v13856_v25  ;;  %v13858_v4 = vpop.eup %13857 }
 0x435   : > { %v13860_v59 = vpop.eup %13859 }
 0x436   : > { %v12630_v35 = vpop.f32.mrb[74].mxu1  ;;  %v13862_v11 = vpop.eup %13861 }
 0x437   : > { %v3126_v55 = vpop.f32.mrb[75].mxu1  ;;  %12726 = vmatmul.mubr.msk.f32.vlgmr.msra.gmra.mrb[128].mxu1 %vm3474_vm1, %v13858_v4  ;;  %v13864_v30 = vpop.eup %13863  ;;  %v3132_v6 = vadd.f32 %v12630_v35, %v17422_v26  ;;  %v4116_v4 = vld [vmem:[%s21321_s7] sm:$0xff]  ;;  %v4117_v35 = vld [vmem:[%s21321_s7 + $0x8] sm:$0xf] }
 0x438   : > { %12728 = vmatprep.mubr.msk.f32.mxu1 %vm3474_vm1, %v13860_v59  ;;  %v3127_v37 = vadd.f32 %v17422_v26, %v3126_v55  ;;  %v13866_v45 = vpop.eup %13865  ;;  %v13253_v55 = vpack.c.bf16 %v4117_v35, %v4116_v4 }
 0x439   : > { %v13868_v5 = vpop.eup %13867 }
 0x43a   : > { %13875 = vtanh.f32 %v3127_v37  ;;  %v13870_v27 = vpop.eup %13869  ;;  %13255 = vmatprep.subr.msk.bf16.mxu1 %vm13254_vm4, %v13253_v55 }
 0x43b   : > { %12729 = vmatmul.mubr.msk.f32.gmra.mrb[130].mxu1 %vm3474_vm1, %v13862_v11  ;;  %13877 = vtanh.f32 %v3132_v6 }
 0x43c   : > { %12731 = vmatprep.mubr.msk.f32.mxu1 %vm3474_vm1, %v13864_v30  ;;  %v13872_v43 = vpop.eup %13871  ;;  %13258 = vmatpush3.bf16.msk.msra.mxu1 %vm13254_vm4, %v13253_v55 }
 0x43d   : > { %v13874_v0 = vpop.eup %13873 }
 0x43e   : > { %v12633_v38 = vpop.f32.mrb[76].mxu1 }
 0x43f   : > { %v3136_v41 = vpop.f32.mrb[77].mxu1  ;;  %12732 = vmatmul.mubr.msk.f32.gmra.mrb[132].mxu1 %vm3474_vm1, %v13866_v45  ;;  %v3142_v58 = vadd.f32 %v12633_v38, %v17422_v26 }
 0x440   : > { %v3137_v57 = vadd.f32 %v17422_v26, %v3136_v41  ;;  %12734 = vmatprep.mubr.msk.f32.mxu1 %vm3474_vm1, %v13868_v5 }
 0x442   : > { %13879 = vtanh.f32 %v3137_v57 }
 0x443   : > { %12735 = vmatmul.mubr.msk.f32.gmra.mrb[134].mxu1 %vm3474_vm1, %v13870_v27  ;;  %13881 = vtanh.f32 %v3142_v58 }
 0x444   : > { %12737 = vmatprep.mubr.msk.f32.mxu1 %vm3474_vm1, %v13872_v43  ;;  %v13876_v23 = vpop.eup %13875 }
 0x445   : > { %v13878_v50 = vpop.eup %13877 }
 0x446   : > { %v12636_v56 = vpop.f32.mrb[78].mxu1 }
 0x447   : > { %v3152_v36 = vadd.f32 %v12636_v56, %v17422_v26  ;;  %v3146_v17 = vpop.f32.mrb[79].mxu1  ;;  %12738 = vmatmul.mubr.msk.f32.gmra.mrb[136].mxu1 %vm3474_vm1, %v13874_v0 }
 0x448   : > { %v3147_v44 = vadd.f32 %v17422_v26, %v3146_v17  ;;  %12740 = vmatprep.mubr.msk.f32.mxu1 %vm3474_vm1, %v13876_v23 }
 0x44a   : > { %13883 = vtanh.f32 %v3147_v44 }
 0x44b   : > { %13885 = vtanh.f32 %v3152_v36  ;;  %12741 = vmatmul.mubr.msk.f32.gmra.mrb[138].mxu1 %vm3474_vm1, %v13878_v50 }
 0x44c   : > { %v13880_v33 = vpop.eup %13879 }
 0x44d   : > { %12743 = vmatprep.mubr.msk.f32.mxu1 %vm3474_vm1, %v13880_v33  ;;  %v13882_v7 = vpop.eup %13881 }
 0x44e   : > { %v12639_v42 = vpop.f32.mrb[80].mxu1 }
 0x44f   : > { %v3162_v39 = vadd.f32 %v12639_v42, %v17422_v26  ;;  %v3156_v2 = vpop.f32.mrb[81].mxu1  ;;  %12744 = vmatmul.mubr.msk.f32.gmra.mrb[140].mxu1 %vm3474_vm1, %v13882_v7 }
 0x450   : > { %v3157_v9 = vadd.f32 %v17422_v26, %v3156_v2 }
 0x452   : > { %13887 = vtanh.f32 %v3157_v9 }
 0x453   : > { %13889 = vtanh.f32 %v3162_v39 }
 0x454   : > { %v13884_v49 = vpop.eup %13883 }
 0x455   : > { %v13886_v51 = vpop.eup %13885  ;;  %12746 = vmatprep.mubr.msk.f32.mxu1 %vm3474_vm1, %v13884_v49 }
 0x456   : > { %v12642_v63 = vpop.f32.mrb[82].mxu1  ;;  %12747 = vmatmul.mubr.msk.f32.gmra.mrb[142].mxu1 %vm3474_vm1, %v13886_v51 }
 0x457   : > { %v3172_v16 = vadd.f32 %v12642_v63, %v17422_v26  ;;  %v3166_v34 = vpop.f32.mrb[83].mxu1 }
 0x458   : > { %v3167_v60 = vadd.f32 %v17422_v26, %v3166_v34 }
 0x45a   : > { %13891 = vtanh.f32 %v3167_v60 }
 0x45b   : > { %13893 = vtanh.f32 %v3172_v16 }
 0x45c   : > { %v13888_v24 = vpop.eup %13887 }
 0x45d   : > { %v13890_v29 = vpop.eup %13889  ;;  %12749 = vmatprep.mubr.msk.f32.mxu1 %vm3474_vm1, %v13888_v24 }
 0x45e   : > { %v12645_v10 = vpop.f32.mrb[84].mxu1  ;;  %12750 = vmatmul.mubr.msk.f32.gmra.mrb[144].mxu1 %vm3474_vm1, %v13890_v29 }
 0x45f   : > { %v3182_v54 = vadd.f32 %v12645_v10, %v17422_v26  ;;  %v3176_v12 = vpop.f32.mrb[85].mxu1 }
 0x460   : > { %v3177_v32 = vadd.f32 %v17422_v26, %v3176_v12 }
 0x462   : > { %13895 = vtanh.f32 %v3177_v32 }
 0x463   : > { %13897 = vtanh.f32 %v3182_v54 }
 0x464   : > { %v13892_v3 = vpop.eup %13891 }
 0x465   : > { %v13894_v20 = vpop.eup %13893  ;;  %12752 = vmatprep.mubr.msk.f32.mxu1 %vm3474_vm1, %v13892_v3 }
 0x466   : > { %v12648_v21 = vpop.f32.mrb[86].mxu1  ;;  %12753 = vmatmul.mubr.msk.f32.gmra.mrb[146].mxu1 %vm3474_vm1, %v13894_v20 }
 0x467   : > { %v3192_v61 = vadd.f32 %v12648_v21, %v17422_v26  ;;  %v3186_v22 = vpop.f32.mrb[87].mxu1 }
 0x468   : > { %v3187_v48 = vadd.f32 %v17422_v26, %v3186_v22 }
 0x46a   : > { %13899 = vtanh.f32 %v3187_v48 }
 0x46b   : > { %13901 = vtanh.f32 %v3192_v61 }
 0x46c   : > { %v13896_v53 = vpop.eup %13895 }
 0x46d   : > { %v13898_v47 = vpop.eup %13897  ;;  %12755 = vmatprep.mubr.msk.f32.mxu1 %vm3474_vm1, %v13896_v53 }
 0x46e   : > { %v12651_v18 = vpop.f32.mrb[88].mxu1  ;;  %12756 = vmatmul.mubr.msk.f32.gmra.mrb[148].mxu1 %vm3474_vm1, %v13898_v47 }
 0x46f   : > { %v3202_v62 = vadd.f32 %v12651_v18, %v17422_v26  ;;  %v3196_v46 = vpop.f32.mrb[89].mxu1 }
 0x470   : > { %v3197_v28 = vadd.f32 %v17422_v26, %v3196_v46 }
 0x472   : > { %13903 = vtanh.f32 %v3197_v28 }
 0x473   : > { %13905 = vtanh.f32 %v3202_v62 }
 0x474   : > { %v13900_v15 = vpop.eup %13899 }
 0x475   : > { %v13902_v31 = vpop.eup %13901  ;;  %12758 = vmatprep.mubr.msk.f32.mxu1 %vm3474_vm1, %v13900_v15 }
 0x476   : > { %v12654_v14 = vpop.f32.mrb[90].mxu1  ;;  %12759 = vmatmul.mubr.msk.f32.gmra.mrb[150].mxu1 %vm3474_vm1, %v13902_v31 }
 0x477   : > { %v3212_v40 = vadd.f32 %v12654_v14, %v17422_v26  ;;  %v3206_v19 = vpop.f32.mrb[91].mxu1 }
 0x478   : > { %v3207_v25 = vadd.f32 %v17422_v26, %v3206_v19 }
 0x47a   : > { %13907 = vtanh.f32 %v3207_v25 }
 0x47b   : > { %13909 = vtanh.f32 %v3212_v40 }
 0x47c   : > { %v13904_v52 = vpop.eup %13903 }
 0x47d   : > { %v13906_v8 = vpop.eup %13905  ;;  %12761 = vmatprep.mubr.msk.f32.mxu1 %vm3474_vm1, %v13904_v52 }
 0x47e   : > { %v12657_v59 = vpop.f32.mrb[92].mxu1  ;;  %12762 = vmatmul.mubr.msk.f32.gmra.mrb[152].mxu1 %vm3474_vm1, %v13906_v8 }
 0x47f   : > { %v3222_v13 = vadd.f32 %v12657_v59, %v17422_v26  ;;  %v3216_v37 = vpop.f32.mrb[93].mxu1 }
 0x480   : > { %v3217_v11 = vadd.f32 %v17422_v26, %v3216_v37 }
 0x482   : > { %13911 = vtanh.f32 %v3217_v11 }
 0x483   : > { %13913 = vtanh.f32 %v3222_v13 }
 0x484   : > { %v13908_v30 = vpop.eup %13907 }
 0x485   : > { %v13910_v6 = vpop.eup %13909  ;;  %12764 = vmatprep.mubr.msk.f32.mxu1 %vm3474_vm1, %v13908_v30 }
 0x486   : > { %v12660_v45 = vpop.f32.mrb[94].mxu1  ;;  %12765 = vmatmul.mubr.msk.f32.gmra.mrb[154].mxu1 %vm3474_vm1, %v13910_v6 }
 0x487   : > { %v3232_v38 = vadd.f32 %v12660_v45, %v17422_v26  ;;  %v3226_v5 = vpop.f32.mrb[95].mxu1 }
 0x488   : > { %v3227_v41 = vadd.f32 %v17422_v26, %v3226_v5 }
 0x48a   : > { %13915 = vtanh.f32 %v3227_v41 }
 0x48b   : > { %13917 = vtanh.f32 %v3232_v38 }
 0x48c   : > { %v13912_v58 = vpop.eup %13911 }
 0x48d   : > { %v13914_v57 = vpop.eup %13913  ;;  %12767 = vmatprep.mubr.msk.f32.mxu1 %vm3474_vm1, %v13912_v58 }
 0x48e   : > { %v12663_v27 = vpop.f32.mrb[96].mxu1  ;;  %12768 = vmatmul.mubr.msk.f32.gmra.mrb[156].mxu1 %vm3474_vm1, %v13914_v57 }
 0x48f   : > { %v3242_v43 = vadd.f32 %v12663_v27, %v17422_v26  ;;  %v3236_v0 = vpop.f32.mrb[97].mxu1 }
 0x490   : > { %v3237_v56 = vadd.f32 %v17422_v26, %v3236_v0 }
 0x492   : > { %13919 = vtanh.f32 %v3237_v56 }
 0x493   : > { %13921 = vtanh.f32 %v3242_v43 }
 0x494   : > { %v13916_v23 = vpop.eup %13915 }
 0x495   : > { %v13918_v36 = vpop.eup %13917  ;;  %12770 = vmatprep.mubr.msk.f32.mxu1 %vm3474_vm1, %v13916_v23 }
 0x496   : > { %v12666_v17 = vpop.f32.mrb[98].mxu1  ;;  %12771 = vmatmul.mubr.msk.f32.gmra.mrb[158].mxu1 %vm3474_vm1, %v13918_v36 }
 0x497   : > { %v3252_v44 = vadd.f32 %v12666_v17, %v17422_v26  ;;  %v3246_v50 = vpop.f32.mrb[99].mxu1 }
 0x498   : > { %v3247_v33 = vadd.f32 %v17422_v26, %v3246_v50 }
 0x49a   : > { %13923 = vtanh.f32 %v3247_v33 }
 0x49b   : > { %13925 = vtanh.f32 %v3252_v44 }
 0x49c   : > { %v13920_v7 = vpop.eup %13919 }
 0x49d   : > { %v13922_v42 = vpop.eup %13921  ;;  %12773 = vmatprep.mubr.msk.f32.mxu1 %vm3474_vm1, %v13920_v7 }
 0x49e   : > { %v12669_v39 = vpop.f32.mrb[100].mxu1  ;;  %12774 = vmatmul.mubr.msk.f32.gmra.mrb[160].mxu1 %vm3474_vm1, %v13922_v42 }
 0x49f   : > { %v3262_v2 = vadd.f32 %v12669_v39, %v17422_v26  ;;  %v3256_v9 = vpop.f32.mrb[101].mxu1 }
 0x4a0   : > { %v3257_v49 = vadd.f32 %v17422_v26, %v3256_v9 }
 0x4a2   : > { %13927 = vtanh.f32 %v3257_v49 }
 0x4a3   : > { %13929 = vtanh.f32 %v3262_v2 }
 0x4a4   : > { %v13924_v51 = vpop.eup %13923 }
 0x4a5   : > { %v13926_v63 = vpop.eup %13925  ;;  %12776 = vmatprep.mubr.msk.f32.mxu1 %vm3474_vm1, %v13924_v51 }
 0x4a6   : > { %v12672_v16 = vpop.f32.mrb[102].mxu1  ;;  %12777 = vmatmul.mubr.msk.f32.gmra.mrb[162].mxu1 %vm3474_vm1, %v13926_v63 }
 0x4a7   : > { %v3272_v34 = vadd.f32 %v12672_v16, %v17422_v26  ;;  %v3266_v60 = vpop.f32.mrb[103].mxu1 }
 0x4a8   : > { %v3267_v24 = vadd.f32 %v17422_v26, %v3266_v60 }
 0x4aa   : > { %13931 = vtanh.f32 %v3267_v24 }
 0x4ab   : > { %13933 = vtanh.f32 %v3272_v34 }
 0x4ac   : > { %v13928_v29 = vpop.eup %13927 }
 0x4ad   : > { %v13930_v10 = vpop.eup %13929  ;;  %12779 = vmatprep.mubr.msk.f32.mxu1 %vm3474_vm1, %v13928_v29 }
 0x4ae   : > { %v12675_v54 = vpop.f32.mrb[104].mxu1  ;;  %12780 = vmatmul.mubr.msk.f32.gmra.mrb[164].mxu1 %vm3474_vm1, %v13930_v10 }
 0x4af   : > { %v3282_v12 = vadd.f32 %v12675_v54, %v17422_v26  ;;  %v3276_v32 = vpop.f32.mrb[105].mxu1 }
 0x4b0   : > { %v3277_v3 = vadd.f32 %v17422_v26, %v3276_v32 }
 0x4b2   : > { %13935 = vtanh.f32 %v3277_v3 }
 0x4b3   : > { %13937 = vtanh.f32 %v3282_v12 }
 0x4b4   : > { %v13932_v20 = vpop.eup %13931 }
 0x4b5   : > { %v13934_v21 = vpop.eup %13933  ;;  %12782 = vmatprep.mubr.msk.f32.mxu1 %vm3474_vm1, %v13932_v20 }
 0x4b6   : > { %v12678_v61 = vpop.f32.mrb[106].mxu1  ;;  %12783 = vmatmul.mubr.msk.f32.gmra.mrb[166].mxu1 %vm3474_vm1, %v13934_v21 }
 0x4b7   : > { %v3292_v22 = vadd.f32 %v12678_v61, %v17422_v26  ;;  %v3286_v48 = vpop.f32.mrb[107].mxu1 }
 0x4b8   : > { %v3287_v53 = vadd.f32 %v17422_v26, %v3286_v48  ;;  %v17559_v48 = vld [vmem:[%s21320_s6] ss:$0 sm:$0xff] }
 0x4ba   : > { %13939 = vtanh.f32 %v3287_v53  ;;  %v13641_v53 = vld [vmem:[%s21323_s9] sm:$0x3f]  }
 0x4bb   : > { %13941 = vtanh.f32 %v3292_v22  ;;  %13579 = vmatprep.subr.msk.bf16.mxu1 %vm4914_vm5, %v13641_v53 }
 0x4bc   : > { %v13936_v47 = vpop.eup %13935 }
 0x4bd   : > { %v13938_v18 = vpop.eup %13937  ;;  %12785 = vmatprep.mubr.msk.f32.mxu1 %vm3474_vm1, %v13936_v47 }
 0x4be   : > { %v12681_v62 = vpop.f32.mrb[108].mxu1  ;;  %12786 = vmatmul.mubr.msk.f32.gmra.mrb[168].mxu1 %vm3474_vm1, %v13938_v18 }
 0x4bf   : > { %v3302_v46 = vadd.f32 %v12681_v62, %v17422_v26  ;;  %v3296_v28 = vpop.f32.mrb[109].mxu1 }
 0x4c0   : > { %v3297_v15 = vadd.f32 %v17422_v26, %v3296_v28 }
 0x4c2   : > { %13943 = vtanh.f32 %v3297_v15 }
 0x4c3   : > { %13945 = vtanh.f32 %v3302_v46 }
 0x4c4   : > { %v13940_v31 = vpop.eup %13939 }
 0x4c5   : > { %v13942_v14 = vpop.eup %13941  ;;  %12788 = vmatprep.mubr.msk.f32.mxu1 %vm3474_vm1, %v13940_v31 }
 0x4c6   : > { %v12684_v40 = vpop.f32.mrb[110].mxu1  ;;  %12789 = vmatmul.mubr.msk.f32.gmra.mrb[170].mxu1 %vm3474_vm1, %v13942_v14 }
 0x4c7   : > { %v3312_v19 = vadd.f32 %v12684_v40, %v17422_v26  ;;  %v3306_v25 = vpop.f32.mrb[111].mxu1 }
 0x4c8   : > { %v3307_v52 = vadd.f32 %v17422_v26, %v3306_v25 }
 0x4ca   : > { %13947 = vtanh.f32 %v3307_v52 }
 0x4cb   : > { %13949 = vtanh.f32 %v3312_v19 }
 0x4cc   : > { %v13944_v8 = vpop.eup %13943 }
 0x4cd   : > { %v13946_v4 = vpop.eup %13945  ;;  %12791 = vmatprep.mubr.msk.f32.mxu1 %vm3474_vm1, %v13944_v8 }
 0x4ce   : > { %v12687_v35 = vpop.f32.mrb[112].mxu1  ;;  %12792 = vmatmul.mubr.msk.f32.gmra.mrb[172].mxu1 %vm3474_vm1, %v13946_v4 }
 0x4cf   : > { %v3322_v59 = vadd.f32 %v12687_v35, %v17422_v26  ;;  %v3316_v55 = vpop.f32.mrb[113].mxu1 }
 0x4d0   : > { %v3317_v13 = vadd.f32 %v17422_v26, %v3316_v55 }
 0x4d2   : > { %13951 = vtanh.f32 %v3317_v13 }
 0x4d3   : > { %13953 = vtanh.f32 %v3322_v59 }
 0x4d4   : > { %v13948_v37 = vpop.eup %13947 }
 0x4d5   : > { %v13950_v11 = vpop.eup %13949  ;;  %12794 = vmatprep.mubr.msk.f32.mxu1 %vm3474_vm1, %v13948_v37 }
 0x4d6   : > { %v12690_v30 = vpop.f32.mrb[114].mxu1  ;;  %12795 = vmatmul.mubr.msk.f32.gmra.mrb[174].mxu1 %vm3474_vm1, %v13950_v11 }
 0x4d7   : > { %v3332_v6 = vadd.f32 %v12690_v30, %v17422_v26  ;;  %v3326_v45 = vpop.f32.mrb[115].mxu1 }
 0x4d8   : > { %v3327_v38 = vadd.f32 %v17422_v26, %v3326_v45 }
 0x4da   : > { %13955 = vtanh.f32 %v3327_v38 }
 0x4db   : > { %13957 = vtanh.f32 %v3332_v6  ;;  %v4916_v6 = vsel %vm4914_vm5, %v13641_v53, 0 }
 0x4dc   : > { %v13952_v5 = vpop.eup %13951 }
 0x4dd   : > { %v13954_v41 = vpop.eup %13953  ;;  %12797 = vmatprep.mubr.msk.f32.mxu1 %vm3474_vm1, %v13952_v5 }
 0x4de   : > { %v12693_v58 = vpop.f32.mrb[116].mxu1  ;;  %12798 = vmatmul.mubr.msk.f32.gmra.mrb[176].mxu1 %vm3474_vm1, %v13954_v41 }
 0x4df   : > { %v3342_v57 = vadd.f32 %v12693_v58, %v17422_v26  ;;  %v3336_v27 = vpop.f32.mrb[117].mxu1 }
 0x4e0   : > { %v3337_v43 = vadd.f32 %v17422_v26, %v3336_v27 }
 0x4e2   : > { %13959 = vtanh.f32 %v3337_v43  ;;  %v13642_v43 = vld [vmem:[%s21325_s11] sm:$0x3f]  }
 0x4e3   : > { %13961 = vtanh.f32 %v3342_v57 }
 0x4e4   : > { %v13956_v0 = vpop.eup %13955 }
 0x4e5   : > { %v13958_v56 = vpop.eup %13957  ;;  %12800 = vmatprep.mubr.msk.f32.mxu1 %vm3474_vm1, %v13956_v0 }
 0x4e6   : > { %v12696_v23 = vpop.f32.mrb[118].mxu1  ;;  %12801 = vmatmul.mubr.msk.f32.gmra.mrb[178].mxu1 %vm3474_vm1, %v13958_v56 }
 0x4e7   : > { %v3352_v36 = vadd.f32 %v12696_v23, %v17422_v26  ;;  %v3346_v17 = vpop.f32.mrb[119].mxu1 }
 0x4e8   : > { %v3347_v44 = vadd.f32 %v17422_v26, %v3346_v17 }
 0x4ea   : > { %13963 = vtanh.f32 %v3347_v44 }
 0x4eb   : > { %13965 = vtanh.f32 %v3352_v36 }
 0x4ec   : > { %v13960_v50 = vpop.eup %13959 }
 0x4ed   : > { %v13962_v33 = vpop.eup %13961  ;;  %12803 = vmatprep.mubr.msk.f32.mxu1 %vm3474_vm1, %v13960_v50 }
 0x4ee   : > { %v12699_v7 = vpop.f32.mrb[120].mxu1  ;;  %12804 = vmatmul.mubr.msk.f32.gmra.mrb[180].mxu1 %vm3474_vm1, %v13962_v33 }
 0x4ef   : > { %v3362_v42 = vadd.f32 %v12699_v7, %v17422_v26  ;;  %v3356_v39 = vpop.f32.mrb[121].mxu1 }
 0x4f0   : > { %v3357_v2 = vadd.f32 %v17422_v26, %v3356_v39 }
 0x4f2   : > { %13967 = vtanh.f32 %v3357_v2 }
 0x4f3   : > { %13969 = vtanh.f32 %v3362_v42 }
 0x4f4   : > { %v13964_v9 = vpop.eup %13963 }
 0x4f5   : > { %v13966_v49 = vpop.eup %13965  ;;  %12806 = vmatprep.mubr.msk.f32.mxu1 %vm3474_vm1, %v13964_v9 }
 0x4f6   : > { %v12702_v51 = vpop.f32.mrb[122].mxu1  ;;  %12807 = vmatmul.mubr.msk.f32.gmra.mrb[182].mxu1 %vm3474_vm1, %v13966_v49 }
 0x4f7   : > { %v3372_v63 = vadd.f32 %v12702_v51, %v17422_v26  ;;  %v3366_v16 = vpop.f32.mrb[123].mxu1 }
 0x4f8   : > { %v3367_v34 = vadd.f32 %v17422_v26, %v3366_v16 }
 0x4fa   : > { %13971 = vtanh.f32 %v3367_v34 }
 0x4fb   : > { %13973 = vtanh.f32 %v3372_v63 }
 0x4fc   : > { %v13968_v60 = vpop.eup %13967 }
 0x4fd   : > { %v13970_v24 = vpop.eup %13969  ;;  %12809 = vmatprep.mubr.msk.f32.mxu1 %vm3474_vm1, %v13968_v60 }
 0x4fe   : > { %v12705_v29 = vpop.f32.mrb[124].mxu1  ;;  %12810 = vmatmul.mubr.msk.f32.gmra.mrb[184].mxu1 %vm3474_vm1, %v13970_v24 }
 0x4ff   : > { %v3382_v10 = vadd.f32 %v12705_v29, %v17422_v26  ;;  %v3376_v54 = vpop.f32.mrb[125].mxu1 }
 0x500   : > { %v3377_v12 = vadd.f32 %v17422_v26, %v3376_v54 }
 0x502   : > { %13975 = vtanh.f32 %v3377_v12 }
 0x503   : > { %13977 = vtanh.f32 %v3382_v10 }
 0x504   : > { %v13972_v32 = vpop.eup %13971 }
 0x505   : > { %v13974_v3 = vpop.eup %13973  ;;  %12812 = vmatprep.mubr.msk.f32.mxu1 %vm3474_vm1, %v13972_v32 }
 0x506   : > { %v12708_v20 = vpop.f32.mrb[126].mxu1  ;;  %12813 = vmatmul.mubr.msk.f32.gmra.mrb[186].mxu1 %vm3474_vm1, %v13974_v3 }
 0x507   : > { %v3392_v21 = vadd.f32 %v12708_v20, %v17422_v26  ;;  %v3386_v61 = vpop.f32.mrb[127].mxu1 }
 0x508   : > { %v3387_v22 = vadd.f32 %v17422_v26, %v3386_v61 }
 0x50a   : > { %13979 = vtanh.f32 %v3387_v22  ;;  %v12727_v47 = vpop.f32.mrb[128].mxu1 }
 0x50b   : > { %13981 = vtanh.f32 %v3392_v21  ;;  %v3739_v18 = vadd.f32 %v12727_v47, %v17559_v48  ;;  %v3733_v62 = vpop.f32.mrb[129].mxu1 }
 0x50c   : > { %v13976_v46 = vpop.eup %13975  ;;  %v3734_v26 = vadd.f32 %v17559_v48, %v3733_v62 }
 0x50d   : > { %v13978_v28 = vpop.eup %13977  ;;  %13983 = vtanh.f32 %v3739_v18  ;;  %12815 = vmatprep.mubr.msk.f32.mxu1 %vm3474_vm1, %v13976_v46 }
 0x50e   : > { %13985 = vtanh.f32 %v3734_v26  ;;  %v12730_v15 = vpop.f32.mrb[130].mxu1  ;;  %12816 = vmatmul.mubr.msk.f32.gmra.mrb[188].mxu1 %vm3474_vm1, %v13978_v28 }
 0x50f   : > { %v3749_v31 = vadd.f32 %v12730_v15, %v17559_v48  ;;  %v3743_v14 = vpop.f32.mrb[131].mxu1 }
 0x510   : > { %v3744_v40 = vadd.f32 %v17559_v48, %v3743_v14 }
 0x511   : > { %13987 = vtanh.f32 %v3749_v31 }
 0x512   : > { %13989 = vtanh.f32 %v3744_v40  ;;  %v12733_v19 = vpop.f32.mrb[132].mxu1 }
 0x513   : > { %v3759_v25 = vadd.f32 %v12733_v19, %v17559_v48  ;;  %v3753_v52 = vpop.f32.mrb[133].mxu1 }
 0x514   : > { %v13980_v8 = vpop.eup %13979  ;;  %v3754_v4 = vadd.f32 %v17559_v48, %v3753_v52 }
 0x515   : > { %v13982_v35 = vpop.eup %13981  ;;  %13991 = vtanh.f32 %v3759_v25  ;;  %12818 = vmatprep.mubr.msk.f32.mxu1 %vm3474_vm1, %v13980_v8 }
 0x516   : > { %13993 = vtanh.f32 %v3754_v4  ;;  %v12736_v59 = vpop.f32.mrb[134].mxu1  ;;  %12819 = vmatmul.mubr.msk.f32.gmra.mrb[190].mxu1 %vm3474_vm1, %v13982_v35 }
 0x517   : > { %v17575_v55 = vpop.eup %13983  ;;  %v3769_v13 = vadd.f32 %v12736_v59, %v17559_v48  ;;  %v3763_v37 = vpop.f32.mrb[135].mxu1 }
 0x518   : > { %v17578_v11 = vpop.eup %13985  ;;  %v3764_v30 = vadd.f32 %v17559_v48, %v3763_v37 }
 0x519   : > { %13995 = vtanh.f32 %v3769_v13  ;;  %12825 = vmatprep.mubr.msk.f32.mxu1 %vm4125_vm6, %v17578_v11 }
 0x51a   : > { %13997 = vtanh.f32 %v3764_v30  ;;  %v12739_v38 = vpop.f32.mrb[136].mxu1  ;;  %12826 = vmatmul.mubr.msk.f32.vlgmr.msra.gmra.mrb[192].mxu1 %vm4125_vm6, %v17575_v55 }
 0x51b   : > { %v17588_v5 = vpop.eup %13987  ;;  %v3779_v41 = vadd.f32 %v12739_v38, %v17559_v48  ;;  %v3773_v58 = vpop.f32.mrb[137].mxu1  ;;  %12922 = vmatpush3.bf16.msra.mxu1 %v4916_v6 }
 0x51c   : > { %v17591_v57 = vpop.eup %13989  ;;  %v3774_v27 = vadd.f32 %v17559_v48, %v3773_v58  ;;  %13580 = vmatprep.subr.msk.bf16.mxu1 %vm4914_vm5, %v13642_v43 }
 0x51d   : > { %13999 = vtanh.f32 %v3779_v41  ;;  %12828 = vmatprep.mubr.msk.f32.mxu1 %vm4125_vm6, %v17591_v57 }
 0x51e   : > { %14001 = vtanh.f32 %v3774_v27  ;;  %v12742_v0 = vpop.f32.mrb[138].mxu1  ;;  %12829 = vmatmul.mubr.msk.f32.gmra.mrb[194].mxu1 %vm4125_vm6, %v17588_v5 }
 0x51f   : > { %v17600_v56 = vpop.eup %13991  ;;  %v3789_v23 = vadd.f32 %v12742_v0, %v17559_v48  ;;  %v3783_v36 = vpop.f32.mrb[139].mxu1 }
 0x520   : > { %v17603_v17 = vpop.eup %13993  ;;  %v3784_v44 = vadd.f32 %v17559_v48, %v3783_v36 }
 0x521   : > { %14003 = vtanh.f32 %v3789_v23  ;;  %12831 = vmatprep.mubr.msk.f32.mxu1 %vm4125_vm6, %v17603_v17 }
 0x522   : > { %14005 = vtanh.f32 %v3784_v44  ;;  %v12745_v33 = vpop.f32.mrb[140].mxu1  ;;  %12832 = vmatmul.mubr.msk.f32.gmra.mrb[196].mxu1 %vm4125_vm6, %v17600_v56 }
 0x523   : > { %v17612_v7 = vpop.eup %13995  ;;  %v3799_v42 = vadd.f32 %v12745_v33, %v17559_v48  ;;  %v3793_v39 = vpop.f32.mrb[141].mxu1 }
 0x524   : > { %v17615_v2 = vpop.eup %13997  ;;  %v3794_v9 = vadd.f32 %v17559_v48, %v3793_v39 }
 0x525   : > { %14007 = vtanh.f32 %v3799_v42  ;;  %12834 = vmatprep.mubr.msk.f32.mxu1 %vm4125_vm6, %v17615_v2 }
 0x526   : > { %14009 = vtanh.f32 %v3794_v9  ;;  %12835 = vmatmul.mubr.msk.f32.gmra.mrb[198].mxu1 %vm4125_vm6, %v17612_v7 }
 0x527   : > { %v17624_v51 = vpop.eup %13999 }
 0x528   : > { %v17626_v63 = vpop.eup %14001 }
 0x529   : > { %v12748_v16 = vpop.f32.mrb[142].mxu1  ;;  %12837 = vmatprep.mubr.msk.f32.mxu1 %vm4125_vm6, %v17626_v63 }
 0x52a   : > { %v3809_v60 = vadd.f32 %v12748_v16, %v17559_v48  ;;  %v3803_v24 = vpop.f32.mrb[143].mxu1  ;;  %12838 = vmatmul.mubr.msk.f32.gmra.mrb[200].mxu1 %vm4125_vm6, %v17624_v51 }
 0x52b   : > { %v17635_v29 = vpop.eup %14003  ;;  %v3804_v10 = vadd.f32 %v17559_v48, %v3803_v24 }
 0x52c   : > { %v17638_v54 = vpop.eup %14005  ;;  %14011 = vtanh.f32 %v3809_v60 }
 0x52d   : > { %14013 = vtanh.f32 %v3804_v10  ;;  %12840 = vmatprep.mubr.msk.f32.mxu1 %vm4125_vm6, %v17638_v54 }
 0x52e   : > { %12841 = vmatmul.mubr.msk.f32.gmra.mrb[202].mxu1 %vm4125_vm6, %v17635_v29 }
 0x52f   : > { %v17646_v32 = vpop.eup %14007 }
 0x530   : > { %v17648_v3 = vpop.eup %14009 }
 0x531   : > { %v12751_v20 = vpop.f32.mrb[144].mxu1  ;;  %12843 = vmatprep.mubr.msk.f32.mxu1 %vm4125_vm6, %v17648_v3 }
 0x532   : > { %v3819_v61 = vadd.f32 %v12751_v20, %v17559_v48  ;;  %v3813_v22 = vpop.f32.mrb[145].mxu1  ;;  %12844 = vmatmul.mubr.msk.f32.gmra.mrb[204].mxu1 %vm4125_vm6, %v17646_v32 }
 0x533   : > { %v3814_v53 = vadd.f32 %v17559_v48, %v3813_v22 }
 0x534   : > { %14015 = vtanh.f32 %v3819_v61 }
 0x535   : > { %14017 = vtanh.f32 %v3814_v53 }
 0x536   : > { %v17658_v47 = vpop.eup %14011 }
 0x537   : > { %v17660_v18 = vpop.eup %14013 }
 0x538   : > { %12846 = vmatprep.mubr.msk.f32.mxu1 %vm4125_vm6, %v17660_v18 }
 0x539   : > { %v12754_v46 = vpop.f32.mrb[146].mxu1  ;;  %12847 = vmatmul.mubr.msk.f32.gmra.mrb[206].mxu1 %vm4125_vm6, %v17658_v47 }
 0x53a   : > { %v3829_v26 = vadd.f32 %v12754_v46, %v17559_v48  ;;  %v3823_v28 = vpop.f32.mrb[147].mxu1 }
 0x53b   : > { %v3824_v15 = vadd.f32 %v17559_v48, %v3823_v28 }
 0x53c   : > { %14019 = vtanh.f32 %v3829_v26 }
 0x53d   : > { %14021 = vtanh.f32 %v3824_v15 }
 0x53e   : > { %v17670_v31 = vpop.eup %14015 }
 0x53f   : > { %v17672_v14 = vpop.eup %14017 }
 0x540   : > { %12849 = vmatprep.mubr.msk.f32.mxu1 %vm4125_vm6, %v17672_v14 }
 0x541   : > { %v12757_v19 = vpop.f32.mrb[148].mxu1  ;;  %12850 = vmatmul.mubr.msk.f32.gmra.mrb[208].mxu1 %vm4125_vm6, %v17670_v31 }
 0x542   : > { %v3839_v25 = vadd.f32 %v12757_v19, %v17559_v48  ;;  %v3833_v52 = vpop.f32.mrb[149].mxu1 }
 0x543   : > { %v3834_v8 = vadd.f32 %v17559_v48, %v3833_v52 }
 0x544   : > { %14023 = vtanh.f32 %v3839_v25 }
 0x545   : > { %14025 = vtanh.f32 %v3834_v8 }
 0x546   : > { %v17682_v4 = vpop.eup %14019 }
 0x547   : > { %v17684_v35 = vpop.eup %14021 }
 0x548   : > { %12852 = vmatprep.mubr.msk.f32.mxu1 %vm4125_vm6, %v17684_v35 }
 0x549   : > { %v12760_v13 = vpop.f32.mrb[150].mxu1  ;;  %12853 = vmatmul.mubr.msk.f32.gmra.mrb[210].mxu1 %vm4125_vm6, %v17682_v4 }
 0x54a   : > { %v3849_v37 = vadd.f32 %v12760_v13, %v17559_v48  ;;  %v3843_v30 = vpop.f32.mrb[151].mxu1 }
 0x54b   : > { %v3844_v6 = vadd.f32 %v17559_v48, %v3843_v30 }
 0x54c   : > { %14027 = vtanh.f32 %v3849_v37 }
 0x54d   : > { %14029 = vtanh.f32 %v3844_v6 }
 0x54e   : > { %v17694_v38 = vpop.eup %14023 }
 0x54f   : > { %v17696_v41 = vpop.eup %14025 }
 0x550   : > { %12855 = vmatprep.mubr.msk.f32.mxu1 %vm4125_vm6, %v17696_v41 }
 0x551   : > { %v12763_v27 = vpop.f32.mrb[152].mxu1  ;;  %12856 = vmatmul.mubr.msk.f32.gmra.mrb[212].mxu1 %vm4125_vm6, %v17694_v38 }
 0x552   : > { %v3859_v0 = vadd.f32 %v12763_v27, %v17559_v48  ;;  %v3853_v23 = vpop.f32.mrb[153].mxu1 }
 0x553   : > { %v3854_v36 = vadd.f32 %v17559_v48, %v3853_v23 }
 0x554   : > { %14031 = vtanh.f32 %v3859_v0 }
 0x555   : > { %14033 = vtanh.f32 %v3854_v36 }
 0x556   : > { %v17706_v44 = vpop.eup %14027 }
 0x557   : > { %v17708_v33 = vpop.eup %14029 }
 0x558   : > { %12858 = vmatprep.mubr.msk.f32.mxu1 %vm4125_vm6, %v17708_v33 }
 0x559   : > { %v12766_v39 = vpop.f32.mrb[154].mxu1  ;;  %12859 = vmatmul.mubr.msk.f32.gmra.mrb[214].mxu1 %vm4125_vm6, %v17706_v44 }
 0x55a   : > { %v3869_v9 = vadd.f32 %v12766_v39, %v17559_v48  ;;  %v3863_v16 = vpop.f32.mrb[155].mxu1 }
 0x55b   : > { %v3864_v60 = vadd.f32 %v17559_v48, %v3863_v16 }
 0x55c   : > { %14035 = vtanh.f32 %v3869_v9 }
 0x55d   : > { %14037 = vtanh.f32 %v3864_v60 }
 0x55e   : > { %v17718_v24 = vpop.eup %14031 }
 0x55f   : > { %v17720_v10 = vpop.eup %14033 }
 0x560   : > { %12861 = vmatprep.mubr.msk.f32.mxu1 %vm4125_vm6, %v17720_v10 }
 0x561   : > { %v12769_v61 = vpop.f32.mrb[156].mxu1  ;;  %12862 = vmatmul.mubr.msk.f32.gmra.mrb[216].mxu1 %vm4125_vm6, %v17718_v24 }
 0x562   : > { %v3879_v22 = vadd.f32 %v12769_v61, %v17559_v48  ;;  %v3873_v53 = vpop.f32.mrb[157].mxu1 }
 0x563   : > { %v3874_v46 = vadd.f32 %v17559_v48, %v3873_v53 }
 0x564   : > { %14039 = vtanh.f32 %v3879_v22 }
 0x565   : > { %14041 = vtanh.f32 %v3874_v46 }
 0x566   : > { %v17730_v26 = vpop.eup %14035 }
 0x567   : > { %v17732_v28 = vpop.eup %14037 }
 0x568   : > { %12864 = vmatprep.mubr.msk.f32.mxu1 %vm4125_vm6, %v17732_v28 }
 0x569   : > { %v12772_v19 = vpop.f32.mrb[158].mxu1  ;;  %12865 = vmatmul.mubr.msk.f32.gmra.mrb[218].mxu1 %vm4125_vm6, %v17730_v26 }
 0x56a   : > { %v3889_v25 = vadd.f32 %v12772_v19, %v17559_v48  ;;  %v3883_v52 = vpop.f32.mrb[159].mxu1 }
 0x56b   : > { %v3884_v8 = vadd.f32 %v17559_v48, %v3883_v52 }
 0x56c   : > { %14043 = vtanh.f32 %v3889_v25 }
 0x56d   : > { %14045 = vtanh.f32 %v3884_v8 }
 0x56e   : > { %v17742_v13 = vpop.eup %14039 }
 0x56f   : > { %v17744_v37 = vpop.eup %14041 }
 0x570   : > { %12867 = vmatprep.mubr.msk.f32.mxu1 %vm4125_vm6, %v17744_v37 }
 0x571   : > { %v12775_v6 = vpop.f32.mrb[160].mxu1  ;;  %12868 = vmatmul.mubr.msk.f32.gmra.mrb[220].mxu1 %vm4125_vm6, %v17742_v13 }
 0x572   : > { %v3899_v27 = vadd.f32 %v12775_v6, %v17559_v48  ;;  %v3893_v0 = vpop.f32.mrb[161].mxu1 }
 0x573   : > { %v3894_v23 = vadd.f32 %v17559_v48, %v3893_v0 }
 0x574   : > { %14047 = vtanh.f32 %v3899_v27 }
 0x575   : > { %14049 = vtanh.f32 %v3894_v23 }
 0x576   : > { %v17754_v36 = vpop.eup %14043 }
 0x577   : > { %v17756_v39 = vpop.eup %14045 }
 0x578   : > { %12870 = vmatprep.mubr.msk.f32.mxu1 %vm4125_vm6, %v17756_v39 }
 0x579   : > { %v12778_v16 = vpop.f32.mrb[162].mxu1  ;;  %12871 = vmatmul.mubr.msk.f32.gmra.mrb[222].mxu1 %vm4125_vm6, %v17754_v36 }
 0x57a   : > { %v3909_v60 = vadd.f32 %v12778_v16, %v17559_v48  ;;  %v3903_v61 = vpop.f32.mrb[163].mxu1 }
 0x57b   : > { %v3904_v22 = vadd.f32 %v17559_v48, %v3903_v61 }
 0x57c   : > { %14051 = vtanh.f32 %v3909_v60 }
 0x57d   : > { %14053 = vtanh.f32 %v3904_v22 }
 0x57e   : > { %v17766_v53 = vpop.eup %14047 }
 0x57f   : > { %v17768_v46 = vpop.eup %14049 }
 0x580   : > { %12873 = vmatprep.mubr.msk.f32.mxu1 %vm4125_vm6, %v17768_v46 }
 0x581   : > { %v12781_v25 = vpop.f32.mrb[164].mxu1  ;;  %12874 = vmatmul.mubr.msk.f32.gmra.mrb[224].mxu1 %vm4125_vm6, %v17766_v53 }
 0x582   : > { %v3919_v52 = vadd.f32 %v12781_v25, %v17559_v48  ;;  %v3913_v8 = vpop.f32.mrb[165].mxu1 }
 0x583   : > { %v3914_v6 = vadd.f32 %v17559_v48, %v3913_v8 }
 0x584   : > { %14055 = vtanh.f32 %v3919_v52 }
 0x585   : > { %14057 = vtanh.f32 %v3914_v6 }
 0x586   : > { %v17778_v27 = vpop.eup %14051 }
 0x587   : > { %v17780_v0 = vpop.eup %14053 }
 0x588   : > { %12876 = vmatprep.mubr.msk.f32.mxu1 %vm4125_vm6, %v17780_v0 }
 0x589   : > { %v12784_v16 = vpop.f32.mrb[166].mxu1  ;;  %12877 = vmatmul.mubr.msk.f32.gmra.mrb[226].mxu1 %vm4125_vm6, %v17778_v27 }
 0x58a   : > { %v3929_v60 = vadd.f32 %v12784_v16, %v17559_v48  ;;  %v3923_v61 = vpop.f32.mrb[167].mxu1 }
 0x58b   : > { %v3924_v22 = vadd.f32 %v17559_v48, %v3923_v61 }
 0x58c   : > { %14059 = vtanh.f32 %v3929_v60 }
 0x58d   : > { %14061 = vtanh.f32 %v3924_v22 }
 0x58e   : > { %v17790_v25 = vpop.eup %14055 }
 0x58f   : > { %v17792_v52 = vpop.eup %14057 }
 0x590   : > { %12879 = vmatprep.mubr.msk.f32.mxu1 %vm4125_vm6, %v17792_v52 }
 0x591   : > { %v12787_v6 = vpop.f32.mrb[168].mxu1  ;;  %12880 = vmatmul.mubr.msk.f32.gmra.mrb[228].mxu1 %vm4125_vm6, %v17790_v25 }
 0x592   : > { %v3939_v16 = vadd.f32 %v12787_v6, %v17559_v48  ;;  %v3933_v1 = vpop.f32.mrb[169].mxu1 }
 0x593   : > { %v3934_v60 = vadd.f32 %v17559_v48, %v3933_v1 }
 0x594   : > { %14063 = vtanh.f32 %v3939_v16 }
 0x595   : > { %14065 = vtanh.f32 %v3934_v60 }
 0x596   : > { %v17802_v61 = vpop.eup %14059 }
 0x597   : > { %v17804_v22 = vpop.eup %14061 }
 0x598   : > { %12882 = vmatprep.mubr.msk.f32.mxu1 %vm4125_vm6, %v17804_v22 }
 0x599   : > { %v12790_v8 = vpop.f32.mrb[170].mxu1  ;;  %12883 = vmatmul.mubr.msk.f32.gmra.mrb[230].mxu1 %vm4125_vm6, %v17802_v61 }
 0x59a   : > { %v3949_v6 = vadd.f32 %v12790_v8, %v17559_v48  ;;  %v3943_v19 = vpop.f32.mrb[171].mxu1 }
 0x59b   : > { %v3944_v1 = vadd.f32 %v17559_v48, %v3943_v19 }
 0x59c   : > { %14067 = vtanh.f32 %v3949_v6 }
 0x59d   : > { %14069 = vtanh.f32 %v3944_v1 }
 0x59e   : > { %v17814_v16 = vpop.eup %14063 }
 0x59f   : > { %v17816_v60 = vpop.eup %14065 }
 0x5a0   : > { %12885 = vmatprep.mubr.msk.f32.mxu1 %vm4125_vm6, %v17816_v60 }
 0x5a1   : > { %v12793_v9 = vpop.f32.mrb[172].mxu1  ;;  %12886 = vmatmul.mubr.msk.f32.gmra.mrb[232].mxu1 %vm4125_vm6, %v17814_v16 }
 0x5a2   : > { %v3959_v8 = vadd.f32 %v12793_v9, %v17559_v48  ;;  %v3953_v30 = vpop.f32.mrb[173].mxu1 }
 0x5a3   : > { %v3954_v19 = vadd.f32 %v17559_v48, %v3953_v30 }
 0x5a4   : > { %14071 = vtanh.f32 %v3959_v8 }
 0x5a5   : > { %14073 = vtanh.f32 %v3954_v19 }
 0x5a6   : > { %v17826_v6 = vpop.eup %14067 }
 0x5a7   : > { %v17828_v1 = vpop.eup %14069 }
 0x5a8   : > { %12888 = vmatprep.mubr.msk.f32.mxu1 %vm4125_vm6, %v17828_v1 }
 0x5a9   : > { %v12796_v23 = vpop.f32.mrb[174].mxu1  ;;  %12889 = vmatmul.mubr.msk.f32.gmra.mrb[234].mxu1 %vm4125_vm6, %v17826_v6 }
 0x5aa   : > { %v3969_v9 = vadd.f32 %v12796_v23, %v17559_v48  ;;  %v3963_v20 = vpop.f32.mrb[175].mxu1 }
 0x5ab   : > { %v3964_v30 = vadd.f32 %v17559_v48, %v3963_v20 }
 0x5ac   : > { %14075 = vtanh.f32 %v3969_v9 }
 0x5ad   : > { %14077 = vtanh.f32 %v3964_v30 }
 0x5ae   : > { %v17838_v8 = vpop.eup %14071 }
 0x5af   : > { %v17840_v19 = vpop.eup %14073 }
 0x5b0   : > { %12891 = vmatprep.mubr.msk.f32.mxu1 %vm4125_vm6, %v17840_v19 }
 0x5b1   : > { %v12799_v42 = vpop.f32.mrb[176].mxu1  ;;  %12892 = vmatmul.mubr.msk.f32.gmra.mrb[236].mxu1 %vm4125_vm6, %v17838_v8 }
 0x5b2   : > { %v3979_v23 = vadd.f32 %v12799_v42, %v17559_v48  ;;  %v3973_v58 = vpop.f32.mrb[177].mxu1 }
 0x5b3   : > { %v3974_v20 = vadd.f32 %v17559_v48, %v3973_v58 }
 0x5b4   : > { %14079 = vtanh.f32 %v3979_v23 }
 0x5b5   : > { %14081 = vtanh.f32 %v3974_v20 }
 0x5b6   : > { %v17850_v9 = vpop.eup %14075 }
 0x5b7   : > { %v17852_v30 = vpop.eup %14077 }
 0x5b8   : > { %12894 = vmatprep.mubr.msk.f32.mxu1 %vm4125_vm6, %v17852_v30 }
 0x5b9   : > { %v12802_v15 = vpop.f32.mrb[178].mxu1  ;;  %12895 = vmatmul.mubr.msk.f32.gmra.mrb[238].mxu1 %vm4125_vm6, %v17850_v9 }
 0x5ba   : > { %v3989_v42 = vadd.f32 %v12802_v15, %v17559_v48  ;;  %v3983_v40 = vpop.f32.mrb[179].mxu1 }
 0x5bb   : > { %v3984_v58 = vadd.f32 %v17559_v48, %v3983_v40 }
 0x5bc   : > { %14083 = vtanh.f32 %v3989_v42 }
 0x5bd   : > { %14085 = vtanh.f32 %v3984_v58 }
 0x5be   : > { %v17862_v23 = vpop.eup %14079 }
 0x5bf   : > { %v17864_v20 = vpop.eup %14081 }
 0x5c0   : > { %12897 = vmatprep.mubr.msk.f32.mxu1 %vm4125_vm6, %v17864_v20 }
 0x5c1   : > { %v12805_v62 = vpop.f32.mrb[180].mxu1  ;;  %12898 = vmatmul.mubr.msk.f32.gmra.mrb[240].mxu1 %vm4125_vm6, %v17862_v23 }
 0x5c2   : > { %v3999_v15 = vadd.f32 %v12805_v62, %v17559_v48  ;;  %v3993_v21 = vpop.f32.mrb[181].mxu1 }
 0x5c3   : > { %v3994_v40 = vadd.f32 %v17559_v48, %v3993_v21 }
 0x5c4   : > { %14087 = vtanh.f32 %v3999_v15 }
 0x5c5   : > { %14089 = vtanh.f32 %v3994_v40 }
 0x5c6   : > { %v17874_v42 = vpop.eup %14083 }
 0x5c7   : > { %v17876_v58 = vpop.eup %14085 }
 0x5c8   : > { %12900 = vmatprep.mubr.msk.f32.mxu1 %vm4125_vm6, %v17876_v58 }
 0x5c9   : > { %v12808_v59 = vpop.f32.mrb[182].mxu1  ;;  %12901 = vmatmul.mubr.msk.f32.gmra.mrb[242].mxu1 %vm4125_vm6, %v17874_v42 }
 0x5ca   : > { %v4009_v62 = vadd.f32 %v12808_v59, %v17559_v48  ;;  %v4003_v34 = vpop.f32.mrb[183].mxu1 }
 0x5cb   : > { %v4004_v21 = vadd.f32 %v17559_v48, %v4003_v34 }
 0x5cc   : > { %14091 = vtanh.f32 %v4009_v62 }
 0x5cd   : > { %14093 = vtanh.f32 %v4004_v21 }
 0x5ce   : > { %v17886_v15 = vpop.eup %14087 }
 0x5cf   : > { %21383 = vst [vmem:[#allocation2_spill] sm:$0xff] %v17886_v15  ;;  %v17888_v40 = vpop.eup %14089 }
 0x5d0   : > { %21384 = vst [vmem:[#allocation3_spill] sm:$0xff] %v17888_v40  ;;  %12903 = vmatprep.mubr.msk.f32.mxu1 %vm4125_vm6, %v17888_v40 }
 0x5d1   : > { %v12811_v49 = vpop.f32.mrb[184].mxu1  ;;  %12904 = vmatmul.mubr.msk.f32.gmra.mrb[244].mxu1 %vm4125_vm6, %v17886_v15 }
 0x5d2   : > { %v4019_v59 = vadd.f32 %v12811_v49, %v17559_v48  ;;  %v4013_v50 = vpop.f32.mrb[185].mxu1 }
 0x5d3   : > { %v4014_v34 = vadd.f32 %v17559_v48, %v4013_v50 }
 0x5d4   : > { %14095 = vtanh.f32 %v4019_v59 }
 0x5d5   : > { %14097 = vtanh.f32 %v4014_v34 }
 0x5d6   : > { %v17898_v62 = vpop.eup %14091 }
 0x5d7   : > { %21385 = vst [vmem:[#allocation4_spill] sm:$0xff] %v17898_v62  ;;  %v17900_v21 = vpop.eup %14093 }
 0x5d8   : > { %21386 = vst [vmem:[#allocation5_spill] sm:$0xff] %v17900_v21  ;;  %12906 = vmatprep.mubr.msk.f32.mxu1 %vm4125_vm6, %v17900_v21 }
 0x5d9   : > { %v12814_v12 = vpop.f32.mrb[186].mxu1  ;;  %12907 = vmatmul.mubr.msk.f32.gmra.mrb[246].mxu1 %vm4125_vm6, %v17898_v62 }
 0x5da   : > { %v4029_v49 = vadd.f32 %v12814_v12, %v17559_v48  ;;  %v4023_v45 = vpop.f32.mrb[187].mxu1 }
 0x5db   : > { %v4024_v50 = vadd.f32 %v17559_v48, %v4023_v45 }
 0x5dc   : > { %14099 = vtanh.f32 %v4029_v49 }
 0x5dd   : > { %14101 = vtanh.f32 %v4024_v50 }
 0x5de   : > { %v17910_v59 = vpop.eup %14095 }
 0x5df   : > { %21387 = vst [vmem:[#allocation6_spill] sm:$0xff] %v17910_v59  ;;  %v17912_v34 = vpop.eup %14097 }
 0x5e0   : > { %21388 = vst [vmem:[#allocation7_spill] sm:$0xff] %v17912_v34  ;;  %12909 = vmatprep.mubr.msk.f32.mxu1 %vm4125_vm6, %v17912_v34 }
 0x5e1   : > { %v12817_v21 = vpop.f32.mrb[188].mxu1  ;;  %12910 = vmatmul.mubr.msk.f32.gmra.mrb[248].mxu1 %vm4125_vm6, %v17910_v59  ;;  %v17942_v59 = vld [vmem:[%s21322_s8] ss:$0 sm:$0xff] }
 0x5e2   : > { %v4039_v12 = vadd.f32 %v12817_v21, %v17559_v48  ;;  %v4033_v45 = vpop.f32.mrb[189].mxu1 }
 0x5e3   : > { %v4034_v49 = vadd.f32 %v17559_v48, %v4033_v45 }
 0x5e4   : > { %14103 = vtanh.f32 %v4039_v12 }
 0x5e5   : > { %14105 = vtanh.f32 %v4034_v49 }
 0x5e6   : > { %v17922_v50 = vpop.eup %14099 }
 0x5e7   : > { %21389 = vst [vmem:[#allocation8_spill] sm:$0xff] %v17922_v50  ;;  %v17924_v62 = vpop.eup %14101 }
 0x5e8   : > { %21390 = vst [vmem:[#allocation9_spill] sm:$0xff] %v17924_v62  ;;  %12912 = vmatprep.mubr.msk.f32.mxu1 %vm4125_vm6, %v17924_v62 }
 0x5e9   : > { %v12820_v21 = vpop.f32.mrb[190].mxu1  ;;  %12913 = vmatmul.mubr.msk.f32.gmra.mrb[250].mxu1 %vm4125_vm6, %v17922_v50 }
 0x5ea   : > { %v4049_v12 = vadd.f32 %v12820_v21, %v17559_v48  ;;  %v4043_v45 = vpop.f32.mrb[191].mxu1 }
 0x5eb   : > { %v4044_v49 = vadd.f32 %v17559_v48, %v4043_v45 }
 0x5ec   : > { %14107 = vtanh.f32 %v4049_v12 }
 0x5ed   : > { %14109 = vtanh.f32 %v4044_v49  ;;  %v12827_v34 = vpop.f32.mrb[192].mxu1 }
 0x5ee   : > { %v17949_v21 = vpop.eup %14103  ;;  %v4394_v48 = vadd.f32 %v12827_v34, %v17942_v59  ;;  %v4388_v45 = vpop.f32.mrb[193].mxu1 }
 0x5ef   : > { %21391 = vst [vmem:[#allocation10_spill] sm:$0xff] %v17949_v21  ;;  %v17952_v62 = vpop.eup %14105  ;;  %v4389_v12 = vadd.f32 %v17942_v59, %v4388_v45 }
 0x5f0   : > { %21392 = vst [vmem:[#allocation11_spill] sm:$0xff] %v17952_v62  ;;  %4709 = vst.msk [vmem:[%s17947_s28 + $0x8] sm:$0xff] %vm4707_vm7, %v4394_v48  ;;  %12915 = vmatprep.mubr.msk.f32.mxu1 %vm4125_vm6, %v17952_v62 }
 0x5f1   : > { %4708 = vst.msk [vmem:[%s17947_s28] sm:$0xff] %vm4707_vm7, %v4389_v12  ;;  %v12830_v50 = vpop.f32.mrb[194].mxu1  ;;  %12916 = vmatmul.mubr.msk.f32.gmra.mrb[252].mxu1 %vm4125_vm6, %v17949_v21 }
 0x5f2   : > { %v4404_v34 = vadd.f32 %v12830_v50, %v17942_v59  ;;  %v4398_v40 = vpop.f32.mrb[195].mxu1 }
 0x5f3   : > { %v4399_v45 = vadd.f32 %v17942_v59, %v4398_v40 }
 0x5f4   : > { %4711 = vst.msk [vmem:[%s17947_s28 + $0x18] sm:$0xff] %vm4707_vm7, %v4404_v34 }
 0x5f5   : > { %4710 = vst.msk [vmem:[%s17947_s28 + $0x10] sm:$0xff] %vm4707_vm7, %v4399_v45  ;;  %v12833_v48 = vpop.f32.mrb[196].mxu1 }
 0x5f6   : > { %v17971_v15 = vpop.eup %14107  ;;  %v4414_v12 = vadd.f32 %v12833_v48, %v17942_v59  ;;  %v4408_v49 = vpop.f32.mrb[197].mxu1 }
 0x5f7   : > { %v17974_v62 = vpop.eup %14109  ;;  %v4409_v21 = vadd.f32 %v17942_v59, %v4408_v49  ;;  %v21393_v49 = vpack.c.bf16 %v17575_v55, %v17578_v11 }
 0x5f8   : > { %v4803_v50 = vpack.c.bf16 %v17971_v15, %v17974_v62  ;;  %4713 = vst.msk [vmem:[%s17947_s28 + $0x28] sm:$0xff] %vm4707_vm7, %v4414_v12  ;;  %12918 = vmatprep.mubr.msk.f32.mxu1 %vm4125_vm6, %v17974_v62  ;;  %v5414_v12 = vsel %vm4914_vm5, %v13642_v43, 0 }
 0x5f9   : > { %4712 = vst.msk [vmem:[%s17947_s28 + $0x20] sm:$0xff] %vm4707_vm7, %v4409_v21  ;;  %v12836_v40 = vpop.f32.mrb[198].mxu1  ;;  %12919 = vmatmul.mubr.msk.f32.gmra.mrb[254].mxu1 %vm4125_vm6, %v17971_v15 }
 0x5fa   : > { %v4424_v34 = vadd.f32 %v12836_v40, %v17942_v59  ;;  %v4418_v45 = vpop.f32.mrb[199].mxu1  ;;  %12923 = vmatprep.mubr.msk.bf16.mxu1 %vm4125_vm6, %v21393_v49  ;;  %v21394_v40 = vpack.c.bf16 %v17588_v5, %v17591_v57 }
 0x5fb   : > { %v4419_v48 = vadd.f32 %v17942_v59, %v4418_v45  ;;  %v21395_v45 = vpack.c.bf16 %v17600_v56, %v17603_v17  ;;  %v21396_v17 = vpack.c.bf16 %v17612_v7, %v17615_v2 }
 0x5fc   : > { %4715 = vst.msk [vmem:[%s17947_s28 + $0x38] sm:$0xff] %vm4707_vm7, %v4424_v34 }
 0x5fd   : > { %4714 = vst.msk [vmem:[%s17947_s28 + $0x30] sm:$0xff] %vm4707_vm7, %v4419_v48  ;;  %v12839_v21 = vpop.f32.mrb[200].mxu1  ;;  %12924 = vmatmul.mubr.msk.bf16.vlgmr.msra.gmra.mrb[0].mxu1 %vm4125_vm6, %v21394_v40 }
 0x5fe   : > { %v4434_v55 = vadd.f32 %v12839_v21, %v17942_v59  ;;  %v4428_v11 = vpop.f32.mrb[201].mxu1  ;;  %12927 = vmatprep.mubr.msk.bf16.mxu1 %vm4125_vm6, %v21395_v45  ;;  %12988 = vmatpush3.bf16.msra.mxu1 %v5414_v12  ;;  %v21397_v21 = vpack.c.bf16 %v17624_v51, %v17626_v63  ;;  %v21399_v63 = vpack.c.bf16 %v17646_v32, %v17648_v3 }
 0x5ff   : > { %v4429_v43 = vadd.f32 %v17942_v59, %v4428_v11  ;;  %v21398_v11 = vpack.c.bf16 %v17635_v29, %v17638_v54  ;;  %v21400_v29 = vpack.c.bf16 %v17658_v47, %v17660_v18  ;;  %v21401_v32 = vpack.c.bf16 %v17670_v31, %v17672_v14 }
 0x600   : > { %4717 = vst.msk [vmem:[%s17947_s28 + $0x48] sm:$0xff] %vm4707_vm7, %v4434_v55  ;;  %v21402_v47 = vpack.c.bf16 %v17682_v4, %v17684_v35  ;;  %v21403_v31 = vpack.c.bf16 %v17694_v38, %v17696_v41  ;;  %v21404_v4 = vpack.c.bf16 %v17706_v44, %v17708_v33  ;;  %v21405_v38 = vpack.c.bf16 %v17718_v24, %v17720_v10 }
 0x601   : > { %4716 = vst.msk [vmem:[%s17947_s28 + $0x40] sm:$0xff] %vm4707_vm7, %v4429_v43  ;;  %v12842_v5 = vpop.f32.mrb[202].mxu1  ;;  %v21406_v44 = vpack.c.bf16 %v17730_v26, %v17732_v28  ;;  %v21407_v24 = vpack.c.bf16 %v17742_v13, %v17744_v37  ;;  %v21408_v26 = vpack.c.bf16 %v17754_v36, %v17756_v39  ;;  %v21409_v13 = vpack.c.bf16 %v17766_v53, %v17768_v46 }
 0x602   : > { %v4444_v57 = vadd.f32 %v12842_v5, %v17942_v59  ;;  %v4438_v34 = vpop.f32.mrb[203].mxu1  ;;  %v21410_v36 = vpack.c.bf16 %v17778_v27, %v17780_v0  ;;  %v21411_v53 = vpack.c.bf16 %v17790_v25, %v17792_v52  ;;  %v21412_v27 = vpack.c.bf16 %v17802_v61, %v17804_v22 }
 0x603   : > { %v4439_v49 = vadd.f32 %v17942_v59, %v4438_v34  ;;  %v21413_v25 = vpack.c.bf16 %v17814_v16, %v17816_v60  ;;  %v21414_v61 = vpack.c.bf16 %v17826_v6, %v17828_v1  ;;  %v21415_v16 = vpack.c.bf16 %v17838_v8, %v17840_v19 }
 0x604   : > { %4719 = vst.msk [vmem:[%s17947_s28 + $0x58] sm:$0xff] %vm4707_vm7, %v4444_v57  ;;  %v21416_v6 = vpack.c.bf16 %v17850_v9, %v17852_v30  ;;  %v21417_v8 = vpack.c.bf16 %v17862_v23, %v17864_v20  ;;  %v21418_v9 = vpack.c.bf16 %v17874_v42, %v17876_v58  ;;  %v21419_v23 = vld [vmem:[#allocation2_spill] sm:$0xff]  ;;  %v21420_v20 = vld [vmem:[#allocation3_spill] sm:$0xff]  ;;  %v21422_v42 = vld [vmem:[#allocation4_spill] sm:$0xff] }
 0x605   : > { %4718 = vst.msk [vmem:[%s17947_s28 + $0x50] sm:$0xff] %vm4707_vm7, %v4439_v49  ;;  %v12845_v56 = vpop.f32.mrb[204].mxu1  ;;  %12928 = vmatmul.mubr.msk.bf16.gmra.mrb[4].mxu1 %vm4125_vm6, %v21396_v17  ;;  %v21423_v58 = vld [vmem:[#allocation5_spill] sm:$0xff] }
 0x606   : > { %v4454_v48 = vadd.f32 %v12845_v56, %v17942_v59  ;;  %v4448_v12 = vpop.f32.mrb[205].mxu1  ;;  %12931 = vmatprep.mubr.msk.bf16.mxu1 %vm4125_vm6, %v21397_v21 }
 0x607   : > { %v4449_v40 = vadd.f32 %v17942_v59, %v4448_v12 }
 0x608   : > { %4721 = vst.msk [vmem:[%s17947_s28 + $0x68] sm:$0xff] %vm4707_vm7, %v4454_v48 }
 0x609   : > { %4720 = vst.msk [vmem:[%s17947_s28 + $0x60] sm:$0xff] %vm4707_vm7, %v4449_v40 }
 0x60c   : > { %v12848_v55 = vpop.f32.mrb[206].mxu1 }
 0x60d   : > { %v4464_v7 = vadd.f32 %v12848_v55, %v17942_v59  ;;  %v4458_v2 = vpop.f32.mrb[207].mxu1  ;;  %12932 = vmatmul.mubr.msk.bf16.gmra.mrb[8].mxu1 %vm4125_vm6, %v21398_v11 }
 0x60e   : > { %v4459_v51 = vadd.f32 %v17942_v59, %v4458_v2  ;;  %12935 = vmatprep.mubr.msk.bf16.mxu1 %vm4125_vm6, %v21399_v63 }
 0x60f   : > { %4723 = vst.msk [vmem:[%s17947_s28 + $0x78] sm:$0xff] %vm4707_vm7, %v4464_v7 }
 0x610   : > { %4722 = vst.msk [vmem:[%s17947_s28 + $0x70] sm:$0xff] %vm4707_vm7, %v4459_v51 }
 0x614   : > { %v12851_v45 = vpop.f32.mrb[208].mxu1 }
 0x615   : > { %v4474_v43 = vadd.f32 %v12851_v45, %v17942_v59  ;;  %v4468_v5 = vpop.f32.mrb[209].mxu1  ;;  %12936 = vmatmul.mubr.msk.bf16.gmra.mrb[12].mxu1 %vm4125_vm6, %v21400_v29  ;;  %v21421_v29 = vpack.c.bf16 %v21419_v23, %v21420_v20 }
 0x616   : > { %v4469_v54 = vadd.f32 %v17942_v59, %v4468_v5  ;;  %12939 = vmatprep.mubr.msk.bf16.mxu1 %vm4125_vm6, %v21401_v32 }
 0x617   : > { %4725 = vst.msk [vmem:[%s17947_s28 + $0x88] sm:$0xff] %vm4707_vm7, %v4474_v43 }
 0x618   : > { %4724 = vst.msk [vmem:[%s17947_s28 + $0x80] sm:$0xff] %vm4707_vm7, %v4469_v54 }
 0x61c   : > { %v12854_v3 = vpop.f32.mrb[210].mxu1 }
 0x61d   : > { %v4484_v57 = vadd.f32 %v12854_v3, %v17942_v59  ;;  %v4478_v34 = vpop.f32.mrb[211].mxu1  ;;  %12940 = vmatmul.mubr.msk.bf16.gmra.mrb[16].mxu1 %vm4125_vm6, %v21402_v47  ;;  %v21425_v47 = vld [vmem:[#allocation6_spill] sm:$0xff] }
 0x61e   : > { %v4479_v18 = vadd.f32 %v17942_v59, %v4478_v34  ;;  %12943 = vmatprep.mubr.msk.bf16.mxu1 %vm4125_vm6, %v21403_v31 }
 0x61f   : > { %4727 = vst.msk [vmem:[%s17947_s28 + $0x98] sm:$0xff] %vm4707_vm7, %v4484_v57  ;;  %v21424_v57 = vpack.c.bf16 %v21422_v42, %v21423_v58 }
 0x620   : > { %4726 = vst.msk [vmem:[%s17947_s28 + $0x90] sm:$0xff] %vm4707_vm7, %v4479_v18  ;;  %v21426_v18 = vld [vmem:[#allocation7_spill] sm:$0xff] }
 0x621   : > { %v21427_v31 = vpack.c.bf16 %v21425_v47, %v21426_v18 }
 0x624   : > { %v12857_v14 = vpop.f32.mrb[212].mxu1 }
 0x625   : > { %v4494_v49 = vadd.f32 %v12857_v14, %v17942_v59  ;;  %v4488_v56 = vpop.f32.mrb[213].mxu1  ;;  %12944 = vmatmul.mubr.msk.bf16.gmra.mrb[20].mxu1 %vm4125_vm6, %v21404_v4  ;;  %v21428_v4 = vld [vmem:[#allocation8_spill] sm:$0xff] }
 0x626   : > { %v4489_v35 = vadd.f32 %v17942_v59, %v4488_v56  ;;  %12947 = vmatprep.mubr.msk.bf16.mxu1 %vm4125_vm6, %v21405_v38 }
 0x627   : > { %4729 = vst.msk [vmem:[%s17947_s28 + $0xa8] sm:$0xff] %vm4707_vm7, %v4494_v49 }
 0x628   : > { %4728 = vst.msk [vmem:[%s17947_s28 + $0xa0] sm:$0xff] %vm4707_vm7, %v4489_v35  ;;  %v21429_v35 = vld [vmem:[#allocation9_spill] sm:$0xff] }
 0x629   : > { %v21430_v38 = vpack.c.bf16 %v21428_v4, %v21429_v35  ;;  %v13643_v35 = vld [vmem:[%s21327_s13] sm:$0xff]  }
 0x62a   : > { %13053 = vmatprep.subr.bf16.mxu1 %v13643_v35 }
 0x62c   : > { %v12860_v41 = vpop.f32.mrb[214].mxu1 }
 0x62d   : > { %v4504_v17 = vadd.f32 %v12860_v41, %v17942_v59  ;;  %v4498_v48 = vpop.f32.mrb[215].mxu1  ;;  %12948 = vmatmul.mubr.msk.bf16.gmra.mrb[24].mxu1 %vm4125_vm6, %v21406_v44 }
 0x62e   : > { %v4499_v33 = vadd.f32 %v17942_v59, %v4498_v48  ;;  %12951 = vmatprep.mubr.msk.bf16.mxu1 %vm4125_vm6, %v21407_v24  ;;  %v21432_v48 = vld [vmem:[#allocation11_spill] sm:$0xff] }
 0x62f   : > { %4731 = vst.msk [vmem:[%s17947_s28 + $0xb8] sm:$0xff] %vm4707_vm7, %v4504_v17  ;;  %v21431_v17 = vld [vmem:[#allocation10_spill] sm:$0xff] }
 0x630   : > { %4730 = vst.msk [vmem:[%s17947_s28 + $0xb0] sm:$0xff] %vm4707_vm7, %v4499_v33  ;;  %v21433_v44 = vpack.c.bf16 %v21431_v17, %v21432_v48 }
 0x634   : > { %v12863_v10 = vpop.f32.mrb[216].mxu1 }
 0x635   : > { %v4514_v12 = vadd.f32 %v12863_v10, %v17942_v59  ;;  %v4508_v21 = vpop.f32.mrb[217].mxu1  ;;  %12952 = vmatmul.mubr.msk.bf16.gmra.mrb[28].mxu1 %vm4125_vm6, %v21408_v26 }
 0x636   : > { %v4509_v28 = vadd.f32 %v17942_v59, %v4508_v21  ;;  %12955 = vmatprep.mubr.msk.bf16.mxu1 %vm4125_vm6, %v21409_v13 }
 0x637   : > { %4733 = vst.msk [vmem:[%s17947_s28 + $0xc8] sm:$0xff] %vm4707_vm7, %v4514_v12 }
 0x638   : > { %4732 = vst.msk [vmem:[%s17947_s28 + $0xc0] sm:$0xff] %vm4707_vm7, %v4509_v28 }
 0x63c   : > { %v12866_v37 = vpop.f32.mrb[218].mxu1 }
 0x63d   : > { %v4524_v40 = vadd.f32 %v12866_v37, %v17942_v59  ;;  %v4518_v55 = vpop.f32.mrb[219].mxu1  ;;  %12956 = vmatmul.mubr.msk.bf16.gmra.mrb[32].mxu1 %vm4125_vm6, %v21410_v36 }
 0x63e   : > { %v4519_v39 = vadd.f32 %v17942_v59, %v4518_v55  ;;  %12959 = vmatprep.mubr.msk.bf16.mxu1 %vm4125_vm6, %v21411_v53 }
 0x63f   : > { %4735 = vst.msk [vmem:[%s17947_s28 + $0xd8] sm:$0xff] %vm4707_vm7, %v4524_v40 }
 0x640   : > { %4734 = vst.msk [vmem:[%s17947_s28 + $0xd0] sm:$0xff] %vm4707_vm7, %v4519_v39 }
 0x644   : > { %v12869_v46 = vpop.f32.mrb[220].mxu1 }
 0x645   : > { %v4534_v7 = vadd.f32 %v12869_v46, %v17942_v59  ;;  %v4528_v2 = vpop.f32.mrb[221].mxu1  ;;  %12960 = vmatmul.mubr.msk.bf16.gmra.mrb[36].mxu1 %vm4125_vm6, %v21412_v27 }
 0x646   : > { %v4529_v0 = vadd.f32 %v17942_v59, %v4528_v2  ;;  %12963 = vmatprep.mubr.msk.bf16.mxu1 %vm4125_vm6, %v21413_v25 }
 0x647   : > { %4737 = vst.msk [vmem:[%s17947_s28 + $0xe8] sm:$0xff] %vm4707_vm7, %v4534_v7 }
 0x648   : > { %4736 = vst.msk [vmem:[%s17947_s28 + $0xe0] sm:$0xff] %vm4707_vm7, %v4529_v0 }
 0x64c   : > { %v12872_v52 = vpop.f32.mrb[222].mxu1 }
 0x64d   : > { %v4544_v11 = vadd.f32 %v12872_v52, %v17942_v59  ;;  %v4538_v51 = vpop.f32.mrb[223].mxu1  ;;  %12964 = vmatmul.mubr.msk.bf16.gmra.mrb[40].mxu1 %vm4125_vm6, %v21414_v61 }
 0x64e   : > { %v4539_v22 = vadd.f32 %v17942_v59, %v4538_v51  ;;  %12967 = vmatprep.mubr.msk.bf16.mxu1 %vm4125_vm6, %v21415_v16 }
 0x64f   : > { %4739 = vst.msk [vmem:[%s17947_s28 + $0xf8] sm:$0xff] %vm4707_vm7, %v4544_v11 }
 0x650   : > { %4738 = vst.msk [vmem:[%s17947_s28 + $0xf0] sm:$0xff] %vm4707_vm7, %v4539_v22 }
 0x654   : > { %v12875_v60 = vpop.f32.mrb[224].mxu1 }
 0x655   : > { %v4554_v63 = vadd.f32 %v12875_v60, %v17942_v59  ;;  %v4548_v45 = vpop.f32.mrb[225].mxu1  ;;  %12968 = vmatmul.mubr.msk.bf16.gmra.mrb[44].mxu1 %vm4125_vm6, %v21416_v6 }
 0x656   : > { %v4549_v1 = vadd.f32 %v17942_v59, %v4548_v45  ;;  %12971 = vmatprep.mubr.msk.bf16.mxu1 %vm4125_vm6, %v21417_v8 }
 0x657   : > { %4741 = vst.msk [vmem:[%s17947_s28 + $0x108] sm:$0xff] %vm4707_vm7, %v4554_v63 }
 0x658   : > { %4740 = vst.msk [vmem:[%s17947_s28 + $0x100] sm:$0xff] %vm4707_vm7, %v4549_v1 }
 0x65c   : > { %v12878_v19 = vpop.f32.mrb[226].mxu1 }
 0x65d   : > { %v4564_v43 = vadd.f32 %v12878_v19, %v17942_v59  ;;  %v4558_v5 = vpop.f32.mrb[227].mxu1  ;;  %12972 = vmatmul.mubr.msk.bf16.gmra.mrb[48].mxu1 %vm4125_vm6, %v21418_v9 }
 0x65e   : > { %v4559_v30 = vadd.f32 %v17942_v59, %v4558_v5  ;;  %12975 = vmatprep.mubr.msk.bf16.mxu1 %vm4125_vm6, %v21421_v29 }
 0x65f   : > { %4743 = vst.msk [vmem:[%s17947_s28 + $0x118] sm:$0xff] %vm4707_vm7, %v4564_v43 }
 0x660   : > { %4742 = vst.msk [vmem:[%s17947_s28 + $0x110] sm:$0xff] %vm4707_vm7, %v4559_v30 }
 0x664   : > { %v12881_v54 = vpop.f32.mrb[228].mxu1 }
 0x665   : > { %v4574_v32 = vadd.f32 %v12881_v54, %v17942_v59  ;;  %v4568_v3 = vpop.f32.mrb[229].mxu1  ;;  %12976 = vmatmul.mubr.msk.bf16.gmra.mrb[52].mxu1 %vm4125_vm6, %v21424_v57  ;;  %v18289_v57 = vld [vmem:[%s21324_s10] ss:$0 sm:$0xff] }
 0x666   : > { %v4569_v34 = vadd.f32 %v17942_v59, %v4568_v3  ;;  %12979 = vmatprep.mubr.msk.bf16.mxu1 %vm4125_vm6, %v21427_v31 }
 0x667   : > { %4745 = vst.msk [vmem:[%s17947_s28 + $0x128] sm:$0xff] %vm4707_vm7, %v4574_v32 }
 0x668   : > { %4744 = vst.msk [vmem:[%s17947_s28 + $0x120] sm:$0xff] %vm4707_vm7, %v4569_v34 }
 0x66c   : > { %v12884_v14 = vpop.f32.mrb[230].mxu1 }
 0x66d   : > { %v4584_v49 = vadd.f32 %v12884_v14, %v17942_v59  ;;  %v4578_v56 = vpop.f32.mrb[231].mxu1  ;;  %12980 = vmatmul.mubr.msk.bf16.gmra.mrb[56].mxu1 %vm4125_vm6, %v21430_v38 }
 0x66e   : > { %v4579_v41 = vadd.f32 %v17942_v59, %v4578_v56  ;;  %12983 = vmatprep.mubr.msk.bf16.mxu1 %vm4125_vm6, %v21433_v44 }
 0x66f   : > { %4747 = vst.msk [vmem:[%s17947_s28 + $0x138] sm:$0xff] %vm4707_vm7, %v4584_v49 }
 0x670   : > { %4746 = vst.msk [vmem:[%s17947_s28 + $0x130] sm:$0xff] %vm4707_vm7, %v4579_v41 }
 0x674   : > { %v12887_v33 = vpop.f32.mrb[232].mxu1 }
 0x675   : > { %v4594_v24 = vadd.f32 %v12887_v33, %v17942_v59  ;;  %v4588_v10 = vpop.f32.mrb[233].mxu1  ;;  %12984 = vmatmul.mubr.msk.bf16.gmra.mrb[60].mxu1 %vm4125_vm6, %v4803_v50 }
 0x676   : > { %v4589_v12 = vadd.f32 %v17942_v59, %v4588_v10 }
 0x677   : > { %4749 = vst.msk [vmem:[%s17947_s28 + $0x148] sm:$0xff] %vm4707_vm7, %v4594_v24 }
 0x678   : > { %4748 = vst.msk [vmem:[%s17947_s28 + $0x140] sm:$0xff] %vm4707_vm7, %v4589_v12  ;;  %v13647_v12 = vld [vmem:[%s21329_s15] ss:$28 sps:$4 sm:$0xff]  }
 0x67c   : > { %v12890_v21 = vpop.f32.mrb[234].mxu1 }
 0x67d   : > { %v4604_v26 = vadd.f32 %v12890_v21, %v17942_v59  ;;  %v4598_v28 = vpop.f32.mrb[235].mxu1  ;;  %v13649_v21 = vld [vmem:[%s21329_s15 + $0x4] ss:$28 sps:$4 sm:$0xff]  }
 0x67e   : > { %v4599_v13 = vadd.f32 %v17942_v59, %v4598_v28  ;;  %6710 = vmatprep.subr.bf16.mxu0 %v13649_v21 }
 0x67f   : > { %4751 = vst.msk [vmem:[%s17947_s28 + $0x158] sm:$0xff] %vm4707_vm7, %v4604_v26  ;;  %6711 = vmatpush1.bf16.msra.mxu0 %v13647_v12 }
 0x680   : > { %4750 = vst.msk [vmem:[%s17947_s28 + $0x150] sm:$0xff] %vm4707_vm7, %v4599_v13 }
 0x684   : > { %v12893_v15 = vpop.f32.mrb[236].mxu1 }
 0x685   : > { %v4614_v62 = vadd.f32 %v12893_v15, %v17942_v59  ;;  %v4608_v50 = vpop.f32.mrb[237].mxu1 }
 0x686   : > { %v4609_v37 = vadd.f32 %v17942_v59, %v4608_v50 }
 0x687   : > { %4753 = vst.msk [vmem:[%s17947_s28 + $0x168] sm:$0xff] %vm4707_vm7, %v4614_v62 }
 0x688   : > { %4752 = vst.msk [vmem:[%s17947_s28 + $0x160] sm:$0xff] %vm4707_vm7, %v4609_v37 }
 0x68c   : > { %v12896_v40 = vpop.f32.mrb[238].mxu1 }
 0x68d   : > { %v4624_v55 = vadd.f32 %v12896_v40, %v17942_v59  ;;  %v4618_v36 = vpop.f32.mrb[239].mxu1 }
 0x68e   : > { %v4619_v39 = vadd.f32 %v17942_v59, %v4618_v36 }
 0x68f   : > { %4755 = vst.msk [vmem:[%s17947_s28 + $0x178] sm:$0xff] %vm4707_vm7, %v4624_v55 }
 0x690   : > { %4754 = vst.msk [vmem:[%s17947_s28 + $0x170] sm:$0xff] %vm4707_vm7, %v4619_v39  ;;  %v13644_v39 = vld [vmem:[%s21327_s13 + $0x8] sm:$0xff]  }
 0x694   : > { %v12899_v53 = vpop.f32.mrb[240].mxu1 }
 0x695   : > { %v4634_v46 = vadd.f32 %v12899_v53, %v17942_v59  ;;  %v4628_v7 = vpop.f32.mrb[241].mxu1 }
 0x696   : > { %v4629_v2 = vadd.f32 %v17942_v59, %v4628_v7 }
 0x697   : > { %4757 = vst.msk [vmem:[%s17947_s28 + $0x188] sm:$0xff] %vm4707_vm7, %v4634_v46 }
 0x698   : > { %4756 = vst.msk [vmem:[%s17947_s28 + $0x180] sm:$0xff] %vm4707_vm7, %v4629_v2 }
 0x69c   : > { %v12902_v27 = vpop.f32.mrb[242].mxu1 }
 0x69d   : > { %v4644_v0 = vadd.f32 %v12902_v27, %v17942_v59  ;;  %v4638_v25 = vpop.f32.mrb[243].mxu1 }
 0x69e   : > { %v4639_v52 = vadd.f32 %v17942_v59, %v4638_v25 }
 0x69f   : > { %4759 = vst.msk [vmem:[%s17947_s28 + $0x198] sm:$0xff] %vm4707_vm7, %v4644_v0  ;;  %v13645_v0 = vld [vmem:[%s21327_s13 + $0x10] sm:$0xff]  }
 0x6a0   : > { %4758 = vst.msk [vmem:[%s17947_s28 + $0x190] sm:$0xff] %vm4707_vm7, %v4639_v52 }
 0x6a4   : > { %v12905_v11 = vpop.f32.mrb[244].mxu1 }
 0x6a5   : > { %v4654_v51 = vadd.f32 %v12905_v11, %v17942_v59  ;;  %v4648_v61 = vpop.f32.mrb[245].mxu1 }
 0x6a6   : > { %v4649_v22 = vadd.f32 %v17942_v59, %v4648_v61 }
 0x6a7   : > { %4761 = vst.msk [vmem:[%s17947_s28 + $0x1a8] sm:$0xff] %vm4707_vm7, %v4654_v51 }
 0x6a8   : > { %4760 = vst.msk [vmem:[%s17947_s28 + $0x1a0] sm:$0xff] %vm4707_vm7, %v4649_v22 }
 0x6ac   : > { %v12908_v16 = vpop.f32.mrb[246].mxu1 }
 0x6ad   : > { %v4664_v60 = vadd.f32 %v12908_v16, %v17942_v59  ;;  %v4658_v63 = vpop.f32.mrb[247].mxu1 }
 0x6ae   : > { %v4659_v45 = vadd.f32 %v17942_v59, %v4658_v63 }
 0x6af   : > { %4763 = vst.msk [vmem:[%s17947_s28 + $0x1b8] sm:$0xff] %vm4707_vm7, %v4664_v60 }
 0x6b0   : > { %4762 = vst.msk [vmem:[%s17947_s28 + $0x1b0] sm:$0xff] %vm4707_vm7, %v4659_v45  ;;  %v13646_v45 = vld [vmem:[%s21327_s13 + $0x18] sm:$0xff]  }
 0x6b4   : > { %v12911_v6 = vpop.f32.mrb[248].mxu1 }
 0x6b5   : > { %v4674_v1 = vadd.f32 %v12911_v6, %v17942_v59  ;;  %v4668_v8 = vpop.f32.mrb[249].mxu1 }
 0x6b6   : > { %v4669_v19 = vadd.f32 %v17942_v59, %v4668_v8 }
 0x6b7   : > { %4765 = vst.msk [vmem:[%s17947_s28 + $0x1c8] sm:$0xff] %vm4707_vm7, %v4674_v1 }
 0x6b8   : > { %4764 = vst.msk [vmem:[%s17947_s28 + $0x1c0] sm:$0xff] %vm4707_vm7, %v4669_v19 }
 0x6bc   : > { %v12914_v43 = vpop.f32.mrb[250].mxu1 }
 0x6bd   : > { %v4684_v5 = vadd.f32 %v12914_v43, %v17942_v59  ;;  %v4678_v9 = vpop.f32.mrb[251].mxu1 }
 0x6be   : > { %v4679_v30 = vadd.f32 %v17942_v59, %v4678_v9 }
 0x6bf   : > { %4767 = vst.msk [vmem:[%s17947_s28 + $0x1d8] sm:$0xff] %vm4707_vm7, %v4684_v5 }
 0x6c0   : > { %4766 = vst.msk [vmem:[%s17947_s28 + $0x1d0] sm:$0xff] %vm4707_vm7, %v4679_v30 }
 0x6c4   : > { %v12917_v23 = vpop.f32.mrb[252].mxu1 }
 0x6c5   : > { %v4694_v20 = vadd.f32 %v12917_v23, %v17942_v59  ;;  %v4688_v29 = vpop.f32.mrb[253].mxu1 }
 0x6c6   : > { %v4689_v54 = vadd.f32 %v17942_v59, %v4688_v29 }
 0x6c7   : > { %4769 = vst.msk [vmem:[%s17947_s28 + $0x1e8] sm:$0xff] %vm4707_vm7, %v4694_v20 }
 0x6c8   : > { %4768 = vst.msk [vmem:[%s17947_s28 + $0x1e0] sm:$0xff] %vm4707_vm7, %v4689_v54 }
 0x6cc   : > { %v12920_v32 = vpop.f32.mrb[254].mxu1 }
 0x6cd   : > { %v4704_v3 = vadd.f32 %v12920_v32, %v17942_v59  ;;  %v4698_v42 = vpop.f32.mrb[255].mxu1 }
 0x6ce   : > { %v4699_v58 = vadd.f32 %v17942_v59, %v4698_v42 }
 0x6cf   : > { %4771 = vst.msk [vmem:[%s17947_s28 + $0x1f8] sm:$0xff] %vm4707_vm7, %v4704_v3 }
 0x6d0   : > { %4770 = vst.msk [vmem:[%s17947_s28 + $0x1f0] sm:$0xff] %vm4707_vm7, %v4699_v58  ;;  %v12925_v34 = vpop.f32.mrb[0].mxu1 }
 0x6d1   : > { %v4961_v47 = vadd.f32 %v12925_v34, %v18289_v57  ;;  %v4952_v18 = vpop.f32.mrb[1].mxu1 }
 0x6d2   : > { %v4953_v31 = vadd.f32 %v18289_v57, %v4952_v18  ;;  %v12926_v14 = vpop.f32.mrb[2].mxu1 }
 0x6d3   : > { %14111 = vtanh.f32 %v4961_v47  ;;  %v4964_v49 = vadd.f32 %v12926_v14, %v18289_v57  ;;  %v4955_v59 = vpop.f32.mrb[3].mxu1 }
 0x6d4   : > { %14113 = vtanh.f32 %v4953_v31  ;;  %v4956_v56 = vadd.f32 %v18289_v57, %v4955_v59 }
 0x6d5   : > { %14115 = vtanh.f32 %v4964_v49 }
 0x6d6   : > { %14117 = vtanh.f32 %v4956_v56 }
 0x6d8   : > { %v12929_v4 = vpop.f32.mrb[4].mxu1 }
 0x6d9   : > { %v4977_v38 = vadd.f32 %v12929_v4, %v18289_v57  ;;  %v4968_v41 = vpop.f32.mrb[5].mxu1 }
 0x6da   : > { %v4969_v17 = vadd.f32 %v18289_v57, %v4968_v41  ;;  %v12930_v48 = vpop.f32.mrb[6].mxu1 }
 0x6db   : > { %14119 = vtanh.f32 %v4977_v38  ;;  %v4980_v44 = vadd.f32 %v12930_v48, %v18289_v57  ;;  %v4971_v33 = vpop.f32.mrb[7].mxu1 }
 0x6dc   : > { %14121 = vtanh.f32 %v4969_v17  ;;  %v4972_v24 = vadd.f32 %v18289_v57, %v4971_v33 }
 0x6dd   : > { %v14112_v10 = vpop.eup %14111  ;;  %14123 = vtanh.f32 %v4980_v44 }
 0x6de   : > { %v14114_v26 = vpop.eup %14113  ;;  %14125 = vtanh.f32 %v4972_v24 }
 0x6df   : > { %v14116_v28 = vpop.eup %14115 }
 0x6e0   : > { %v14118_v13 = vpop.eup %14117  ;;  %v5272_v15 = vpack.c.bf16 %v14116_v28, %v14112_v10  ;;  %v12933_v62 = vpop.f32.mrb[8].mxu1 }
 0x6e1   : > { %v4993_v50 = vadd.f32 %v12933_v62, %v18289_v57  ;;  %v4984_v37 = vpop.f32.mrb[9].mxu1  ;;  %v5271_v40 = vpack.c.bf16 %v14118_v13, %v14114_v26 }
 0x6e2   : > { %v4985_v55 = vadd.f32 %v18289_v57, %v4984_v37  ;;  %v12934_v36 = vpop.f32.mrb[10].mxu1 }
 0x6e3   : > { %14127 = vtanh.f32 %v4993_v50  ;;  %v4996_v53 = vadd.f32 %v12934_v36, %v18289_v57  ;;  %v4987_v46 = vpop.f32.mrb[11].mxu1  ;;  %12989 = vmatprep.mubr.msk.bf16.mxu1 %vm4125_vm6, %v5271_v40 }
 0x6e4   : > { %14129 = vtanh.f32 %v4985_v55  ;;  %v4988_v7 = vadd.f32 %v18289_v57, %v4987_v46  ;;  %12990 = vmatmul.mubr.msk.bf16.vlgmr.msra.gmra.mrb[64].mxu1 %vm4125_vm6, %v5272_v15 }
 0x6e5   : > { %v14120_v2 = vpop.eup %14119  ;;  %14131 = vtanh.f32 %v4996_v53  ;;  %13054 = vmatpush3.bf16.msra.mxu1 %v13643_v35 }
 0x6e6   : > { %v14122_v27 = vpop.eup %14121  ;;  %14133 = vtanh.f32 %v4988_v7  ;;  %13055 = vmatprep.subr.bf16.mxu1 %v13644_v39 }
 0x6e7   : > { %v14124_v25 = vpop.eup %14123 }
 0x6e8   : > { %v14126_v52 = vpop.eup %14125  ;;  %v5274_v11 = vpack.c.bf16 %v14124_v25, %v14120_v2  ;;  %v12937_v51 = vpop.f32.mrb[12].mxu1 }
 0x6e9   : > { %v5009_v61 = vadd.f32 %v12937_v51, %v18289_v57  ;;  %v5000_v22 = vpop.f32.mrb[13].mxu1  ;;  %v5273_v16 = vpack.c.bf16 %v14126_v52, %v14122_v27  ;;  %13056 = vmatpush3.bf16.msra.mxu1 %v13644_v39 }
 0x6ea   : > { %v5001_v60 = vadd.f32 %v18289_v57, %v5000_v22  ;;  %v12938_v63 = vpop.f32.mrb[14].mxu1  ;;  %13057 = vmatprep.subr.bf16.mxu1 %v13645_v0 }
 0x6eb   : > { %14135 = vtanh.f32 %v5009_v61  ;;  %v5012_v6 = vadd.f32 %v12938_v63, %v18289_v57  ;;  %v5003_v1 = vpop.f32.mrb[15].mxu1  ;;  %12993 = vmatprep.mubr.msk.bf16.mxu1 %vm4125_vm6, %v5273_v16 }
 0x6ec   : > { %14137 = vtanh.f32 %v5001_v60  ;;  %v5004_v8 = vadd.f32 %v18289_v57, %v5003_v1  ;;  %12994 = vmatmul.mubr.msk.bf16.gmra.mrb[68].mxu1 %vm4125_vm6, %v5274_v11 }
 0x6ed   : > { %v14128_v19 = vpop.eup %14127  ;;  %14139 = vtanh.f32 %v5012_v6  ;;  %13058 = vmatpush3.bf16.msra.mxu1 %v13645_v0 }
 0x6ee   : > { %v14130_v43 = vpop.eup %14129  ;;  %14141 = vtanh.f32 %v5004_v8  ;;  %13059 = vmatprep.subr.bf16.mxu1 %v13646_v45 }
 0x6ef   : > { %v14132_v5 = vpop.eup %14131 }
 0x6f0   : > { %v14134_v9 = vpop.eup %14133  ;;  %v5276_v30 = vpack.c.bf16 %v14132_v5, %v14128_v19  ;;  %v12941_v23 = vpop.f32.mrb[16].mxu1 }
 0x6f1   : > { %v5025_v20 = vadd.f32 %v12941_v23, %v18289_v57  ;;  %v5016_v29 = vpop.f32.mrb[17].mxu1  ;;  %v5275_v54 = vpack.c.bf16 %v14134_v9, %v14130_v43  ;;  %13060 = vmatpush3.bf16.msra.mxu1 %v13646_v45 }
 0x6f2   : > { %v5017_v32 = vadd.f32 %v18289_v57, %v5016_v29  ;;  %v12942_v3 = vpop.f32.mrb[18].mxu1 }
 0x6f3   : > { %14143 = vtanh.f32 %v5025_v20  ;;  %v5028_v42 = vadd.f32 %v12942_v3, %v18289_v57  ;;  %v5019_v58 = vpop.f32.mrb[19].mxu1  ;;  %12997 = vmatprep.mubr.msk.bf16.mxu1 %vm4125_vm6, %v5275_v54 }
 0x6f4   : > { %14145 = vtanh.f32 %v5017_v32  ;;  %v5020_v34 = vadd.f32 %v18289_v57, %v5019_v58  ;;  %12998 = vmatmul.mubr.msk.bf16.gmra.mrb[72].mxu1 %vm4125_vm6, %v5276_v30 }
 0x6f5   : > { %v14136_v47 = vpop.eup %14135  ;;  %14147 = vtanh.f32 %v5028_v42 }
 0x6f6   : > { %v14138_v18 = vpop.eup %14137  ;;  %14149 = vtanh.f32 %v5020_v34 }
 0x6f7   : > { %v14140_v31 = vpop.eup %14139 }
 0x6f8   : > { %v14142_v14 = vpop.eup %14141  ;;  %v5278_v49 = vpack.c.bf16 %v14140_v31, %v14136_v47  ;;  %v12945_v59 = vpop.f32.mrb[20].mxu1 }
 0x6f9   : > { %v5041_v56 = vadd.f32 %v12945_v59, %v18289_v57  ;;  %v5032_v4 = vpop.f32.mrb[21].mxu1  ;;  %v5277_v35 = vpack.c.bf16 %v14142_v14, %v14138_v18 }
 0x6fa   : > { %v5033_v38 = vadd.f32 %v18289_v57, %v5032_v4  ;;  %v12946_v41 = vpop.f32.mrb[22].mxu1 }
 0x6fb   : > { %14151 = vtanh.f32 %v5041_v56  ;;  %v5044_v17 = vadd.f32 %v12946_v41, %v18289_v57  ;;  %v5035_v48 = vpop.f32.mrb[23].mxu1  ;;  %13001 = vmatprep.mubr.msk.bf16.mxu1 %vm4125_vm6, %v5277_v35 }
 0x6fc   : > { %14153 = vtanh.f32 %v5033_v38  ;;  %v5036_v44 = vadd.f32 %v18289_v57, %v5035_v48  ;;  %13002 = vmatmul.mubr.msk.bf16.gmra.mrb[76].mxu1 %vm4125_vm6, %v5278_v49 }
 0x6fd   : > { %v14144_v33 = vpop.eup %14143  ;;  %14155 = vtanh.f32 %v5044_v17 }
 0x6fe   : > { %v14146_v24 = vpop.eup %14145  ;;  %14157 = vtanh.f32 %v5036_v44 }
 0x6ff   : > { %v14148_v10 = vpop.eup %14147 }
 0x700   : > { %v14150_v12 = vpop.eup %14149  ;;  %v5280_v21 = vpack.c.bf16 %v14148_v10, %v14144_v33  ;;  %v12949_v26 = vpop.f32.mrb[24].mxu1 }
 0x701   : > { %v5057_v28 = vadd.f32 %v12949_v26, %v18289_v57  ;;  %v5048_v13 = vpop.f32.mrb[25].mxu1  ;;  %v5279_v15 = vpack.c.bf16 %v14150_v12, %v14146_v24 }
 0x702   : > { %v5049_v62 = vadd.f32 %v18289_v57, %v5048_v13  ;;  %v12950_v50 = vpop.f32.mrb[26].mxu1 }
 0x703   : > { %14159 = vtanh.f32 %v5057_v28  ;;  %v5060_v37 = vadd.f32 %v12950_v50, %v18289_v57  ;;  %v5051_v40 = vpop.f32.mrb[27].mxu1  ;;  %13005 = vmatprep.mubr.msk.bf16.mxu1 %vm4125_vm6, %v5279_v15 }
 0x704   : > { %14161 = vtanh.f32 %v5049_v62  ;;  %v5052_v55 = vadd.f32 %v18289_v57, %v5051_v40  ;;  %13006 = vmatmul.mubr.msk.bf16.gmra.mrb[80].mxu1 %vm4125_vm6, %v5280_v21 }
 0x705   : > { %v14152_v36 = vpop.eup %14151  ;;  %14163 = vtanh.f32 %v5060_v37 }
 0x706   : > { %v14154_v39 = vpop.eup %14153  ;;  %14165 = vtanh.f32 %v5052_v55 }
 0x707   : > { %v14156_v53 = vpop.eup %14155 }
 0x708   : > { %v14158_v46 = vpop.eup %14157  ;;  %v5282_v7 = vpack.c.bf16 %v14156_v53, %v14152_v36  ;;  %v12953_v2 = vpop.f32.mrb[28].mxu1 }
 0x709   : > { %v5073_v27 = vadd.f32 %v12953_v2, %v18289_v57  ;;  %v5064_v0 = vpop.f32.mrb[29].mxu1  ;;  %v5281_v25 = vpack.c.bf16 %v14158_v46, %v14154_v39 }
 0x70a   : > { %v5065_v52 = vadd.f32 %v18289_v57, %v5064_v0  ;;  %v12954_v11 = vpop.f32.mrb[30].mxu1 }
 0x70b   : > { %14167 = vtanh.f32 %v5073_v27  ;;  %v5076_v51 = vadd.f32 %v12954_v11, %v18289_v57  ;;  %v5067_v61 = vpop.f32.mrb[31].mxu1  ;;  %13009 = vmatprep.mubr.msk.bf16.mxu1 %vm4125_vm6, %v5281_v25 }
 0x70c   : > { %14169 = vtanh.f32 %v5065_v52  ;;  %v5068_v22 = vadd.f32 %v18289_v57, %v5067_v61  ;;  %13010 = vmatmul.mubr.msk.bf16.gmra.mrb[84].mxu1 %vm4125_vm6, %v5282_v7 }
 0x70d   : > { %v14160_v16 = vpop.eup %14159  ;;  %14171 = vtanh.f32 %v5076_v51 }
 0x70e   : > { %v14162_v60 = vpop.eup %14161  ;;  %14173 = vtanh.f32 %v5068_v22 }
 0x70f   : > { %v14164_v63 = vpop.eup %14163 }
 0x710   : > { %v14166_v45 = vpop.eup %14165  ;;  %v5284_v6 = vpack.c.bf16 %v14164_v63, %v14160_v16  ;;  %v12957_v1 = vpop.f32.mrb[32].mxu1 }
 0x711   : > { %v5089_v8 = vadd.f32 %v12957_v1, %v18289_v57  ;;  %v5080_v19 = vpop.f32.mrb[33].mxu1  ;;  %v5283_v43 = vpack.c.bf16 %v14166_v45, %v14162_v60 }
 0x712   : > { %v5081_v5 = vadd.f32 %v18289_v57, %v5080_v19  ;;  %v12958_v9 = vpop.f32.mrb[34].mxu1 }
 0x713   : > { %14175 = vtanh.f32 %v5089_v8  ;;  %v5092_v30 = vadd.f32 %v12958_v9, %v18289_v57  ;;  %v5083_v23 = vpop.f32.mrb[35].mxu1  ;;  %13013 = vmatprep.mubr.msk.bf16.mxu1 %vm4125_vm6, %v5283_v43 }
 0x714   : > { %14177 = vtanh.f32 %v5081_v5  ;;  %v5084_v20 = vadd.f32 %v18289_v57, %v5083_v23  ;;  %13014 = vmatmul.mubr.msk.bf16.gmra.mrb[88].mxu1 %vm4125_vm6, %v5284_v6 }
 0x715   : > { %v14168_v29 = vpop.eup %14167  ;;  %14179 = vtanh.f32 %v5092_v30 }
 0x716   : > { %v14170_v54 = vpop.eup %14169  ;;  %14181 = vtanh.f32 %v5084_v20 }
 0x717   : > { %v14172_v32 = vpop.eup %14171 }
 0x718   : > { %v14174_v3 = vpop.eup %14173  ;;  %v5286_v42 = vpack.c.bf16 %v14172_v32, %v14168_v29  ;;  %v12961_v58 = vpop.f32.mrb[36].mxu1 }
 0x719   : > { %v5105_v34 = vadd.f32 %v12961_v58, %v18289_v57  ;;  %v5096_v47 = vpop.f32.mrb[37].mxu1  ;;  %v5285_v18 = vpack.c.bf16 %v14174_v3, %v14170_v54 }
 0x71a   : > { %v5097_v31 = vadd.f32 %v18289_v57, %v5096_v47  ;;  %v12962_v14 = vpop.f32.mrb[38].mxu1 }
 0x71b   : > { %14183 = vtanh.f32 %v5105_v34  ;;  %v5108_v49 = vadd.f32 %v12962_v14, %v18289_v57  ;;  %v5099_v59 = vpop.f32.mrb[39].mxu1  ;;  %13017 = vmatprep.mubr.msk.bf16.mxu1 %vm4125_vm6, %v5285_v18 }
 0x71c   : > { %14185 = vtanh.f32 %v5097_v31  ;;  %v5100_v56 = vadd.f32 %v18289_v57, %v5099_v59  ;;  %13018 = vmatmul.mubr.msk.bf16.gmra.mrb[92].mxu1 %vm4125_vm6, %v5286_v42 }
 0x71d   : > { %v14176_v4 = vpop.eup %14175  ;;  %14187 = vtanh.f32 %v5108_v49 }
 0x71e   : > { %v14178_v35 = vpop.eup %14177  ;;  %14189 = vtanh.f32 %v5100_v56 }
 0x71f   : > { %v14180_v38 = vpop.eup %14179 }
 0x720   : > { %v14182_v41 = vpop.eup %14181  ;;  %v5288_v17 = vpack.c.bf16 %v14180_v38, %v14176_v4  ;;  %v12965_v48 = vpop.f32.mrb[40].mxu1 }
 0x721   : > { %v5121_v44 = vadd.f32 %v12965_v48, %v18289_v57  ;;  %v5112_v33 = vpop.f32.mrb[41].mxu1  ;;  %v5287_v24 = vpack.c.bf16 %v14182_v41, %v14178_v35 }
 0x722   : > { %v5113_v10 = vadd.f32 %v18289_v57, %v5112_v33  ;;  %v12966_v12 = vpop.f32.mrb[42].mxu1 }
 0x723   : > { %14191 = vtanh.f32 %v5121_v44  ;;  %v5124_v21 = vadd.f32 %v12966_v12, %v18289_v57  ;;  %v5115_v26 = vpop.f32.mrb[43].mxu1  ;;  %13021 = vmatprep.mubr.msk.bf16.mxu1 %vm4125_vm6, %v5287_v24 }
 0x724   : > { %14193 = vtanh.f32 %v5113_v10  ;;  %v5116_v28 = vadd.f32 %v18289_v57, %v5115_v26  ;;  %13022 = vmatmul.mubr.msk.bf16.gmra.mrb[96].mxu1 %vm4125_vm6, %v5288_v17 }
 0x725   : > { %v14184_v13 = vpop.eup %14183  ;;  %14195 = vtanh.f32 %v5124_v21 }
 0x726   : > { %v14186_v15 = vpop.eup %14185  ;;  %14197 = vtanh.f32 %v5116_v28 }
 0x727   : > { %v14188_v62 = vpop.eup %14187 }
 0x728   : > { %v14190_v50 = vpop.eup %14189  ;;  %v5290_v37 = vpack.c.bf16 %v14188_v62, %v14184_v13  ;;  %v12969_v40 = vpop.f32.mrb[44].mxu1 }
 0x729   : > { %v5137_v55 = vadd.f32 %v12969_v40, %v18289_v57  ;;  %v5128_v36 = vpop.f32.mrb[45].mxu1  ;;  %v5289_v39 = vpack.c.bf16 %v14190_v50, %v14186_v15 }
 0x72a   : > { %v5129_v53 = vadd.f32 %v18289_v57, %v5128_v36  ;;  %v12970_v46 = vpop.f32.mrb[46].mxu1 }
 0x72b   : > { %14199 = vtanh.f32 %v5137_v55  ;;  %v5140_v7 = vadd.f32 %v12970_v46, %v18289_v57  ;;  %v5131_v2 = vpop.f32.mrb[47].mxu1  ;;  %13025 = vmatprep.mubr.msk.bf16.mxu1 %vm4125_vm6, %v5289_v39 }
 0x72c   : > { %14201 = vtanh.f32 %v5129_v53  ;;  %v5132_v27 = vadd.f32 %v18289_v57, %v5131_v2  ;;  %13026 = vmatmul.mubr.msk.bf16.gmra.mrb[100].mxu1 %vm4125_vm6, %v5290_v37 }
 0x72d   : > { %v14192_v0 = vpop.eup %14191  ;;  %14203 = vtanh.f32 %v5140_v7 }
 0x72e   : > { %v14194_v25 = vpop.eup %14193  ;;  %14205 = vtanh.f32 %v5132_v27 }
 0x72f   : > { %v14196_v52 = vpop.eup %14195 }
 0x730   : > { %v14198_v11 = vpop.eup %14197  ;;  %v5292_v51 = vpack.c.bf16 %v14196_v52, %v14192_v0  ;;  %v12973_v61 = vpop.f32.mrb[48].mxu1 }
 0x731   : > { %v5153_v22 = vadd.f32 %v12973_v61, %v18289_v57  ;;  %v5144_v16 = vpop.f32.mrb[49].mxu1  ;;  %v5291_v60 = vpack.c.bf16 %v14198_v11, %v14194_v25  ;;  %v13652_v61 = vld [vmem:[%s21329_s15 + $0x3c] ss:$28 sps:$4 sm:$0xff]  }
 0x732   : > { %v5145_v63 = vadd.f32 %v18289_v57, %v5144_v16  ;;  %v12974_v45 = vpop.f32.mrb[50].mxu1  ;;  %6712 = vmatprep.subr.bf16.mxu0 %v13652_v61  ;;  %v13655_v16 = vld [vmem:[%s21329_s15 + $0x74] ss:$28 sps:$4 sm:$0xff]  }
 0x733   : > { %14207 = vtanh.f32 %v5153_v22  ;;  %v5156_v6 = vadd.f32 %v12974_v45, %v18289_v57  ;;  %v5147_v1 = vpop.f32.mrb[51].mxu1  ;;  %13029 = vmatprep.mubr.msk.bf16.mxu1 %vm4125_vm6, %v5291_v60  ;;  %v13653_v22 = vld [vmem:[%s21329_s15 + $0x70] ss:$28 sps:$4 sm:$0xff]   ;;  %v13656_v60 = vld [vmem:[%s21329_s15 + $0xa8] ss:$28 sps:$4 sm:$0xff]  }
 0x734   : > { %14209 = vtanh.f32 %v5145_v63  ;;  %v5148_v8 = vadd.f32 %v18289_v57, %v5147_v1  ;;  %13030 = vmatmul.mubr.msk.bf16.gmra.mrb[104].mxu1 %vm4125_vm6, %v5292_v51  ;;  %v13650_v51 = vld [vmem:[%s21329_s15 + $0x38] ss:$28 sps:$4 sm:$0xff]   ;;  %v13658_v63 = vld [vmem:[%s21329_s15 + $0xac] ss:$28 sps:$4 sm:$0xff]   ;;  %v18430_v45 = vld [vmem:[%s21326_s12] ss:$0 sm:$0xff] }
 0x735   : > { %v14200_v19 = vpop.eup %14199  ;;  %14211 = vtanh.f32 %v5156_v6  ;;  %6713 = vmatpush1.bf16.msra.mxu0 %v13650_v51 }
 0x736   : > { %v14202_v43 = vpop.eup %14201  ;;  %14213 = vtanh.f32 %v5148_v8  ;;  %6714 = vmatprep.subr.bf16.mxu0 %v13655_v16  ;;  %v13680_v16 = vld [vmem:[%s21329_s15 + $0xb0] ss:$28 sps:$4 sm:$0xff]  }
 0x737   : > { %v14204_v5 = vpop.eup %14203 }
 0x738   : > { %v14206_v9 = vpop.eup %14205  ;;  %v5294_v30 = vpack.c.bf16 %v14204_v5, %v14200_v19  ;;  %v12977_v23 = vpop.f32.mrb[52].mxu1 }
 0x739   : > { %v5169_v20 = vadd.f32 %v12977_v23, %v18289_v57  ;;  %v5160_v29 = vpop.f32.mrb[53].mxu1  ;;  %v5293_v54 = vpack.c.bf16 %v14206_v9, %v14202_v43  ;;  %6715 = vmatpush1.bf16.msra.mxu0 %v13653_v22 }
 0x73a   : > { %v5161_v32 = vadd.f32 %v18289_v57, %v5160_v29  ;;  %v12978_v3 = vpop.f32.mrb[54].mxu1  ;;  %6716 = vmatprep.subr.bf16.mxu0 %v13658_v63  ;;  %v13661_v29 = vld [vmem:[%s21329_s15 + $0xe4] ss:$28 sps:$4 sm:$0xff]  }
 0x73b   : > { %14215 = vtanh.f32 %v5169_v20  ;;  %v5172_v42 = vadd.f32 %v12978_v3, %v18289_v57  ;;  %v5163_v58 = vpop.f32.mrb[55].mxu1  ;;  %13033 = vmatprep.mubr.msk.bf16.mxu1 %vm4125_vm6, %v5293_v54  ;;  %v13659_v20 = vld [vmem:[%s21329_s15 + $0xe0] ss:$28 sps:$4 sm:$0xff]  }
 0x73c   : > { %14217 = vtanh.f32 %v5161_v32  ;;  %v5164_v34 = vadd.f32 %v18289_v57, %v5163_v58  ;;  %13034 = vmatmul.mubr.msk.bf16.gmra.mrb[108].mxu1 %vm4125_vm6, %v5294_v30 }
 0x73d   : > { %v14208_v47 = vpop.eup %14207  ;;  %14219 = vtanh.f32 %v5172_v42  ;;  %6717 = vmatpush1.bf16.msra.mxu0 %v13656_v60 }
 0x73e   : > { %v14210_v18 = vpop.eup %14209  ;;  %14221 = vtanh.f32 %v5164_v34  ;;  %6718 = vmatprep.subr.bf16.mxu0 %v13661_v29 }
 0x73f   : > { %v14212_v31 = vpop.eup %14211 }
 0x740   : > { %v14214_v14 = vpop.eup %14213  ;;  %v5296_v49 = vpack.c.bf16 %v14212_v31, %v14208_v47  ;;  %v12981_v59 = vpop.f32.mrb[56].mxu1  ;;  %v13664_v31 = vld [vmem:[%s21329_s15 + $0x11c] ss:$28 sps:$4 sm:$0xff]  }
 0x741   : > { %v5185_v56 = vadd.f32 %v12981_v59, %v18289_v57  ;;  %v5176_v4 = vpop.f32.mrb[57].mxu1  ;;  %v5295_v35 = vpack.c.bf16 %v14214_v14, %v14210_v18  ;;  %6719 = vmatpush1.bf16.msra.mxu0 %v13659_v20  ;;  %v13662_v18 = vld [vmem:[%s21329_s15 + $0x118] ss:$28 sps:$4 sm:$0xff]  }
 0x742   : > { %v5177_v38 = vadd.f32 %v18289_v57, %v5176_v4  ;;  %v12982_v41 = vpop.f32.mrb[58].mxu1  ;;  %6720 = vmatprep.subr.bf16.mxu0 %v13664_v31 }
 0x743   : > { %14223 = vtanh.f32 %v5185_v56  ;;  %v5188_v17 = vadd.f32 %v12982_v41, %v18289_v57  ;;  %v5179_v48 = vpop.f32.mrb[59].mxu1  ;;  %13037 = vmatprep.mubr.msk.bf16.mxu1 %vm4125_vm6, %v5295_v35  ;;  %v13673_v56 = vld [vmem:[%s21329_s15 + $0xc] ss:$28 sps:$4 sm:$0xff]  }
 0x744   : > { %14225 = vtanh.f32 %v5177_v38  ;;  %v5180_v44 = vadd.f32 %v18289_v57, %v5179_v48  ;;  %13038 = vmatmul.mubr.msk.bf16.gmra.mrb[112].mxu1 %vm4125_vm6, %v5296_v49  ;;  %v13667_v49 = vld [vmem:[%s21329_s15 + $0x154] ss:$28 sps:$4 sm:$0xff]   ;;  %v13670_v48 = vld [vmem:[%s21329_s15 + $0x18c] ss:$28 sps:$4 sm:$0xff]   ;;  %7063 = vmatprep.subr.bf16.mxu1 %v13673_v56 }
 0x745   : > { %v14216_v33 = vpop.eup %14215  ;;  %14227 = vtanh.f32 %v5188_v17  ;;  %6721 = vmatpush1.bf16.msra.mxu0 %v13662_v18  ;;  %v13665_v35 = vld [vmem:[%s21329_s15 + $0x150] ss:$28 sps:$4 sm:$0xff]  }
 0x746   : > { %v14218_v24 = vpop.eup %14217  ;;  %14229 = vtanh.f32 %v5180_v44  ;;  %6722 = vmatprep.subr.bf16.mxu0 %v13667_v49 }
 0x747   : > { %v14220_v10 = vpop.eup %14219 }
 0x748   : > { %v14222_v12 = vpop.eup %14221  ;;  %v5298_v21 = vpack.c.bf16 %v14220_v10, %v14216_v33  ;;  %v12985_v26 = vpop.f32.mrb[60].mxu1  ;;  %v13671_v10 = vld [vmem:[%s21329_s15 + $0x8] ss:$28 sps:$4 sm:$0xff]  }
 0x749   : > { %v5201_v28 = vadd.f32 %v12985_v26, %v18289_v57  ;;  %v5192_v13 = vpop.f32.mrb[61].mxu1  ;;  %v5297_v15 = vpack.c.bf16 %v14222_v12, %v14218_v24  ;;  %v13676_v26 = vld [vmem:[%s21329_s15 + $0x44] ss:$28 sps:$4 sm:$0xff]   ;;  %6723 = vmatpush1.bf16.msra.mxu0 %v13665_v35 }
 0x74a   : > { %v5193_v62 = vadd.f32 %v18289_v57, %v5192_v13  ;;  %v12986_v50 = vpop.f32.mrb[62].mxu1  ;;  %6724 = vmatprep.subr.bf16.mxu0 %v13670_v48 }
 0x74b   : > { %14231 = vtanh.f32 %v5201_v28  ;;  %v5204_v37 = vadd.f32 %v12986_v50, %v18289_v57  ;;  %v5195_v40 = vpop.f32.mrb[63].mxu1  ;;  %13041 = vmatprep.mubr.msk.bf16.mxu1 %vm4125_vm6, %v5297_v15  ;;  %v13668_v15 = vld [vmem:[%s21329_s15 + $0x188] ss:$28 sps:$4 sm:$0xff]  }
 0x74c   : > { %14233 = vtanh.f32 %v5193_v62  ;;  %v5196_v55 = vadd.f32 %v18289_v57, %v5195_v40  ;;  %13042 = vmatmul.mubr.msk.bf16.gmra.mrb[116].mxu1 %vm4125_vm6, %v5298_v21 }
 0x74d   : > { %v14224_v36 = vpop.eup %14223  ;;  %14235 = vtanh.f32 %v5204_v37  ;;  %v13674_v37 = vld [vmem:[%s21329_s15 + $0x40] ss:$28 sps:$4 sm:$0xff]   ;;  %6725 = vmatpush1.bf16.msra.mxu0 %v13668_v15 }
 0x74e   : > { %v14226_v39 = vpop.eup %14225  ;;  %14237 = vtanh.f32 %v5196_v55  ;;  %v13679_v55 = vld [vmem:[%s21329_s15 + $0x7c] ss:$28 sps:$4 sm:$0xff]  }
 0x74f   : > { %v14228_v53 = vpop.eup %14227 }
 0x750   : > { %v14230_v46 = vpop.eup %14229  ;;  %v5300_v7 = vpack.c.bf16 %v14228_v53, %v14224_v36 }
 0x751   : > { %v5299_v2 = vpack.c.bf16 %v14230_v46, %v14226_v39 }
 0x753   : > { %13045 = vmatprep.mubr.msk.bf16.mxu1 %vm4125_vm6, %v5299_v2 }
 0x754   : > { %13046 = vmatmul.mubr.msk.bf16.gmra.mrb[120].mxu1 %vm4125_vm6, %v5300_v7 }
 0x755   : > { %v14232_v27 = vpop.eup %14231 }
 0x756   : > { %v14234_v0 = vpop.eup %14233 }
 0x757   : > { %v14236_v25 = vpop.eup %14235 }
 0x758   : > { %v14238_v52 = vpop.eup %14237  ;;  %v5302_v11 = vpack.c.bf16 %v14236_v25, %v14232_v27 }
 0x759   : > { %v5301_v57 = vpack.c.bf16 %v14238_v52, %v14234_v0  ;;  %v13677_v0 = vld [vmem:[%s21329_s15 + $0x78] ss:$28 sps:$4 sm:$0xff]  }
 0x75b   : > { %13049 = vmatprep.mubr.msk.bf16.mxu1 %vm4125_vm6, %v5301_v57 }
 0x75c   : > { %13050 = vmatmul.mubr.msk.bf16.gmra.mrb[124].mxu1 %vm4125_vm6, %v5302_v11  ;;  %v13682_v11 = vld [vmem:[%s21329_s15 + $0xb4] ss:$28 sps:$4 sm:$0xff]  }
 0x7b7   : > { %v12991_v6 = vpop.f32.mrb[64].mxu1 }
 0x7b8   : > { %v5459_v1 = vadd.f32 %v12991_v6, %v18430_v45  ;;  %v5450_v8 = vpop.f32.mrb[65].mxu1 }
 0x7b9   : > { %v5451_v19 = vadd.f32 %v18430_v45, %v5450_v8  ;;  %v12992_v43 = vpop.f32.mrb[66].mxu1 }
 0x7ba   : > { %14239 = vtanh.f32 %v5459_v1  ;;  %v5462_v5 = vadd.f32 %v12992_v43, %v18430_v45  ;;  %v5453_v9 = vpop.f32.mrb[67].mxu1 }
 0x7bb   : > { %14241 = vtanh.f32 %v5451_v19  ;;  %v5454_v30 = vadd.f32 %v18430_v45, %v5453_v9 }
 0x7bc   : > { %14243 = vtanh.f32 %v5462_v5 }
 0x7bd   : > { %14245 = vtanh.f32 %v5454_v30 }
 0x7bf   : > { %v12995_v23 = vpop.f32.mrb[68].mxu1 }
 0x7c0   : > { %v5475_v54 = vadd.f32 %v12995_v23, %v18430_v45  ;;  %v5466_v32 = vpop.f32.mrb[69].mxu1 }
 0x7c1   : > { %v5467_v3 = vadd.f32 %v18430_v45, %v5466_v32  ;;  %v12996_v42 = vpop.f32.mrb[70].mxu1 }
 0x7c2   : > { %14247 = vtanh.f32 %v5475_v54  ;;  %v5478_v58 = vadd.f32 %v12996_v42, %v18430_v45  ;;  %v5469_v34 = vpop.f32.mrb[71].mxu1 }
 0x7c3   : > { %14249 = vtanh.f32 %v5467_v3  ;;  %v5470_v47 = vadd.f32 %v18430_v45, %v5469_v34 }
 0x7c4   : > { %v14240_v14 = vpop.eup %14239  ;;  %14251 = vtanh.f32 %v5478_v58 }
 0x7c5   : > { %v14242_v59 = vpop.eup %14241  ;;  %14253 = vtanh.f32 %v5470_v47 }
 0x7c6   : > { %v14244_v4 = vpop.eup %14243 }
 0x7c7   : > { %v14246_v38 = vpop.eup %14245  ;;  %v5770_v41 = vpack.c.bf16 %v14244_v4, %v14240_v14  ;;  %v12999_v17 = vpop.f32.mrb[72].mxu1 }
 0x7c8   : > { %v5491_v44 = vadd.f32 %v12999_v17, %v18430_v45  ;;  %v5482_v33 = vpop.f32.mrb[73].mxu1  ;;  %v5769_v24 = vpack.c.bf16 %v14246_v38, %v14242_v59 }
 0x7c9   : > { %v5483_v12 = vadd.f32 %v18430_v45, %v5482_v33  ;;  %v13000_v21 = vpop.f32.mrb[74].mxu1 }
 0x7ca   : > { %14255 = vtanh.f32 %v5491_v44  ;;  %v5494_v28 = vadd.f32 %v13000_v21, %v18430_v45  ;;  %v5485_v13 = vpop.f32.mrb[75].mxu1  ;;  %13061 = vmatprep.mubr.msk.bf16.mxu1 %vm3474_vm1, %v5769_v24 }
 0x7cb   : > { %14257 = vtanh.f32 %v5483_v12  ;;  %v5486_v62 = vadd.f32 %v18430_v45, %v5485_v13  ;;  %13062 = vmatmul.mubr.msk.bf16.vlgmr.msra.gmra.mrb[128].mxu1 %vm3474_vm1, %v5770_v41 }
 0x7cc   : > { %v14248_v50 = vpop.eup %14247  ;;  %14259 = vtanh.f32 %v5494_v28  ;;  %7064 = vmatpush1.bf16.msra.mxu1 %v13671_v10 }
 0x7cd   : > { %v14250_v40 = vpop.eup %14249  ;;  %14261 = vtanh.f32 %v5486_v62  ;;  %7065 = vmatprep.subr.bf16.mxu1 %v13676_v26 }
 0x7ce   : > { %v14252_v36 = vpop.eup %14251 }
 0x7cf   : > { %v14254_v39 = vpop.eup %14253  ;;  %v5772_v53 = vpack.c.bf16 %v14252_v36, %v14248_v50  ;;  %v13003_v46 = vpop.f32.mrb[76].mxu1 }
 0x7d0   : > { %v5507_v7 = vadd.f32 %v13003_v46, %v18430_v45  ;;  %v5498_v2 = vpop.f32.mrb[77].mxu1  ;;  %v5771_v27 = vpack.c.bf16 %v14254_v39, %v14250_v40  ;;  %7066 = vmatpush1.bf16.msra.mxu1 %v13674_v37 }
 0x7d1   : > { %v5499_v25 = vadd.f32 %v18430_v45, %v5498_v2  ;;  %v13004_v52 = vpop.f32.mrb[78].mxu1  ;;  %7067 = vmatprep.subr.bf16.mxu1 %v13679_v55 }
 0x7d2   : > { %14263 = vtanh.f32 %v5507_v7  ;;  %v5510_v57 = vadd.f32 %v13004_v52, %v18430_v45  ;;  %v5501_v51 = vpop.f32.mrb[79].mxu1  ;;  %13065 = vmatprep.mubr.msk.bf16.mxu1 %vm3474_vm1, %v5771_v27 }
 0x7d3   : > { %14265 = vtanh.f32 %v5499_v25  ;;  %v5502_v61 = vadd.f32 %v18430_v45, %v5501_v51  ;;  %13066 = vmatmul.mubr.msk.bf16.gmra.mrb[132].mxu1 %vm3474_vm1, %v5772_v53 }
 0x7d4   : > { %v14256_v22 = vpop.eup %14255  ;;  %14267 = vtanh.f32 %v5510_v57  ;;  %7068 = vmatpush1.bf16.msra.mxu1 %v13677_v0 }
 0x7d5   : > { %v14258_v60 = vpop.eup %14257  ;;  %14269 = vtanh.f32 %v5502_v61  ;;  %7069 = vmatprep.subr.bf16.mxu1 %v13682_v11 }
 0x7d6   : > { %v14260_v63 = vpop.eup %14259 }
 0x7d7   : > { %v14262_v6 = vpop.eup %14261  ;;  %v5774_v1 = vpack.c.bf16 %v14260_v63, %v14256_v22  ;;  %v13007_v8 = vpop.f32.mrb[80].mxu1 }
 0x7d8   : > { %v5523_v19 = vadd.f32 %v13007_v8, %v18430_v45  ;;  %v5514_v43 = vpop.f32.mrb[81].mxu1  ;;  %v5773_v5 = vpack.c.bf16 %v14262_v6, %v14258_v60  ;;  %7070 = vmatpush1.bf16.msra.mxu1 %v13680_v16 }
 0x7d9   : > { %v5515_v9 = vadd.f32 %v18430_v45, %v5514_v43  ;;  %v13008_v30 = vpop.f32.mrb[82].mxu1 }
 0x7da   : > { %14271 = vtanh.f32 %v5523_v19  ;;  %v5526_v23 = vadd.f32 %v13008_v30, %v18430_v45  ;;  %v5517_v20 = vpop.f32.mrb[83].mxu1  ;;  %13069 = vmatprep.mubr.msk.bf16.mxu1 %vm3474_vm1, %v5773_v5 }
 0x7db   : > { %14273 = vtanh.f32 %v5515_v9  ;;  %v5518_v29 = vadd.f32 %v18430_v45, %v5517_v20  ;;  %13070 = vmatmul.mubr.msk.bf16.gmra.mrb[136].mxu1 %vm3474_vm1, %v5774_v1 }
 0x7dc   : > { %v14264_v54 = vpop.eup %14263  ;;  %14275 = vtanh.f32 %v5526_v23 }
 0x7dd   : > { %v14266_v32 = vpop.eup %14265  ;;  %14277 = vtanh.f32 %v5518_v29 }
 0x7de   : > { %v14268_v3 = vpop.eup %14267 }
 0x7df   : > { %v14270_v42 = vpop.eup %14269  ;;  %v5776_v58 = vpack.c.bf16 %v14268_v3, %v14264_v54  ;;  %v13011_v34 = vpop.f32.mrb[84].mxu1 }
 0x7e0   : > { %v5539_v47 = vadd.f32 %v13011_v34, %v18430_v45  ;;  %v5530_v18 = vpop.f32.mrb[85].mxu1  ;;  %v5775_v31 = vpack.c.bf16 %v14270_v42, %v14266_v32 }
 0x7e1   : > { %v5531_v14 = vadd.f32 %v18430_v45, %v5530_v18  ;;  %v13012_v49 = vpop.f32.mrb[86].mxu1 }
 0x7e2   : > { %14279 = vtanh.f32 %v5539_v47  ;;  %v5542_v59 = vadd.f32 %v13012_v49, %v18430_v45  ;;  %v5533_v56 = vpop.f32.mrb[87].mxu1  ;;  %13073 = vmatprep.mubr.msk.bf16.mxu1 %vm3474_vm1, %v5775_v31 }
 0x7e3   : > { %14281 = vtanh.f32 %v5531_v14  ;;  %v5534_v4 = vadd.f32 %v18430_v45, %v5533_v56  ;;  %13074 = vmatmul.mubr.msk.bf16.gmra.mrb[140].mxu1 %vm3474_vm1, %v5776_v58 }
 0x7e4   : > { %v14272_v35 = vpop.eup %14271  ;;  %14283 = vtanh.f32 %v5542_v59 }
 0x7e5   : > { %v14274_v38 = vpop.eup %14273  ;;  %14285 = vtanh.f32 %v5534_v4 }
 0x7e6   : > { %v14276_v41 = vpop.eup %14275 }
 0x7e7   : > { %v14278_v17 = vpop.eup %14277  ;;  %v5778_v48 = vpack.c.bf16 %v14276_v41, %v14272_v35  ;;  %v13015_v44 = vpop.f32.mrb[88].mxu1 }
 0x7e8   : > { %v5555_v33 = vadd.f32 %v13015_v44, %v18430_v45  ;;  %v5546_v24 = vpop.f32.mrb[89].mxu1  ;;  %v5777_v10 = vpack.c.bf16 %v14278_v17, %v14274_v38 }
 0x7e9   : > { %v5547_v12 = vadd.f32 %v18430_v45, %v5546_v24  ;;  %v13016_v21 = vpop.f32.mrb[90].mxu1 }
 0x7ea   : > { %14287 = vtanh.f32 %v5555_v33  ;;  %v5558_v26 = vadd.f32 %v13016_v21, %v18430_v45  ;;  %v5549_v28 = vpop.f32.mrb[91].mxu1  ;;  %13077 = vmatprep.mubr.msk.bf16.mxu1 %vm3474_vm1, %v5777_v10 }
 0x7eb   : > { %14289 = vtanh.f32 %v5547_v12  ;;  %v5550_v13 = vadd.f32 %v18430_v45, %v5549_v28  ;;  %13078 = vmatmul.mubr.msk.bf16.gmra.mrb[144].mxu1 %vm3474_vm1, %v5778_v48 }
 0x7ec   : > { %v14280_v15 = vpop.eup %14279  ;;  %14291 = vtanh.f32 %v5558_v26 }
 0x7ed   : > { %v14282_v62 = vpop.eup %14281  ;;  %14293 = vtanh.f32 %v5550_v13 }
 0x7ee   : > { %v14284_v50 = vpop.eup %14283 }
 0x7ef   : > { %v14286_v37 = vpop.eup %14285  ;;  %v5780_v40 = vpack.c.bf16 %v14284_v50, %v14280_v15  ;;  %v13019_v55 = vpop.f32.mrb[92].mxu1 }
 0x7f0   : > { %v5571_v36 = vadd.f32 %v13019_v55, %v18430_v45  ;;  %v5562_v39 = vpop.f32.mrb[93].mxu1  ;;  %v5779_v53 = vpack.c.bf16 %v14286_v37, %v14282_v62 }
 0x7f1   : > { %v5563_v46 = vadd.f32 %v18430_v45, %v5562_v39  ;;  %v13020_v7 = vpop.f32.mrb[94].mxu1 }
 0x7f2   : > { %14295 = vtanh.f32 %v5571_v36  ;;  %v5574_v2 = vadd.f32 %v13020_v7, %v18430_v45  ;;  %v5565_v27 = vpop.f32.mrb[95].mxu1  ;;  %13081 = vmatprep.mubr.msk.bf16.mxu1 %vm3474_vm1, %v5779_v53 }
 0x7f3   : > { %14297 = vtanh.f32 %v5563_v46  ;;  %v5566_v0 = vadd.f32 %v18430_v45, %v5565_v27  ;;  %13082 = vmatmul.mubr.msk.bf16.gmra.mrb[148].mxu1 %vm3474_vm1, %v5780_v40 }
 0x7f4   : > { %v14288_v25 = vpop.eup %14287  ;;  %14299 = vtanh.f32 %v5574_v2 }
 0x7f5   : > { %v14290_v52 = vpop.eup %14289  ;;  %14301 = vtanh.f32 %v5566_v0 }
 0x7f6   : > { %v14292_v11 = vpop.eup %14291 }
 0x7f7   : > { %v14294_v57 = vpop.eup %14293  ;;  %v5782_v51 = vpack.c.bf16 %v14292_v11, %v14288_v25  ;;  %v13023_v61 = vpop.f32.mrb[96].mxu1 }
 0x7f8   : > { %v5587_v22 = vadd.f32 %v13023_v61, %v18430_v45  ;;  %v5578_v16 = vpop.f32.mrb[97].mxu1  ;;  %v5781_v60 = vpack.c.bf16 %v14294_v57, %v14290_v52 }
 0x7f9   : > { %v5579_v63 = vadd.f32 %v18430_v45, %v5578_v16  ;;  %v13024_v6 = vpop.f32.mrb[98].mxu1 }
 0x7fa   : > { %14303 = vtanh.f32 %v5587_v22  ;;  %v5590_v1 = vadd.f32 %v13024_v6, %v18430_v45  ;;  %v5581_v8 = vpop.f32.mrb[99].mxu1  ;;  %13085 = vmatprep.mubr.msk.bf16.mxu1 %vm3474_vm1, %v5781_v60 }
 0x7fb   : > { %14305 = vtanh.f32 %v5579_v63  ;;  %v5582_v19 = vadd.f32 %v18430_v45, %v5581_v8  ;;  %13086 = vmatmul.mubr.msk.bf16.gmra.mrb[152].mxu1 %vm3474_vm1, %v5782_v51 }
 0x7fc   : > { %v14296_v43 = vpop.eup %14295  ;;  %14307 = vtanh.f32 %v5590_v1 }
 0x7fd   : > { %v14298_v5 = vpop.eup %14297  ;;  %14309 = vtanh.f32 %v5582_v19  ;;  %v13685_v19 = vld [vmem:[%s21329_s15 + $0xec] ss:$28 sps:$4 sm:$0xff]  }
 0x7fe   : > { %v14300_v9 = vpop.eup %14299  ;;  %7071 = vmatprep.subr.bf16.mxu1 %v13685_v19 }
 0x7ff   : > { %v14302_v30 = vpop.eup %14301  ;;  %v5784_v23 = vpack.c.bf16 %v14300_v9, %v14296_v43  ;;  %v13027_v20 = vpop.f32.mrb[100].mxu1 }
 0x800   : > { %v5603_v29 = vadd.f32 %v13027_v20, %v18430_v45  ;;  %v5594_v54 = vpop.f32.mrb[101].mxu1  ;;  %v5783_v32 = vpack.c.bf16 %v14302_v30, %v14298_v5  ;;  %v13683_v30 = vld [vmem:[%s21329_s15 + $0xe8] ss:$28 sps:$4 sm:$0xff]  }
 0x801   : > { %v5595_v3 = vadd.f32 %v18430_v45, %v5594_v54  ;;  %v13028_v42 = vpop.f32.mrb[102].mxu1  ;;  %7072 = vmatpush1.bf16.msra.mxu1 %v13683_v30 }
 0x802   : > { %14311 = vtanh.f32 %v5603_v29  ;;  %v5606_v58 = vadd.f32 %v13028_v42, %v18430_v45  ;;  %v5597_v34 = vpop.f32.mrb[103].mxu1  ;;  %13089 = vmatprep.mubr.msk.bf16.mxu1 %vm3474_vm1, %v5783_v32 }
 0x803   : > { %14313 = vtanh.f32 %v5595_v3  ;;  %v5598_v47 = vadd.f32 %v18430_v45, %v5597_v34  ;;  %13090 = vmatmul.mubr.msk.bf16.gmra.mrb[156].mxu1 %vm3474_vm1, %v5784_v23  ;;  %v13688_v3 = vld [vmem:[%s21329_s15 + $0x124] ss:$28 sps:$4 sm:$0xff]  }
 0x804   : > { %v14304_v18 = vpop.eup %14303  ;;  %14315 = vtanh.f32 %v5606_v58  ;;  %v13686_v58 = vld [vmem:[%s21329_s15 + $0x120] ss:$28 sps:$4 sm:$0xff]   ;;  %7073 = vmatprep.subr.bf16.mxu1 %v13688_v3 }
 0x805   : > { %v14306_v31 = vpop.eup %14305  ;;  %14317 = vtanh.f32 %v5598_v47  ;;  %7074 = vmatpush1.bf16.msra.mxu1 %v13686_v58 }
 0x806   : > { %v14308_v14 = vpop.eup %14307 }
 0x807   : > { %v14310_v49 = vpop.eup %14309  ;;  %v5786_v59 = vpack.c.bf16 %v14308_v14, %v14304_v18  ;;  %v13031_v56 = vpop.f32.mrb[104].mxu1 }
 0x808   : > { %v5619_v4 = vadd.f32 %v13031_v56, %v18430_v45  ;;  %v5610_v35 = vpop.f32.mrb[105].mxu1  ;;  %v5785_v38 = vpack.c.bf16 %v14310_v49, %v14306_v31  ;;  %v13691_v49 = vld [vmem:[%s21329_s15 + $0x15c] ss:$28 sps:$4 sm:$0xff]  }
 0x809   : > { %v5611_v41 = vadd.f32 %v18430_v45, %v5610_v35  ;;  %v13032_v17 = vpop.f32.mrb[106].mxu1  ;;  %v13689_v35 = vld [vmem:[%s21329_s15 + $0x158] ss:$28 sps:$4 sm:$0xff]   ;;  %7075 = vmatprep.subr.bf16.mxu1 %v13691_v49 }
 0x80a   : > { %14319 = vtanh.f32 %v5619_v4  ;;  %v5622_v48 = vadd.f32 %v13032_v17, %v18430_v45  ;;  %v5613_v44 = vpop.f32.mrb[107].mxu1  ;;  %13093 = vmatprep.mubr.msk.bf16.mxu1 %vm3474_vm1, %v5785_v38  ;;  %7076 = vmatpush1.bf16.msra.mxu1 %v13689_v35 }
 0x80b   : > { %14321 = vtanh.f32 %v5611_v41  ;;  %v5614_v33 = vadd.f32 %v18430_v45, %v5613_v44  ;;  %13094 = vmatmul.mubr.msk.bf16.gmra.mrb[160].mxu1 %vm3474_vm1, %v5786_v59 }
 0x80c   : > { %v14312_v24 = vpop.eup %14311  ;;  %14323 = vtanh.f32 %v5622_v48 }
 0x80d   : > { %v14314_v10 = vpop.eup %14313  ;;  %14325 = vtanh.f32 %v5614_v33  ;;  %v13694_v33 = vld [vmem:[%s21329_s15 + $0x194] ss:$28 sps:$4 sm:$0xff]  }
 0x80e   : > { %v14316_v12 = vpop.eup %14315  ;;  %7077 = vmatprep.subr.bf16.mxu1 %v13694_v33  ;;  %v13710_v33 = vld [vmem:[%s21329_s15 + $0x18] ss:$28 sps:$4 sm:$0xff]  }
 0x80f   : > { %v14318_v21 = vpop.eup %14317  ;;  %v5788_v26 = vpack.c.bf16 %v14316_v12, %v14312_v24  ;;  %v13035_v28 = vpop.f32.mrb[108].mxu1 }
 0x810   : > { %v5635_v13 = vadd.f32 %v13035_v28, %v18430_v45  ;;  %v5626_v15 = vpop.f32.mrb[109].mxu1  ;;  %v5787_v62 = vpack.c.bf16 %v14318_v21, %v14314_v10  ;;  %v13692_v10 = vld [vmem:[%s21329_s15 + $0x190] ss:$28 sps:$4 sm:$0xff]  }
 0x811   : > { %v5627_v50 = vadd.f32 %v18430_v45, %v5626_v15  ;;  %v13036_v37 = vpop.f32.mrb[110].mxu1  ;;  %7078 = vmatpush1.bf16.msra.mxu1 %v13692_v10  ;;  %v13703_v10 = vld [vmem:[%s21329_s15 + $0x84] ss:$28 sps:$4 sm:$0xff]  }
 0x812   : > { %14327 = vtanh.f32 %v5635_v13  ;;  %v5638_v40 = vadd.f32 %v13036_v37, %v18430_v45  ;;  %v5629_v55 = vpop.f32.mrb[111].mxu1  ;;  %13097 = vmatprep.mubr.msk.bf16.mxu1 %vm3474_vm1, %v5787_v62  ;;  %13125 = vmatprep.subr.bf16.mxu1 %v13710_v33 }
 0x813   : > { %14329 = vtanh.f32 %v5627_v50  ;;  %v5630_v36 = vadd.f32 %v18430_v45, %v5629_v55  ;;  %13098 = vmatmul.mubr.msk.bf16.gmra.mrb[164].mxu1 %vm3474_vm1, %v5788_v26 }
 0x814   : > { %v14320_v39 = vpop.eup %14319  ;;  %14331 = vtanh.f32 %v5638_v40 }
 0x815   : > { %v14322_v53 = vpop.eup %14321  ;;  %14333 = vtanh.f32 %v5630_v36 }
 0x816   : > { %v14324_v46 = vpop.eup %14323 }
 0x817   : > { %v14326_v7 = vpop.eup %14325  ;;  %v5790_v2 = vpack.c.bf16 %v14324_v46, %v14320_v39  ;;  %v13039_v27 = vpop.f32.mrb[112].mxu1  ;;  %v13697_v46 = vld [vmem:[%s21329_s15 + $0x14] ss:$28 sps:$4 sm:$0xff]  }
 0x818   : > { %v5651_v0 = vadd.f32 %v13039_v27, %v18430_v45  ;;  %v5642_v25 = vpop.f32.mrb[113].mxu1  ;;  %v5789_v52 = vpack.c.bf16 %v14326_v7, %v14322_v53  ;;  %7416 = vmatprep.subr.bf16.mxu0 %v13697_v46 }
 0x819   : > { %v5643_v11 = vadd.f32 %v18430_v45, %v5642_v25  ;;  %v13040_v57 = vpop.f32.mrb[114].mxu1 }
 0x81a   : > { %14335 = vtanh.f32 %v5651_v0  ;;  %v5654_v51 = vadd.f32 %v13040_v57, %v18430_v45  ;;  %v5645_v61 = vpop.f32.mrb[115].mxu1  ;;  %13101 = vmatprep.mubr.msk.bf16.mxu1 %vm3474_vm1, %v5789_v52 }
 0x81b   : > { %14337 = vtanh.f32 %v5643_v11  ;;  %v5646_v22 = vadd.f32 %v18430_v45, %v5645_v61  ;;  %13102 = vmatmul.mubr.msk.bf16.gmra.mrb[168].mxu1 %vm3474_vm1, %v5790_v2 }
 0x81c   : > { %v14328_v16 = vpop.eup %14327  ;;  %14339 = vtanh.f32 %v5654_v51 }
 0x81d   : > { %v14330_v60 = vpop.eup %14329  ;;  %14341 = vtanh.f32 %v5646_v22  ;;  %v21434_v22 = vmov 0  }
 0x81e   : > { %v14332_v63 = vpop.eup %14331 }
 0x81f   : > { %v14334_v6 = vpop.eup %14333  ;;  %v5792_v1 = vpack.c.bf16 %v14332_v63, %v14328_v16  ;;  %v13043_v8 = vpop.f32.mrb[116].mxu1  ;;  %v18607_v16 = vld [vmem:[%s21328_s14] ss:$0 sm:$0xff] }
 0x820   : > { %v5667_v43 = vadd.f32 %v13043_v8, %v18430_v45  ;;  %v5658_v5 = vpop.f32.mrb[117].mxu1  ;;  %v5791_v9 = vpack.c.bf16 %v14334_v6, %v14330_v60 }
 0x821   : > { %v5659_v23 = vadd.f32 %v18430_v45, %v5658_v5  ;;  %v13044_v20 = vpop.f32.mrb[118].mxu1 }
 0x822   : > { %14343 = vtanh.f32 %v5667_v43  ;;  %v5670_v29 = vadd.f32 %v13044_v20, %v18430_v45  ;;  %v5661_v54 = vpop.f32.mrb[119].mxu1  ;;  %13105 = vmatprep.mubr.msk.bf16.mxu1 %vm3474_vm1, %v5791_v9 }
 0x823   : > { %14345 = vtanh.f32 %v5659_v23  ;;  %v5662_v32 = vadd.f32 %v18430_v45, %v5661_v54  ;;  %13106 = vmatmul.mubr.msk.bf16.gmra.mrb[172].mxu1 %vm3474_vm1, %v5792_v1 }
 0x824   : > { %v14336_v42 = vpop.eup %14335  ;;  %14347 = vtanh.f32 %v5670_v29 }
 0x825   : > { %v14338_v34 = vpop.eup %14337  ;;  %14349 = vtanh.f32 %v5662_v32 }
 0x826   : > { %v14340_v47 = vpop.eup %14339 }
 0x827   : > { %v14342_v18 = vpop.eup %14341  ;;  %v5794_v31 = vpack.c.bf16 %v14340_v47, %v14336_v42  ;;  %v13047_v14 = vpop.f32.mrb[120].mxu1 }
 0x828   : > { %v5683_v59 = vadd.f32 %v13047_v14, %v18430_v45  ;;  %v5674_v56 = vpop.f32.mrb[121].mxu1  ;;  %v5793_v4 = vpack.c.bf16 %v14342_v18, %v14338_v34 }
 0x829   : > { %v5675_v38 = vadd.f32 %v18430_v45, %v5674_v56  ;;  %v13048_v41 = vpop.f32.mrb[122].mxu1 }
 0x82a   : > { %14351 = vtanh.f32 %v5683_v59  ;;  %v5686_v17 = vadd.f32 %v13048_v41, %v18430_v45  ;;  %v5677_v48 = vpop.f32.mrb[123].mxu1  ;;  %13109 = vmatprep.mubr.msk.bf16.mxu1 %vm3474_vm1, %v5793_v4  ;;  %v13700_v4 = vld [vmem:[%s21329_s15 + $0x4c] ss:$28 sps:$4 sm:$0xff]  }
 0x82b   : > { %14353 = vtanh.f32 %v5675_v38  ;;  %v5678_v44 = vadd.f32 %v18430_v45, %v5677_v48  ;;  %13110 = vmatmul.mubr.msk.bf16.gmra.mrb[176].mxu1 %vm3474_vm1, %v5794_v31  ;;  %v13695_v31 = vld [vmem:[%s21329_s15 + $0x10] ss:$28 sps:$4 sm:$0xff]  }
 0x82c   : > { %v14344_v24 = vpop.eup %14343  ;;  %14355 = vtanh.f32 %v5686_v17 }
 0x82d   : > { %v14346_v12 = vpop.eup %14345  ;;  %14357 = vtanh.f32 %v5678_v44  ;;  %v13698_v44 = vld [vmem:[%s21329_s15 + $0x48] ss:$28 sps:$4 sm:$0xff]  }
 0x82e   : > { %v14348_v21 = vpop.eup %14347 }
 0x82f   : > { %v14350_v26 = vpop.eup %14349  ;;  %v5796_v28 = vpack.c.bf16 %v14348_v21, %v14344_v24  ;;  %v13051_v13 = vpop.f32.mrb[124].mxu1 }
 0x830   : > { %v5699_v15 = vadd.f32 %v13051_v13, %v18430_v45  ;;  %v5690_v62 = vpop.f32.mrb[125].mxu1  ;;  %v5795_v50 = vpack.c.bf16 %v14350_v26, %v14346_v12 }
 0x831   : > { %v5691_v37 = vadd.f32 %v18430_v45, %v5690_v62  ;;  %v13052_v40 = vpop.f32.mrb[126].mxu1 }
 0x832   : > { %14359 = vtanh.f32 %v5699_v15  ;;  %v5702_v55 = vadd.f32 %v13052_v40, %v18430_v45  ;;  %v5693_v36 = vpop.f32.mrb[127].mxu1  ;;  %13113 = vmatprep.mubr.msk.bf16.mxu1 %vm3474_vm1, %v5795_v50 }
 0x833   : > { %14361 = vtanh.f32 %v5691_v37  ;;  %v5694_v39 = vadd.f32 %v18430_v45, %v5693_v36  ;;  %13114 = vmatmul.mubr.msk.bf16.gmra.mrb[180].mxu1 %vm3474_vm1, %v5796_v28  ;;  %v13701_v37 = vld [vmem:[%s21329_s15 + $0x80] ss:$28 sps:$4 sm:$0xff]  }
 0x834   : > { %v14352_v53 = vpop.eup %14351  ;;  %14363 = vtanh.f32 %v5702_v55  ;;  %v13706_v36 = vld [vmem:[%s21329_s15 + $0xbc] ss:$28 sps:$4 sm:$0xff]  }
 0x835   : > { %v14354_v7 = vpop.eup %14353  ;;  %14365 = vtanh.f32 %v5694_v39 }
 0x836   : > { %v14356_v2 = vpop.eup %14355 }
 0x837   : > { %v14358_v27 = vpop.eup %14357  ;;  %v5798_v0 = vpack.c.bf16 %v14356_v2, %v14352_v53  ;;  %v13704_v2 = vld [vmem:[%s21329_s15 + $0xb8] ss:$28 sps:$4 sm:$0xff]  }
 0x838   : > { %v5797_v25 = vpack.c.bf16 %v14358_v27, %v14354_v7 }
 0x83a   : > { %13117 = vmatprep.mubr.msk.bf16.mxu1 %vm3474_vm1, %v5797_v25 }
 0x83b   : > { %13118 = vmatmul.mubr.msk.bf16.gmra.mrb[184].mxu1 %vm3474_vm1, %v5798_v0  ;;  %v13709_v0 = vld [vmem:[%s21329_s15 + $0xf4] ss:$28 sps:$4 sm:$0xff]  }
 0x83c   : > { %v14360_v45 = vpop.eup %14359 }
 0x83d   : > { %v14362_v52 = vpop.eup %14361 }
 0x83e   : > { %v14364_v11 = vpop.eup %14363 }
 0x83f   : > { %v14366_v57 = vpop.eup %14365  ;;  %v5800_v51 = vpack.c.bf16 %v14364_v11, %v14360_v45 }
 0x840   : > { %v5799_v61 = vpack.c.bf16 %v14366_v57, %v14362_v52 }
 0x842   : > { %13121 = vmatprep.mubr.msk.bf16.mxu1 %vm3474_vm1, %v5799_v61 }
 0x843   : > { %13122 = vmatmul.mubr.msk.bf16.gmra.mrb[188].mxu1 %vm3474_vm1, %v5800_v51 }
 0x844   : > { %7095 = vmatprep.mubr.bf16.mxu1 %v21434_v22 }
 0x89e   : > { %v13063_v60 = vpop.f32.mrb[128].mxu1 }
 0x89f   : > { %v5979_v63 = vadd.f32 %v13063_v60, %v18607_v16  ;;  %v5970_v6 = vpop.f32.mrb[129].mxu1  ;;  %v13707_v60 = vld [vmem:[%s21329_s15 + $0xf0] ss:$28 sps:$4 sm:$0xff]  }
 0x8a0   : > { %v5971_v1 = vadd.f32 %v18607_v16, %v5970_v6  ;;  %v13064_v8 = vpop.f32.mrb[130].mxu1 }
 0x8a1   : > { %14367 = vtanh.f32 %v5979_v63  ;;  %v5982_v19 = vadd.f32 %v13064_v8, %v18607_v16  ;;  %v5973_v43 = vpop.f32.mrb[131].mxu1 }
 0x8a2   : > { %14369 = vtanh.f32 %v5971_v1  ;;  %v5974_v5 = vadd.f32 %v18607_v16, %v5973_v43 }
 0x8a3   : > { %14371 = vtanh.f32 %v5982_v19 }
 0x8a4   : > { %14373 = vtanh.f32 %v5974_v5 }
 0x8a6   : > { %v13067_v9 = vpop.f32.mrb[132].mxu1 }
 0x8a7   : > { %v5995_v30 = vadd.f32 %v13067_v9, %v18607_v16  ;;  %v5986_v23 = vpop.f32.mrb[133].mxu1 }
 0x8a8   : > { %v5987_v20 = vadd.f32 %v18607_v16, %v5986_v23  ;;  %v13068_v29 = vpop.f32.mrb[134].mxu1 }
 0x8a9   : > { %14375 = vtanh.f32 %v5995_v30  ;;  %v5998_v54 = vadd.f32 %v13068_v29, %v18607_v16  ;;  %v5989_v32 = vpop.f32.mrb[135].mxu1 }
 0x8aa   : > { %14377 = vtanh.f32 %v5987_v20  ;;  %v5990_v3 = vadd.f32 %v18607_v16, %v5989_v32 }
 0x8ab   : > { %v14368_v42 = vpop.eup %14367  ;;  %14379 = vtanh.f32 %v5998_v54 }
 0x8ac   : > { %v14370_v58 = vpop.eup %14369  ;;  %14381 = vtanh.f32 %v5990_v3 }
 0x8ad   : > { %v14372_v34 = vpop.eup %14371 }
 0x8ae   : > { %v14374_v47 = vpop.eup %14373  ;;  %v13071_v18 = vpop.f32.mrb[136].mxu1  ;;  %v18620_v14 = vpack.c.bf16 %v14372_v34, %v14368_v42 }
 0x8af   : > { %v6011_v49 = vadd.f32 %v13071_v18, %v18607_v16  ;;  %v6002_v59 = vpop.f32.mrb[137].mxu1  ;;  %v18623_v56 = vpack.c.bf16 %v14374_v47, %v14370_v58 }
 0x8b0   : > { %v6003_v35 = vadd.f32 %v18607_v16, %v6002_v59  ;;  %v13072_v38 = vpop.f32.mrb[138].mxu1 }
 0x8b1   : > { %14383 = vtanh.f32 %v6011_v49  ;;  %v6014_v41 = vadd.f32 %v13072_v38, %v18607_v16  ;;  %v6005_v17 = vpop.f32.mrb[139].mxu1  ;;  %6743 = vmatmul.mubr.bf16.vlgmr.msra.gmra.mrb[128].mxu0 %v18623_v56  ;;  %7096 = vmatmul.mubr.bf16.vlgmr.msra.gmra.mrb[192].mxu1 %v18623_v56 }
 0x8b2   : > { %14385 = vtanh.f32 %v6003_v35  ;;  %v6006_v48 = vadd.f32 %v18607_v16, %v6005_v17  ;;  %7417 = vmatpush1.bf16.msra.mxu0 %v13695_v31  ;;  %6752 = vmatprep.mubr.bf16.mxu0 %v21434_v22 }
 0x8b3   : > { %v14376_v24 = vpop.eup %14375  ;;  %14387 = vtanh.f32 %v6014_v41  ;;  %7105 = vmatprep.mubr.bf16.mxu1 %v21434_v22  ;;  %7418 = vmatprep.subr.bf16.mxu0 %v13700_v4 }
 0x8b4   : > { %v14378_v12 = vpop.eup %14377  ;;  %14389 = vtanh.f32 %v6006_v48  ;;  %13126 = vmatpush3.bf16.msra.mxu1 %v13710_v33 }
 0x8b5   : > { %v14380_v21 = vpop.eup %14379 }
 0x8b6   : > { %v14382_v26 = vpop.eup %14381  ;;  %v13075_v28 = vpop.f32.mrb[140].mxu1  ;;  %v18644_v13 = vpack.c.bf16 %v14380_v21, %v14376_v24  ;;  %7419 = vmatpush1.bf16.msra.mxu0 %v13698_v44 }
 0x8b7   : > { %v6027_v15 = vadd.f32 %v13075_v28, %v18607_v16  ;;  %v6018_v62 = vpop.f32.mrb[141].mxu1  ;;  %v18647_v50 = vpack.c.bf16 %v14382_v26, %v14378_v12  ;;  %7420 = vmatprep.subr.bf16.mxu0 %v13703_v10  ;;  %v13711_v10 = vld [vmem:[%s21329_s15 + $0x128] ss:$28 sps:$4 sm:$0xff]   ;;  %v13714_v26 = vld [vmem:[%s21329_s15 + $0x50] ss:$28 sps:$4 sm:$0xff]  }
 0x8b8   : > { %v6019_v40 = vadd.f32 %v18607_v16, %v6018_v62  ;;  %v13076_v55 = vpop.f32.mrb[142].mxu1  ;;  %v13713_v12 = vld [vmem:[%s21329_s15 + $0x12c] ss:$28 sps:$4 sm:$0xff]   ;;  %13127 = vmatprep.subr.bf16.mxu1 %v13714_v26 }
 0x8b9   : > { %14391 = vtanh.f32 %v6027_v15  ;;  %v6030_v39 = vadd.f32 %v13076_v55, %v18607_v16  ;;  %v6021_v53 = vpop.f32.mrb[143].mxu1  ;;  %6753 = vmatmul.mubr.bf16.gmra.mrb[132].mxu0 %v18620_v14  ;;  %7106 = vmatmul.mubr.bf16.gmra.mrb[196].mxu1 %v18620_v14 }
 0x8ba   : > { %14393 = vtanh.f32 %v6019_v40  ;;  %v6022_v46 = vadd.f32 %v18607_v16, %v6021_v53  ;;  %6762 = vmatprep.mubr.bf16.mxu0 %v21434_v22  ;;  %7115 = vmatprep.mubr.bf16.mxu1 %v21434_v22 }
 0x8bb   : > { %v14384_v7 = vpop.eup %14383  ;;  %14395 = vtanh.f32 %v6030_v39  ;;  %7421 = vmatpush1.bf16.msra.mxu0 %v13701_v37  ;;  %13128 = vmatpush3.bf16.msra.mxu1 %v13714_v26 }
 0x8bc   : > { %v14386_v27 = vpop.eup %14385  ;;  %14397 = vtanh.f32 %v6022_v46  ;;  %7422 = vmatprep.subr.bf16.mxu0 %v13706_v36 }
 0x8bd   : > { %v14388_v25 = vpop.eup %14387 }
 0x8be   : > { %v14390_v45 = vpop.eup %14389  ;;  %v13079_v52 = vpop.f32.mrb[144].mxu1  ;;  %v18668_v11 = vpack.c.bf16 %v14388_v25, %v14384_v7 }
 0x8bf   : > { %v6043_v57 = vadd.f32 %v13079_v52, %v18607_v16  ;;  %v6034_v51 = vpop.f32.mrb[145].mxu1  ;;  %v18671_v61 = vpack.c.bf16 %v14390_v45, %v14386_v27  ;;  %7423 = vmatpush1.bf16.msra.mxu0 %v13704_v2 }
 0x8c0   : > { %v6035_v63 = vadd.f32 %v18607_v16, %v6034_v51  ;;  %v13080_v6 = vpop.f32.mrb[146].mxu1  ;;  %7424 = vmatprep.subr.bf16.mxu0 %v13709_v0 }
 0x8c1   : > { %14399 = vtanh.f32 %v6043_v57  ;;  %v6046_v1 = vadd.f32 %v13080_v6, %v18607_v16  ;;  %v6037_v8 = vpop.f32.mrb[147].mxu1  ;;  %6763 = vmatmul.mubr.bf16.gmra.mrb[136].mxu0 %v18647_v50  ;;  %7116 = vmatmul.mubr.bf16.gmra.mrb[200].mxu1 %v18647_v50 }
 0x8c2   : > { %14401 = vtanh.f32 %v6035_v63  ;;  %v6038_v19 = vadd.f32 %v18607_v16, %v6037_v8  ;;  %6772 = vmatprep.mubr.bf16.mxu0 %v21434_v22  ;;  %7125 = vmatprep.mubr.bf16.mxu1 %v21434_v22 }
 0x8c3   : > { %v14392_v43 = vpop.eup %14391  ;;  %14403 = vtanh.f32 %v6046_v1  ;;  %7425 = vmatpush1.bf16.msra.mxu0 %v13707_v60 }
 0x8c4   : > { %v14394_v5 = vpop.eup %14393  ;;  %14405 = vtanh.f32 %v6038_v19  ;;  %7426 = vmatprep.subr.bf16.mxu0 %v13713_v12 }
 0x8c5   : > { %v14396_v9 = vpop.eup %14395 }
 0x8c6   : > { %v14398_v30 = vpop.eup %14397  ;;  %v13083_v23 = vpop.f32.mrb[148].mxu1  ;;  %v18683_v20 = vpack.c.bf16 %v14396_v9, %v14392_v43 }
 0x8c7   : > { %v6059_v29 = vadd.f32 %v13083_v23, %v18607_v16  ;;  %v6050_v54 = vpop.f32.mrb[149].mxu1  ;;  %v18686_v32 = vpack.c.bf16 %v14398_v30, %v14394_v5  ;;  %7427 = vmatpush1.bf16.msra.mxu0 %v13711_v10 }
 0x8c8   : > { %v6051_v3 = vadd.f32 %v18607_v16, %v6050_v54  ;;  %v13084_v42 = vpop.f32.mrb[150].mxu1 }
 0x8c9   : > { %14407 = vtanh.f32 %v6059_v29  ;;  %v6062_v58 = vadd.f32 %v13084_v42, %v18607_v16  ;;  %v6053_v34 = vpop.f32.mrb[151].mxu1  ;;  %6773 = vmatmul.mubr.bf16.gmra.mrb[140].mxu0 %v18644_v13  ;;  %7126 = vmatmul.mubr.bf16.gmra.mrb[204].mxu1 %v18644_v13 }
 0x8ca   : > { %14409 = vtanh.f32 %v6051_v3  ;;  %v6054_v47 = vadd.f32 %v18607_v16, %v6053_v34  ;;  %6782 = vmatprep.mubr.bf16.mxu0 %v21434_v22  ;;  %7135 = vmatprep.mubr.bf16.mxu1 %v21434_v22 }
 0x8cb   : > { %v14400_v18 = vpop.eup %14399  ;;  %14411 = vtanh.f32 %v6062_v58 }
 0x8cc   : > { %v14402_v31 = vpop.eup %14401  ;;  %14413 = vtanh.f32 %v6054_v47 }
 0x8cd   : > { %v14404_v49 = vpop.eup %14403 }
 0x8ce   : > { %v14406_v59 = vpop.eup %14405  ;;  %v13087_v4 = vpop.f32.mrb[152].mxu1  ;;  %v18695_v35 = vpack.c.bf16 %v14404_v49, %v14400_v18 }
 0x8cf   : > { %v6075_v38 = vadd.f32 %v13087_v4, %v18607_v16  ;;  %v6066_v41 = vpop.f32.mrb[153].mxu1  ;;  %v18698_v17 = vpack.c.bf16 %v14406_v59, %v14402_v31 }
 0x8d0   : > { %v6067_v48 = vadd.f32 %v18607_v16, %v6066_v41  ;;  %v13088_v44 = vpop.f32.mrb[154].mxu1 }
 0x8d1   : > { %14415 = vtanh.f32 %v6075_v38  ;;  %v6078_v33 = vadd.f32 %v13088_v44, %v18607_v16  ;;  %v6069_v24 = vpop.f32.mrb[155].mxu1  ;;  %6783 = vmatmul.mubr.bf16.gmra.mrb[144].mxu0 %v18671_v61  ;;  %7136 = vmatmul.mubr.bf16.gmra.mrb[208].mxu1 %v18671_v61 }
 0x8d2   : > { %14417 = vtanh.f32 %v6067_v48  ;;  %v6070_v21 = vadd.f32 %v18607_v16, %v6069_v24  ;;  %6792 = vmatprep.mubr.bf16.mxu0 %v21434_v22  ;;  %7145 = vmatprep.mubr.bf16.mxu1 %v21434_v22 }
 0x8d3   : > { %v14408_v28 = vpop.eup %14407  ;;  %14419 = vtanh.f32 %v6078_v33 }
 0x8d4   : > { %v14410_v15 = vpop.eup %14409  ;;  %14421 = vtanh.f32 %v6070_v21 }
 0x8d5   : > { %v14412_v62 = vpop.eup %14411 }
 0x8d6   : > { %v14414_v37 = vpop.eup %14413  ;;  %v13091_v40 = vpop.f32.mrb[156].mxu1  ;;  %v18716_v55 = vpack.c.bf16 %v14412_v62, %v14408_v28 }
 0x8d7   : > { %v6091_v36 = vadd.f32 %v13091_v40, %v18607_v16  ;;  %v6082_v39 = vpop.f32.mrb[157].mxu1  ;;  %v18719_v53 = vpack.c.bf16 %v14414_v37, %v14410_v15  ;;  %v13715_v37 = vld [vmem:[%s21329_s15 + $0x160] ss:$28 sps:$4 sm:$0xff]  }
 0x8d8   : > { %v6083_v46 = vadd.f32 %v18607_v16, %v6082_v39  ;;  %v13092_v7 = vpop.f32.mrb[158].mxu1  ;;  %v13717_v40 = vld [vmem:[%s21329_s15 + $0x164] ss:$28 sps:$4 sm:$0xff]  }
 0x8d9   : > { %14423 = vtanh.f32 %v6091_v36  ;;  %v6094_v2 = vadd.f32 %v13092_v7, %v18607_v16  ;;  %v6085_v27 = vpop.f32.mrb[159].mxu1  ;;  %6793 = vmatmul.mubr.bf16.gmra.mrb[148].mxu0 %v18668_v11  ;;  %7146 = vmatmul.mubr.bf16.gmra.mrb[212].mxu1 %v18668_v11  ;;  %v13718_v39 = vld [vmem:[%s21329_s15 + $0x88] ss:$28 sps:$4 sm:$0xff]  }
 0x8da   : > { %14425 = vtanh.f32 %v6083_v46  ;;  %v6086_v0 = vadd.f32 %v18607_v16, %v6085_v27  ;;  %6802 = vmatprep.mubr.bf16.mxu0 %v21434_v22  ;;  %7155 = vmatprep.mubr.bf16.mxu1 %v21434_v22 }
 0x8db   : > { %v14416_v25 = vpop.eup %14415  ;;  %14427 = vtanh.f32 %v6094_v2  ;;  %7428 = vmatprep.subr.bf16.mxu0 %v13717_v40  ;;  %13129 = vmatprep.subr.bf16.mxu1 %v13718_v39 }
 0x8dc   : > { %v14418_v45 = vpop.eup %14417  ;;  %14429 = vtanh.f32 %v6086_v0  ;;  %7429 = vmatpush1.bf16.msra.mxu0 %v13715_v37  ;;  %13130 = vmatpush3.bf16.msra.mxu1 %v13718_v39 }
 0x8dd   : > { %v14420_v52 = vpop.eup %14419 }
 0x8de   : > { %v14422_v57 = vpop.eup %14421  ;;  %v13095_v51 = vpop.f32.mrb[160].mxu1  ;;  %v18728_v60 = vpack.c.bf16 %v14420_v52, %v14416_v25 }
 0x8df   : > { %v6107_v63 = vadd.f32 %v13095_v51, %v18607_v16  ;;  %v6098_v6 = vpop.f32.mrb[161].mxu1  ;;  %v18731_v1 = vpack.c.bf16 %v14422_v57, %v14418_v45 }
 0x8e0   : > { %v6099_v8 = vadd.f32 %v18607_v16, %v6098_v6  ;;  %v13096_v19 = vpop.f32.mrb[162].mxu1 }
 0x8e1   : > { %14431 = vtanh.f32 %v6107_v63  ;;  %v6110_v43 = vadd.f32 %v13096_v19, %v18607_v16  ;;  %v6101_v5 = vpop.f32.mrb[163].mxu1  ;;  %6803 = vmatmul.mubr.bf16.gmra.mrb[152].mxu0 %v18686_v32  ;;  %7156 = vmatmul.mubr.bf16.gmra.mrb[216].mxu1 %v18686_v32 }
 0x8e2   : > { %14433 = vtanh.f32 %v6099_v8  ;;  %v6102_v9 = vadd.f32 %v18607_v16, %v6101_v5  ;;  %6812 = vmatprep.mubr.bf16.mxu0 %v21434_v22  ;;  %7165 = vmatprep.mubr.bf16.mxu1 %v21434_v22 }
 0x8e3   : > { %v14424_v30 = vpop.eup %14423  ;;  %14435 = vtanh.f32 %v6110_v43 }
 0x8e4   : > { %v14426_v23 = vpop.eup %14425  ;;  %14437 = vtanh.f32 %v6102_v9 }
 0x8e5   : > { %v14428_v29 = vpop.eup %14427 }
 0x8e6   : > { %v14430_v54 = vpop.eup %14429  ;;  %v13099_v3 = vpop.f32.mrb[164].mxu1  ;;  %v18740_v42 = vpack.c.bf16 %v14428_v29, %v14424_v30 }
 0x8e7   : > { %v6123_v58 = vadd.f32 %v13099_v3, %v18607_v16  ;;  %v6114_v34 = vpop.f32.mrb[165].mxu1  ;;  %v18743_v47 = vpack.c.bf16 %v14430_v54, %v14426_v23 }
 0x8e8   : > { %v6115_v18 = vadd.f32 %v18607_v16, %v6114_v34  ;;  %v13100_v31 = vpop.f32.mrb[166].mxu1 }
 0x8e9   : > { %14439 = vtanh.f32 %v6123_v58  ;;  %v6126_v49 = vadd.f32 %v13100_v31, %v18607_v16  ;;  %v6117_v59 = vpop.f32.mrb[167].mxu1  ;;  %6813 = vmatmul.mubr.bf16.gmra.mrb[156].mxu0 %v18683_v20  ;;  %7166 = vmatmul.mubr.bf16.gmra.mrb[220].mxu1 %v18683_v20 }
 0x8ea   : > { %14441 = vtanh.f32 %v6115_v18  ;;  %v6118_v4 = vadd.f32 %v18607_v16, %v6117_v59  ;;  %6822 = vmatprep.mubr.bf16.mxu0 %v21434_v22  ;;  %7175 = vmatprep.mubr.bf16.mxu1 %v21434_v22 }
 0x8eb   : > { %v14432_v38 = vpop.eup %14431  ;;  %14443 = vtanh.f32 %v6126_v49 }
 0x8ec   : > { %v14434_v41 = vpop.eup %14433  ;;  %14445 = vtanh.f32 %v6118_v4 }
 0x8ed   : > { %v14436_v48 = vpop.eup %14435 }
 0x8ee   : > { %v14438_v44 = vpop.eup %14437  ;;  %v13103_v33 = vpop.f32.mrb[168].mxu1  ;;  %v18752_v24 = vpack.c.bf16 %v14436_v48, %v14432_v38 }
 0x8ef   : > { %v6139_v10 = vadd.f32 %v13103_v33, %v18607_v16  ;;  %v6130_v12 = vpop.f32.mrb[169].mxu1  ;;  %v18755_v21 = vpack.c.bf16 %v14438_v44, %v14434_v41 }
 0x8f0   : > { %v6131_v26 = vadd.f32 %v18607_v16, %v6130_v12  ;;  %v13104_v28 = vpop.f32.mrb[170].mxu1 }
 0x8f1   : > { %14447 = vtanh.f32 %v6139_v10  ;;  %v6142_v15 = vadd.f32 %v13104_v28, %v18607_v16  ;;  %v6133_v62 = vpop.f32.mrb[171].mxu1  ;;  %6823 = vmatmul.mubr.bf16.gmra.mrb[160].mxu0 %v18698_v17  ;;  %7176 = vmatmul.mubr.bf16.gmra.mrb[224].mxu1 %v18698_v17 }
 0x8f2   : > { %14449 = vtanh.f32 %v6131_v26  ;;  %v6134_v36 = vadd.f32 %v18607_v16, %v6133_v62  ;;  %6832 = vmatprep.mubr.bf16.mxu0 %v21434_v22  ;;  %7185 = vmatprep.mubr.bf16.mxu1 %v21434_v22 }
 0x8f3   : > { %v14440_v46 = vpop.eup %14439  ;;  %14451 = vtanh.f32 %v6142_v15 }
 0x8f4   : > { %v14442_v7 = vpop.eup %14441  ;;  %14453 = vtanh.f32 %v6134_v36 }
 0x8f5   : > { %v14444_v2 = vpop.eup %14443 }
 0x8f6   : > { %v14446_v27 = vpop.eup %14445  ;;  %v13107_v0 = vpop.f32.mrb[172].mxu1  ;;  %v18773_v25 = vpack.c.bf16 %v14444_v2, %v14440_v46 }
 0x8f7   : > { %v6155_v45 = vadd.f32 %v13107_v0, %v18607_v16  ;;  %v6146_v52 = vpop.f32.mrb[173].mxu1  ;;  %v18776_v57 = vpack.c.bf16 %v14446_v27, %v14442_v7 }
 0x8f8   : > { %21435 = vst [vmem:[#allocation2_spill] sm:$0xff] %v18773_v25  ;;  %v6147_v51 = vadd.f32 %v18607_v16, %v6146_v52  ;;  %v13108_v63 = vpop.f32.mrb[174].mxu1 }
 0x8f9   : > { %21436 = vst [vmem:[#allocation3_spill] sm:$0xff] %v18776_v57  ;;  %14455 = vtanh.f32 %v6155_v45  ;;  %v6158_v6 = vadd.f32 %v13108_v63, %v18607_v16  ;;  %v6149_v8 = vpop.f32.mrb[175].mxu1  ;;  %6833 = vmatmul.mubr.bf16.gmra.mrb[164].mxu0 %v18695_v35  ;;  %7186 = vmatmul.mubr.bf16.gmra.mrb[228].mxu1 %v18695_v35 }
 0x8fa   : > { %14457 = vtanh.f32 %v6147_v51  ;;  %v6150_v19 = vadd.f32 %v18607_v16, %v6149_v8  ;;  %6842 = vmatprep.mubr.bf16.mxu0 %v21434_v22  ;;  %7195 = vmatprep.mubr.bf16.mxu1 %v21434_v22 }
 0x8fb   : > { %v14448_v43 = vpop.eup %14447  ;;  %14459 = vtanh.f32 %v6158_v6 }
 0x8fc   : > { %v14450_v5 = vpop.eup %14449  ;;  %14461 = vtanh.f32 %v6150_v19 }
 0x8fd   : > { %v14452_v9 = vpop.eup %14451 }
 0x8fe   : > { %v14454_v30 = vpop.eup %14453  ;;  %v13111_v23 = vpop.f32.mrb[176].mxu1  ;;  %v18785_v29 = vpack.c.bf16 %v14452_v9, %v14448_v43 }
 0x8ff   : > { %v6171_v54 = vadd.f32 %v13111_v23, %v18607_v16  ;;  %v6162_v3 = vpop.f32.mrb[177].mxu1  ;;  %v18788_v58 = vpack.c.bf16 %v14454_v30, %v14450_v5 }
 0x900   : > { %21437 = vst [vmem:[#allocation4_spill] sm:$0xff] %v18785_v29  ;;  %v6163_v34 = vadd.f32 %v18607_v16, %v6162_v3  ;;  %v13112_v18 = vpop.f32.mrb[178].mxu1 }
 0x901   : > { %21438 = vst [vmem:[#allocation5_spill] sm:$0xff] %v18788_v58  ;;  %14463 = vtanh.f32 %v6171_v54  ;;  %v6174_v31 = vadd.f32 %v13112_v18, %v18607_v16  ;;  %v6165_v49 = vpop.f32.mrb[179].mxu1  ;;  %6843 = vmatmul.mubr.bf16.gmra.mrb[168].mxu0 %v18719_v53  ;;  %7196 = vmatmul.mubr.bf16.gmra.mrb[232].mxu1 %v18719_v53 }
 0x902   : > { %14465 = vtanh.f32 %v6163_v34  ;;  %v6166_v59 = vadd.f32 %v18607_v16, %v6165_v49  ;;  %6852 = vmatprep.mubr.bf16.mxu0 %v21434_v22  ;;  %7205 = vmatprep.mubr.bf16.mxu1 %v21434_v22 }
 0x903   : > { %v14456_v4 = vpop.eup %14455  ;;  %14467 = vtanh.f32 %v6174_v31 }
 0x904   : > { %v14458_v38 = vpop.eup %14457  ;;  %14469 = vtanh.f32 %v6166_v59 }
 0x905   : > { %v14460_v41 = vpop.eup %14459 }
 0x906   : > { %v14462_v48 = vpop.eup %14461  ;;  %v13115_v44 = vpop.f32.mrb[180].mxu1  ;;  %v18797_v33 = vpack.c.bf16 %v14460_v41, %v14456_v4 }
 0x907   : > { %v6187_v10 = vadd.f32 %v13115_v44, %v18607_v16  ;;  %v6178_v12 = vpop.f32.mrb[181].mxu1  ;;  %v18800_v26 = vpack.c.bf16 %v14462_v48, %v14458_v38 }
 0x908   : > { %21439 = vst [vmem:[#allocation6_spill] sm:$0xff] %v18797_v33  ;;  %v6179_v28 = vadd.f32 %v18607_v16, %v6178_v12  ;;  %v13116_v15 = vpop.f32.mrb[182].mxu1 }
 0x909   : > { %21440 = vst [vmem:[#allocation7_spill] sm:$0xff] %v18800_v26  ;;  %14471 = vtanh.f32 %v6187_v10  ;;  %v6190_v62 = vadd.f32 %v13116_v15, %v18607_v16  ;;  %v6181_v37 = vpop.f32.mrb[183].mxu1  ;;  %6853 = vmatmul.mubr.bf16.gmra.mrb[172].mxu0 %v18716_v55  ;;  %7206 = vmatmul.mubr.bf16.gmra.mrb[236].mxu1 %v18716_v55 }
 0x90a   : > { %14473 = vtanh.f32 %v6179_v28  ;;  %v6182_v40 = vadd.f32 %v18607_v16, %v6181_v37  ;;  %6862 = vmatprep.mubr.bf16.mxu0 %v21434_v22  ;;  %7215 = vmatprep.mubr.bf16.mxu1 %v21434_v22 }
 0x90b   : > { %v14464_v36 = vpop.eup %14463  ;;  %14475 = vtanh.f32 %v6190_v62 }
 0x90c   : > { %v14466_v39 = vpop.eup %14465  ;;  %14477 = vtanh.f32 %v6182_v40 }
 0x90d   : > { %v14468_v46 = vpop.eup %14467 }
 0x90e   : > { %v14470_v7 = vpop.eup %14469  ;;  %v13119_v2 = vpop.f32.mrb[184].mxu1  ;;  %v18809_v27 = vpack.c.bf16 %v14468_v46, %v14464_v36  ;;  %v13721_v46 = vld [vmem:[%s21329_s15 + $0x19c] ss:$28 sps:$4 sm:$0xff]  }
 0x90f   : > { %v6203_v0 = vadd.f32 %v13119_v2, %v18607_v16  ;;  %v6194_v45 = vpop.f32.mrb[185].mxu1  ;;  %v18812_v52 = vpack.c.bf16 %v14470_v7, %v14466_v39  ;;  %v13722_v39 = vld [vmem:[%s21329_s15 + $0xc0] ss:$28 sps:$4 sm:$0xff]   ;;  %v13719_v7 = vld [vmem:[%s21329_s15 + $0x198] ss:$28 sps:$4 sm:$0xff]   ;;  %7430 = vmatprep.subr.bf16.mxu0 %v13721_v46 }
 0x910   : > { %21441 = vst [vmem:[#allocation8_spill] sm:$0xff] %v18809_v27  ;;  %v6195_v51 = vadd.f32 %v18607_v16, %v6194_v45  ;;  %v13120_v63 = vpop.f32.mrb[186].mxu1  ;;  %13131 = vmatprep.subr.bf16.mxu1 %v13722_v39  ;;  %v13723_v2 = vld [vmem:[%s21329_s15 + $0xf8] ss:$28 sps:$4 sm:$0xff]   ;;  %7431 = vmatpush1.bf16.msra.mxu0 %v13719_v7  ;;  %v13725_v45 = vld [vmem:[%s21329_s15 + $0x168] ss:$28 sps:$4 sm:$0xff]  }
 0x911   : > { %21442 = vst [vmem:[#allocation9_spill] sm:$0xff] %v18812_v52  ;;  %14479 = vtanh.f32 %v6203_v0  ;;  %v6206_v6 = vadd.f32 %v13120_v63, %v18607_v16  ;;  %v6197_v8 = vpop.f32.mrb[187].mxu1  ;;  %6863 = vmatmul.mubr.bf16.gmra.mrb[176].mxu0 %v18731_v1  ;;  %7216 = vmatmul.mubr.bf16.gmra.mrb[240].mxu1 %v18731_v1  ;;  %v13724_v0 = vld [vmem:[%s21329_s15 + $0x130] ss:$28 sps:$4 sm:$0xff]   ;;  %v6387_v63 = vlaneseq }
 0x912   : > { %14481 = vtanh.f32 %v6195_v51  ;;  %v6198_v19 = vadd.f32 %v18607_v16, %v6197_v8  ;;  %6872 = vmatprep.mubr.bf16.mxu0 %v21434_v22  ;;  %7225 = vmatprep.mubr.bf16.mxu1 %v21434_v22  ;;  %v13726_v51 = vld [vmem:[%s21329_s15 + $0x1a0] ss:$28 sps:$4 sm:$0xff]  }
 0x913   : > { %v14472_v43 = vpop.eup %14471  ;;  %14483 = vtanh.f32 %v6206_v6  ;;  %13132 = vmatpush3.bf16.msra.mxu1 %v13722_v39  ;;  %v18908_v6 = vshrl.u32 %v6387_v63, 7 }
 0x914   : > { %v14474_v5 = vpop.eup %14473  ;;  %14485 = vtanh.f32 %v6198_v19  ;;  %13133 = vmatprep.subr.bf16.mxu1 %v13723_v2 }
 0x915   : > { %v14476_v9 = vpop.eup %14475  ;;  %21449 = vst [vmem:[#allocation16_spill] sm:$0xff] %v18908_v6  ;;  %v6389_v8 = vsub.s32 0, %v18908_v6  ;;  %v6397_v19 = vsub.s32 2, %v18908_v6 }
 0x916   : > { %v14478_v30 = vpop.eup %14477  ;;  %v13123_v23 = vpop.f32.mrb[188].mxu1  ;;  %v18821_v54 = vpack.c.bf16 %v14476_v9, %v14472_v43  ;;  %v6385_v43 = vld [vmem:[%s21330_s16] sm:$0x7f]  ;;  %v6401_v9 = vsub.s32 3, %v18908_v6 }
 0x917   : > { %v6219_v3 = vadd.f32 %v13123_v23, %v18607_v16  ;;  %v6210_v34 = vpop.f32.mrb[189].mxu1  ;;  %v18824_v18 = vpack.c.bf16 %v14478_v30, %v14474_v5  ;;  %13134 = vmatpush3.bf16.msra.mxu1 %v13723_v2  ;;  %v6393_v5 = vsub.s32 1, %v18908_v6  ;;  %v18921_v30 = vrot.slane %v6385_v43, %v6389_v8 }
 0x918   : > { %21443 = vst [vmem:[#allocation10_spill] sm:$0xff] %v18821_v54  ;;  %v6211_v31 = vadd.f32 %v18607_v16, %v6210_v34  ;;  %v13124_v49 = vpop.f32.mrb[190].mxu1  ;;  %13135 = vmatprep.subr.bf16.mxu1 %v13724_v0  ;;  %v18923_v23 = vrot.slane %v6385_v43, %v6397_v19  ;;  %v18927_v34 = vrot.slane %v6385_v43, %v6401_v9 }
 0x919   : > { %21444 = vst [vmem:[#allocation11_spill] sm:$0xff] %v18824_v18  ;;  %14487 = vtanh.f32 %v6219_v3  ;;  %v6222_v59 = vadd.f32 %v13124_v49, %v18607_v16  ;;  %v6213_v4 = vpop.f32.mrb[191].mxu1  ;;  %6873 = vmatmul.mubr.bf16.gmra.mrb[180].mxu0 %v18728_v60  ;;  %7226 = vmatmul.mubr.bf16.gmra.mrb[244].mxu1 %v18728_v60  ;;  %v18925_v3 = vrot.slane %v6385_v43, %v6393_v5 }
 0x91a   : > { %14489 = vtanh.f32 %v6211_v31  ;;  %v6214_v38 = vadd.f32 %v18607_v16, %v6213_v4  ;;  %6882 = vmatprep.mubr.bf16.mxu0 %v21434_v22  ;;  %7235 = vmatprep.mubr.bf16.mxu1 %v21434_v22 }
 0x91b   : > { %v14480_v41 = vpop.eup %14479  ;;  %14491 = vtanh.f32 %v6222_v59  ;;  %13136 = vmatpush3.bf16.msra.mxu1 %v13724_v0 }
 0x91c   : > { %v14482_v48 = vpop.eup %14481  ;;  %14493 = vtanh.f32 %v6214_v38  ;;  %13137 = vmatprep.subr.bf16.mxu1 %v13725_v45 }
 0x91d   : > { %v14484_v44 = vpop.eup %14483 }
 0x91e   : > { %v14486_v10 = vpop.eup %14485  ;;  %v18833_v12 = vpack.c.bf16 %v14484_v44, %v14480_v41 }
 0x91f   : > { %v18835_v28 = vpack.c.bf16 %v14486_v10, %v14482_v48  ;;  %13138 = vmatpush3.bf16.msra.mxu1 %v13725_v45 }
 0x920   : > { %21445 = vst [vmem:[#allocation12_spill] sm:$0xff] %v18833_v12  ;;  %13139 = vmatprep.subr.bf16.mxu1 %v13726_v51 }
 0x921   : > { %21446 = vst [vmem:[#allocation13_spill] sm:$0xff] %v18835_v28  ;;  %6883 = vmatmul.mubr.bf16.gmra.mrb[184].mxu0 %v18743_v47  ;;  %7236 = vmatmul.mubr.bf16.gmra.mrb[248].mxu1 %v18743_v47 }
 0x922   : > { %6892 = vmatprep.mubr.bf16.mxu0 %v21434_v22  ;;  %7245 = vmatprep.mubr.bf16.mxu1 %v21434_v22 }
 0x923   : > { %v14488_v16 = vpop.eup %14487  ;;  %13140 = vmatpush3.bf16.msra.mxu1 %v13726_v51 }
 0x924   : > { %v14490_v15 = vpop.eup %14489 }
 0x925   : > { %v14492_v62 = vpop.eup %14491 }
 0x926   : > { %v14494_v37 = vpop.eup %14493  ;;  %v18841_v40 = vpack.c.bf16 %v14492_v62, %v14488_v16 }
 0x927   : > { %v18843_v36 = vpack.c.bf16 %v14494_v37, %v14490_v15 }
 0x928   : > { %21447 = vst [vmem:[#allocation14_spill] sm:$0xff] %v18841_v40 }
 0x929   : > { %21448 = vst [vmem:[#allocation15_spill] sm:$0xff] %v18843_v36  ;;  %6893 = vmatmul.mubr.bf16.gmra.mrb[188].mxu0 %v18740_v42  ;;  %7246 = vmatmul.mubr.bf16.gmra.mrb[252].mxu1 %v18740_v42 }
 0x92a   : > { %6902 = vmatprep.mubr.bf16.mxu0 %v21434_v22  ;;  %7255 = vmatprep.mubr.bf16.mxu1 %v21434_v22 }
 0x931   : > { %6903 = vmatmul.mubr.bf16.gmra.mrb[192].mxu0 %v18755_v21  ;;  %7256 = vmatmul.mubr.bf16.gmra.mrb[0].mxu1 %v18755_v21 }
 0x932   : > { %6912 = vmatprep.mubr.bf16.mxu0 %v21434_v22  ;;  %7265 = vmatprep.mubr.bf16.mxu1 %v21434_v22 }
 0x939   : > { %6913 = vmatmul.mubr.bf16.gmra.mrb[196].mxu0 %v18752_v24  ;;  %7266 = vmatmul.mubr.bf16.gmra.mrb[4].mxu1 %v18752_v24 }
 0x93a   : > { %6922 = vmatprep.mubr.bf16.mxu0 %v21434_v22  ;;  %7275 = vmatprep.mubr.bf16.mxu1 %v21434_v22 }
 0x941   : > { %6923 = vmatmul.mubr.bf16.gmra.mrb[200].mxu0 %v18776_v57  ;;  %7276 = vmatmul.mubr.bf16.gmra.mrb[8].mxu1 %v18776_v57 }
 0x942   : > { %6932 = vmatprep.mubr.bf16.mxu0 %v21434_v22  ;;  %7285 = vmatprep.mubr.bf16.mxu1 %v21434_v22 }
 0x949   : > { %6933 = vmatmul.mubr.bf16.gmra.mrb[204].mxu0 %v18773_v25  ;;  %7286 = vmatmul.mubr.bf16.gmra.mrb[12].mxu1 %v18773_v25 }
 0x94a   : > { %6942 = vmatprep.mubr.bf16.mxu0 %v21434_v22  ;;  %7295 = vmatprep.mubr.bf16.mxu1 %v21434_v22 }
 0x951   : > { %6943 = vmatmul.mubr.bf16.gmra.mrb[208].mxu0 %v18788_v58  ;;  %7296 = vmatmul.mubr.bf16.gmra.mrb[16].mxu1 %v18788_v58 }
 0x952   : > { %6952 = vmatprep.mubr.bf16.mxu0 %v21434_v22  ;;  %7305 = vmatprep.mubr.bf16.mxu1 %v21434_v22 }
 0x959   : > { %6953 = vmatmul.mubr.bf16.gmra.mrb[212].mxu0 %v18785_v29  ;;  %7306 = vmatmul.mubr.bf16.gmra.mrb[20].mxu1 %v18785_v29 }
 0x95a   : > { %6962 = vmatprep.mubr.bf16.mxu0 %v21434_v22  ;;  %7315 = vmatprep.mubr.bf16.mxu1 %v21434_v22 }
 0x961   : > { %6963 = vmatmul.mubr.bf16.gmra.mrb[216].mxu0 %v18800_v26  ;;  %7316 = vmatmul.mubr.bf16.gmra.mrb[24].mxu1 %v18800_v26 }
 0x962   : > { %6972 = vmatprep.mubr.bf16.mxu0 %v21434_v22  ;;  %7325 = vmatprep.mubr.bf16.mxu1 %v21434_v22 }
 0x969   : > { %6973 = vmatmul.mubr.bf16.gmra.mrb[220].mxu0 %v18797_v33  ;;  %7326 = vmatmul.mubr.bf16.gmra.mrb[28].mxu1 %v18797_v33 }
 0x96a   : > { %6982 = vmatprep.mubr.bf16.mxu0 %v21434_v22  ;;  %7335 = vmatprep.mubr.bf16.mxu1 %v21434_v22 }
 0x971   : > { %6983 = vmatmul.mubr.bf16.gmra.mrb[224].mxu0 %v18812_v52  ;;  %7336 = vmatmul.mubr.bf16.gmra.mrb[32].mxu1 %v18812_v52 }
 0x972   : > { %6992 = vmatprep.mubr.bf16.mxu0 %v21434_v22  ;;  %7345 = vmatprep.mubr.bf16.mxu1 %v21434_v22 }
 0x979   : > { %6993 = vmatmul.mubr.bf16.gmra.mrb[228].mxu0 %v18809_v27  ;;  %7346 = vmatmul.mubr.bf16.gmra.mrb[36].mxu1 %v18809_v27 }
 0x97a   : > { %7002 = vmatprep.mubr.bf16.mxu0 %v21434_v22  ;;  %7355 = vmatprep.mubr.bf16.mxu1 %v21434_v22 }
 0x981   : > { %7003 = vmatmul.mubr.bf16.gmra.mrb[232].mxu0 %v18824_v18  ;;  %7356 = vmatmul.mubr.bf16.gmra.mrb[40].mxu1 %v18824_v18 }
 0x982   : > { %7012 = vmatprep.mubr.bf16.mxu0 %v21434_v22  ;;  %7365 = vmatprep.mubr.bf16.mxu1 %v21434_v22 }
 0x984   : > { %v6744_v31 = vpop.f32.mrb[128].mxu0  ;;  %v7097_v49 = vpop.f32.mrb[192].mxu1 }
 0x985   : > { %v6745_v59 = vadd.f32 %v6744_v31, %v18921_v30  ;;  %v7098_v4 = vadd.f32 %v7097_v49, %v18923_v23  ;;  %v6746_v38 = vpop.f32.mrb[129].mxu0  ;;  %v7099_v41 = vpop.f32.mrb[193].mxu1 }
 0x986   : > { %v6747_v48 = vadd.f32 %v6746_v38, %v18925_v3  ;;  %v7100_v44 = vadd.f32 %v7099_v41, %v18927_v34  ;;  %v6748_v10 = vpop.f32.mrb[130].mxu0  ;;  %v7101_v16 = vpop.f32.mrb[194].mxu1 }
 0x987   : > { %v11672_v15 = vmul.f32 -1.442695, %v6745_v59  ;;  %v11674_v62 = vmul.f32 -1.442695, %v7098_v4  ;;  %v6749_v37 = vadd.f32 %v6748_v10, %v18921_v30  ;;  %v7102_v39 = vadd.f32 %v7101_v16, %v18923_v23  ;;  %v6750_v46 = vpop.f32.mrb[131].mxu0  ;;  %v7103_v7 = vpop.f32.mrb[195].mxu1 }
 0x988   : > { %v11673_v2 = vmul.f32 -1.442695, %v6747_v48  ;;  %v11675_v0 = vmul.f32 -1.442695, %v7100_v44  ;;  %v6751_v45 = vadd.f32 %v6750_v46, %v18925_v3  ;;  %v7104_v51 = vadd.f32 %v7103_v7, %v18927_v34 }
 0x989   : > { %14495 = vpow2.f32 %v11672_v15  ;;  %v11679_v63 = vmul.f32 -1.442695, %v6749_v37  ;;  %7013 = vmatmul.mubr.bf16.gmra.mrb[236].mxu0 %v18821_v54  ;;  %7366 = vmatmul.mubr.bf16.gmra.mrb[44].mxu1 %v18821_v54  ;;  %v11681_v8 = vmul.f32 -1.442695, %v7102_v39 }
 0x98a   : > { %14497 = vpow2.f32 %v11674_v62  ;;  %7022 = vmatprep.mubr.bf16.mxu0 %v21434_v22  ;;  %7375 = vmatprep.mubr.bf16.mxu1 %v21434_v22  ;;  %v11680_v19 = vmul.f32 -1.442695, %v6751_v45  ;;  %v11682_v43 = vmul.f32 -1.442695, %v7104_v51 }
 0x98b   : > { %14499 = vpow2.f32 %v11673_v2 }
 0x98c   : > { %14501 = vpow2.f32 %v11675_v0  ;;  %v6754_v5 = vpop.f32.mrb[132].mxu0  ;;  %v7107_v9 = vpop.f32.mrb[196].mxu1 }
 0x98d   : > { %14503 = vpow2.f32 %v11679_v63  ;;  %v6755_v31 = vadd.f32 %v6754_v5, %v18921_v30  ;;  %v7108_v49 = vadd.f32 %v7107_v9, %v18923_v23  ;;  %v6756_v59 = vpop.f32.mrb[133].mxu0  ;;  %v7109_v4 = vpop.f32.mrb[197].mxu1 }
 0x98e   : > { %14505 = vpow2.f32 %v11681_v8  ;;  %v6757_v38 = vadd.f32 %v6756_v59, %v18925_v3  ;;  %v7110_v41 = vadd.f32 %v7109_v4, %v18927_v34  ;;  %v6758_v48 = vpop.f32.mrb[134].mxu0  ;;  %v7111_v44 = vpop.f32.mrb[198].mxu1 }
 0x98f   : > { %14507 = vpow2.f32 %v11680_v19  ;;  %v11686_v10 = vmul.f32 -1.442695, %v6755_v31  ;;  %v11688_v16 = vmul.f32 -1.442695, %v7108_v49  ;;  %v6759_v15 = vadd.f32 %v6758_v48, %v18921_v30  ;;  %v6760_v62 = vpop.f32.mrb[135].mxu0  ;;  %v7113_v37 = vpop.f32.mrb[199].mxu1 }
 0x990   : > { %14509 = vpow2.f32 %v11682_v43  ;;  %v11687_v39 = vmul.f32 -1.442695, %v6757_v38  ;;  %v11689_v46 = vmul.f32 -1.442695, %v7110_v41 }
 0x991   : > { %14511 = vpow2.f32 %v11686_v10  ;;  %v11693_v7 = vmul.f32 -1.442695, %v6759_v15  ;;  %7023 = vmatmul.mubr.bf16.gmra.mrb[240].mxu0 %v18835_v28  ;;  %7376 = vmatmul.mubr.bf16.gmra.mrb[48].mxu1 %v18835_v28 }
 0x992   : > { %14513 = vpow2.f32 %v11688_v16  ;;  %7032 = vmatprep.mubr.bf16.mxu0 %v21434_v22  ;;  %7385 = vmatprep.mubr.bf16.mxu1 %v21434_v22 }
 0x993   : > { %v14496_v2 = vpop.eup %14495  ;;  %14515 = vpow2.f32 %v11687_v39 }
 0x994   : > { %v14498_v0 = vpop.eup %14497  ;;  %v9402_v45 = vadd.f32 1.0, %v14496_v2  ;;  %14517 = vpow2.f32 %v11689_v46  ;;  %v6764_v51 = vpop.f32.mrb[136].mxu0 }
 0x995   : > { %v7117_v63 = vpop.f32.mrb[200].mxu1  ;;  %v14500_v8 = vpop.eup %14499  ;;  %v9404_v19 = vadd.f32 1.0, %v14498_v0  ;;  %14519 = vpow2.f32 %v11693_v7 }
 0x996   : > { %v6766_v43 = vpop.f32.mrb[137].mxu0  ;;  %v18952_v5 = vpop.f32.mrb[201].mxu1  ;;  %14521 = vrcp.f32 %v9402_v45  ;;  %v9403_v31 = vadd.f32 1.0, %v14500_v8  ;;  %v7112_v45 = vadd.f32 %v7111_v44, %v18923_v23 }
 0x997   : > { %v14502_v9 = vpop.eup %14501  ;;  %v18954_v49 = vpop.f32.mrb[138].mxu0  ;;  %14523 = vrcp.f32 %v9404_v19  ;;  %v6767_v28 = vadd.f32 %v6766_v43, %v18925_v3 }
 0x998   : > { %v18956_v59 = vpop.f32.mrb[202].mxu1  ;;  %v14504_v4 = vpop.eup %14503  ;;  %v9405_v38 = vadd.f32 1.0, %v14502_v9  ;;  %14525 = vrcp.f32 %v9403_v31  ;;  %v6761_v9 = vadd.f32 %v6760_v62, %v18925_v3  ;;  %v6765_v62 = vadd.f32 %v6764_v51, %v18921_v30 }
 0x999   : > { %v18958_v41 = vpop.f32.mrb[139].mxu0  ;;  %v14506_v48 = vpop.eup %14505  ;;  %v9409_v10 = vadd.f32 1.0, %v14504_v4  ;;  %7033 = vmatmul.mubr.bf16.gmra.mrb[244].mxu0 %v18833_v12  ;;  %7386 = vmatmul.mubr.bf16.gmra.mrb[52].mxu1 %v18833_v12  ;;  %v6769_v43 = vadd.f32 %v18954_v49, %v18921_v30 }
 0x99a   : > { %v18960_v16 = vpop.f32.mrb[203].mxu1  ;;  %v14508_v15 = vpop.eup %14507  ;;  %14527 = vrcp.f32 %v9405_v38  ;;  %v9411_v39 = vadd.f32 1.0, %v14506_v48  ;;  %7042 = vmatprep.mubr.bf16.mxu0 %v21434_v22  ;;  %7395 = vmatprep.mubr.bf16.mxu1 %v21434_v22  ;;  %v7114_v48 = vadd.f32 %v7113_v37, %v18927_v34  ;;  %v11694_v51 = vmul.f32 -1.442695, %v6761_v9 }
 0x99b   : > { %v14510_v46 = vpop.eup %14509  ;;  %14529 = vrcp.f32 %v9409_v10  ;;  %v9410_v7 = vadd.f32 1.0, %v14508_v15  ;;  %v11700_v9 = vmul.f32 -1.442695, %v6765_v62  ;;  %v6771_v49 = vadd.f32 %v18958_v41, %v18925_v3 }
 0x99c   : > { %v14512_v2 = vpop.eup %14511  ;;  %14531 = vrcp.f32 %v9411_v39  ;;  %v9412_v0 = vadd.f32 1.0, %v14510_v46  ;;  %v18968_v31 = vpop.f32.mrb[140].mxu0  ;;  %v11707_v41 = vmul.f32 -1.442695, %v6769_v43 }
 0x99d   : > { %v14514_v8 = vpop.eup %14513  ;;  %14533 = vrcp.f32 %v9410_v7  ;;  %v9416_v19 = vadd.f32 1.0, %v14512_v2  ;;  %v18971_v10 = vpop.f32.mrb[204].mxu1 }
 0x99e   : > { %v14516_v4 = vpop.eup %14515  ;;  %14535 = vrcp.f32 %v9412_v0  ;;  %v9418_v38 = vadd.f32 1.0, %v14514_v8  ;;  %v18973_v15 = vpop.f32.mrb[141].mxu0  ;;  %v11695_v0 = vmul.f32 -1.442695, %v7112_v45  ;;  %v7118_v8 = vadd.f32 %v7117_v63, %v18923_v23 }
 0x99f   : > { %v14518_v39 = vpop.eup %14517  ;;  %14537 = vrcp.f32 %v9416_v19  ;;  %v9417_v44 = vadd.f32 1.0, %v14516_v4  ;;  %v18983_v46 = vpop.f32.mrb[205].mxu1  ;;  %v11696_v45 = vmul.f32 -1.442695, %v7114_v48  ;;  %v7120_v63 = vadd.f32 %v18952_v5, %v18927_v34 }
 0x9a0   : > { %v18985_v7 = vpop.f32.mrb[142].mxu0  ;;  %v14520_v37 = vpop.eup %14519  ;;  %14539 = vrcp.f32 %v9418_v38  ;;  %v9419_v2 = vadd.f32 1.0, %v14518_v39  ;;  %v11702_v5 = vmul.f32 -1.442695, %v7118_v8  ;;  %v7122_v39 = vadd.f32 %v18956_v59, %v18923_v23 }
 0x9a1   : > { %v18988_v6 = vpop.f32.mrb[206].mxu1  ;;  %v18990_v12 = vpop.f32.mrb[143].mxu0  ;;  %14541 = vrcp.f32 %v9417_v44  ;;  %v9423_v4 = vadd.f32 1.0, %v14520_v37  ;;  %7043 = vmatmul.mubr.bf16.gmra.mrb[248].mxu0 %v18843_v36  ;;  %7396 = vmatmul.mubr.bf16.gmra.mrb[56].mxu1 %v18843_v36  ;;  %v7124_v59 = vadd.f32 %v18960_v16, %v18927_v34 }
 0x9a2   : > { %v14522_v19 = vpop.eup %14521  ;;  %v18993_v54 = vpop.f32.mrb[207].mxu1  ;;  %14543 = vrcp.f32 %v9419_v2  ;;  %7052 = vmatprep.mubr.bf16.mxu0 %v21434_v22  ;;  %7405 = vmatprep.mubr.bf16.mxu1 %v21434_v22  ;;  %v11709_v16 = vmul.f32 -1.442695, %v7122_v39 }
 0x9a3   : > { %v14524_v18 = vpop.eup %14523  ;;  %10746 = vst [vmem:[%s18980_s30] sm:$0xff] %v14522_v19  ;;  %14545 = vrcp.f32 %v9423_v4  ;;  %v6775_v4 = vadd.f32 %v18968_v31, %v18921_v30  ;;  %v11708_v31 = vmul.f32 -1.442695, %v6771_v49 }
 0x9a4   : > { %v14526_v38 = vpop.eup %14525  ;;  %10748 = vst [vmem:[%s18980_s30 + $0x10] sm:$0xff] %v14524_v18  ;;  %14547 = vpow2.f32 %v11695_v0  ;;  %v11701_v18 = vmul.f32 -1.442695, %v6767_v28  ;;  %v19011_v62 = vpop.f32.mrb[144].mxu0  ;;  %v11703_v0 = vmul.f32 -1.442695, %v7120_v63 }
 0x9a5   : > { %v14528_v48 = vpop.eup %14527  ;;  %10747 = vst [vmem:[%s18980_s30 + $0x8] sm:$0xff] %v14526_v38  ;;  %14549 = vpow2.f32 %v11694_v51  ;;  %v19013_v37 = vpop.f32.mrb[208].mxu1  ;;  %v7128_v38 = vadd.f32 %v18971_v10, %v18923_v23  ;;  %v11714_v10 = vmul.f32 -1.442695, %v6775_v4 }
 0x9a6   : > { %v14530_v44 = vpop.eup %14529  ;;  %10749 = vst [vmem:[%s18980_s30 + $0x18] sm:$0xff] %v14528_v48  ;;  %14551 = vpow2.f32 %v11696_v45  ;;  %v19018_v8 = vpop.f32.mrb[145].mxu0 }
 0x9a7   : > { %v14532_v2 = vpop.eup %14531  ;;  %10753 = vst [vmem:[%s18980_s30 + $0x38] sm:$0xff] %v14530_v44  ;;  %v19020_v19 = vpop.f32.mrb[209].mxu1  ;;  %14553 = vpow2.f32 %v11700_v9 }
 0x9a8   : > { %v14534_v28 = vpop.eup %14533  ;;  %10755 = vst [vmem:[%s18980_s30 + $0x48] sm:$0xff] %v14532_v2  ;;  %v19025_v51 = vpop.f32.mrb[146].mxu0  ;;  %14555 = vpow2.f32 %v11702_v5  ;;  %v11710_v2 = vmul.f32 -1.442695, %v7124_v59 }
 0x9a9   : > { %v19027_v45 = vpop.f32.mrb[210].mxu1  ;;  %v14536_v63 = vpop.eup %14535  ;;  %10754 = vst [vmem:[%s18980_s30 + $0x40] sm:$0xff] %v14534_v28  ;;  %14557 = vpow2.f32 %v11701_v18  ;;  %7053 = vmatmul.mubr.bf16.gmra.mrb[252].mxu0 %v18841_v40  ;;  %7406 = vmatmul.mubr.bf16.gmra.mrb[60].mxu1 %v18841_v40  ;;  %v11716_v18 = vmul.f32 -1.442695, %v7128_v38 }
 0x9aa   : > { %v19032_v48 = vpop.f32.mrb[147].mxu0  ;;  %v19034_v9 = vpop.f32.mrb[211].mxu1  ;;  %10756 = vst [vmem:[%s18980_s30 + $0x50] sm:$0xff] %v14536_v63  ;;  %14559 = vpow2.f32 %v11703_v0  ;;  %13141 = vmatprep.mubr.bf16.mxu1 %v18623_v56  ;;  %7448 = vmatprep.mubr.bf16.mxu0 %v21434_v22 }
 0x9ab   : > { %v14538_v43 = vpop.eup %14537  ;;  %14561 = vpow2.f32 %v11707_v41 }
 0x9ac   : > { %v14540_v44 = vpop.eup %14539  ;;  %10760 = vst [vmem:[%s18980_s30 + $0x70] sm:$0xff] %v14538_v43  ;;  %14563 = vpow2.f32 %v11709_v16  ;;  %v19045_v0 = vpop.f32.mrb[148].mxu0 }
 0x9ad   : > { %v14542_v5 = vpop.eup %14541  ;;  %10762 = vst [vmem:[%s18980_s30 + $0x80] sm:$0xff] %v14540_v44  ;;  %14565 = vpow2.f32 %v11708_v31  ;;  %v19047_v59 = vpop.f32.mrb[212].mxu1 }
 0x9ae   : > { %v14544_v39 = vpop.eup %14543  ;;  %10761 = vst [vmem:[%s18980_s30 + $0x78] sm:$0xff] %v14542_v5  ;;  %14567 = vpow2.f32 %v11710_v2  ;;  %v19050_v41 = vpop.f32.mrb[149].mxu0 }
 0x9af   : > { %v14546_v49 = vpop.eup %14545  ;;  %10763 = vst [vmem:[%s18980_s30 + $0x88] sm:$0xff] %v14544_v39  ;;  %v19052_v4 = vpop.f32.mrb[213].mxu1  ;;  %14569 = vpow2.f32 %v11714_v10 }
 0x9b0   : > { %v14548_v28 = vpop.eup %14547  ;;  %10767 = vst [vmem:[%s18980_s30 + $0xa8] sm:$0xff] %v14546_v49  ;;  %v19054_v44 = vpop.f32.mrb[150].mxu0  ;;  %14571 = vpow2.f32 %v11716_v18 }
 0x9b1   : > { %v14550_v63 = vpop.eup %14549  ;;  %v9425_v43 = vadd.f32 1.0, %v14548_v28  ;;  %v19056_v16 = vpop.f32.mrb[214].mxu1  ;;  %7449 = vmatmul.mubr.bf16.vlgmr.msra.gmra.mrb[0].mxu0 %v18623_v56  ;;  %13142 = vmatmul.mubr.bf16.vlgmr.msra.gmra.mrb[64].mxu1 %v18620_v14 }
 0x9b2   : > { %v14552_v38 = vpop.eup %14551  ;;  %v9424_v31 = vadd.f32 1.0, %v14550_v63  ;;  %v19058_v5 = vpop.f32.mrb[151].mxu0  ;;  %13145 = vmatprep.mubr.bf16.mxu1 %v18647_v50  ;;  %7458 = vmatprep.mubr.bf16.mxu0 %v21434_v22 }
 0x9b3   : > { %v14554_v39 = vpop.eup %14553  ;;  %14573 = vrcp.f32 %v9425_v43  ;;  %v9426_v49 = vadd.f32 1.0, %v14552_v38  ;;  %v19060_v2 = vpop.f32.mrb[215].mxu1 }
 0x9b4   : > { %v14556_v40 = vpop.eup %14555  ;;  %14575 = vrcp.f32 %v9424_v31  ;;  %v9430_v36 = vadd.f32 1.0, %v14554_v39  ;;  %v19066_v27 = vpop.f32.mrb[152].mxu0  ;;  %v6777_v39 = vadd.f32 %v18973_v15, %v18925_v3  ;;  %v6779_v15 = vadd.f32 %v18985_v7, %v18921_v30 }
 0x9b5   : > { %v14558_v10 = vpop.eup %14557  ;;  %14577 = vrcp.f32 %v9426_v49  ;;  %v9432_v28 = vadd.f32 1.0, %v14556_v40  ;;  %v19070_v49 = vpop.f32.mrb[216].mxu1  ;;  %v6781_v7 = vadd.f32 %v18990_v12, %v18925_v3 }
 0x9b6   : > { %v14560_v18 = vpop.eup %14559  ;;  %14579 = vrcp.f32 %v9430_v36  ;;  %v9431_v63 = vadd.f32 1.0, %v14558_v10  ;;  %v19072_v40 = vpop.f32.mrb[153].mxu0  ;;  %v7130_v36 = vadd.f32 %v18983_v46, %v18927_v34  ;;  %v7132_v46 = vadd.f32 %v18988_v6, %v18923_v23 }
 0x9b7   : > { %v14562_v43 = vpop.eup %14561  ;;  %14581 = vrcp.f32 %v9432_v28  ;;  %v9433_v38 = vadd.f32 1.0, %v14560_v18  ;;  %v19076_v10 = vpop.f32.mrb[217].mxu1  ;;  %v7134_v6 = vadd.f32 %v18993_v54, %v18927_v34  ;;  %v11721_v12 = vmul.f32 -1.442695, %v6779_v15 }
 0x9b8   : > { %v14564_v31 = vpop.eup %14563  ;;  %14583 = vrcp.f32 %v9431_v63  ;;  %v9437_v56 = vadd.f32 1.0, %v14562_v43  ;;  %v19078_v28 = vpop.f32.mrb[154].mxu0  ;;  %v11717_v25 = vmul.f32 -1.442695, %v7130_v36  ;;  %v7138_v54 = vadd.f32 %v19013_v37, %v18923_v23 }
 0x9b9   : > { %v14566_v52 = vpop.eup %14565  ;;  %14585 = vrcp.f32 %v9433_v38  ;;  %v9439_v33 = vadd.f32 1.0, %v14564_v31  ;;  %v19082_v43 = vpop.f32.mrb[218].mxu1  ;;  %7459 = vmatmul.mubr.bf16.gmra.mrb[4].mxu0 %v18620_v14  ;;  %13146 = vmatmul.mubr.bf16.gmra.mrb[68].mxu1 %v18644_v13  ;;  %v6785_v14 = vadd.f32 %v19011_v62, %v18921_v30  ;;  %v11722_v15 = vmul.f32 -1.442695, %v6781_v7 }
 0x9ba   : > { %v14568_v18 = vpop.eup %14567  ;;  %14587 = vrcp.f32 %v9437_v56  ;;  %v9438_v63 = vadd.f32 1.0, %v14566_v52  ;;  %v19084_v26 = vpop.f32.mrb[155].mxu0  ;;  %v11715_v52 = vmul.f32 -1.442695, %v6777_v39  ;;  %13149 = vmatprep.mubr.bf16.mxu1 %v18671_v61  ;;  %7468 = vmatprep.mubr.bf16.mxu0 %v21434_v22  ;;  %v6787_v62 = vadd.f32 %v19018_v8, %v18925_v3 }
 0x9bb   : > { %v14570_v29 = vpop.eup %14569  ;;  %14589 = vrcp.f32 %v9439_v33  ;;  %v9440_v38 = vadd.f32 1.0, %v14568_v18  ;;  %v19088_v31 = vpop.f32.mrb[219].mxu1  ;;  %v11724_v37 = vmul.f32 -1.442695, %v7134_v6  ;;  %v11728_v8 = vmul.f32 -1.442695, %v6785_v14 }
 0x9bc   : > { %v14572_v58 = vpop.eup %14571  ;;  %14591 = vrcp.f32 %v9438_v63  ;;  %v9444_v56 = vadd.f32 1.0, %v14570_v29  ;;  %v19104_v36 = vpop.f32.mrb[156].mxu0 }
 0x9bd   : > { %v14574_v33 = vpop.eup %14573  ;;  %14593 = vrcp.f32 %v9440_v38  ;;  %v9446_v18 = vadd.f32 1.0, %v14572_v58  ;;  %v11723_v58 = vmul.f32 -1.442695, %v7132_v46  ;;  %v19106_v63 = vpop.f32.mrb[220].mxu1 }
 0x9be   : > { %v14576_v29 = vpop.eup %14575  ;;  %10769 = vst [vmem:[%s18980_s30 + $0xb8] sm:$0xff] %v14574_v33  ;;  %14595 = vrcp.f32 %v9444_v56  ;;  %v19111_v56 = vpop.f32.mrb[157].mxu0 }
 0x9bf   : > { %v14578_v39 = vpop.eup %14577  ;;  %10768 = vst [vmem:[%s18980_s30 + $0xb0] sm:$0xff] %v14576_v29  ;;  %14597 = vrcp.f32 %v9446_v18  ;;  %v19113_v33 = vpop.f32.mrb[221].mxu1  ;;  %v7140_v18 = vadd.f32 %v19020_v19, %v18927_v34  ;;  %v11730_v19 = vmul.f32 -1.442695, %v7138_v54 }
 0x9c0   : > { %v14580_v38 = vpop.eup %14579  ;;  %10770 = vst [vmem:[%s18980_s30 + $0xc0] sm:$0xff] %v14578_v39  ;;  %14599 = vpow2.f32 %v11715_v52  ;;  %v19118_v29 = vpop.f32.mrb[158].mxu0  ;;  %v6789_v39 = vadd.f32 %v19025_v51, %v18921_v30  ;;  %v6791_v51 = vadd.f32 %v19032_v48, %v18925_v3 }
 0x9c1   : > { %v14582_v46 = vpop.eup %14581  ;;  %10774 = vst [vmem:[%s18980_s30 + $0xe0] sm:$0xff] %v14580_v38  ;;  %14601 = vpow2.f32 %v11717_v25  ;;  %v19120_v52 = vpop.f32.mrb[222].mxu1  ;;  %v7142_v38 = vadd.f32 %v19027_v45, %v18923_v23  ;;  %7469 = vmatmul.mubr.bf16.gmra.mrb[8].mxu0 %v18647_v50  ;;  %13150 = vmatmul.mubr.bf16.gmra.mrb[72].mxu1 %v18668_v11 }
 0x9c2   : > { %21450 = vst [vmem:[#allocation17_spill] sm:$0xff] %v19120_v52  ;;  %v14584_v7 = vpop.eup %14583  ;;  %10776 = vst [vmem:[%s18980_s30 + $0xf0] sm:$0xff] %v14582_v46  ;;  %14603 = vpow2.f32 %v11721_v12  ;;  %v19125_v57 = vpop.f32.mrb[159].mxu0  ;;  %v11729_v12 = vmul.f32 -1.442695, %v6787_v62  ;;  %13153 = vmatprep.mubr.bf16.mxu1 %v18686_v32  ;;  %7478 = vmatprep.mubr.bf16.mxu0 %v21434_v22 }
 0x9c3   : > { %v19127_v25 = vpop.f32.mrb[223].mxu1  ;;  %v14586_v6 = vpop.eup %14585  ;;  %10775 = vst [vmem:[%s18980_s30 + $0xe8] sm:$0xff] %v14584_v7  ;;  %14605 = vpow2.f32 %v11723_v58  ;;  %v11731_v58 = vmul.f32 -1.442695, %v7140_v18  ;;  %v11735_v54 = vmul.f32 -1.442695, %v6789_v39 }
 0x9c4   : > { %v14588_v52 = vpop.eup %14587  ;;  %10777 = vst [vmem:[%s18980_s30 + $0xf8] sm:$0xff] %v14586_v6  ;;  %14607 = vpow2.f32 %v11722_v15  ;;  %v11737_v50 = vmul.f32 -1.442695, %v7142_v38  ;;  %v19142_v48 = vpop.f32.mrb[160].mxu0 }
 0x9c5   : > { %v14590_v14 = vpop.eup %14589  ;;  %10781 = vst [vmem:[%s18980_s30 + $0x118] sm:$0xff] %v14588_v52  ;;  %14609 = vpow2.f32 %v11724_v37  ;;  %v19144_v62 = vpop.f32.mrb[224].mxu1  ;;  %v11736_v37 = vmul.f32 -1.442695, %v6791_v51 }
 0x9c6   : > { %v14592_v45 = vpop.eup %14591  ;;  %10783 = vst [vmem:[%s18980_s30 + $0x128] sm:$0xff] %v14590_v14  ;;  %14611 = vpow2.f32 %v11728_v8  ;;  %v19147_v18 = vpop.f32.mrb[161].mxu0 }
 0x9c7   : > { %v14594_v15 = vpop.eup %14593  ;;  %10782 = vst [vmem:[%s18980_s30 + $0x120] sm:$0xff] %v14592_v45  ;;  %14613 = vpow2.f32 %v11730_v19  ;;  %v19149_v52 = vpop.f32.mrb[225].mxu1 }
 0x9c8   : > { %v14596_v46 = vpop.eup %14595  ;;  %10784 = vst [vmem:[%s18980_s30 + $0x130] sm:$0xff] %v14594_v15  ;;  %14615 = vpow2.f32 %v11729_v12  ;;  %v19152_v8 = vpop.f32.mrb[162].mxu0 }
 0x9c9   : > { %v14598_v7 = vpop.eup %14597  ;;  %10788 = vst [vmem:[%s18980_s30 + $0x150] sm:$0xff] %v14596_v46  ;;  %14617 = vpow2.f32 %v11731_v58  ;;  %v19154_v39 = vpop.f32.mrb[226].mxu1  ;;  %7479 = vmatmul.mubr.bf16.gmra.mrb[12].mxu0 %v18644_v13  ;;  %13154 = vmatmul.mubr.bf16.gmra.mrb[76].mxu1 %v18683_v20 }
 0x9ca   : > { %21451 = vst [vmem:[#allocation18_spill] sm:$0xff] %v19154_v39  ;;  %v14600_v6 = vpop.eup %14599  ;;  %10790 = vst [vmem:[%s18980_s30 + $0x160] sm:$0xff] %v14598_v7  ;;  %14619 = vpow2.f32 %v11735_v54  ;;  %v19157_v19 = vpop.f32.mrb[163].mxu0  ;;  %13157 = vmatprep.mubr.bf16.mxu1 %v18698_v17  ;;  %7488 = vmatprep.mubr.bf16.mxu0 %v21434_v22 }
 0x9cb   : > { %21452 = vst [vmem:[#allocation19_spill] sm:$0xff] %v19157_v19  ;;  %v19159_v38 = vpop.f32.mrb[227].mxu1  ;;  %v14602_v12 = vpop.eup %14601  ;;  %v9445_v51 = vadd.f32 1.0, %v14600_v6  ;;  %14621 = vpow2.f32 %v11737_v50 }
 0x9cc   : > { %21453 = vst [vmem:[#allocation20_spill] sm:$0xff] %v19159_v38  ;;  %v14604_v14 = vpop.eup %14603  ;;  %v9447_v45 = vadd.f32 1.0, %v14602_v12  ;;  %14623 = vpow2.f32 %v11736_v37  ;;  %v19165_v6 = vpop.f32.mrb[164].mxu0 }
 0x9cd   : > { %v14606_v58 = vpop.eup %14605  ;;  %14625 = vrcp.f32 %v9445_v51  ;;  %v9451_v15 = vadd.f32 1.0, %v14604_v14  ;;  %v19167_v12 = vpop.f32.mrb[228].mxu1 }
 0x9ce   : > { %v14608_v54 = vpop.eup %14607  ;;  %14627 = vrcp.f32 %v9447_v45  ;;  %v9453_v46 = vadd.f32 1.0, %v14606_v58  ;;  %v19169_v38 = vpop.f32.mrb[165].mxu0 }
 0x9cf   : > { %v14610_v7 = vpop.eup %14609  ;;  %14629 = vrcp.f32 %v9451_v15  ;;  %v9452_v50 = vadd.f32 1.0, %v14608_v54  ;;  %21454 = vst [vmem:[#allocation21_spill] sm:$0xff] %v19169_v38  ;;  %v19171_v19 = vpop.f32.mrb[229].mxu1  ;;  %v7144_v15 = vadd.f32 %v19034_v9, %v18927_v34 }
 0x9d0   : > { %v14612_v37 = vpop.eup %14611  ;;  %14631 = vrcp.f32 %v9453_v46  ;;  %v9454_v13 = vadd.f32 1.0, %v14610_v7  ;;  %21455 = vst [vmem:[#allocation22_spill] sm:$0xff] %v19171_v19  ;;  %v19173_v39 = vpop.f32.mrb[166].mxu0 }
 0x9d1   : > { %v14614_v51 = vpop.eup %14613  ;;  %14633 = vrcp.f32 %v9452_v50  ;;  %v9458_v14 = vadd.f32 1.0, %v14612_v37  ;;  %21456 = vst [vmem:[#allocation23_spill] sm:$0xff] %v19173_v39  ;;  %v19177_v54 = vpop.f32.mrb[230].mxu1  ;;  %v6795_v50 = vadd.f32 %v19045_v0, %v18921_v30  ;;  %7489 = vmatmul.mubr.bf16.gmra.mrb[16].mxu0 %v18671_v61  ;;  %13158 = vmatmul.mubr.bf16.gmra.mrb[80].mxu1 %v18695_v35  ;;  %v7150_v61 = vadd.f32 %v19052_v4, %v18927_v34 }
 0x9d2   : > { %v14616_v45 = vpop.eup %14615  ;;  %14635 = vrcp.f32 %v9454_v13  ;;  %v9460_v58 = vadd.f32 1.0, %v14614_v51  ;;  %v19179_v46 = vpop.f32.mrb[167].mxu0  ;;  %v7148_v13 = vadd.f32 %v19047_v59, %v18923_v23  ;;  %13161 = vmatprep.mubr.bf16.mxu1 %v18719_v53  ;;  %7498 = vmatprep.mubr.bf16.mxu0 %v21434_v22 }
 0x9d3   : > { %v14618_v7 = vpop.eup %14617  ;;  %14637 = vrcp.f32 %v9458_v14  ;;  %v9459_v38 = vadd.f32 1.0, %v14616_v45  ;;  %v19183_v37 = vpop.f32.mrb[231].mxu1  ;;  %v6797_v14 = vadd.f32 %v19050_v41, %v18925_v3 }
 0x9d4   : > { %21457 = vst [vmem:[#allocation24_spill] sm:$0xff] %v19183_v37  ;;  %v14620_v19 = vpop.eup %14619  ;;  %14639 = vrcp.f32 %v9460_v58  ;;  %v9461_v39 = vadd.f32 1.0, %v14618_v7  ;;  %v11738_v58 = vmul.f32 -1.442695, %v7144_v15  ;;  %v6799_v7 = vadd.f32 %v19054_v44, %v18921_v30  ;;  %v19197_v41 = vpop.f32.mrb[168].mxu0 }
 0x9d5   : > { %v14622_v9 = vpop.eup %14621  ;;  %14641 = vrcp.f32 %v9459_v38  ;;  %v9465_v51 = vadd.f32 1.0, %v14620_v19  ;;  %v11742_v19 = vmul.f32 -1.442695, %v6795_v50  ;;  %v7152_v15 = vadd.f32 %v19056_v16, %v18923_v23  ;;  %v19204_v4 = vpop.f32.mrb[169].mxu0 }
 0x9d6   : > { %v14624_v0 = vpop.eup %14623  ;;  %14643 = vrcp.f32 %v9461_v39  ;;  %v9467_v45 = vadd.f32 1.0, %v14622_v9  ;;  %v11744_v39 = vmul.f32 -1.442695, %v7148_v13  ;;  %v19202_v9 = vpop.f32.mrb[232].mxu1  ;;  %21458 = vst [vmem:[#allocation25_spill] sm:$0xff] %v19204_v4  ;;  %v6801_v44 = vadd.f32 %v19058_v5, %v18925_v3 }
 0x9d7   : > { %v14626_v59 = vpop.eup %14625  ;;  %14645 = vrcp.f32 %v9465_v51  ;;  %v9466_v38 = vadd.f32 1.0, %v14624_v0  ;;  %v11743_v50 = vmul.f32 -1.442695, %v6797_v14  ;;  %v19209_v0 = vpop.f32.mrb[233].mxu1  ;;  %v11745_v16 = vmul.f32 -1.442695, %v7150_v61 }
 0x9d8   : > { %v14628_v37 = vpop.eup %14627  ;;  %10789 = vst [vmem:[%s18980_s30 + $0x158] sm:$0xff] %v14626_v59  ;;  %14647 = vrcp.f32 %v9467_v45  ;;  %v19211_v45 = vpop.f32.mrb[170].mxu0  ;;  %v7154_v59 = vadd.f32 %v19060_v2, %v18927_v34  ;;  %v11749_v5 = vmul.f32 -1.442695, %v6799_v7  ;;  %v11751_v61 = vmul.f32 -1.442695, %v7152_v15 }
 0x9d9   : > { %v14630_v51 = vpop.eup %14629  ;;  %10791 = vst [vmem:[%s18980_s30 + $0x168] sm:$0xff] %v14628_v37  ;;  %14649 = vrcp.f32 %v9466_v38  ;;  %21459 = vst [vmem:[#allocation26_spill] sm:$0xff] %v19211_v45  ;;  %v19216_v4 = vpop.f32.mrb[234].mxu1  ;;  %v6805_v38 = vadd.f32 %v19066_v27, %v18921_v30  ;;  %v7158_v2 = vadd.f32 %v19070_v49, %v18923_v23  ;;  %7499 = vmatmul.mubr.bf16.gmra.mrb[20].mxu0 %v18668_v11  ;;  %13162 = vmatmul.mubr.bf16.gmra.mrb[84].mxu1 %v18716_v55 }
 0x9da   : > { %v14632_v13 = vpop.eup %14631  ;;  %10795 = vst [vmem:[%s18980_s30 + $0x188] sm:$0xff] %v14630_v51  ;;  %14651 = vpow2.f32 %v11738_v58  ;;  %v19218_v37 = vpop.f32.mrb[171].mxu0  ;;  %v11750_v7 = vmul.f32 -1.442695, %v6801_v44  ;;  %v6807_v27 = vadd.f32 %v19072_v40, %v18925_v3  ;;  %13165 = vmatprep.mubr.bf16.mxu1 %v18731_v1  ;;  %7508 = vmatprep.mubr.bf16.mxu0 %v21434_v22  ;;  %v11752_v49 = vmul.f32 -1.442695, %v7154_v59 }
 0x9db   : > { %v14634_v14 = vpop.eup %14633  ;;  %10797 = vst [vmem:[%s18980_s30 + $0x198] sm:$0xff] %v14632_v13  ;;  %14653 = vpow2.f32 %v11742_v19  ;;  %v19223_v45 = vpop.f32.mrb[235].mxu1  ;;  %v7160_v11 = vadd.f32 %v19076_v10, %v18927_v34  ;;  %v11756_v51 = vmul.f32 -1.442695, %v6805_v38  ;;  %v11758_v13 = vmul.f32 -1.442695, %v7158_v2 }
 0x9dc   : > { %v14636_v58 = vpop.eup %14635  ;;  %10796 = vst [vmem:[%s18980_s30 + $0x190] sm:$0xff] %v14634_v14  ;;  %14655 = vpow2.f32 %v11744_v39  ;;  %v19241_v40 = vpop.f32.mrb[236].mxu1  ;;  %v11757_v10 = vmul.f32 -1.442695, %v6807_v27 }
 0x9dd   : > { %v14638_v19 = vpop.eup %14637  ;;  %10798 = vst [vmem:[%s18980_s30 + $0x1a0] sm:$0xff] %v14636_v58  ;;  %14657 = vpow2.f32 %v11743_v50  ;;  %v19239_v50 = vpop.f32.mrb[172].mxu0 }
 0x9de   : > { %v14640_v39 = vpop.eup %14639  ;;  %10802 = vst [vmem:[%s18980_s30 + $0x1c0] sm:$0xff] %v14638_v19  ;;  %14659 = vpow2.f32 %v11745_v16  ;;  %v19244_v16 = vpop.f32.mrb[173].mxu0  ;;  %v11759_v19 = vmul.f32 -1.442695, %v7160_v11 }
 0x9df   : > { %v14642_v15 = vpop.eup %14641  ;;  %10804 = vst [vmem:[%s18980_s30 + $0x1d0] sm:$0xff] %v14640_v39  ;;  %14661 = vpow2.f32 %v11749_v5  ;;  %v19246_v59 = vpop.f32.mrb[237].mxu1 }
 0x9e0   : > { %v14644_v44 = vpop.eup %14643  ;;  %10803 = vst [vmem:[%s18980_s30 + $0x1c8] sm:$0xff] %v14642_v15  ;;  %14663 = vpow2.f32 %v11751_v61  ;;  %v19249_v5 = vpop.f32.mrb[174].mxu0 }
 0x9e1   : > { %v14646_v14 = vpop.eup %14645  ;;  %10805 = vst [vmem:[%s18980_s30 + $0x1d8] sm:$0xff] %v14644_v44  ;;  %14665 = vpow2.f32 %v11750_v7  ;;  %v19251_v38 = vpop.f32.mrb[238].mxu1  ;;  %7509 = vmatmul.mubr.bf16.gmra.mrb[24].mxu0 %v18686_v32  ;;  %13166 = vmatmul.mubr.bf16.gmra.mrb[88].mxu1 %v18728_v60 }
 0x9e2   : > { %v14648_v58 = vpop.eup %14647  ;;  %10809 = vst [vmem:[%s18980_s30 + $0x1f8] sm:$0xff] %v14646_v14  ;;  %14667 = vpow2.f32 %v11752_v49  ;;  %v19254_v61 = vpop.f32.mrb[175].mxu0  ;;  %13169 = vmatprep.mubr.bf16.mxu1 %v18743_v47  ;;  %7518 = vmatprep.mubr.bf16.mxu0 %v21434_v22 }
 0x9e3   : > { %21460 = vst [vmem:[#allocation27_spill] sm:$0xff] %v19254_v61  ;;  %v19256_v2 = vpop.f32.mrb[239].mxu1  ;;  %v14650_v39 = vpop.eup %14649  ;;  %10811 = vst [vmem:[%s18980_s30 + $0x208] sm:$0xff] %v14648_v58  ;;  %14669 = vpow2.f32 %v11756_v51 }
 0x9e4   : > { %21461 = vst [vmem:[#allocation28_spill] sm:$0xff] %v19256_v2  ;;  %v14652_v15 = vpop.eup %14651  ;;  %10810 = vst [vmem:[%s18980_s30 + $0x200] sm:$0xff] %v14650_v39  ;;  %14671 = vpow2.f32 %v11758_v13  ;;  %v19264_v14 = vpop.f32.mrb[176].mxu0 }
 0x9e5   : > { %v14654_v7 = vpop.eup %14653  ;;  %v9468_v27 = vadd.f32 1.0, %v14652_v15  ;;  %14673 = vpow2.f32 %v11757_v10  ;;  %v19266_v13 = vpop.f32.mrb[240].mxu1 }
 0x9e6   : > { %v14656_v49 = vpop.eup %14655  ;;  %v9472_v11 = vadd.f32 1.0, %v14654_v7  ;;  %14675 = vpow2.f32 %v11759_v19  ;;  %21462 = vst [vmem:[#allocation29_spill] sm:$0xff] %v19266_v13  ;;  %v19268_v39 = vpop.f32.mrb[177].mxu0 }
 0x9e7   : > { %v14658_v44 = vpop.eup %14657  ;;  %14677 = vrcp.f32 %v9468_v27  ;;  %v9474_v51 = vadd.f32 1.0, %v14656_v49  ;;  %21463 = vst [vmem:[#allocation30_spill] sm:$0xff] %v19268_v39  ;;  %v19270_v10 = vpop.f32.mrb[241].mxu1 }
 0x9e8   : > { %v14660_v32 = vpop.eup %14659  ;;  %14679 = vrcp.f32 %v9472_v11  ;;  %v9473_v58 = vadd.f32 1.0, %v14658_v44  ;;  %21464 = vst [vmem:[#allocation31_spill] sm:$0xff] %v19270_v10  ;;  %v19272_v61 = vpop.f32.mrb[178].mxu0 }
 0x9e9   : > { %v14662_v15 = vpop.eup %14661  ;;  %14681 = vrcp.f32 %v9474_v51  ;;  %v9475_v2 = vadd.f32 1.0, %v14660_v32  ;;  %v19274_v19 = vpop.f32.mrb[242].mxu1  ;;  %v6809_v51 = vadd.f32 %v19078_v28, %v18921_v30  ;;  %7519 = vmatmul.mubr.bf16.gmra.mrb[28].mxu0 %v18683_v20  ;;  %13170 = vmatmul.mubr.bf16.gmra.mrb[92].mxu1 %v18740_v42  ;;  %v6811_v28 = vadd.f32 %v19084_v26, %v18925_v3 }
 0x9ea   : > { %v14664_v7 = vpop.eup %14663  ;;  %14683 = vrcp.f32 %v9473_v58  ;;  %v9479_v27 = vadd.f32 1.0, %v14662_v15  ;;  %v19276_v49 = vpop.f32.mrb[179].mxu0  ;;  %v7162_v15 = vadd.f32 %v19082_v43, %v18923_v23  ;;  %13173 = vmatprep.mubr.bf16.mxu1 %v18755_v21  ;;  %7528 = vmatprep.mubr.bf16.mxu0 %v21434_v22 }
 0x9eb   : > { %21465 = vst [vmem:[#allocation32_spill] sm:$0xff] %v19276_v49  ;;  %v14666_v13 = vpop.eup %14665  ;;  %14685 = vrcp.f32 %v9475_v2  ;;  %v9481_v11 = vadd.f32 1.0, %v14664_v7  ;;  %v19278_v44 = vpop.f32.mrb[243].mxu1 }
 0x9ec   : > { %21466 = vst [vmem:[#allocation33_spill] sm:$0xff] %v19278_v44  ;;  %v14668_v39 = vpop.eup %14667  ;;  %14687 = vrcp.f32 %v9479_v27  ;;  %v9480_v10 = vadd.f32 1.0, %v14666_v13  ;;  %v7164_v27 = vadd.f32 %v19088_v31, %v18927_v34  ;;  %v11763_v44 = vmul.f32 -1.442695, %v6809_v51 }
 0x9ed   : > { %v14670_v32 = vpop.eup %14669  ;;  %14689 = vrcp.f32 %v9481_v11  ;;  %v9482_v58 = vadd.f32 1.0, %v14668_v39  ;;  %v19292_v39 = vpop.f32.mrb[180].mxu0  ;;  %v7168_v31 = vadd.f32 %v19106_v63, %v18923_v23 }
 0x9ee   : > { %v14672_v2 = vpop.eup %14671  ;;  %14691 = vrcp.f32 %v9480_v10  ;;  %v9486_v13 = vadd.f32 1.0, %v14670_v32  ;;  %21467 = vst [vmem:[#allocation34_spill] sm:$0xff] %v19292_v39  ;;  %v6815_v10 = vadd.f32 %v19104_v36, %v18921_v30  ;;  %v19296_v32 = vpop.f32.mrb[244].mxu1  ;;  %v11764_v36 = vmul.f32 -1.442695, %v6811_v28 }
 0x9ef   : > { %v14674_v7 = vpop.eup %14673  ;;  %14693 = vrcp.f32 %v9482_v58  ;;  %v9488_v20 = vadd.f32 1.0, %v14672_v2  ;;  %v19298_v49 = vpop.f32.mrb[181].mxu0  ;;  %v11765_v2 = vmul.f32 -1.442695, %v7162_v15  ;;  %v11766_v63 = vmul.f32 -1.442695, %v7164_v27 }
 0x9f0   : > { %v14676_v43 = vpop.eup %14675  ;;  %14695 = vrcp.f32 %v9486_v13  ;;  %v9487_v11 = vadd.f32 1.0, %v14674_v7  ;;  %21468 = vst [vmem:[#allocation35_spill] sm:$0xff] %v19298_v49  ;;  %v19302_v39 = vpop.f32.mrb[245].mxu1  ;;  %v6817_v7 = vadd.f32 %v19111_v56, %v18925_v3  ;;  %v11770_v28 = vmul.f32 -1.442695, %v6815_v10 }
 0x9f1   : > { %v14678_v26 = vpop.eup %14677  ;;  %14697 = vrcp.f32 %v9488_v20  ;;  %v9489_v58 = vadd.f32 1.0, %v14676_v43  ;;  %v19304_v13 = vpop.f32.mrb[182].mxu0  ;;  %v7170_v43 = vadd.f32 %v19113_v33, %v18927_v34  ;;  %v6819_v56 = vadd.f32 %v19118_v29, %v18921_v30  ;;  %7529 = vmatmul.mubr.bf16.gmra.mrb[32].mxu0 %v18698_v17  ;;  %13174 = vmatmul.mubr.bf16.gmra.mrb[96].mxu1 %v18752_v24  ;;  %v21470_v33 = vld [vmem:[#allocation17_spill] sm:$0xff] }
 0x9f2   : > { %21469 = vst [vmem:[#allocation36_spill] sm:$0xff] %v19304_v13  ;;  %v14680_v51 = vpop.eup %14679  ;;  %10812 = vst [vmem:[%s18980_s30 + $0x210] sm:$0xff] %v14678_v26  ;;  %14699 = vrcp.f32 %v9487_v11  ;;  %v19309_v49 = vpop.f32.mrb[246].mxu1  ;;  %v11772_v27 = vmul.f32 -1.442695, %v7168_v31  ;;  %7538 = vmatprep.mubr.bf16.mxu0 %v21434_v22  ;;  %v6821_v17 = vadd.f32 %v19125_v57, %v18925_v3  ;;  %v7174_v31 = vadd.f32 %v19127_v25, %v18927_v34 }
 0x9f3   : > { %v19311_v20 = vpop.f32.mrb[183].mxu0  ;;  %v14682_v15 = vpop.eup %14681  ;;  %10816 = vst [vmem:[%s18980_s30 + $0x230] sm:$0xff] %v14680_v51  ;;  %14701 = vrcp.f32 %v9489_v58  ;;  %v7172_v58 = vadd.f32 %v21470_v33, %v18923_v23  ;;  %v21471_v51 = vld [vmem:[#allocation3_spill] sm:$0xff]  ;;  %v11771_v29 = vmul.f32 -1.442695, %v6817_v7  ;;  %v6825_v57 = vadd.f32 %v19142_v48, %v18921_v30 }
 0x9f4   : > { %v19316_v13 = vpop.f32.mrb[247].mxu1  ;;  %v14684_v11 = vpop.eup %14683  ;;  %10818 = vst [vmem:[%s18980_s30 + $0x240] sm:$0xff] %v14682_v15  ;;  %14703 = vpow2.f32 %v11763_v44  ;;  %13177 = vmatprep.mubr.bf16.mxu1 %v21471_v51 }
 0x9f5   : > { %v14686_v26 = vpop.eup %14685  ;;  %10817 = vst [vmem:[%s18980_s30 + $0x238] sm:$0xff] %v14684_v11  ;;  %14705 = vpow2.f32 %v11765_v2  ;;  %v11773_v2 = vmul.f32 -1.442695, %v7170_v43  ;;  %v19334_v15 = vpop.f32.mrb[184].mxu0  ;;  %v11779_v25 = vmul.f32 -1.442695, %v7172_v58 }
 0x9f6   : > { %v14688_v44 = vpop.eup %14687  ;;  %10819 = vst [vmem:[%s18980_s30 + $0x248] sm:$0xff] %v14686_v26  ;;  %14707 = vpow2.f32 %v11764_v36  ;;  %v19336_v11 = vpop.f32.mrb[248].mxu1  ;;  %v11777_v36 = vmul.f32 -1.442695, %v6819_v56  ;;  %v11784_v58 = vmul.f32 -1.442695, %v6825_v57 }
 0x9f7   : > { %v14690_v10 = vpop.eup %14689  ;;  %10823 = vst [vmem:[%s18980_s30 + $0x268] sm:$0xff] %v14688_v44  ;;  %14709 = vpow2.f32 %v11766_v63  ;;  %v19341_v7 = vpop.f32.mrb[185].mxu0 }
 0x9f8   : > { %v14692_v33 = vpop.eup %14691  ;;  %10825 = vst [vmem:[%s18980_s30 + $0x278] sm:$0xff] %v14690_v10  ;;  %14711 = vpow2.f32 %v11770_v28  ;;  %21472 = vst [vmem:[#allocation17_spill] sm:$0xff] %v19341_v7  ;;  %v19343_v63 = vpop.f32.mrb[249].mxu1  ;;  %v11778_v28 = vmul.f32 -1.442695, %v6821_v17 }
 0x9f9   : > { %v14694_v43 = vpop.eup %14693  ;;  %10824 = vst [vmem:[%s18980_s30 + $0x270] sm:$0xff] %v14692_v33  ;;  %14713 = vpow2.f32 %v11772_v27  ;;  %v19346_v26 = vpop.f32.mrb[186].mxu0  ;;  %v11780_v33 = vmul.f32 -1.442695, %v7174_v31  ;;  %7539 = vmatmul.mubr.bf16.gmra.mrb[36].mxu0 %v18695_v35 }
 0x9fa   : > { %v19348_v44 = vpop.f32.mrb[250].mxu1  ;;  %v14696_v10 = vpop.eup %14695  ;;  %10826 = vst [vmem:[%s18980_s30 + $0x280] sm:$0xff] %v14694_v43  ;;  %14715 = vpow2.f32 %v11771_v29  ;;  %v21477_v29 = vld [vmem:[#allocation5_spill] sm:$0xff]  ;;  %7548 = vmatprep.mubr.bf16.mxu0 %v21434_v22 }
 0x9fb   : > { %21473 = vst [vmem:[#allocation3_spill] sm:$0xff] %v19348_v44  ;;  %v19351_v48 = vpop.f32.mrb[187].mxu0  ;;  %v19353_v56 = vpop.f32.mrb[251].mxu1  ;;  %10830 = vst [vmem:[%s18980_s30 + $0x2a0] sm:$0xff] %v14696_v10  ;;  %14717 = vpow2.f32 %v11773_v2  ;;  %v21476_v44 = vld [vmem:[#allocation2_spill] sm:$0xff] }
 0x9fc   : > { %21474 = vst [vmem:[#allocation37_spill] sm:$0xff] %v19351_v48  ;;  %21475 = vst [vmem:[#allocation38_spill] sm:$0xff] %v19353_v56  ;;  %v14698_v7 = vpop.eup %14697  ;;  %14719 = vpow2.f32 %v11777_v36  ;;  %13178 = vmatmul.mubr.bf16.gmra.mrb[100].mxu1 %v21476_v44  ;;  %v19365_v36 = vpop.f32.mrb[252].mxu1 }
 0x9fd   : > { %v14700_v27 = vpop.eup %14699  ;;  %10832 = vst [vmem:[%s18980_s30 + $0x2b0] sm:$0xff] %v14698_v7  ;;  %14721 = vpow2.f32 %v11779_v25  ;;  %13181 = vmatprep.mubr.bf16.mxu1 %v21477_v29  ;;  %v19363_v7 = vpop.f32.mrb[188].mxu0  ;;  %21479 = vst [vmem:[#allocation5_spill] sm:$0xff] %v19365_v36 }
 0x9fe   : > { %v14702_v43 = vpop.eup %14701  ;;  %10831 = vst [vmem:[%s18980_s30 + $0x2a8] sm:$0xff] %v14700_v27  ;;  %14723 = vpow2.f32 %v11778_v28  ;;  %21478 = vst [vmem:[#allocation2_spill] sm:$0xff] %v19363_v7  ;;  %v19367_v10 = vpop.f32.mrb[189].mxu0 }
 0x9ff   : > { %v14704_v17 = vpop.eup %14703  ;;  %10833 = vst [vmem:[%s18980_s30 + $0x2b8] sm:$0xff] %v14702_v43  ;;  %14725 = vpow2.f32 %v11780_v33  ;;  %21480 = vst [vmem:[#allocation39_spill] sm:$0xff] %v19367_v10  ;;  %v19369_v25 = vpop.f32.mrb[253].mxu1 }
 0xa00   : > { %v14706_v2 = vpop.eup %14705  ;;  %v9493_v31 = vadd.f32 1.0, %v14704_v17  ;;  %14727 = vpow2.f32 %v11784_v58  ;;  %21481 = vst [vmem:[#allocation40_spill] sm:$0xff] %v19369_v25  ;;  %v19371_v48 = vpop.f32.mrb[190].mxu0 }
 0xa01   : > { %v14708_v35 = vpop.eup %14707  ;;  %v9495_v57 = vadd.f32 1.0, %v14706_v2  ;;  %21482 = vst [vmem:[#allocation41_spill] sm:$0xff] %v19371_v48  ;;  %v19373_v28 = vpop.f32.mrb[254].mxu1  ;;  %7549 = vmatmul.mubr.bf16.gmra.mrb[40].mxu0 %v18719_v53  ;;  %v21487_v48 = vld [vmem:[#allocation7_spill] sm:$0xff]  ;;  %v6827_v53 = vadd.f32 %v19147_v18, %v18925_v3 }
 0xa02   : > { %v14710_v27 = vpop.eup %14709  ;;  %14729 = vrcp.f32 %v9493_v31  ;;  %v9494_v56 = vadd.f32 1.0, %v14708_v35  ;;  %21483 = vst [vmem:[#allocation42_spill] sm:$0xff] %v19373_v28  ;;  %v19375_v17 = vpop.f32.mrb[191].mxu0  ;;  %v21486_v31 = vld [vmem:[#allocation4_spill] sm:$0xff]  ;;  %7558 = vmatprep.mubr.bf16.mxu0 %v21434_v22 }
 0xa03   : > { %v14712_v43 = vpop.eup %14711  ;;  %14731 = vrcp.f32 %v9495_v57  ;;  %v9496_v33 = vadd.f32 1.0, %v14710_v27  ;;  %21484 = vst [vmem:[#allocation43_spill] sm:$0xff] %v19375_v17  ;;  %v19377_v58 = vpop.f32.mrb[255].mxu1  ;;  %v7178_v27 = vadd.f32 %v19144_v62, %v18923_v23  ;;  %v11785_v7 = vmul.f32 -1.442695, %v6827_v53 }
 0xa04   : > { %v14714_v36 = vpop.eup %14713  ;;  %14733 = vrcp.f32 %v9494_v56  ;;  %v9500_v2 = vadd.f32 1.0, %v14712_v43  ;;  %21485 = vst [vmem:[#allocation44_spill] sm:$0xff] %v19377_v58  ;;  %13182 = vmatmul.mubr.bf16.gmra.mrb[104].mxu1 %v21486_v31  ;;  %v7180_v58 = vadd.f32 %v19149_v52, %v18927_v34  ;;  %v19391_v17 = vpop.f32.mrb[0].mxu1 }
 0xa05   : > { %v14716_v10 = vpop.eup %14715  ;;  %14735 = vrcp.f32 %v9496_v33  ;;  %v9502_v25 = vadd.f32 1.0, %v14714_v36  ;;  %13185 = vmatprep.mubr.bf16.mxu1 %v21487_v48  ;;  %v19387_v33 = vpop.f32.mrb[192].mxu0  ;;  %21489 = vst [vmem:[#allocation45_spill] sm:$0xff] %v19391_v17 }
 0xa06   : > { %v14718_v35 = vpop.eup %14717  ;;  %14737 = vrcp.f32 %v9500_v2  ;;  %v9501_v28 = vadd.f32 1.0, %v14716_v10  ;;  %21488 = vst [vmem:[#allocation4_spill] sm:$0xff] %v19387_v33  ;;  %v11786_v33 = vmul.f32 -1.442695, %v7178_v27  ;;  %v21493_v27 = vld [vmem:[#allocation20_spill] sm:$0xff] }
 0xa07   : > { %v14720_v57 = vpop.eup %14719  ;;  %14739 = vrcp.f32 %v9502_v25  ;;  %v9503_v56 = vadd.f32 1.0, %v14718_v35  ;;  %v19393_v25 = vpop.f32.mrb[193].mxu0 }
 0xa08   : > { %v14722_v43 = vpop.eup %14721  ;;  %14741 = vrcp.f32 %v9501_v28  ;;  %v9507_v36 = vadd.f32 1.0, %v14720_v57  ;;  %21490 = vst [vmem:[#allocation46_spill] sm:$0xff] %v19393_v25  ;;  %v6829_v28 = vadd.f32 %v19152_v8, %v18921_v30  ;;  %v21492_v25 = vld [vmem:[#allocation19_spill] sm:$0xff]  ;;  %v11787_v8 = vmul.f32 -1.442695, %v7180_v58  ;;  %v21497_v58 = vld [vmem:[#allocation9_spill] sm:$0xff] }
 0xa09   : > { %v14724_v2 = vpop.eup %14723  ;;  %14743 = vrcp.f32 %v9503_v56  ;;  %v9509_v10 = vadd.f32 1.0, %v14722_v43  ;;  %v21491_v56 = vld [vmem:[#allocation18_spill] sm:$0xff]  ;;  %v6831_v48 = vadd.f32 %v21492_v25, %v18925_v3  ;;  %7559 = vmatmul.mubr.bf16.gmra.mrb[44].mxu0 %v18716_v55  ;;  %v6835_v25 = vadd.f32 %v19165_v6, %v18921_v30 }
 0xa0a   : > { %v14726_v35 = vpop.eup %14725  ;;  %14745 = vrcp.f32 %v9507_v36  ;;  %v9508_v62 = vadd.f32 1.0, %v14724_v2  ;;  %v7182_v43 = vadd.f32 %v21491_v56, %v18923_v23  ;;  %v19401_v36 = vpop.f32.mrb[1].mxu1  ;;  %v11791_v53 = vmul.f32 -1.442695, %v6829_v28  ;;  %7568 = vmatprep.mubr.bf16.mxu0 %v21434_v22 }
 0xa0b   : > { %v14728_v18 = vpop.eup %14727  ;;  %14747 = vrcp.f32 %v9509_v10  ;;  %v9510_v57 = vadd.f32 1.0, %v14726_v35  ;;  %v7184_v10 = vadd.f32 %v21493_v27, %v18927_v34  ;;  %v21494_v35 = vld [vmem:[#allocation6_spill] sm:$0xff]  ;;  %v19413_v56 = vpop.f32.mrb[2].mxu1  ;;  %v11792_v6 = vmul.f32 -1.442695, %v6831_v48 }
 0xa0c   : > { %v14730_v52 = vpop.eup %14729  ;;  %14749 = vrcp.f32 %v9508_v62  ;;  %v9514_v17 = vadd.f32 1.0, %v14728_v18  ;;  %13186 = vmatmul.mubr.bf16.gmra.mrb[108].mxu1 %v21494_v35  ;;  %v19411_v18 = vpop.f32.mrb[194].mxu0  ;;  %21496 = vst [vmem:[#allocation19_spill] sm:$0xff] %v19413_v56  ;;  %v11798_v48 = vmul.f32 -1.442695, %v6835_v25  ;;  %v21502_v25 = vld [vmem:[#allocation8_spill] sm:$0xff] }
 0xa0d   : > { %v14732_v2 = vpop.eup %14731  ;;  %10837 = vst [vmem:[%s18980_s30 + $0x2d8] sm:$0xff] %v14730_v52  ;;  %14751 = vrcp.f32 %v9510_v57  ;;  %21495 = vst [vmem:[#allocation18_spill] sm:$0xff] %v19411_v18  ;;  %13189 = vmatprep.mubr.bf16.mxu1 %v21497_v58  ;;  %v11793_v57 = vmul.f32 -1.442695, %v7182_v43  ;;  %v21498_v52 = vld [vmem:[#allocation21_spill] sm:$0xff]  ;;  %v19423_v27 = vpop.f32.mrb[195].mxu0 }
 0xa0e   : > { %v14734_v62 = vpop.eup %14733  ;;  %10839 = vst [vmem:[%s18980_s30 + $0x2e8] sm:$0xff] %v14732_v2  ;;  %14753 = vrcp.f32 %v9514_v17  ;;  %v7188_v17 = vadd.f32 %v19167_v12, %v18923_v23  ;;  %v6837_v2 = vadd.f32 %v21498_v52, %v18925_v3  ;;  %v19425_v56 = vpop.f32.mrb[3].mxu1  ;;  %v21500_v43 = vld [vmem:[#allocation22_spill] sm:$0xff] }
 0xa0f   : > { %v14736_v55 = vpop.eup %14735  ;;  %10838 = vst [vmem:[%s18980_s30 + $0x2e0] sm:$0xff] %v14734_v62  ;;  %14755 = vpow2.f32 %v11786_v33  ;;  %21499 = vst [vmem:[#allocation20_spill] sm:$0xff] %v19425_v56  ;;  %v11794_v33 = vmul.f32 -1.442695, %v7184_v10  ;;  %v7190_v12 = vadd.f32 %v21500_v43, %v18927_v34 }
 0xa10   : > { %v14738_v28 = vpop.eup %14737  ;;  %10840 = vst [vmem:[%s18980_s30 + $0x2f0] sm:$0xff] %v14736_v55  ;;  %14757 = vpow2.f32 %v11785_v7  ;;  %v21501_v7 = vld [vmem:[#allocation23_spill] sm:$0xff]  ;;  %v11800_v56 = vmul.f32 -1.442695, %v7188_v17  ;;  %v19441_v17 = vpop.f32.mrb[196].mxu0 }
 0xa11   : > { %v14740_v18 = vpop.eup %14739  ;;  %10844 = vst [vmem:[%s18980_s30 + $0x310] sm:$0xff] %v14738_v28  ;;  %14759 = vpow2.f32 %v11787_v8  ;;  %v6839_v55 = vadd.f32 %v21501_v7, %v18921_v30  ;;  %v7192_v8 = vadd.f32 %v19177_v54, %v18923_v23  ;;  %v11799_v28 = vmul.f32 -1.442695, %v6837_v2  ;;  %7569 = vmatmul.mubr.bf16.gmra.mrb[48].mxu0 %v18731_v1  ;;  %v19443_v54 = vpop.f32.mrb[4].mxu1 }
 0xa12   : > { %v14742_v62 = vpop.eup %14741  ;;  %10846 = vst [vmem:[%s18980_s30 + $0x320] sm:$0xff] %v14740_v18  ;;  %14761 = vpow2.f32 %v11791_v53  ;;  %v11801_v53 = vmul.f32 -1.442695, %v7190_v12  ;;  %7578 = vmatprep.mubr.bf16.mxu0 %v21434_v22  ;;  %v19450_v12 = vpop.f32.mrb[5].mxu1 }
 0xa13   : > { %v14744_v52 = vpop.eup %14743  ;;  %10845 = vst [vmem:[%s18980_s30 + $0x318] sm:$0xff] %v14742_v62  ;;  %14763 = vpow2.f32 %v11793_v57  ;;  %v11805_v57 = vmul.f32 -1.442695, %v6839_v55  ;;  %v11807_v1 = vmul.f32 -1.442695, %v7192_v8  ;;  %21504 = vst [vmem:[#allocation6_spill] sm:$0xff] %v19450_v12 }
 0xa14   : > { %v14746_v10 = vpop.eup %14745  ;;  %10847 = vst [vmem:[%s18980_s30 + $0x328] sm:$0xff] %v14744_v52  ;;  %14765 = vpow2.f32 %v11792_v6  ;;  %13190 = vmatmul.mubr.bf16.gmra.mrb[112].mxu1 %v21502_v25  ;;  %v21503_v6 = vld [vmem:[#allocation11_spill] sm:$0xff]  ;;  %v19455_v7 = vpop.f32.mrb[6].mxu1 }
 0xa15   : > { %v14748_v43 = vpop.eup %14747  ;;  %10851 = vst [vmem:[%s18980_s30 + $0x348] sm:$0xff] %v14746_v10  ;;  %14767 = vpow2.f32 %v11794_v33  ;;  %13193 = vmatprep.mubr.bf16.mxu1 %v21503_v6  ;;  %v19448_v33 = vpop.f32.mrb[197].mxu0  ;;  %21506 = vst [vmem:[#allocation21_spill] sm:$0xff] %v19455_v7 }
 0xa16   : > { %v14750_v18 = vpop.eup %14749  ;;  %10853 = vst [vmem:[%s18980_s30 + $0x358] sm:$0xff] %v14748_v43  ;;  %14769 = vpow2.f32 %v11798_v48  ;;  %v19453_v48 = vpop.f32.mrb[198].mxu0 }
 0xa17   : > { %v14752_v2 = vpop.eup %14751  ;;  %10852 = vst [vmem:[%s18980_s30 + $0x350] sm:$0xff] %v14750_v18  ;;  %14771 = vpow2.f32 %v11800_v56  ;;  %21505 = vst [vmem:[#allocation9_spill] sm:$0xff] %v19453_v48  ;;  %v19458_v52 = vpop.f32.mrb[199].mxu0 }
 0xa18   : > { %v14754_v62 = vpop.eup %14753  ;;  %10854 = vst [vmem:[%s18980_s30 + $0x360] sm:$0xff] %v14752_v2  ;;  %14773 = vpow2.f32 %v11799_v28  ;;  %21507 = vst [vmem:[#allocation22_spill] sm:$0xff] %v19458_v52  ;;  %v19460_v10 = vpop.f32.mrb[7].mxu1 }
 0xa19   : > { %v14756_v55 = vpop.eup %14755  ;;  %10858 = vst [vmem:[%s18980_s30 + $0x380] sm:$0xff] %v14754_v62  ;;  %14775 = vpow2.f32 %v11801_v53  ;;  %21508 = vst [vmem:[#allocation23_spill] sm:$0xff] %v19460_v10  ;;  %7579 = vmatmul.mubr.bf16.gmra.mrb[52].mxu0 %v18728_v60  ;;  %v21509_v62 = vld [vmem:[#allocation10_spill] sm:$0xff]  ;;  %v21510_v10 = vld [vmem:[#allocation13_spill] sm:$0xff]  ;;  %v6841_v60 = vadd.f32 %v19179_v46, %v18925_v3 }
 0xa1a   : > { %v14758_v56 = vpop.eup %14757  ;;  %v9516_v8 = vadd.f32 1.0, %v14756_v55  ;;  %14777 = vpow2.f32 %v11805_v57  ;;  %7588 = vmatprep.mubr.bf16.mxu0 %v21434_v22 }
 0xa1b   : > { %v14760_v43 = vpop.eup %14759  ;;  %v9515_v18 = vadd.f32 1.0, %v14758_v56  ;;  %14779 = vpow2.f32 %v11807_v1 }
 0xa1c   : > { %v14762_v12 = vpop.eup %14761  ;;  %14781 = vrcp.f32 %v9516_v8  ;;  %v9517_v28 = vadd.f32 1.0, %v14760_v43  ;;  %13194 = vmatmul.mubr.bf16.gmra.mrb[116].mxu1 %v21509_v62 }
 0xa1d   : > { %v14764_v2 = vpop.eup %14763  ;;  %14783 = vrcp.f32 %v9515_v18  ;;  %v9521_v48 = vadd.f32 1.0, %v14762_v12  ;;  %13197 = vmatprep.mubr.bf16.mxu1 %v21510_v10 }
 0xa1e   : > { %v14766_v53 = vpop.eup %14765  ;;  %14785 = vrcp.f32 %v9517_v28  ;;  %v9523_v52 = vadd.f32 1.0, %v14764_v2  ;;  %v21511_v28 = vld [vmem:[#allocation24_spill] sm:$0xff] }
 0xa1f   : > { %v14768_v57 = vpop.eup %14767  ;;  %14787 = vrcp.f32 %v9521_v48  ;;  %v9522_v1 = vadd.f32 1.0, %v14766_v53  ;;  %v7194_v2 = vadd.f32 %v21511_v28, %v18927_v34  ;;  %v6845_v48 = vadd.f32 %v19197_v41, %v18921_v30 }
 0xa20   : > { %v14770_v55 = vpop.eup %14769  ;;  %14789 = vrcp.f32 %v9523_v52  ;;  %v9524_v56 = vadd.f32 1.0, %v14768_v57  ;;  %v7198_v57 = vadd.f32 %v19202_v9, %v18923_v23  ;;  %v7200_v9 = vadd.f32 %v19209_v0, %v18927_v34 }
 0xa21   : > { %v14772_v8 = vpop.eup %14771  ;;  %14791 = vrcp.f32 %v9522_v1  ;;  %v9528_v12 = vadd.f32 1.0, %v14770_v55  ;;  %v11806_v55 = vmul.f32 -1.442695, %v6841_v60  ;;  %7589 = vmatmul.mubr.bf16.gmra.mrb[56].mxu0 %v18743_v47  ;;  %v11812_v60 = vmul.f32 -1.442695, %v6845_v48  ;;  %v21515_v47 = vld [vmem:[#allocation26_spill] sm:$0xff] }
 0xa22   : > { %v14774_v43 = vpop.eup %14773  ;;  %14793 = vrcp.f32 %v9524_v56  ;;  %v9530_v18 = vadd.f32 1.0, %v14772_v8  ;;  %v21512_v56 = vld [vmem:[#allocation25_spill] sm:$0xff]  ;;  %7598 = vmatprep.mubr.bf16.mxu0 %v21434_v22  ;;  %v6849_v28 = vadd.f32 %v21515_v47, %v18921_v30  ;;  %v7202_v0 = vadd.f32 %v19216_v4, %v18923_v23 }
 0xa23   : > { %v14776_v10 = vpop.eup %14775  ;;  %14795 = vrcp.f32 %v9528_v12  ;;  %v9529_v7 = vadd.f32 1.0, %v14774_v43  ;;  %v6847_v8 = vadd.f32 %v21512_v56, %v18925_v3  ;;  %v21513_v12 = vld [vmem:[#allocation12_spill] sm:$0xff]  ;;  %v11815_v56 = vmul.f32 -1.442695, %v7200_v9 }
 0xa24   : > { %v14778_v52 = vpop.eup %14777  ;;  %14797 = vrcp.f32 %v9530_v18  ;;  %v9531_v53 = vadd.f32 1.0, %v14776_v10  ;;  %13198 = vmatmul.mubr.bf16.gmra.mrb[120].mxu1 %v21513_v12  ;;  %v11808_v10 = vmul.f32 -1.442695, %v7194_v2  ;;  %v21514_v18 = vld [vmem:[#allocation15_spill] sm:$0xff]  ;;  %v11814_v2 = vmul.f32 -1.442695, %v7198_v57 }
 0xa25   : > { %v14780_v46 = vpop.eup %14779  ;;  %14799 = vrcp.f32 %v9529_v7  ;;  %v9535_v1 = vadd.f32 1.0, %v14778_v52  ;;  %13201 = vmatprep.mubr.bf16.mxu1 %v21514_v18  ;;  %v11819_v4 = vmul.f32 -1.442695, %v6849_v28  ;;  %v6857_v47 = vadd.f32 %v19244_v16, %v18925_v3 }
 0xa26   : > { %v14782_v41 = vpop.eup %14781  ;;  %14801 = vrcp.f32 %v9531_v53  ;;  %v9537_v43 = vadd.f32 1.0, %v14780_v46  ;;  %v11813_v46 = vmul.f32 -1.442695, %v6847_v8  ;;  %v19499_v8 = vpop.f32.mrb[8].mxu1 }
 0xa27   : > { %v14784_v7 = vpop.eup %14783  ;;  %10860 = vst [vmem:[%s18980_s30 + $0x390] sm:$0xff] %v14782_v41  ;;  %14803 = vrcp.f32 %v9535_v1  ;;  %v6851_v1 = vadd.f32 %v19218_v37, %v18925_v3  ;;  %v7204_v41 = vadd.f32 %v19223_v45, %v18927_v34  ;;  %v7208_v45 = vadd.f32 %v19241_v40, %v18923_v23  ;;  %v21516_v40 = vld [vmem:[#allocation14_spill] sm:$0xff] }
 0xa28   : > { %v14786_v52 = vpop.eup %14785  ;;  %10859 = vst [vmem:[%s18980_s30 + $0x388] sm:$0xff] %v14784_v7  ;;  %14805 = vrcp.f32 %v9537_v43  ;;  %v19497_v43 = vpop.f32.mrb[200].mxu0 }
 0xa29   : > { %v14788_v53 = vpop.eup %14787  ;;  %10861 = vst [vmem:[%s18980_s30 + $0x398] sm:$0xff] %v14786_v52  ;;  %14807 = vpow2.f32 %v11806_v55  ;;  %v6855_v55 = vadd.f32 %v19239_v50, %v18921_v30  ;;  %v19504_v9 = vpop.f32.mrb[201].mxu0  ;;  %v11820_v50 = vmul.f32 -1.442695, %v6851_v1  ;;  %7599 = vmatmul.mubr.bf16.gmra.mrb[60].mxu0 %v18740_v42 }
 0xa2a   : > { %v14790_v48 = vpop.eup %14789  ;;  %10865 = vst [vmem:[%s18980_s30 + $0x3b8] sm:$0xff] %v14788_v53  ;;  %14809 = vpow2.f32 %v11808_v10  ;;  %v11821_v10 = vmul.f32 -1.442695, %v7202_v0  ;;  %v19506_v7 = vpop.f32.mrb[9].mxu1  ;;  %v11822_v0 = vmul.f32 -1.442695, %v7204_v41  ;;  %7608 = vmatprep.mubr.bf16.mxu0 %v21434_v22 }
 0xa2b   : > { %v14792_v57 = vpop.eup %14791  ;;  %10867 = vst [vmem:[%s18980_s30 + $0x3c8] sm:$0xff] %v14790_v48  ;;  %14811 = vpow2.f32 %v11812_v60  ;;  %v19511_v28 = vpop.f32.mrb[202].mxu0  ;;  %v11826_v1 = vmul.f32 -1.442695, %v6855_v55  ;;  %v11828_v48 = vmul.f32 -1.442695, %v7208_v45 }
 0xa2c   : > { %v14794_v37 = vpop.eup %14793  ;;  %10866 = vst [vmem:[%s18980_s30 + $0x3c0] sm:$0xff] %v14792_v57  ;;  %14813 = vpow2.f32 %v11814_v2  ;;  %v19513_v52 = vpop.f32.mrb[10].mxu1  ;;  %13202 = vmatmul.mubr.bf16.gmra.mrb[124].mxu1 %v21516_v40 }
 0xa2d   : > { %v14796_v60 = vpop.eup %14795  ;;  %10868 = vst [vmem:[%s18980_s30 + $0x3d0] sm:$0xff] %v14794_v37  ;;  %14815 = vpow2.f32 %v11813_v46  ;;  %v19518_v53 = vpop.f32.mrb[203].mxu0 }
 0xa2e   : > { %v14798_v2 = vpop.eup %14797  ;;  %10872 = vst [vmem:[%s18980_s30 + $0x3f0] sm:$0xff] %v14796_v60  ;;  %14817 = vpow2.f32 %v11815_v56  ;;  %v19520_v46 = vpop.f32.mrb[11].mxu1  ;;  %v11827_v56 = vmul.f32 -1.442695, %v6857_v47 }
 0xa2f   : > { %v14800_v16 = vpop.eup %14799  ;;  %10874 = vst [vmem:[%s18980_s30 + $0x400] sm:$0xff] %v14798_v2  ;;  %14819 = vpow2.f32 %v11819_v4  ;;  %v19528_v60 = vpop.f32.mrb[204].mxu0 }
 0xa30   : > { %v14802_v42 = vpop.eup %14801  ;;  %10873 = vst [vmem:[%s18980_s30 + $0x3f8] sm:$0xff] %v14800_v16  ;;  %14821 = vpow2.f32 %v11821_v10  ;;  %v19530_v40 = vpop.f32.mrb[12].mxu1 }
 0xa31   : > { %v14804_v57 = vpop.eup %14803  ;;  %10875 = vst [vmem:[%s18980_s30 + $0x408] sm:$0xff] %v14802_v42  ;;  %14823 = vpow2.f32 %v11820_v50  ;;  %v19532_v2 = vpop.f32.mrb[205].mxu0  ;;  %7609 = vmatmul.mubr.bf16.gmra.mrb[64].mxu0 %v18755_v21 }
 0xa32   : > { %v14806_v41 = vpop.eup %14805  ;;  %10879 = vst [vmem:[%s18980_s30 + $0x428] sm:$0xff] %v14804_v57  ;;  %14825 = vpow2.f32 %v11822_v0  ;;  %v19534_v10 = vpop.f32.mrb[13].mxu1  ;;  %7618 = vmatprep.mubr.bf16.mxu0 %v21434_v22 }
 0xa33   : > { %v14808_v37 = vpop.eup %14807  ;;  %10881 = vst [vmem:[%s18980_s30 + $0x438] sm:$0xff] %v14806_v41  ;;  %14827 = vpow2.f32 %v11826_v1  ;;  %21517 = vst [vmem:[#allocation8_spill] sm:$0xff] %v19534_v10  ;;  %v19536_v47 = vpop.f32.mrb[206].mxu0 }
 0xa34   : > { %v14810_v4 = vpop.eup %14809  ;;  %v9536_v55 = vadd.f32 1.0, %v14808_v37  ;;  %14829 = vpow2.f32 %v11828_v48  ;;  %21518 = vst [vmem:[#allocation11_spill] sm:$0xff] %v19536_v47 }
 0xa35   : > { %v14812_v45 = vpop.eup %14811  ;;  %v9538_v50 = vadd.f32 1.0, %v14810_v4  ;;  %14831 = vpow2.f32 %v11827_v56 }
 0xa36   : > { %v14814_v0 = vpop.eup %14813  ;;  %14833 = vrcp.f32 %v9536_v55  ;;  %v9542_v16 = vadd.f32 1.0, %v14812_v45  ;;  %v7210_v55 = vadd.f32 %v19246_v59, %v18927_v34  ;;  %v21519_v59 = vld [vmem:[#allocation27_spill] sm:$0xff] }
 0xa37   : > { %v14816_v1 = vpop.eup %14815  ;;  %14835 = vrcp.f32 %v9538_v50  ;;  %v9544_v42 = vadd.f32 1.0, %v14814_v0  ;;  %v6859_v50 = vadd.f32 %v19249_v5, %v18921_v30 }
 0xa38   : > { %v14818_v48 = vpop.eup %14817  ;;  %14837 = vrcp.f32 %v9542_v16  ;;  %v9543_v57 = vadd.f32 1.0, %v14816_v1  ;;  %v7212_v1 = vadd.f32 %v19251_v38, %v18923_v23 }
 0xa39   : > { %v14820_v41 = vpop.eup %14819  ;;  %14839 = vrcp.f32 %v9544_v42  ;;  %v9545_v37 = vadd.f32 1.0, %v14818_v48  ;;  %7619 = vmatmul.mubr.bf16.gmra.mrb[68].mxu0 %v18752_v24 }
 0xa3a   : > { %v14822_v4 = vpop.eup %14821  ;;  %14841 = vrcp.f32 %v9543_v57  ;;  %v9549_v56 = vadd.f32 1.0, %v14820_v41  ;;  %v6861_v57 = vadd.f32 %v21519_v59, %v18925_v3  ;;  %7628 = vmatprep.mubr.bf16.mxu0 %v21434_v22  ;;  %v11829_v41 = vmul.f32 -1.442695, %v7210_v55  ;;  %v21521_v55 = vld [vmem:[#allocation29_spill] sm:$0xff] }
 0xa3b   : > { %v14824_v47 = vpop.eup %14823  ;;  %14843 = vrcp.f32 %v9545_v37  ;;  %v9551_v21 = vadd.f32 1.0, %v14822_v4  ;;  %v21520_v37 = vld [vmem:[#allocation28_spill] sm:$0xff] }
 0xa3c   : > { %v14826_v45 = vpop.eup %14825  ;;  %14845 = vrcp.f32 %v9549_v56  ;;  %v9550_v10 = vadd.f32 1.0, %v14824_v47  ;;  %v7214_v4 = vadd.f32 %v21520_v37, %v18927_v34  ;;  %v11833_v56 = vmul.f32 -1.442695, %v6859_v50  ;;  %v21522_v50 = vld [vmem:[#allocation30_spill] sm:$0xff] }
 0xa3d   : > { %v14828_v0 = vpop.eup %14827  ;;  %14847 = vrcp.f32 %v9551_v21  ;;  %v9552_v16 = vadd.f32 1.0, %v14826_v45  ;;  %v19554_v21 = vpop.f32.mrb[14].mxu1  ;;  %v6867_v59 = vadd.f32 %v21522_v50, %v18925_v3 }
 0xa3e   : > { %v14830_v42 = vpop.eup %14829  ;;  %14849 = vrcp.f32 %v9550_v10  ;;  %v9556_v48 = vadd.f32 1.0, %v14828_v0  ;;  %v6865_v10 = vadd.f32 %v19264_v14, %v18921_v30  ;;  %v11835_v0 = vmul.f32 -1.442695, %v7212_v1  ;;  %v19564_v14 = vpop.f32.mrb[15].mxu1 }
 0xa3f   : > { %v14832_v47 = vpop.eup %14831  ;;  %14851 = vrcp.f32 %v9552_v16  ;;  %v9558_v5 = vadd.f32 1.0, %v14830_v42  ;;  %v7218_v16 = vadd.f32 %v21521_v55, %v18923_v23  ;;  %v11836_v1 = vmul.f32 -1.442695, %v7214_v4 }
 0xa40   : > { %v14834_v38 = vpop.eup %14833  ;;  %14853 = vrcp.f32 %v9556_v48  ;;  %v9557_v24 = vadd.f32 1.0, %v14832_v47  ;;  %v11834_v48 = vmul.f32 -1.442695, %v6861_v57  ;;  %v19562_v47 = vpop.f32.mrb[207].mxu0  ;;  %v11840_v57 = vmul.f32 -1.442695, %v6865_v10 }
 0xa41   : > { %v14836_v45 = vpop.eup %14835  ;;  %10880 = vst [vmem:[%s18980_s30 + $0x430] sm:$0xff] %v14834_v38  ;;  %14855 = vrcp.f32 %v9558_v5  ;;  %v21523_v5 = vld [vmem:[#allocation31_spill] sm:$0xff]  ;;  %v11842_v50 = vmul.f32 -1.442695, %v7218_v16  ;;  %7629 = vmatmul.mubr.bf16.gmra.mrb[72].mxu0 %v21471_v51  ;;  %v21524_v10 = vld [vmem:[#allocation32_spill] sm:$0xff]  ;;  %v21525_v16 = vld [vmem:[#allocation33_spill] sm:$0xff] }
 0xa42   : > { %v14838_v42 = vpop.eup %14837  ;;  %10882 = vst [vmem:[%s18980_s30 + $0x440] sm:$0xff] %v14836_v45  ;;  %14857 = vrcp.f32 %v9557_v24  ;;  %v7220_v38 = vadd.f32 %v21523_v5, %v18927_v34  ;;  %v6869_v24 = vadd.f32 %v19272_v61, %v18921_v30  ;;  %7638 = vmatprep.mubr.bf16.mxu0 %v21434_v22 }
 0xa43   : > { %v14840_v37 = vpop.eup %14839  ;;  %10886 = vst [vmem:[%s18980_s30 + $0x460] sm:$0xff] %v14838_v42  ;;  %14859 = vpow2.f32 %v11829_v41  ;;  %v7222_v41 = vadd.f32 %v19274_v19, %v18923_v23  ;;  %v6871_v42 = vadd.f32 %v21524_v10, %v18925_v3  ;;  %v7224_v19 = vadd.f32 %v21525_v16, %v18927_v34 }
 0xa44   : > { %v14842_v55 = vpop.eup %14841  ;;  %10888 = vst [vmem:[%s18980_s30 + $0x470] sm:$0xff] %v14840_v37  ;;  %14861 = vpow2.f32 %v11833_v56  ;;  %v11841_v56 = vmul.f32 -1.442695, %v6867_v59  ;;  %v11847_v51 = vmul.f32 -1.442695, %v6869_v24  ;;  %v19586_v59 = vpop.f32.mrb[16].mxu1 }
 0xa45   : > { %v14844_v45 = vpop.eup %14843  ;;  %10887 = vst [vmem:[%s18980_s30 + $0x468] sm:$0xff] %v14842_v55  ;;  %14863 = vpow2.f32 %v11835_v0  ;;  %v11843_v0 = vmul.f32 -1.442695, %v7220_v38  ;;  %v11849_v55 = vmul.f32 -1.442695, %v7222_v41  ;;  %v19591_v38 = vpop.f32.mrb[17].mxu1 }
 0xa46   : > { %v14846_v4 = vpop.eup %14845  ;;  %10889 = vst [vmem:[%s18980_s30 + $0x478] sm:$0xff] %v14844_v45  ;;  %14865 = vpow2.f32 %v11834_v48  ;;  %v19584_v48 = vpop.f32.mrb[208].mxu0 }
 0xa47   : > { %v14848_v61 = vpop.eup %14847  ;;  %10893 = vst [vmem:[%s18980_s30 + $0x498] sm:$0xff] %v14846_v4  ;;  %14867 = vpow2.f32 %v11836_v1  ;;  %v19589_v1 = vpop.f32.mrb[209].mxu0 }
 0xa48   : > { %v14850_v37 = vpop.eup %14849  ;;  %10895 = vst [vmem:[%s18980_s30 + $0x4a8] sm:$0xff] %v14848_v61  ;;  %14869 = vpow2.f32 %v11840_v57  ;;  %v11848_v57 = vmul.f32 -1.442695, %v6871_v42  ;;  %v19594_v24 = vpop.f32.mrb[210].mxu0  ;;  %v11850_v61 = vmul.f32 -1.442695, %v7224_v19 }
 0xa49   : > { %v14852_v5 = vpop.eup %14851  ;;  %10894 = vst [vmem:[%s18980_s30 + $0x4a0] sm:$0xff] %v14850_v37  ;;  %14871 = vpow2.f32 %v11842_v50  ;;  %v19596_v4 = vpop.f32.mrb[18].mxu1  ;;  %7639 = vmatmul.mubr.bf16.gmra.mrb[76].mxu0 %v21476_v44 }
 0xa4a   : > { %v14854_v45 = vpop.eup %14853  ;;  %10896 = vst [vmem:[%s18980_s30 + $0x4b0] sm:$0xff] %v14852_v5  ;;  %14873 = vpow2.f32 %v11841_v56  ;;  %v19599_v50 = vpop.f32.mrb[211].mxu0  ;;  %7648 = vmatprep.mubr.bf16.mxu0 %v21434_v22 }
 0xa4b   : > { %v14856_v10 = vpop.eup %14855  ;;  %10900 = vst [vmem:[%s18980_s30 + $0x4d0] sm:$0xff] %v14854_v45  ;;  %14875 = vpow2.f32 %v11843_v0  ;;  %21526 = vst [vmem:[#allocation10_spill] sm:$0xff] %v19599_v50  ;;  %v19601_v41 = vpop.f32.mrb[19].mxu1 }
 0xa4c   : > { %21527 = vst [vmem:[#allocation24_spill] sm:$0xff] %v19601_v41  ;;  %v14858_v16 = vpop.eup %14857  ;;  %10902 = vst [vmem:[%s18980_s30 + $0x4e0] sm:$0xff] %v14856_v10  ;;  %14877 = vpow2.f32 %v11847_v51  ;;  %v19607_v41 = vpop.f32.mrb[212].mxu0 }
 0xa4d   : > { %v14860_v37 = vpop.eup %14859  ;;  %10901 = vst [vmem:[%s18980_s30 + $0x4d8] sm:$0xff] %v14858_v16  ;;  %14879 = vpow2.f32 %v11849_v55  ;;  %21528 = vst [vmem:[#allocation25_spill] sm:$0xff] %v19607_v41  ;;  %v19609_v10 = vpop.f32.mrb[20].mxu1 }
 0xa4e   : > { %v14862_v56 = vpop.eup %14861  ;;  %v9559_v42 = vadd.f32 1.0, %v14860_v37  ;;  %14881 = vpow2.f32 %v11848_v57  ;;  %21529 = vst [vmem:[#allocation12_spill] sm:$0xff] %v19609_v10 }
 0xa4f   : > { %v14864_v5 = vpop.eup %14863  ;;  %v9563_v0 = vadd.f32 1.0, %v14862_v56  ;;  %14883 = vpow2.f32 %v11850_v61 }
 0xa50   : > { %v14866_v19 = vpop.eup %14865  ;;  %14885 = vrcp.f32 %v9559_v42  ;;  %v9565_v45 = vadd.f32 1.0, %v14864_v5  ;;  %v21530_v5 = vld [vmem:[#allocation34_spill] sm:$0xff] }
 0xa51   : > { %v14868_v51 = vpop.eup %14867  ;;  %14887 = vrcp.f32 %v9563_v0  ;;  %v9564_v55 = vadd.f32 1.0, %v14866_v19  ;;  %v6875_v41 = vadd.f32 %v21530_v5, %v18921_v30  ;;  %7649 = vmatmul.mubr.bf16.gmra.mrb[80].mxu0 %v21477_v29  ;;  %v7228_v19 = vadd.f32 %v19296_v32, %v18923_v23 }
 0xa52   : > { %v14870_v16 = vpop.eup %14869  ;;  %14889 = vrcp.f32 %v9565_v45  ;;  %v9566_v44 = vadd.f32 1.0, %v14868_v51  ;;  %7658 = vmatprep.mubr.bf16.mxu0 %v21434_v22  ;;  %v7230_v29 = vadd.f32 %v19302_v39, %v18927_v34 }
 0xa53   : > { %v14872_v37 = vpop.eup %14871  ;;  %14891 = vrcp.f32 %v9564_v55  ;;  %v9570_v57 = vadd.f32 1.0, %v14870_v16  ;;  %v21531_v55 = vld [vmem:[#allocation35_spill] sm:$0xff]  ;;  %v11854_v32 = vmul.f32 -1.442695, %v6875_v41  ;;  %v11856_v5 = vmul.f32 -1.442695, %v7228_v19 }
 0xa54   : > { %v14874_v50 = vpop.eup %14873  ;;  %14893 = vrcp.f32 %v9566_v44  ;;  %v9572_v56 = vadd.f32 1.0, %v14872_v37  ;;  %v6877_v16 = vadd.f32 %v21531_v55, %v18925_v3  ;;  %v19628_v55 = vpop.f32.mrb[213].mxu0  ;;  %v7234_v19 = vadd.f32 %v19316_v13, %v18927_v34 }
 0xa55   : > { %v14876_v61 = vpop.eup %14875  ;;  %14895 = vrcp.f32 %v9570_v57  ;;  %v9571_v42 = vadd.f32 1.0, %v14874_v50  ;;  %v19630_v41 = vpop.f32.mrb[21].mxu1  ;;  %v7238_v13 = vadd.f32 %v19336_v11, %v18923_v23  ;;  %v7240_v11 = vadd.f32 %v19343_v63, %v18927_v34 }
 0xa56   : > { %v14878_v10 = vpop.eup %14877  ;;  %14897 = vrcp.f32 %v9572_v56  ;;  %v9573_v0 = vadd.f32 1.0, %v14876_v61  ;;  %v21532_v56 = vld [vmem:[#allocation36_spill] sm:$0xff]  ;;  %v11855_v39 = vmul.f32 -1.442695, %v6877_v16 }
 0xa57   : > { %v14880_v45 = vpop.eup %14879  ;;  %14899 = vrcp.f32 %v9571_v42  ;;  %v9577_v51 = vadd.f32 1.0, %v14878_v10  ;;  %v6879_v61 = vadd.f32 %v21532_v56, %v18921_v30  ;;  %v11871_v63 = vmul.f32 -1.442695, %v7240_v11 }
 0xa58   : > { %v14882_v50 = vpop.eup %14881  ;;  %14901 = vrcp.f32 %v9573_v0  ;;  %v9579_v44 = vadd.f32 1.0, %v14880_v45  ;;  %v7232_v0 = vadd.f32 %v19309_v49, %v18923_v23 }
 0xa59   : > { %v14884_v37 = vpop.eup %14883  ;;  %14903 = vrcp.f32 %v9577_v51  ;;  %v9578_v57 = vadd.f32 1.0, %v14882_v50  ;;  %v6881_v51 = vadd.f32 %v19311_v20, %v18925_v3  ;;  %v11861_v16 = vmul.f32 -1.442695, %v6879_v61  ;;  %7659 = vmatmul.mubr.bf16.gmra.mrb[84].mxu0 %v21486_v31  ;;  %v21533_v61 = vld [vmem:[#allocation17_spill] sm:$0xff] }
 0xa5a   : > { %v14886_v42 = vpop.eup %14885  ;;  %14905 = vrcp.f32 %v9579_v44  ;;  %v9580_v10 = vadd.f32 1.0, %v14884_v37  ;;  %v11857_v44 = vmul.f32 -1.442695, %v7230_v29  ;;  %v6885_v20 = vadd.f32 %v19334_v15, %v18921_v30  ;;  %v19638_v37 = vpop.f32.mrb[214].mxu0  ;;  %7668 = vmatprep.mubr.bf16.mxu0 %v21434_v22 }
 0xa5b   : > { %v14888_v45 = vpop.eup %14887  ;;  %10903 = vst [vmem:[%s18980_s30 + $0x4e8] sm:$0xff] %v14886_v42  ;;  %14907 = vrcp.f32 %v9578_v57  ;;  %v19640_v57 = vpop.f32.mrb[22].mxu1  ;;  %v11863_v29 = vmul.f32 -1.442695, %v7232_v0  ;;  %v11862_v15 = vmul.f32 -1.442695, %v6881_v51  ;;  %v6887_v42 = vadd.f32 %v21533_v61, %v18925_v3 }
 0xa5c   : > { %v14890_v50 = vpop.eup %14889  ;;  %10907 = vst [vmem:[%s18980_s30 + $0x508] sm:$0xff] %v14888_v45  ;;  %14909 = vrcp.f32 %v9580_v10  ;;  %v19650_v10 = vpop.f32.mrb[215].mxu0  ;;  %v11864_v0 = vmul.f32 -1.442695, %v7234_v19  ;;  %v6889_v51 = vadd.f32 %v19346_v26, %v18921_v30 }
 0xa5d   : > { %v14892_v49 = vpop.eup %14891  ;;  %10909 = vst [vmem:[%s18980_s30 + $0x518] sm:$0xff] %v14890_v50  ;;  %14911 = vpow2.f32 %v11854_v32  ;;  %v19652_v31 = vpop.f32.mrb[23].mxu1 }
 0xa5e   : > { %v14894_v56 = vpop.eup %14893  ;;  %10908 = vst [vmem:[%s18980_s30 + $0x510] sm:$0xff] %v14892_v49  ;;  %14913 = vpow2.f32 %v11856_v5  ;;  %v11870_v49 = vmul.f32 -1.442695, %v7238_v13  ;;  %v19666_v26 = vpop.f32.mrb[24].mxu1 }
 0xa5f   : > { %v14896_v32 = vpop.eup %14895  ;;  %10910 = vst [vmem:[%s18980_s30 + $0x520] sm:$0xff] %v14894_v56  ;;  %14915 = vpow2.f32 %v11855_v39  ;;  %v11868_v39 = vmul.f32 -1.442695, %v6885_v20  ;;  %v11875_v20 = vmul.f32 -1.442695, %v6889_v51  ;;  %v19672_v61 = vpop.f32.mrb[25].mxu1 }
 0xa60   : > { %v14898_v5 = vpop.eup %14897  ;;  %10914 = vst [vmem:[%s18980_s30 + $0x540] sm:$0xff] %v14896_v32  ;;  %14917 = vpow2.f32 %v11857_v44  ;;  %v11869_v44 = vmul.f32 -1.442695, %v6887_v42  ;;  %v19664_v32 = vpop.f32.mrb[216].mxu0  ;;  %21536 = vst [vmem:[#allocation26_spill] sm:$0xff] %v19672_v61 }
 0xa61   : > { %v14900_v45 = vpop.eup %14899  ;;  %10916 = vst [vmem:[%s18980_s30 + $0x550] sm:$0xff] %v14898_v5  ;;  %14919 = vpow2.f32 %v11861_v16 }
 0xa62   : > { %v14902_v50 = vpop.eup %14901  ;;  %10915 = vst [vmem:[%s18980_s30 + $0x548] sm:$0xff] %v14900_v45  ;;  %14921 = vpow2.f32 %v11863_v29  ;;  %v21534_v29 = vld [vmem:[#allocation7_spill] sm:$0xff] }
 0xa63   : > { %v14904_v56 = vpop.eup %14903  ;;  %10917 = vst [vmem:[%s18980_s30 + $0x558] sm:$0xff] %v14902_v50  ;;  %14923 = vpow2.f32 %v11862_v15  ;;  %7669 = vmatmul.mubr.bf16.gmra.mrb[88].mxu0 %v21534_v29  ;;  %v19670_v15 = vpop.f32.mrb[217].mxu0 }
 0xa64   : > { %v14906_v19 = vpop.eup %14905  ;;  %10921 = vst [vmem:[%s18980_s30 + $0x578] sm:$0xff] %v14904_v56  ;;  %14925 = vpow2.f32 %v11864_v0  ;;  %21535 = vst [vmem:[#allocation15_spill] sm:$0xff] %v19670_v15  ;;  %7678 = vmatprep.mubr.bf16.mxu0 %v21434_v22  ;;  %v19676_v5 = vpop.f32.mrb[218].mxu0 }
 0xa65   : > { %v14908_v16 = vpop.eup %14907  ;;  %10923 = vst [vmem:[%s18980_s30 + $0x588] sm:$0xff] %v14906_v19  ;;  %14927 = vpow2.f32 %v11868_v39  ;;  %21537 = vst [vmem:[#allocation27_spill] sm:$0xff] %v19676_v5  ;;  %v19678_v0 = vpop.f32.mrb[26].mxu1 }
 0xa66   : > { %v14910_v13 = vpop.eup %14909  ;;  %10922 = vst [vmem:[%s18980_s30 + $0x580] sm:$0xff] %v14908_v16  ;;  %14929 = vpow2.f32 %v11870_v49  ;;  %21538 = vst [vmem:[#allocation28_spill] sm:$0xff] %v19678_v0  ;;  %v19680_v39 = vpop.f32.mrb[219].mxu0 }
 0xa67   : > { %v14912_v42 = vpop.eup %14911  ;;  %10924 = vst [vmem:[%s18980_s30 + $0x590] sm:$0xff] %v14910_v13  ;;  %14931 = vpow2.f32 %v11869_v44  ;;  %21539 = vst [vmem:[#allocation29_spill] sm:$0xff] %v19680_v39 }
 0xa68   : > { %v14914_v11 = vpop.eup %14913  ;;  %v9584_v45 = vadd.f32 1.0, %v14912_v42  ;;  %14933 = vpow2.f32 %v11871_v63 }
 0xa69   : > { %v14916_v51 = vpop.eup %14915  ;;  %v9586_v50 = vadd.f32 1.0, %v14914_v11  ;;  %14935 = vpow2.f32 %v11875_v20 }
 0xa6a   : > { %v14918_v49 = vpop.eup %14917  ;;  %14937 = vrcp.f32 %v9584_v45  ;;  %v9585_v56 = vadd.f32 1.0, %v14916_v51  ;;  %v21540_v45 = vld [vmem:[#allocation3_spill] sm:$0xff] }
 0xa6b   : > { %v14920_v19 = vpop.eup %14919  ;;  %14939 = vrcp.f32 %v9586_v50  ;;  %v9587_v16 = vadd.f32 1.0, %v14918_v49  ;;  %7679 = vmatmul.mubr.bf16.gmra.mrb[92].mxu0 %v21494_v35  ;;  %v7242_v51 = vadd.f32 %v21540_v45, %v18923_v23 }
 0xa6c   : > { %v14922_v29 = vpop.eup %14921  ;;  %14941 = vrcp.f32 %v9585_v56  ;;  %v9591_v44 = vadd.f32 1.0, %v14920_v19  ;;  %7688 = vmatprep.mubr.bf16.mxu0 %v21434_v22  ;;  %v21541_v56 = vld [vmem:[#allocation37_spill] sm:$0xff] }
 0xa6d   : > { %v14924_v13 = vpop.eup %14923  ;;  %14943 = vrcp.f32 %v9587_v16  ;;  %v9593_v0 = vadd.f32 1.0, %v14922_v29  ;;  %v6891_v19 = vadd.f32 %v21541_v56, %v18925_v3  ;;  %v21542_v29 = vld [vmem:[#allocation38_spill] sm:$0xff]  ;;  %v21544_v56 = vld [vmem:[#allocation5_spill] sm:$0xff] }
 0xa6e   : > { %v14926_v63 = vpop.eup %14925  ;;  %14945 = vrcp.f32 %v9591_v44  ;;  %v9592_v42 = vadd.f32 1.0, %v14924_v13  ;;  %v7244_v44 = vadd.f32 %v21542_v29, %v18927_v34  ;;  %v7248_v5 = vadd.f32 %v21544_v56, %v18923_v23  ;;  %v21545_v29 = vld [vmem:[#allocation39_spill] sm:$0xff] }
 0xa6f   : > { %v14928_v20 = vpop.eup %14927  ;;  %14947 = vrcp.f32 %v9593_v0  ;;  %v9594_v11 = vadd.f32 1.0, %v14926_v63  ;;  %v21543_v63 = vld [vmem:[#allocation2_spill] sm:$0xff]  ;;  %v11876_v61 = vmul.f32 -1.442695, %v6891_v19 }
 0xa70   : > { %v14930_v50 = vpop.eup %14929  ;;  %14949 = vrcp.f32 %v9592_v42  ;;  %v9598_v49 = vadd.f32 1.0, %v14928_v20  ;;  %v6895_v39 = vadd.f32 %v21543_v63, %v18921_v30  ;;  %v11877_v20 = vmul.f32 -1.442695, %v7242_v51  ;;  %v21546_v51 = vld [vmem:[#allocation40_spill] sm:$0xff] }
 0xa71   : > { %v14932_v16 = vpop.eup %14931  ;;  %14951 = vrcp.f32 %v9594_v11  ;;  %v9600_v35 = vadd.f32 1.0, %v14930_v50 }
 0xa72   : > { %v14934_v13 = vpop.eup %14933  ;;  %14953 = vrcp.f32 %v9598_v49  ;;  %v9599_v0 = vadd.f32 1.0, %v14932_v16  ;;  %v6897_v49 = vadd.f32 %v21545_v29, %v18925_v3  ;;  %v19696_v16 = vpop.f32.mrb[27].mxu1  ;;  %v11882_v19 = vmul.f32 -1.442695, %v6895_v39 }
 0xa73   : > { %v14936_v45 = vpop.eup %14935  ;;  %14955 = vrcp.f32 %v9600_v35  ;;  %v9601_v42 = vadd.f32 1.0, %v14934_v13  ;;  %v11878_v35 = vmul.f32 -1.442695, %v7244_v44  ;;  %v7250_v13 = vadd.f32 %v21546_v51, %v18927_v34  ;;  %7689 = vmatmul.mubr.bf16.gmra.mrb[96].mxu0 %v21497_v58 }
 0xa74   : > { %v14938_v11 = vpop.eup %14937  ;;  %14957 = vrcp.f32 %v9599_v0  ;;  %v9605_v50 = vadd.f32 1.0, %v14936_v45  ;;  %v21547_v0 = vld [vmem:[#allocation41_spill] sm:$0xff]  ;;  %7698 = vmatprep.mubr.bf16.mxu0 %v21434_v22  ;;  %v11884_v44 = vmul.f32 -1.442695, %v7248_v5  ;;  %v11883_v58 = vmul.f32 -1.442695, %v6897_v49 }
 0xa75   : > { %v14940_v15 = vpop.eup %14939  ;;  %10928 = vst [vmem:[%s18980_s30 + $0x5b0] sm:$0xff] %v14938_v11  ;;  %14959 = vrcp.f32 %v9601_v42  ;;  %v6899_v45 = vadd.f32 %v21547_v0, %v18921_v30  ;;  %v21548_v42 = vld [vmem:[#allocation42_spill] sm:$0xff]  ;;  %v11885_v51 = vmul.f32 -1.442695, %v7250_v13  ;;  %v21550_v0 = vld [vmem:[#allocation44_spill] sm:$0xff]  ;;  %v19720_v49 = vpop.f32.mrb[28].mxu1 }
 0xa76   : > { %v14942_v63 = vpop.eup %14941  ;;  %10930 = vst [vmem:[%s18980_s30 + $0x5c0] sm:$0xff] %v14940_v15  ;;  %14961 = vrcp.f32 %v9605_v50  ;;  %v7252_v11 = vadd.f32 %v21548_v42, %v18923_v23  ;;  %v21549_v15 = vld [vmem:[#allocation43_spill] sm:$0xff]  ;;  %v19718_v42 = vpop.f32.mrb[220].mxu0  ;;  %21552 = vst [vmem:[#allocation30_spill] sm:$0xff] %v19720_v49  ;;  %v21553_v13 = vld [vmem:[#allocation45_spill] sm:$0xff] }
 0xa77   : > { %v14944_v56 = vpop.eup %14943  ;;  %10929 = vst [vmem:[%s18980_s30 + $0x5b8] sm:$0xff] %v14942_v63  ;;  %14963 = vpow2.f32 %v11877_v20  ;;  %v6901_v39 = vadd.f32 %v21549_v15, %v18925_v3  ;;  %v7254_v63 = vadd.f32 %v21550_v0, %v18927_v34  ;;  %v11889_v20 = vmul.f32 -1.442695, %v6899_v45  ;;  %v19725_v0 = vpop.f32.mrb[221].mxu0 }
 0xa78   : > { %v14946_v29 = vpop.eup %14945  ;;  %10931 = vst [vmem:[%s18980_s30 + $0x5c8] sm:$0xff] %v14944_v56  ;;  %14965 = vpow2.f32 %v11876_v61  ;;  %v21551_v56 = vld [vmem:[#allocation4_spill] sm:$0xff] }
 0xa79   : > { %v14948_v50 = vpop.eup %14947  ;;  %10935 = vst [vmem:[%s18980_s30 + $0x5e8] sm:$0xff] %v14946_v29  ;;  %14967 = vpow2.f32 %v11878_v35  ;;  %v6905_v61 = vadd.f32 %v21551_v56, %v18921_v30  ;;  %v11891_v35 = vmul.f32 -1.442695, %v7252_v11  ;;  %v7258_v29 = vadd.f32 %v21553_v13, %v18923_v23  ;;  %v19730_v56 = vpop.f32.mrb[222].mxu0 }
 0xa7a   : > { %v14950_v5 = vpop.eup %14949  ;;  %10937 = vst [vmem:[%s18980_s30 + $0x5f8] sm:$0xff] %v14948_v50  ;;  %14969 = vpow2.f32 %v11882_v19  ;;  %v19727_v19 = vpop.f32.mrb[29].mxu1  ;;  %v11890_v50 = vmul.f32 -1.442695, %v6901_v39 }
 0xa7b   : > { %v14952_v15 = vpop.eup %14951  ;;  %10936 = vst [vmem:[%s18980_s30 + $0x5f0] sm:$0xff] %v14950_v5  ;;  %14971 = vpow2.f32 %v11884_v44  ;;  %v19732_v49 = vpop.f32.mrb[30].mxu1  ;;  %v11892_v44 = vmul.f32 -1.442695, %v7254_v63  ;;  %7699 = vmatmul.mubr.bf16.gmra.mrb[100].mxu0 %v21502_v25 }
 0xa7c   : > { %v14954_v45 = vpop.eup %14953  ;;  %10938 = vst [vmem:[%s18980_s30 + $0x600] sm:$0xff] %v14952_v15  ;;  %14973 = vpow2.f32 %v11883_v58  ;;  %21554 = vst [vmem:[#allocation31_spill] sm:$0xff] %v19732_v49  ;;  %v19735_v11 = vpop.f32.mrb[223].mxu0  ;;  %v11896_v58 = vmul.f32 -1.442695, %v6905_v61  ;;  %7708 = vmatprep.mubr.bf16.mxu0 %v21434_v22 }
 0xa7d   : > { %v14956_v5 = vpop.eup %14955  ;;  %10942 = vst [vmem:[%s18980_s30 + $0x620] sm:$0xff] %v14954_v45  ;;  %14975 = vpow2.f32 %v11885_v51  ;;  %21555 = vst [vmem:[#allocation32_spill] sm:$0xff] %v19735_v11  ;;  %v19737_v13 = vpop.f32.mrb[31].mxu1  ;;  %v11898_v45 = vmul.f32 -1.442695, %v7258_v29 }
 0xa7e   : > { %21556 = vst [vmem:[#allocation33_spill] sm:$0xff] %v19737_v13  ;;  %v14958_v15 = vpop.eup %14957  ;;  %10944 = vst [vmem:[%s18980_s30 + $0x630] sm:$0xff] %v14956_v5  ;;  %14977 = vpow2.f32 %v11889_v20  ;;  %v19745_v25 = vpop.f32.mrb[224].mxu0 }
 0xa7f   : > { %v14960_v39 = vpop.eup %14959  ;;  %10943 = vst [vmem:[%s18980_s30 + $0x628] sm:$0xff] %v14958_v15  ;;  %14979 = vpow2.f32 %v11891_v35  ;;  %v19747_v5 = vpop.f32.mrb[32].mxu1 }
 0xa80   : > { %v14962_v49 = vpop.eup %14961  ;;  %10945 = vst [vmem:[%s18980_s30 + $0x638] sm:$0xff] %v14960_v39  ;;  %14981 = vpow2.f32 %v11890_v50  ;;  %v19749_v11 = vpop.f32.mrb[225].mxu0 }
 0xa81   : > { %v14964_v51 = vpop.eup %14963  ;;  %10949 = vst [vmem:[%s18980_s30 + $0x658] sm:$0xff] %v14962_v49  ;;  %14983 = vpow2.f32 %v11892_v44  ;;  %21557 = vst [vmem:[#allocation34_spill] sm:$0xff] %v19749_v11  ;;  %v19751_v35 = vpop.f32.mrb[33].mxu1 }
 0xa82   : > { %v14966_v63 = vpop.eup %14965  ;;  %v9607_v13 = vadd.f32 1.0, %v14964_v51  ;;  %14985 = vpow2.f32 %v11896_v58  ;;  %21558 = vst [vmem:[#allocation35_spill] sm:$0xff] %v19751_v35 }
 0xa83   : > { %v14968_v20 = vpop.eup %14967  ;;  %v9606_v61 = vadd.f32 1.0, %v14966_v63  ;;  %14987 = vpow2.f32 %v11898_v45  ;;  %7709 = vmatmul.mubr.bf16.gmra.mrb[104].mxu0 %v21503_v6 }
 0xa84   : > { %v14970_v29 = vpop.eup %14969  ;;  %14989 = vrcp.f32 %v9607_v13  ;;  %v9608_v50 = vadd.f32 1.0, %v14968_v20  ;;  %7718 = vmatprep.mubr.bf16.mxu0 %v21434_v22  ;;  %v21559_v20 = vld [vmem:[#allocation46_spill] sm:$0xff] }
 0xa85   : > { %v14972_v15 = vpop.eup %14971  ;;  %14991 = vrcp.f32 %v9606_v61  ;;  %v9612_v49 = vadd.f32 1.0, %v14970_v29  ;;  %v6907_v61 = vadd.f32 %v21559_v20, %v18925_v3 }
 0xa86   : > { %v14974_v44 = vpop.eup %14973  ;;  %14993 = vrcp.f32 %v9608_v50  ;;  %v9614_v58 = vadd.f32 1.0, %v14972_v15  ;;  %v7260_v50 = vadd.f32 %v19401_v36, %v18927_v34  ;;  %v6911_v36 = vadd.f32 %v19423_v27, %v18925_v3 }
 0xa87   : > { %v14976_v39 = vpop.eup %14975  ;;  %14995 = vrcp.f32 %v9612_v49  ;;  %v9613_v45 = vadd.f32 1.0, %v14974_v44  ;;  %v21560_v49 = vld [vmem:[#allocation18_spill] sm:$0xff]  ;;  %v6915_v27 = vadd.f32 %v19441_v17, %v18921_v30  ;;  %v6917_v17 = vadd.f32 %v19448_v33, %v18925_v3 }
 0xa88   : > { %v14978_v51 = vpop.eup %14977  ;;  %14997 = vrcp.f32 %v9614_v58  ;;  %v9615_v63 = vadd.f32 1.0, %v14976_v39  ;;  %v6909_v44 = vadd.f32 %v21560_v49, %v18921_v30  ;;  %v11899_v49 = vmul.f32 -1.442695, %v7260_v50 }
 0xa89   : > { %v14980_v35 = vpop.eup %14979  ;;  %14999 = vrcp.f32 %v9613_v45  ;;  %v9619_v13 = vadd.f32 1.0, %v14978_v51  ;;  %v21561_v45 = vld [vmem:[#allocation19_spill] sm:$0xff] }
 0xa8a   : > { %v14982_v29 = vpop.eup %14981  ;;  %15001 = vrcp.f32 %v9615_v63  ;;  %v9621_v6 = vadd.f32 1.0, %v14980_v35  ;;  %v7262_v51 = vadd.f32 %v21561_v45, %v18923_v23  ;;  %v11897_v35 = vmul.f32 -1.442695, %v6907_v61  ;;  %v19772_v61 = vpop.f32.mrb[226].mxu0 }
 0xa8b   : > { %v14984_v15 = vpop.eup %14983  ;;  %15003 = vrcp.f32 %v9619_v13  ;;  %v9620_v11 = vadd.f32 1.0, %v14982_v29  ;;  %7719 = vmatmul.mubr.bf16.gmra.mrb[108].mxu0 %v21509_v62  ;;  %v19774_v62 = vpop.f32.mrb[34].mxu1 }
 0xa8c   : > { %v14986_v58 = vpop.eup %14985  ;;  %15005 = vrcp.f32 %v9621_v6  ;;  %v9622_v39 = vadd.f32 1.0, %v14984_v15  ;;  %v21562_v6 = vld [vmem:[#allocation20_spill] sm:$0xff]  ;;  %7728 = vmatprep.mubr.bf16.mxu0 %v21434_v22  ;;  %v11905_v50 = vmul.f32 -1.442695, %v7262_v51 }
 0xa8d   : > { %v14988_v20 = vpop.eup %14987  ;;  %15007 = vrcp.f32 %v9620_v11  ;;  %v9626_v63 = vadd.f32 1.0, %v14986_v58  ;;  %v7264_v15 = vadd.f32 %v21562_v6, %v18927_v34  ;;  %v11903_v11 = vmul.f32 -1.442695, %v6909_v44 }
 0xa8e   : > { %v14990_v13 = vpop.eup %14989  ;;  %15009 = vrcp.f32 %v9622_v39  ;;  %v9628_v29 = vadd.f32 1.0, %v14988_v20  ;;  %v7268_v39 = vadd.f32 %v19443_v54, %v18923_v23  ;;  %v11904_v44 = vmul.f32 -1.442695, %v6911_v36  ;;  %v21566_v36 = vld [vmem:[#allocation9_spill] sm:$0xff] }
 0xa8f   : > { %v14992_v45 = vpop.eup %14991  ;;  %10951 = vst [vmem:[%s18980_s30 + $0x668] sm:$0xff] %v14990_v13  ;;  %15011 = vrcp.f32 %v9626_v63  ;;  %v19782_v63 = vpop.f32.mrb[227].mxu0  ;;  %v11906_v51 = vmul.f32 -1.442695, %v7264_v15  ;;  %v6919_v33 = vadd.f32 %v21566_v36, %v18921_v30 }
 0xa90   : > { %v14994_v58 = vpop.eup %14993  ;;  %10950 = vst [vmem:[%s18980_s30 + $0x660] sm:$0xff] %v14992_v45  ;;  %15013 = vrcp.f32 %v9628_v29  ;;  %21563 = vst [vmem:[#allocation36_spill] sm:$0xff] %v19782_v63  ;;  %v19784_v13 = vpop.f32.mrb[35].mxu1  ;;  %v21565_v29 = vld [vmem:[#allocation6_spill] sm:$0xff] }
 0xa91   : > { %v14996_v20 = vpop.eup %14995  ;;  %10952 = vst [vmem:[%s18980_s30 + $0x670] sm:$0xff] %v14994_v58  ;;  %15015 = vpow2.f32 %v11897_v35  ;;  %21564 = vst [vmem:[#allocation17_spill] sm:$0xff] %v19784_v13  ;;  %v7270_v54 = vadd.f32 %v21565_v29, %v18927_v34  ;;  %v11910_v35 = vmul.f32 -1.442695, %v6915_v27  ;;  %v11912_v13 = vmul.f32 -1.442695, %v7268_v39 }
 0xa92   : > { %v14998_v6 = vpop.eup %14997  ;;  %10956 = vst [vmem:[%s18980_s30 + $0x690] sm:$0xff] %v14996_v20  ;;  %15017 = vpow2.f32 %v11899_v49  ;;  %v21567_v20 = vld [vmem:[#allocation21_spill] sm:$0xff]  ;;  %v11911_v29 = vmul.f32 -1.442695, %v6917_v17  ;;  %v11917_v39 = vmul.f32 -1.442695, %v6919_v33 }
 0xa93   : > { %v15000_v45 = vpop.eup %14999  ;;  %10958 = vst [vmem:[%s18980_s30 + $0x6a0] sm:$0xff] %v14998_v6  ;;  %15019 = vpow2.f32 %v11903_v11  ;;  %v7272_v49 = vadd.f32 %v21567_v20, %v18923_v23  ;;  %v21568_v6 = vld [vmem:[#allocation22_spill] sm:$0xff]  ;;  %v21569_v27 = vld [vmem:[#allocation13_spill] sm:$0xff]  ;;  %v19804_v17 = vpop.f32.mrb[36].mxu1 }
 0xa94   : > { %v15002_v58 = vpop.eup %15001  ;;  %10957 = vst [vmem:[%s18980_s30 + $0x698] sm:$0xff] %v15000_v45  ;;  %15021 = vpow2.f32 %v11905_v50  ;;  %v6921_v11 = vadd.f32 %v21568_v6, %v18925_v3  ;;  %7729 = vmatmul.mubr.bf16.gmra.mrb[112].mxu0 %v21569_v27  ;;  %v11913_v45 = vmul.f32 -1.442695, %v7270_v54 }
 0xa95   : > { %v15004_v15 = vpop.eup %15003  ;;  %10959 = vst [vmem:[%s18980_s30 + $0x6a8] sm:$0xff] %v15002_v58  ;;  %15023 = vpow2.f32 %v11904_v44  ;;  %7738 = vmatprep.mubr.bf16.mxu0 %v21434_v22  ;;  %v19802_v44 = vpop.f32.mrb[228].mxu0  ;;  %v11919_v58 = vmul.f32 -1.442695, %v7272_v49 }
 0xa96   : > { %v15006_v63 = vpop.eup %15005  ;;  %10963 = vst [vmem:[%s18980_s30 + $0x6c8] sm:$0xff] %v15004_v15  ;;  %15025 = vpow2.f32 %v11906_v51  ;;  %v19807_v20 = vpop.f32.mrb[229].mxu0 }
 0xa97   : > { %v15008_v50 = vpop.eup %15007  ;;  %10965 = vst [vmem:[%s18980_s30 + $0x6d8] sm:$0xff] %v15006_v63  ;;  %15027 = vpow2.f32 %v11910_v35  ;;  %v19809_v51 = vpop.f32.mrb[37].mxu1  ;;  %v11918_v63 = vmul.f32 -1.442695, %v6921_v11 }
 0xa98   : > { %v15010_v36 = vpop.eup %15009  ;;  %10964 = vst [vmem:[%s18980_s30 + $0x6d0] sm:$0xff] %v15008_v50  ;;  %15029 = vpow2.f32 %v11912_v13  ;;  %v19812_v35 = vpop.f32.mrb[230].mxu0 }
 0xa99   : > { %v15012_v54 = vpop.eup %15011  ;;  %10966 = vst [vmem:[%s18980_s30 + $0x6e0] sm:$0xff] %v15010_v36  ;;  %15031 = vpow2.f32 %v11911_v29  ;;  %21570 = vst [vmem:[#allocation7_spill] sm:$0xff] %v19812_v35  ;;  %v19814_v33 = vpop.f32.mrb[38].mxu1 }
 0xa9a   : > { %21571 = vst [vmem:[#allocation3_spill] sm:$0xff] %v19814_v33  ;;  %v15014_v15 = vpop.eup %15013  ;;  %10970 = vst [vmem:[%s18980_s30 + $0x700] sm:$0xff] %v15012_v54  ;;  %15033 = vpow2.f32 %v11913_v45  ;;  %v19817_v6 = vpop.f32.mrb[231].mxu0 }
 0xa9b   : > { %21572 = vst [vmem:[#allocation37_spill] sm:$0xff] %v19817_v6  ;;  %v19819_v13 = vpop.f32.mrb[39].mxu1  ;;  %v15016_v49 = vpop.eup %15015  ;;  %10972 = vst [vmem:[%s18980_s30 + $0x710] sm:$0xff] %v15014_v15  ;;  %15035 = vpow2.f32 %v11917_v39 }
 0xa9c   : > { %21573 = vst [vmem:[#allocation38_spill] sm:$0xff] %v19819_v13  ;;  %v15018_v27 = vpop.eup %15017  ;;  %v9627_v50 = vadd.f32 1.0, %v15016_v49  ;;  %15037 = vpow2.f32 %v11919_v58  ;;  %7739 = vmatmul.mubr.bf16.gmra.mrb[116].mxu0 %v21513_v12  ;;  %v19824_v13 = vpop.f32.mrb[232].mxu0 }
 0xa9d   : > { %v15020_v36 = vpop.eup %15019  ;;  %v9629_v29 = vadd.f32 1.0, %v15018_v27  ;;  %15039 = vpow2.f32 %v11918_v63  ;;  %7748 = vmatprep.mubr.bf16.mxu0 %v21434_v22 }
 0xa9e   : > { %v15022_v11 = vpop.eup %15021  ;;  %15041 = vrcp.f32 %v9627_v50  ;;  %v9633_v33 = vadd.f32 1.0, %v15020_v36  ;;  %v21574_v36 = vld [vmem:[#allocation23_spill] sm:$0xff] }
 0xa9f   : > { %v15024_v45 = vpop.eup %15023  ;;  %15043 = vrcp.f32 %v9629_v29  ;;  %v9635_v54 = vadd.f32 1.0, %v15022_v11  ;;  %v7274_v6 = vadd.f32 %v21574_v36, %v18927_v34  ;;  %v6925_v11 = vadd.f32 %v19497_v43, %v18921_v30 }
 0xaa0   : > { %v15026_v15 = vpop.eup %15025  ;;  %15045 = vrcp.f32 %v9633_v33  ;;  %v9634_v39 = vadd.f32 1.0, %v15024_v45 }
 0xaa1   : > { %v15028_v49 = vpop.eup %15027  ;;  %15047 = vrcp.f32 %v9635_v54  ;;  %v9636_v58 = vadd.f32 1.0, %v15026_v15  ;;  %v7278_v54 = vadd.f32 %v19499_v8, %v18923_v23 }
 0xaa2   : > { %v15030_v27 = vpop.eup %15029  ;;  %15049 = vrcp.f32 %v9634_v39  ;;  %v9640_v63 = vadd.f32 1.0, %v15028_v49  ;;  %v6927_v49 = vadd.f32 %v19504_v9, %v18925_v3 }
 0xaa3   : > { %v15032_v12 = vpop.eup %15031  ;;  %15051 = vrcp.f32 %v9636_v58  ;;  %v9642_v50 = vadd.f32 1.0, %v15030_v27  ;;  %v11920_v27 = vmul.f32 -1.442695, %v7274_v6  ;;  %v7282_v6 = vadd.f32 %v19513_v52, %v18923_v23 }
 0xaa4   : > { %v15034_v35 = vpop.eup %15033  ;;  %15053 = vrcp.f32 %v9640_v63  ;;  %v9641_v29 = vadd.f32 1.0, %v15032_v12  ;;  %7749 = vmatmul.mubr.bf16.gmra.mrb[120].mxu0 %v21514_v18  ;;  %v11924_v63 = vmul.f32 -1.442695, %v6925_v11  ;;  %v6929_v12 = vadd.f32 %v19511_v28, %v18921_v30  ;;  %v19848_v11 = vpop.f32.mrb[233].mxu0 }
 0xaa5   : > { %v15036_v33 = vpop.eup %15035  ;;  %15055 = vrcp.f32 %v9642_v50  ;;  %v9643_v45 = vadd.f32 1.0, %v15034_v35  ;;  %7758 = vmatprep.mubr.bf16.mxu0 %v21434_v22  ;;  %v7280_v35 = vadd.f32 %v19506_v7, %v18927_v34  ;;  %v19840_v50 = vpop.f32.mrb[40].mxu1  ;;  %v11926_v22 = vmul.f32 -1.442695, %v7278_v54 }
 0xaa6   : > { %v15038_v15 = vpop.eup %15037  ;;  %15057 = vrcp.f32 %v9641_v29  ;;  %v9647_v39 = vadd.f32 1.0, %v15036_v33  ;;  %v11925_v7 = vmul.f32 -1.442695, %v6927_v49  ;;  %v6931_v29 = vadd.f32 %v19518_v53, %v18925_v3  ;;  %v19850_v28 = vpop.f32.mrb[41].mxu1 }
 0xaa7   : > { %v15040_v58 = vpop.eup %15039  ;;  %15059 = vrcp.f32 %v9643_v45  ;;  %v9649_v43 = vadd.f32 1.0, %v15038_v15  ;;  %v11927_v45 = vmul.f32 -1.442695, %v7280_v35  ;;  %v7284_v52 = vadd.f32 %v19520_v46, %v18927_v34  ;;  %v19860_v49 = vpop.f32.mrb[42].mxu1 }
 0xaa8   : > { %v15042_v8 = vpop.eup %15041  ;;  %15061 = vrcp.f32 %v9647_v39  ;;  %v9648_v18 = vadd.f32 1.0, %v15040_v58  ;;  %v11931_v15 = vmul.f32 -1.442695, %v6929_v12  ;;  %v6935_v53 = vadd.f32 %v19528_v60, %v18921_v30  ;;  %v19858_v39 = vpop.f32.mrb[234].mxu0 }
 0xaa9   : > { %v15044_v9 = vpop.eup %15043  ;;  %10971 = vst [vmem:[%s18980_s30 + $0x708] sm:$0xff] %v15042_v8  ;;  %15063 = vrcp.f32 %v9649_v43  ;;  %v11933_v43 = vmul.f32 -1.442695, %v7282_v6  ;;  %v7288_v46 = vadd.f32 %v19530_v40, %v18923_v23  ;;  %v11932_v60 = vmul.f32 -1.442695, %v6931_v29 }
 0xaaa   : > { %v15046_v36 = vpop.eup %15045  ;;  %10973 = vst [vmem:[%s18980_s30 + $0x718] sm:$0xff] %v15044_v9  ;;  %15065 = vrcp.f32 %v9648_v18  ;;  %v6937_v8 = vadd.f32 %v19532_v2, %v18925_v3  ;;  %v19869_v18 = vpop.f32.mrb[235].mxu0  ;;  %v11934_v40 = vmul.f32 -1.442695, %v7284_v52  ;;  %v21576_v9 = vld [vmem:[#allocation8_spill] sm:$0xff] }
 0xaab   : > { %v15048_v33 = vpop.eup %15047  ;;  %10977 = vst [vmem:[%s18980_s30 + $0x738] sm:$0xff] %v15046_v36  ;;  %15067 = vpow2.f32 %v11920_v27  ;;  %v21575_v27 = vld [vmem:[#allocation14_spill] sm:$0xff]  ;;  %v11938_v36 = vmul.f32 -1.442695, %v6935_v53  ;;  %v11940_v2 = vmul.f32 -1.442695, %v7288_v46 }
 0xaac   : > { %v15050_v54 = vpop.eup %15049  ;;  %10979 = vst [vmem:[%s18980_s30 + $0x748] sm:$0xff] %v15048_v33  ;;  %15069 = vpow2.f32 %v11924_v63  ;;  %7759 = vmatmul.mubr.bf16.gmra.mrb[124].mxu0 %v21575_v27  ;;  %v19871_v63 = vpop.f32.mrb[43].mxu1  ;;  %v11939_v33 = vmul.f32 -1.442695, %v6937_v8 }
 0xaad   : > { %v15052_v58 = vpop.eup %15051  ;;  %10978 = vst [vmem:[%s18980_s30 + $0x740] sm:$0xff] %v15050_v54  ;;  %15071 = vpow2.f32 %v11926_v22  ;;  %v7290_v22 = vadd.f32 %v21576_v9, %v18927_v34 }
 0xaae   : > { %v15054_v35 = vpop.eup %15053  ;;  %10980 = vst [vmem:[%s18980_s30 + $0x750] sm:$0xff] %v15052_v58  ;;  %15073 = vpow2.f32 %v11925_v7  ;;  %v19881_v58 = vpop.f32.mrb[236].mxu0 }
 0xaaf   : > { %v15056_v12 = vpop.eup %15055  ;;  %10984 = vst [vmem:[%s18980_s30 + $0x770] sm:$0xff] %v15054_v35  ;;  %15075 = vpow2.f32 %v11927_v45  ;;  %v11941_v52 = vmul.f32 -1.442695, %v7290_v22 }
 0xab0   : > { %v15058_v6 = vpop.eup %15057  ;;  %10986 = vst [vmem:[%s18980_s30 + $0x780] sm:$0xff] %v15056_v12  ;;  %15077 = vpow2.f32 %v11931_v15  ;;  %v19883_v15 = vpop.f32.mrb[44].mxu1 }
 0xab1   : > { %v15060_v7 = vpop.eup %15059  ;;  %10985 = vst [vmem:[%s18980_s30 + $0x778] sm:$0xff] %v15058_v6  ;;  %15079 = vpow2.f32 %v11933_v43  ;;  %v19886_v43 = vpop.f32.mrb[237].mxu0 }
 0xab2   : > { %v15062_v29 = vpop.eup %15061  ;;  %10987 = vst [vmem:[%s18980_s30 + $0x788] sm:$0xff] %v15060_v7  ;;  %15081 = vpow2.f32 %v11932_v60  ;;  %v19888_v46 = vpop.f32.mrb[45].mxu1 }
 0xab3   : > { %v15064_v45 = vpop.eup %15063  ;;  %10991 = vst [vmem:[%s18980_s30 + $0x7a8] sm:$0xff] %v15062_v29  ;;  %15083 = vpow2.f32 %v11934_v40  ;;  %v19890_v60 = vpop.f32.mrb[238].mxu0 }
 0xab4   : > { %v15066_v54 = vpop.eup %15065  ;;  %10993 = vst [vmem:[%s18980_s30 + $0x7b8] sm:$0xff] %v15064_v45  ;;  %15085 = vpow2.f32 %v11938_v36  ;;  %v19892_v8 = vpop.f32.mrb[46].mxu1 }
 0xab5   : > { %v15068_v53 = vpop.eup %15067  ;;  %10992 = vst [vmem:[%s18980_s30 + $0x7b0] sm:$0xff] %v15066_v54  ;;  %15087 = vpow2.f32 %v11940_v2  ;;  %21577 = vst [vmem:[#allocation2_spill] sm:$0xff] %v19892_v8 }
 0xab6   : > { %v15070_v27 = vpop.eup %15069  ;;  %v9650_v35 = vadd.f32 1.0, %v15068_v53  ;;  %15089 = vpow2.f32 %v11939_v33 }
 0xab7   : > { %v15072_v12 = vpop.eup %15071  ;;  %v9654_v40 = vadd.f32 1.0, %v15070_v27  ;;  %15091 = vpow2.f32 %v11941_v52  ;;  %v21578_v52 = vld [vmem:[#allocation11_spill] sm:$0xff] }
 0xab8   : > { %v15074_v9 = vpop.eup %15073  ;;  %15093 = vrcp.f32 %v9650_v35  ;;  %v9656_v22 = vadd.f32 1.0, %v15072_v12  ;;  %v6939_v27 = vadd.f32 %v21578_v52, %v18921_v30 }
 0xab9   : > { %v15076_v6 = vpop.eup %15075  ;;  %15095 = vrcp.f32 %v9654_v40  ;;  %v9655_v36 = vadd.f32 1.0, %v15074_v9  ;;  %v7292_v40 = vadd.f32 %v19554_v21, %v18923_v23  ;;  %v6945_v21 = vadd.f32 %v19584_v48, %v18921_v30 }
 0xaba   : > { %v15078_v7 = vpop.eup %15077  ;;  %15097 = vrcp.f32 %v9656_v22  ;;  %v9657_v2 = vadd.f32 1.0, %v15076_v6  ;;  %v6941_v6 = vadd.f32 %v19562_v47, %v18925_v3 }
 0xabb   : > { %v15080_v29 = vpop.eup %15079  ;;  %15099 = vrcp.f32 %v9655_v36  ;;  %v9661_v45 = vadd.f32 1.0, %v15078_v7  ;;  %v11947_v47 = vmul.f32 -1.442695, %v7292_v40 }
 0xabc   : > { %v15082_v33 = vpop.eup %15081  ;;  %15101 = vrcp.f32 %v9657_v2  ;;  %v9663_v54 = vadd.f32 1.0, %v15080_v29  ;;  %v7294_v2 = vadd.f32 %v19564_v14, %v18927_v34  ;;  %v11946_v14 = vmul.f32 -1.442695, %v6941_v6 }
 0xabd   : > { %v15084_v53 = vpop.eup %15083  ;;  %15103 = vrcp.f32 %v9661_v45  ;;  %v9662_v8 = vadd.f32 1.0, %v15082_v33  ;;  %v11945_v33 = vmul.f32 -1.442695, %v6939_v27  ;;  %v19909_v27 = vpop.f32.mrb[239].mxu0 }
 0xabe   : > { %v15086_v35 = vpop.eup %15085  ;;  %15105 = vrcp.f32 %v9663_v54  ;;  %v9664_v12 = vadd.f32 1.0, %v15084_v53  ;;  %v7298_v53 = vadd.f32 %v19586_v59, %v18923_v23  ;;  %v11948_v40 = vmul.f32 -1.442695, %v7294_v2 }
 0xabf   : > { %v15088_v9 = vpop.eup %15087  ;;  %15107 = vrcp.f32 %v9662_v8  ;;  %v9668_v22 = vadd.f32 1.0, %v15086_v35  ;;  %v6947_v35 = vadd.f32 %v19589_v1, %v18925_v3  ;;  %v7300_v59 = vadd.f32 %v19591_v38, %v18927_v34 }
 0xac0   : > { %v15090_v36 = vpop.eup %15089  ;;  %15109 = vrcp.f32 %v9664_v12  ;;  %v9670_v7 = vadd.f32 1.0, %v15088_v9  ;;  %v19911_v12 = vpop.f32.mrb[47].mxu1  ;;  %v6949_v1 = vadd.f32 %v19594_v24, %v18921_v30 }
 0xac1   : > { %v15092_v29 = vpop.eup %15091  ;;  %15111 = vrcp.f32 %v9668_v22  ;;  %v9669_v45 = vadd.f32 1.0, %v15090_v36  ;;  %v11952_v22 = vmul.f32 -1.442695, %v6945_v21  ;;  %v11954_v36 = vmul.f32 -1.442695, %v7298_v53  ;;  %v21580_v21 = vld [vmem:[#allocation24_spill] sm:$0xff] }
 0xac2   : > { %v15094_v8 = vpop.eup %15093  ;;  %15113 = vrcp.f32 %v9670_v7  ;;  %v9671_v54 = vadd.f32 1.0, %v15092_v29  ;;  %v7302_v7 = vadd.f32 %v19596_v4, %v18923_v23  ;;  %v11953_v38 = vmul.f32 -1.442695, %v6947_v35  ;;  %v21579_v29 = vld [vmem:[#allocation10_spill] sm:$0xff] }
 0xac3   : > { %v15096_v52 = vpop.eup %15095  ;;  %10994 = vst [vmem:[%s18980_s30 + $0x7c0] sm:$0xff] %v15094_v8  ;;  %15115 = vrcp.f32 %v9669_v45  ;;  %v6951_v45 = vadd.f32 %v21579_v29, %v18925_v3  ;;  %v11955_v24 = vmul.f32 -1.442695, %v7300_v59  ;;  %v7304_v8 = vadd.f32 %v21580_v21, %v18927_v34 }
 0xac4   : > { %v15098_v48 = vpop.eup %15097  ;;  %10998 = vst [vmem:[%s18980_s30 + $0x7e0] sm:$0xff] %v15096_v52  ;;  %15117 = vrcp.f32 %v9671_v54  ;;  %v11959_v4 = vmul.f32 -1.442695, %v6949_v1  ;;  %v19931_v52 = vpop.f32.mrb[240].mxu0 }
 0xac5   : > { %v15100_v9 = vpop.eup %15099  ;;  %11000 = vst [vmem:[%s18980_s30 + $0x7f0] sm:$0xff] %v15098_v48  ;;  %15119 = vpow2.f32 %v11945_v33  ;;  %v11961_v48 = vmul.f32 -1.442695, %v7302_v7 }
 0xac6   : > { %v15102_v6 = vpop.eup %15101  ;;  %10999 = vst [vmem:[%s18980_s30 + $0x7e8] sm:$0xff] %v15100_v9  ;;  %15121 = vpow2.f32 %v11947_v47  ;;  %v21581_v47 = vld [vmem:[#allocation25_spill] sm:$0xff] }
 0xac7   : > { %v15104_v2 = vpop.eup %15103  ;;  %11001 = vst [vmem:[%s18980_s30 + $0x7f8] sm:$0xff] %v15102_v6  ;;  %15123 = vpow2.f32 %v11946_v14  ;;  %v6955_v53 = vadd.f32 %v21581_v47, %v18921_v30  ;;  %v19933_v14 = vpop.f32.mrb[48].mxu1 }
 0xac8   : > { %v15106_v33 = vpop.eup %15105  ;;  %11005 = vst [vmem:[%s18980_s30 + $0x818] sm:$0xff] %v15104_v2  ;;  %15125 = vpow2.f32 %v11948_v40  ;;  %v19936_v40 = vpop.f32.mrb[241].mxu0 }
 0xac9   : > { %v15108_v54 = vpop.eup %15107  ;;  %11007 = vst [vmem:[%s18980_s30 + $0x828] sm:$0xff] %v15106_v33  ;;  %15127 = vpow2.f32 %v11952_v22  ;;  %v19938_v59 = vpop.f32.mrb[49].mxu1  ;;  %v11960_v22 = vmul.f32 -1.442695, %v6951_v45  ;;  %v11966_v21 = vmul.f32 -1.442695, %v6955_v53 }
 0xaca   : > { %v15110_v35 = vpop.eup %15109  ;;  %11006 = vst [vmem:[%s18980_s30 + $0x820] sm:$0xff] %v15108_v54  ;;  %15129 = vpow2.f32 %v11954_v36  ;;  %v19941_v1 = vpop.f32.mrb[242].mxu0  ;;  %v11962_v36 = vmul.f32 -1.442695, %v7304_v8 }
 0xacb   : > { %v15112_v9 = vpop.eup %15111  ;;  %11008 = vst [vmem:[%s18980_s30 + $0x830] sm:$0xff] %v15110_v35  ;;  %15131 = vpow2.f32 %v11953_v38  ;;  %v19943_v6 = vpop.f32.mrb[50].mxu1 }
 0xacc   : > { %v15114_v2 = vpop.eup %15113  ;;  %11012 = vst [vmem:[%s18980_s30 + $0x850] sm:$0xff] %v15112_v9  ;;  %15133 = vpow2.f32 %v11955_v24  ;;  %v19946_v7 = vpop.f32.mrb[243].mxu0 }
 0xacd   : > { %v19948_v29 = vpop.f32.mrb[51].mxu1  ;;  %v15116_v33 = vpop.eup %15115  ;;  %11014 = vst [vmem:[%s18980_s30 + $0x860] sm:$0xff] %v15114_v2  ;;  %15135 = vpow2.f32 %v11959_v4 }
 0xace   : > { %21582 = vst [vmem:[#allocation5_spill] sm:$0xff] %v19948_v29  ;;  %v15118_v54 = vpop.eup %15117  ;;  %11013 = vst [vmem:[%s18980_s30 + $0x858] sm:$0xff] %v15116_v33  ;;  %15137 = vpow2.f32 %v11961_v48  ;;  %v19953_v8 = vpop.f32.mrb[244].mxu0 }
 0xacf   : > { %v15120_v38 = vpop.eup %15119  ;;  %11015 = vst [vmem:[%s18980_s30 + $0x868] sm:$0xff] %v15118_v54  ;;  %15139 = vpow2.f32 %v11960_v22  ;;  %21583 = vst [vmem:[#allocation39_spill] sm:$0xff] %v19953_v8  ;;  %v19955_v9 = vpop.f32.mrb[52].mxu1 }
 0xad0   : > { %v15122_v45 = vpop.eup %15121  ;;  %v9675_v47 = vadd.f32 1.0, %v15120_v38  ;;  %15141 = vpow2.f32 %v11962_v36  ;;  %21584 = vst [vmem:[#allocation40_spill] sm:$0xff] %v19955_v9  ;;  %v19957_v53 = vpop.f32.mrb[245].mxu0 }
 0xad1   : > { %v15124_v35 = vpop.eup %15123  ;;  %v9677_v24 = vadd.f32 1.0, %v15122_v45  ;;  %15143 = vpow2.f32 %v11966_v21  ;;  %21585 = vst [vmem:[#allocation41_spill] sm:$0xff] %v19957_v53 }
 0xad2   : > { %v15126_v29 = vpop.eup %15125  ;;  %15145 = vrcp.f32 %v9675_v47  ;;  %v9676_v4 = vadd.f32 1.0, %v15124_v35  ;;  %v21586_v47 = vld [vmem:[#allocation12_spill] sm:$0xff] }
 0xad3   : > { %v15128_v2 = vpop.eup %15127  ;;  %15147 = vrcp.f32 %v9677_v24  ;;  %v9678_v48 = vadd.f32 1.0, %v15126_v29  ;;  %v7308_v35 = vadd.f32 %v21586_v47, %v18923_v23  ;;  %v6957_v29 = vadd.f32 %v19628_v55, %v18925_v3 }
 0xad4   : > { %v15130_v33 = vpop.eup %15129  ;;  %15149 = vrcp.f32 %v9676_v4  ;;  %v9682_v22 = vadd.f32 1.0, %v15128_v2  ;;  %v7310_v2 = vadd.f32 %v19630_v41, %v18927_v34  ;;  %v7312_v55 = vadd.f32 %v19640_v57, %v18923_v23 }
 0xad5   : > { %v15132_v54 = vpop.eup %15131  ;;  %15151 = vrcp.f32 %v9678_v48  ;;  %v9684_v36 = vadd.f32 1.0, %v15130_v33  ;;  %v6961_v41 = vadd.f32 %v19650_v10, %v18925_v3  ;;  %v7314_v47 = vadd.f32 %v19652_v31, %v18927_v34 }
 0xad6   : > { %v15134_v38 = vpop.eup %15133  ;;  %15153 = vrcp.f32 %v9682_v22  ;;  %v9683_v21 = vadd.f32 1.0, %v15132_v54  ;;  %v6959_v22 = vadd.f32 %v19638_v37, %v18921_v30  ;;  %v11969_v37 = vmul.f32 -1.442695, %v7310_v2 }
 0xad7   : > { %v15136_v45 = vpop.eup %15135  ;;  %15155 = vrcp.f32 %v9684_v36  ;;  %v9685_v9 = vadd.f32 1.0, %v15134_v38  ;;  %v11968_v38 = vmul.f32 -1.442695, %v7308_v35  ;;  %v11975_v2 = vmul.f32 -1.442695, %v7312_v55  ;;  %v21588_v55 = vld [vmem:[#allocation26_spill] sm:$0xff] }
 0xad8   : > { %v15138_v8 = vpop.eup %15137  ;;  %15157 = vrcp.f32 %v9683_v21  ;;  %v9689_v53 = vadd.f32 1.0, %v15136_v45  ;;  %v11967_v21 = vmul.f32 -1.442695, %v6957_v29  ;;  %v11973_v57 = vmul.f32 -1.442695, %v6959_v22 }
 0xad9   : > { %v15140_v24 = vpop.eup %15139  ;;  %15159 = vrcp.f32 %v9685_v9  ;;  %v9691_v4 = vadd.f32 1.0, %v15138_v8  ;;  %v6965_v29 = vadd.f32 %v19664_v32, %v18921_v30  ;;  %v7318_v31 = vadd.f32 %v19666_v26, %v18923_v23  ;;  %v21587_v32 = vld [vmem:[#allocation15_spill] sm:$0xff] }
 0xada   : > { %v15142_v48 = vpop.eup %15141  ;;  %15161 = vrcp.f32 %v9689_v53  ;;  %v9690_v33 = vadd.f32 1.0, %v15140_v24  ;;  %v19971_v53 = vpop.f32.mrb[53].mxu1  ;;  %v6967_v22 = vadd.f32 %v21587_v32, %v18925_v3  ;;  %v7320_v26 = vadd.f32 %v21588_v55, %v18927_v34 }
 0xadb   : > { %v15144_v54 = vpop.eup %15143  ;;  %15163 = vrcp.f32 %v9691_v4  ;;  %v9692_v36 = vadd.f32 1.0, %v15142_v48  ;;  %v19979_v24 = vpop.f32.mrb[246].mxu0 }
 0xadc   : > { %v15146_v9 = vpop.eup %15145  ;;  %15165 = vrcp.f32 %v9690_v33  ;;  %v9696_v8 = vadd.f32 1.0, %v15144_v54  ;;  %v19981_v10 = vpop.f32.mrb[54].mxu1  ;;  %v11974_v33 = vmul.f32 -1.442695, %v6961_v41  ;;  %v21589_v41 = vld [vmem:[#allocation27_spill] sm:$0xff] }
 0xadd   : > { %v15148_v45 = vpop.eup %15147  ;;  %11019 = vst [vmem:[%s18980_s30 + $0x888] sm:$0xff] %v15146_v9  ;;  %15167 = vrcp.f32 %v9692_v36  ;;  %v19989_v54 = vpop.f32.mrb[247].mxu0  ;;  %v11981_v32 = vmul.f32 -1.442695, %v6967_v22 }
 0xade   : > { %v15150_v35 = vpop.eup %15149  ;;  %11021 = vst [vmem:[%s18980_s30 + $0x898] sm:$0xff] %v15148_v45  ;;  %15169 = vrcp.f32 %v9696_v8  ;;  %v19991_v36 = vpop.f32.mrb[55].mxu1  ;;  %v6969_v45 = vadd.f32 %v21589_v41, %v18921_v30 }
 0xadf   : > { %v15152_v4 = vpop.eup %15151  ;;  %11020 = vst [vmem:[%s18980_s30 + $0x890] sm:$0xff] %v15150_v35  ;;  %15171 = vpow2.f32 %v11968_v38  ;;  %v11976_v38 = vmul.f32 -1.442695, %v7314_v47 }
 0xae0   : > { %v15154_v48 = vpop.eup %15153  ;;  %11022 = vst [vmem:[%s18980_s30 + $0x8a0] sm:$0xff] %v15152_v4  ;;  %15173 = vpow2.f32 %v11967_v21  ;;  %v11980_v21 = vmul.f32 -1.442695, %v6965_v29  ;;  %v11982_v4 = vmul.f32 -1.442695, %v7318_v31  ;;  %v20007_v31 = vpop.f32.mrb[56].mxu1 }
 0xae1   : > { %v15156_v9 = vpop.eup %15155  ;;  %11026 = vst [vmem:[%s18980_s30 + $0x8c0] sm:$0xff] %v15154_v48  ;;  %15175 = vpow2.f32 %v11969_v37  ;;  %v21590_v48 = vld [vmem:[#allocation28_spill] sm:$0xff]  ;;  %v20012_v22 = vpop.f32.mrb[57].mxu1 }
 0xae2   : > { %v15158_v8 = vpop.eup %15157  ;;  %11028 = vst [vmem:[%s18980_s30 + $0x8d0] sm:$0xff] %v15156_v9  ;;  %15177 = vpow2.f32 %v11973_v57  ;;  %v7322_v37 = vadd.f32 %v21590_v48, %v18923_v23  ;;  %v11983_v57 = vmul.f32 -1.442695, %v7320_v26  ;;  %v11987_v9 = vmul.f32 -1.442695, %v6969_v45  ;;  %21591 = vst [vmem:[#allocation42_spill] sm:$0xff] %v20012_v22 }
 0xae3   : > { %v15160_v35 = vpop.eup %15159  ;;  %11027 = vst [vmem:[%s18980_s30 + $0x8c8] sm:$0xff] %v15158_v8  ;;  %15179 = vpow2.f32 %v11975_v2  ;;  %v20005_v2 = vpop.f32.mrb[248].mxu0 }
 0xae4   : > { %v15162_v47 = vpop.eup %15161  ;;  %11029 = vst [vmem:[%s18980_s30 + $0x8d8] sm:$0xff] %v15160_v35  ;;  %15181 = vpow2.f32 %v11974_v33  ;;  %v11989_v41 = vmul.f32 -1.442695, %v7322_v37  ;;  %v20010_v33 = vpop.f32.mrb[249].mxu0 }
 0xae5   : > { %v15164_v55 = vpop.eup %15163  ;;  %11033 = vst [vmem:[%s18980_s30 + $0x8f8] sm:$0xff] %v15162_v47  ;;  %15183 = vpow2.f32 %v11976_v38  ;;  %v20015_v38 = vpop.f32.mrb[250].mxu0 }
 0xae6   : > { %v15166_v29 = vpop.eup %15165  ;;  %11035 = vst [vmem:[%s18980_s30 + $0x908] sm:$0xff] %v15164_v55  ;;  %15185 = vpow2.f32 %v11980_v21  ;;  %21592 = vst [vmem:[#allocation43_spill] sm:$0xff] %v20015_v38  ;;  %v20017_v26 = vpop.f32.mrb[58].mxu1 }
 0xae7   : > { %v15168_v8 = vpop.eup %15167  ;;  %11034 = vst [vmem:[%s18980_s30 + $0x900] sm:$0xff] %v15166_v29  ;;  %15187 = vpow2.f32 %v11982_v4  ;;  %21593 = vst [vmem:[#allocation44_spill] sm:$0xff] %v20017_v26  ;;  %v20020_v45 = vpop.f32.mrb[251].mxu0 }
 0xae8   : > { %v15170_v35 = vpop.eup %15169  ;;  %11036 = vst [vmem:[%s18980_s30 + $0x910] sm:$0xff] %v15168_v8  ;;  %15189 = vpow2.f32 %v11981_v32  ;;  %21594 = vst [vmem:[#allocation4_spill] sm:$0xff] %v20020_v45  ;;  %v20022_v48 = vpop.f32.mrb[59].mxu1 }
 0xae9   : > { %v15172_v21 = vpop.eup %15171  ;;  %11040 = vst [vmem:[%s18980_s30 + $0x930] sm:$0xff] %v15170_v35  ;;  %15191 = vpow2.f32 %v11983_v57  ;;  %21595 = vst [vmem:[#allocation45_spill] sm:$0xff] %v20022_v48 }
 0xaea   : > { %v15174_v4 = vpop.eup %15173  ;;  %v9698_v37 = vadd.f32 1.0, %v15172_v21  ;;  %15193 = vpow2.f32 %v11987_v9 }
 0xaeb   : > { %v15176_v47 = vpop.eup %15175  ;;  %v9697_v55 = vadd.f32 1.0, %v15174_v4  ;;  %15195 = vpow2.f32 %v11989_v41  ;;  %v21596_v41 = vld [vmem:[#allocation29_spill] sm:$0xff] }
 0xaec   : > { %v15178_v29 = vpop.eup %15177  ;;  %15197 = vrcp.f32 %v9698_v37  ;;  %v9699_v32 = vadd.f32 1.0, %v15176_v47  ;;  %v6971_v4 = vadd.f32 %v21596_v41, %v18925_v3  ;;  %v7330_v41 = vadd.f32 %v19727_v19, %v18927_v34 }
 0xaed   : > { %v15180_v8 = vpop.eup %15179  ;;  %15199 = vrcp.f32 %v9697_v55  ;;  %v9703_v38 = vadd.f32 1.0, %v15178_v29  ;;  %v7324_v55 = vadd.f32 %v19696_v16, %v18927_v34  ;;  %v6977_v16 = vadd.f32 %v19725_v0, %v18925_v3 }
 0xaee   : > { %v15182_v26 = vpop.eup %15181  ;;  %15201 = vrcp.f32 %v9699_v32  ;;  %v9705_v35 = vadd.f32 1.0, %v15180_v8 }
 0xaef   : > { %v15184_v57 = vpop.eup %15183  ;;  %15203 = vrcp.f32 %v9703_v38  ;;  %v9704_v45 = vadd.f32 1.0, %v15182_v26  ;;  %v6975_v38 = vadd.f32 %v19718_v42, %v18921_v30  ;;  %v11990_v42 = vmul.f32 -1.442695, %v7324_v55 }
 0xaf0   : > { %v15186_v22 = vpop.eup %15185  ;;  %15205 = vrcp.f32 %v9705_v35  ;;  %v9706_v48 = vadd.f32 1.0, %v15184_v57  ;;  %v11988_v57 = vmul.f32 -1.442695, %v6971_v4  ;;  %v11995_v19 = vmul.f32 -1.442695, %v6977_v16  ;;  %v20053_v16 = vpop.f32.mrb[60].mxu1 }
 0xaf1   : > { %v15188_v21 = vpop.eup %15187  ;;  %15207 = vrcp.f32 %v9704_v45  ;;  %v9710_v9 = vadd.f32 1.0, %v15186_v22  ;;  %v21597_v22 = vld [vmem:[#allocation30_spill] sm:$0xff] }
 0xaf2   : > { %v15190_v37 = vpop.eup %15189  ;;  %15209 = vrcp.f32 %v9706_v48  ;;  %v9712_v47 = vadd.f32 1.0, %v15188_v21  ;;  %v7328_v8 = vadd.f32 %v21597_v22, %v18923_v23 }
 0xaf3   : > { %v15192_v29 = vpop.eup %15191  ;;  %15211 = vrcp.f32 %v9710_v9  ;;  %v9711_v32 = vadd.f32 1.0, %v15190_v37 }
 0xaf4   : > { %v15194_v26 = vpop.eup %15193  ;;  %15213 = vrcp.f32 %v9712_v47  ;;  %v9713_v45 = vadd.f32 1.0, %v15192_v29  ;;  %v11994_v47 = vmul.f32 -1.442695, %v6975_v38  ;;  %v6979_v29 = vadd.f32 %v19730_v56, %v18921_v30 }
 0xaf5   : > { %v15196_v35 = vpop.eup %15195  ;;  %15215 = vrcp.f32 %v9711_v32  ;;  %v9717_v48 = vadd.f32 1.0, %v15194_v26  ;;  %v11996_v0 = vmul.f32 -1.442695, %v7328_v8  ;;  %v21598_v32 = vld [vmem:[#allocation31_spill] sm:$0xff]  ;;  %v11997_v56 = vmul.f32 -1.442695, %v7330_v41 }
 0xaf6   : > { %v15198_v21 = vpop.eup %15197  ;;  %15217 = vrcp.f32 %v9713_v45  ;;  %v9719_v9 = vadd.f32 1.0, %v15196_v35  ;;  %v7332_v26 = vadd.f32 %v21598_v32, %v18923_v23  ;;  %v21599_v45 = vld [vmem:[#allocation32_spill] sm:$0xff]  ;;  %v21600_v35 = vld [vmem:[#allocation33_spill] sm:$0xff]  ;;  %v7338_v41 = vadd.f32 %v19747_v5, %v18923_v23  ;;  %v21601_v32 = vld [vmem:[#allocation34_spill] sm:$0xff] }
 0xaf7   : > { %v15200_v37 = vpop.eup %15199  ;;  %11042 = vst [vmem:[%s18980_s30 + $0x940] sm:$0xff] %v15198_v21  ;;  %15219 = vrcp.f32 %v9717_v48  ;;  %v6981_v22 = vadd.f32 %v21599_v45, %v18925_v3  ;;  %v7334_v48 = vadd.f32 %v21600_v35, %v18927_v34  ;;  %v12001_v21 = vmul.f32 -1.442695, %v6979_v29 }
 0xaf8   : > { %v15202_v4 = vpop.eup %15201  ;;  %11041 = vst [vmem:[%s18980_s30 + $0x938] sm:$0xff] %v15200_v37  ;;  %15221 = vrcp.f32 %v9719_v9  ;;  %v20051_v9 = vpop.f32.mrb[252].mxu0 }
 0xaf9   : > { %v15204_v55 = vpop.eup %15203  ;;  %11043 = vst [vmem:[%s18980_s30 + $0x948] sm:$0xff] %v15202_v4  ;;  %15223 = vpow2.f32 %v11988_v57  ;;  %v6985_v57 = vadd.f32 %v19745_v25, %v18921_v30  ;;  %v20058_v4 = vpop.f32.mrb[253].mxu0  ;;  %v12002_v25 = vmul.f32 -1.442695, %v6981_v22  ;;  %v12004_v5 = vmul.f32 -1.442695, %v7334_v48 }
 0xafa   : > { %v15206_v38 = vpop.eup %15205  ;;  %11047 = vst [vmem:[%s18980_s30 + $0x968] sm:$0xff] %v15204_v55  ;;  %15225 = vpow2.f32 %v11990_v42  ;;  %v12003_v42 = vmul.f32 -1.442695, %v7332_v26  ;;  %v6987_v55 = vadd.f32 %v21601_v32, %v18925_v3  ;;  %v20065_v45 = vpop.f32.mrb[254].mxu0 }
 0xafb   : > { %v15208_v8 = vpop.eup %15207  ;;  %11049 = vst [vmem:[%s18980_s30 + $0x978] sm:$0xff] %v15206_v38  ;;  %15227 = vpow2.f32 %v11994_v47  ;;  %v20060_v47 = vpop.f32.mrb[61].mxu1  ;;  %v12008_v22 = vmul.f32 -1.442695, %v6985_v57 }
 0xafc   : > { %v15210_v37 = vpop.eup %15209  ;;  %11048 = vst [vmem:[%s18980_s30 + $0x970] sm:$0xff] %v15208_v8  ;;  %15229 = vpow2.f32 %v11996_v0  ;;  %v20067_v0 = vpop.f32.mrb[62].mxu1 }
 0xafd   : > { %v15212_v29 = vpop.eup %15211  ;;  %11050 = vst [vmem:[%s18980_s30 + $0x980] sm:$0xff] %v15210_v37  ;;  %15231 = vpow2.f32 %v11995_v19  ;;  %v20070_v38 = vpop.f32.mrb[255].mxu0  ;;  %v12010_v37 = vmul.f32 -1.442695, %v7338_v41 }
 0xafe   : > { %v15214_v26 = vpop.eup %15213  ;;  %11054 = vst [vmem:[%s18980_s30 + $0x9a0] sm:$0xff] %v15212_v29  ;;  %15233 = vpow2.f32 %v11997_v56  ;;  %21602 = vst [vmem:[#allocation46_spill] sm:$0xff] %v20070_v38  ;;  %v20072_v35 = vpop.f32.mrb[63].mxu1  ;;  %v12009_v29 = vmul.f32 -1.442695, %v6987_v55 }
 0xaff   : > { %21603 = vst [vmem:[#allocation18_spill] sm:$0xff] %v20072_v35  ;;  %v15216_v19 = vpop.eup %15215  ;;  %11056 = vst [vmem:[%s18980_s30 + $0x9b0] sm:$0xff] %v15214_v26  ;;  %15235 = vpow2.f32 %v12001_v21  ;;  %v20079_v35 = vpop.f32.mrb[0].mxu0 }
 0xb00   : > { %v15218_v8 = vpop.eup %15217  ;;  %11055 = vst [vmem:[%s18980_s30 + $0x9a8] sm:$0xff] %v15216_v19  ;;  %15237 = vpow2.f32 %v12003_v42  ;;  %v20081_v38 = vpop.f32.mrb[64].mxu1 }
 0xb01   : > { %v15220_v32 = vpop.eup %15219  ;;  %11057 = vst [vmem:[%s18980_s30 + $0x9b8] sm:$0xff] %v15218_v8  ;;  %15239 = vpow2.f32 %v12002_v25  ;;  %21604 = vst [vmem:[#allocation19_spill] sm:$0xff] %v20081_v38  ;;  %v20083_v26 = vpop.f32.mrb[1].mxu0 }
 0xb02   : > { %v15222_v56 = vpop.eup %15221  ;;  %11061 = vst [vmem:[%s18980_s30 + $0x9d8] sm:$0xff] %v15220_v32  ;;  %15241 = vpow2.f32 %v12004_v5  ;;  %21605 = vst [vmem:[#allocation20_spill] sm:$0xff] %v20083_v26  ;;  %v20085_v42 = vpop.f32.mrb[65].mxu1 }
 0xb03   : > { %v15224_v48 = vpop.eup %15223  ;;  %11063 = vst [vmem:[%s18980_s30 + $0x9e8] sm:$0xff] %v15222_v56  ;;  %15243 = vpow2.f32 %v12008_v22  ;;  %21606 = vst [vmem:[#allocation6_spill] sm:$0xff] %v20085_v42  ;;  %v20087_v55 = vpop.f32.mrb[2].mxu0 }
 0xb04   : > { %v15226_v21 = vpop.eup %15225  ;;  %v9718_v57 = vadd.f32 1.0, %v15224_v48  ;;  %15245 = vpow2.f32 %v12010_v37  ;;  %21607 = vst [vmem:[#allocation9_spill] sm:$0xff] %v20087_v55 }
 0xb05   : > { %v15228_v41 = vpop.eup %15227  ;;  %v9720_v25 = vadd.f32 1.0, %v15226_v21  ;;  %15247 = vpow2.f32 %v12009_v29  ;;  %v21608_v21 = vld [vmem:[#allocation35_spill] sm:$0xff] }
 0xb06   : > { %v15230_v5 = vpop.eup %15229  ;;  %15249 = vrcp.f32 %v9718_v57  ;;  %v9724_v19 = vadd.f32 1.0, %v15228_v41  ;;  %v7340_v55 = vadd.f32 %v21608_v21, %v18927_v34 }
 0xb07   : > { %v15232_v22 = vpop.eup %15231  ;;  %15251 = vrcp.f32 %v9720_v25  ;;  %v9726_v8 = vadd.f32 1.0, %v15230_v5  ;;  %v6989_v25 = vadd.f32 %v19772_v61, %v18921_v30  ;;  %v21610_v61 = vld [vmem:[#allocation17_spill] sm:$0xff] }
 0xb08   : > { %v15234_v32 = vpop.eup %15233  ;;  %15253 = vrcp.f32 %v9724_v19  ;;  %v9725_v56 = vadd.f32 1.0, %v15232_v22  ;;  %v7342_v22 = vadd.f32 %v19774_v62, %v18923_v23  ;;  %v6995_v62 = vadd.f32 %v19802_v44, %v18921_v30 }
 0xb09   : > { %v15236_v48 = vpop.eup %15235  ;;  %15255 = vrcp.f32 %v9726_v8  ;;  %v9727_v37 = vadd.f32 1.0, %v15234_v32 }
 0xb0a   : > { %v15238_v26 = vpop.eup %15237  ;;  %15257 = vrcp.f32 %v9725_v56  ;;  %v9731_v42 = vadd.f32 1.0, %v15236_v48 }
 0xb0b   : > { %v15240_v38 = vpop.eup %15239  ;;  %15259 = vrcp.f32 %v9727_v37  ;;  %v9733_v29 = vadd.f32 1.0, %v15238_v26  ;;  %v21609_v26 = vld [vmem:[#allocation36_spill] sm:$0xff]  ;;  %v7344_v37 = vadd.f32 %v21610_v61, %v18927_v34  ;;  %v21611_v61 = vld [vmem:[#allocation7_spill] sm:$0xff] }
 0xb0c   : > { %v15242_v57 = vpop.eup %15241  ;;  %15261 = vrcp.f32 %v9731_v42  ;;  %v9732_v41 = vadd.f32 1.0, %v15240_v38  ;;  %v6991_v56 = vadd.f32 %v21609_v26, %v18925_v3  ;;  %v12011_v42 = vmul.f32 -1.442695, %v7340_v55  ;;  %v20109_v26 = vpop.f32.mrb[3].mxu0 }
 0xb0d   : > { %v15244_v5 = vpop.eup %15243  ;;  %15263 = vrcp.f32 %v9733_v29  ;;  %v9734_v19 = vadd.f32 1.0, %v15242_v57  ;;  %v12015_v57 = vmul.f32 -1.442695, %v6989_v25  ;;  %v7348_v55 = vadd.f32 %v19804_v17, %v18923_v23 }
 0xb0e   : > { %v15246_v8 = vpop.eup %15245  ;;  %15265 = vrcp.f32 %v9732_v41  ;;  %v9738_v32 = vadd.f32 1.0, %v15244_v5  ;;  %v20101_v41 = vpop.f32.mrb[66].mxu1  ;;  %v6997_v25 = vadd.f32 %v19807_v20, %v18925_v3  ;;  %v7350_v17 = vadd.f32 %v19809_v51, %v18927_v34 }
 0xb0f   : > { %v15248_v48 = vpop.eup %15247  ;;  %15267 = vrcp.f32 %v9734_v19  ;;  %v9740_v38 = vadd.f32 1.0, %v15246_v8  ;;  %v12017_v19 = vmul.f32 -1.442695, %v7342_v22  ;;  %v20111_v44 = vpop.f32.mrb[67].mxu1  ;;  %v12018_v22 = vmul.f32 -1.442695, %v7344_v37 }
 0xb10   : > { %v15250_v29 = vpop.eup %15249  ;;  %15269 = vrcp.f32 %v9738_v32  ;;  %v9739_v21 = vadd.f32 1.0, %v15248_v48  ;;  %v12016_v32 = vmul.f32 -1.442695, %v6991_v56  ;;  %v12022_v56 = vmul.f32 -1.442695, %v6995_v62 }
 0xb11   : > { %v15252_v5 = vpop.eup %15251  ;;  %11062 = vst [vmem:[%s18980_s30 + $0x9e0] sm:$0xff] %v15250_v29  ;;  %15271 = vrcp.f32 %v9740_v38  ;;  %v6999_v20 = vadd.f32 %v21611_v61, %v18921_v30  ;;  %v12023_v51 = vmul.f32 -1.442695, %v6997_v25 }
 0xb12   : > { %v15254_v8 = vpop.eup %15253  ;;  %11064 = vst [vmem:[%s18980_s30 + $0x9f0] sm:$0xff] %v15252_v5  ;;  %15273 = vrcp.f32 %v9739_v21  ;;  %v12024_v21 = vmul.f32 -1.442695, %v7348_v55  ;;  %v21612_v5 = vld [vmem:[#allocation3_spill] sm:$0xff] }
 0xb13   : > { %v15256_v48 = vpop.eup %15255  ;;  %11068 = vst [vmem:[%s18980_s30 + $0xa10] sm:$0xff] %v15254_v8  ;;  %15275 = vpow2.f32 %v12011_v42  ;;  %v7352_v42 = vadd.f32 %v21612_v5, %v18923_v23  ;;  %v21613_v8 = vld [vmem:[#allocation37_spill] sm:$0xff]  ;;  %v12029_v61 = vmul.f32 -1.442695, %v6999_v20 }
 0xb14   : > { %v15258_v38 = vpop.eup %15257  ;;  %11070 = vst [vmem:[%s18980_s30 + $0xa20] sm:$0xff] %v15256_v48  ;;  %15277 = vpow2.f32 %v12015_v57  ;;  %v7001_v57 = vadd.f32 %v21613_v8, %v18925_v3  ;;  %v12025_v48 = vmul.f32 -1.442695, %v7350_v17 }
 0xb15   : > { %v15260_v29 = vpop.eup %15259  ;;  %11069 = vst [vmem:[%s18980_s30 + $0xa18] sm:$0xff] %v15258_v38  ;;  %15279 = vpow2.f32 %v12017_v19  ;;  %v21614_v38 = vld [vmem:[#allocation38_spill] sm:$0xff]  ;;  %v12031_v5 = vmul.f32 -1.442695, %v7352_v42 }
 0xb16   : > { %v15262_v37 = vpop.eup %15261  ;;  %11071 = vst [vmem:[%s18980_s30 + $0xa28] sm:$0xff] %v15260_v29  ;;  %15281 = vpow2.f32 %v12016_v32  ;;  %v7354_v19 = vadd.f32 %v21614_v38, %v18927_v34  ;;  %v20129_v29 = vpop.f32.mrb[4].mxu0 }
 0xb17   : > { %v15264_v62 = vpop.eup %15263  ;;  %11075 = vst [vmem:[%s18980_s30 + $0xa48] sm:$0xff] %v15262_v37  ;;  %15283 = vpow2.f32 %v12018_v22  ;;  %v20131_v32 = vpop.f32.mrb[68].mxu1 }
 0xb18   : > { %v15266_v55 = vpop.eup %15265  ;;  %11077 = vst [vmem:[%s18980_s30 + $0xa58] sm:$0xff] %v15264_v62  ;;  %15285 = vpow2.f32 %v12022_v56  ;;  %v20134_v22 = vpop.f32.mrb[5].mxu0  ;;  %v12030_v56 = vmul.f32 -1.442695, %v7001_v57  ;;  %v12032_v38 = vmul.f32 -1.442695, %v7354_v19 }
 0xb19   : > { %v15268_v25 = vpop.eup %15267  ;;  %11076 = vst [vmem:[%s18980_s30 + $0xa50] sm:$0xff] %v15266_v55  ;;  %15287 = vpow2.f32 %v12024_v21  ;;  %v20136_v17 = vpop.f32.mrb[69].mxu1 }
 0xb1a   : > { %21615 = vst [vmem:[#allocation21_spill] sm:$0xff] %v20136_v17  ;;  %v15270_v37 = vpop.eup %15269  ;;  %11078 = vst [vmem:[%s18980_s30 + $0xa60] sm:$0xff] %v15268_v25  ;;  %15289 = vpow2.f32 %v12023_v51  ;;  %v20139_v20 = vpop.f32.mrb[6].mxu0 }
 0xb1b   : > { %21616 = vst [vmem:[#allocation22_spill] sm:$0xff] %v20139_v20  ;;  %v20141_v8 = vpop.f32.mrb[70].mxu1  ;;  %v15272_v62 = vpop.eup %15271  ;;  %11082 = vst [vmem:[%s18980_s30 + $0xa80] sm:$0xff] %v15270_v37  ;;  %15291 = vpow2.f32 %v12025_v48 }
 0xb1c   : > { %21617 = vst [vmem:[#allocation13_spill] sm:$0xff] %v20141_v8  ;;  %v20144_v21 = vpop.f32.mrb[7].mxu0  ;;  %v20146_v42 = vpop.f32.mrb[71].mxu1  ;;  %11084 = vst [vmem:[%s18980_s30 + $0xa90] sm:$0xff] %v15272_v62  ;;  %15293 = vpow2.f32 %v12029_v61 }
 0xb1d   : > { %21618 = vst [vmem:[#allocation23_spill] sm:$0xff] %v20146_v42  ;;  %v15274_v55 = vpop.eup %15273  ;;  %15295 = vpow2.f32 %v12031_v5  ;;  %v20150_v19 = vpop.f32.mrb[8].mxu0 }
 0xb1e   : > { %v15276_v17 = vpop.eup %15275  ;;  %11083 = vst [vmem:[%s18980_s30 + $0xa88] sm:$0xff] %v15274_v55  ;;  %15297 = vpow2.f32 %v12030_v56  ;;  %21619 = vst [vmem:[#allocation14_spill] sm:$0xff] %v20150_v19  ;;  %v20152_v37 = vpop.f32.mrb[72].mxu1 }
 0xb1f   : > { %v15278_v51 = vpop.eup %15277  ;;  %v9741_v57 = vadd.f32 1.0, %v15276_v17  ;;  %15299 = vpow2.f32 %v12032_v38  ;;  %21620 = vst [vmem:[#allocation8_spill] sm:$0xff] %v20152_v37 }
 0xb20   : > { %v15280_v25 = vpop.eup %15279  ;;  %v9745_v20 = vadd.f32 1.0, %v15278_v51 }
 0xb21   : > { %v15282_v8 = vpop.eup %15281  ;;  %15301 = vrcp.f32 %v9741_v57  ;;  %v9747_v48 = vadd.f32 1.0, %v15280_v25  ;;  %v7005_v25 = vadd.f32 %v19824_v13, %v18921_v30 }
 0xb22   : > { %v15284_v42 = vpop.eup %15283  ;;  %15303 = vrcp.f32 %v9745_v20  ;;  %v9746_v62 = vadd.f32 1.0, %v15282_v8  ;;  %v7358_v20 = vadd.f32 %v19840_v50, %v18923_v23  ;;  %v7009_v50 = vadd.f32 %v19858_v39, %v18921_v30 }
 0xb23   : > { %v15286_v61 = vpop.eup %15285  ;;  %15305 = vrcp.f32 %v9747_v48  ;;  %v9748_v55 = vadd.f32 1.0, %v15284_v42  ;;  %v7007_v48 = vadd.f32 %v19848_v11, %v18925_v3 }
 0xb24   : > { %v15288_v5 = vpop.eup %15287  ;;  %15307 = vrcp.f32 %v9746_v62  ;;  %v9752_v17 = vadd.f32 1.0, %v15286_v61  ;;  %v12038_v11 = vmul.f32 -1.442695, %v7358_v20 }
 0xb25   : > { %v15290_v56 = vpop.eup %15289  ;;  %15309 = vrcp.f32 %v9748_v55  ;;  %v9754_v51 = vadd.f32 1.0, %v15288_v5  ;;  %v7360_v55 = vadd.f32 %v19850_v28, %v18927_v34  ;;  %v12037_v28 = vmul.f32 -1.442695, %v7007_v48 }
 0xb26   : > { %v15292_v38 = vpop.eup %15291  ;;  %15311 = vrcp.f32 %v9752_v17  ;;  %v9753_v57 = vadd.f32 1.0, %v15290_v56  ;;  %v12036_v17 = vmul.f32 -1.442695, %v7005_v25  ;;  %v20171_v25 = vpop.f32.mrb[73].mxu1 }
 0xb27   : > { %v15294_v19 = vpop.eup %15293  ;;  %15313 = vrcp.f32 %v9754_v51  ;;  %v9755_v37 = vadd.f32 1.0, %v15292_v38  ;;  %v7011_v38 = vadd.f32 %v19869_v18, %v18925_v3  ;;  %v12039_v20 = vmul.f32 -1.442695, %v7360_v55 }
 0xb28   : > { %v15296_v8 = vpop.eup %15295  ;;  %15315 = vrcp.f32 %v9753_v57  ;;  %v9759_v42 = vadd.f32 1.0, %v15294_v19  ;;  %v20169_v57 = vpop.f32.mrb[9].mxu0  ;;  %v7015_v18 = vadd.f32 %v19881_v58, %v18921_v30  ;;  %v7017_v58 = vadd.f32 %v19886_v43, %v18925_v3 }
 0xb29   : > { %v15298_v62 = vpop.eup %15297  ;;  %15317 = vrcp.f32 %v9755_v37  ;;  %v9761_v61 = vadd.f32 1.0, %v15296_v8  ;;  %v7362_v37 = vadd.f32 %v19860_v49, %v18923_v23  ;;  %v7364_v49 = vadd.f32 %v19871_v63, %v18927_v34  ;;  %v20179_v48 = vpop.f32.mrb[10].mxu0 }
 0xb2a   : > { %v15300_v13 = vpop.eup %15299  ;;  %15319 = vrcp.f32 %v9759_v42  ;;  %v9760_v5 = vadd.f32 1.0, %v15298_v62  ;;  %v12043_v42 = vmul.f32 -1.442695, %v7009_v50  ;;  %v20181_v62 = vpop.f32.mrb[74].mxu1  ;;  %v7368_v63 = vadd.f32 %v19883_v15, %v18923_v23 }
 0xb2b   : > { %v15302_v56 = vpop.eup %15301  ;;  %15321 = vrcp.f32 %v9761_v61  ;;  %v9762_v19 = vadd.f32 1.0, %v15300_v13  ;;  %v12045_v55 = vmul.f32 -1.442695, %v7362_v37  ;;  %v20191_v50 = vpop.f32.mrb[75].mxu1  ;;  %v7370_v15 = vadd.f32 %v19888_v46, %v18927_v34 }
 0xb2c   : > { %v15304_v51 = vpop.eup %15303  ;;  %11085 = vst [vmem:[%s18980_s30 + $0xa98] sm:$0xff] %v15302_v56  ;;  %15323 = vrcp.f32 %v9760_v5  ;;  %v12044_v5 = vmul.f32 -1.442695, %v7011_v38  ;;  %v12050_v37 = vmul.f32 -1.442695, %v7015_v18  ;;  %v7019_v43 = vadd.f32 %v19890_v60, %v18921_v30  ;;  %v20205_v60 = vpop.f32.mrb[76].mxu1 }
 0xb2d   : > { %v15306_v39 = vpop.eup %15305  ;;  %11089 = vst [vmem:[%s18980_s30 + $0xab8] sm:$0xff] %v15304_v51  ;;  %15325 = vrcp.f32 %v9762_v19  ;;  %v12046_v19 = vmul.f32 -1.442695, %v7364_v49  ;;  %v12053_v46 = vmul.f32 -1.442695, %v7370_v15 }
 0xb2e   : > { %v15308_v8 = vpop.eup %15307  ;;  %11091 = vst [vmem:[%s18980_s30 + $0xac8] sm:$0xff] %v15306_v39  ;;  %15327 = vpow2.f32 %v12036_v17  ;;  %v20189_v17 = vpop.f32.mrb[11].mxu0  ;;  %v12051_v39 = vmul.f32 -1.442695, %v7017_v58 }
 0xb2f   : > { %v15310_v61 = vpop.eup %15309  ;;  %11090 = vst [vmem:[%s18980_s30 + $0xac0] sm:$0xff] %v15308_v8  ;;  %15329 = vpow2.f32 %v12038_v11  ;;  %v12057_v8 = vmul.f32 -1.442695, %v7019_v43 }
 0xb30   : > { %v15312_v13 = vpop.eup %15311  ;;  %11092 = vst [vmem:[%s18980_s30 + $0xad0] sm:$0xff] %v15310_v61  ;;  %15331 = vpow2.f32 %v12037_v28  ;;  %v12052_v28 = vmul.f32 -1.442695, %v7368_v63 }
 0xb31   : > { %v15314_v56 = vpop.eup %15313  ;;  %11096 = vst [vmem:[%s18980_s30 + $0xaf0] sm:$0xff] %v15312_v13  ;;  %15333 = vpow2.f32 %v12039_v20 }
 0xb32   : > { %v15316_v11 = vpop.eup %15315  ;;  %11098 = vst [vmem:[%s18980_s30 + $0xb00] sm:$0xff] %v15314_v56  ;;  %15335 = vpow2.f32 %v12043_v42  ;;  %v20203_v42 = vpop.f32.mrb[12].mxu0 }
 0xb33   : > { %v15318_v51 = vpop.eup %15317  ;;  %11097 = vst [vmem:[%s18980_s30 + $0xaf8] sm:$0xff] %v15316_v11  ;;  %15337 = vpow2.f32 %v12045_v55  ;;  %v20208_v61 = vpop.f32.mrb[13].mxu0 }
 0xb34   : > { %v15320_v38 = vpop.eup %15319  ;;  %11099 = vst [vmem:[%s18980_s30 + $0xb08] sm:$0xff] %v15318_v51  ;;  %15339 = vpow2.f32 %v12044_v5  ;;  %v20210_v55 = vpop.f32.mrb[77].mxu1 }
 0xb35   : > { %v15322_v20 = vpop.eup %15321  ;;  %11103 = vst [vmem:[%s18980_s30 + $0xb28] sm:$0xff] %v15320_v38  ;;  %15341 = vpow2.f32 %v12046_v19  ;;  %v20213_v13 = vpop.f32.mrb[14].mxu0 }
 0xb36   : > { %v15324_v49 = vpop.eup %15323  ;;  %11105 = vst [vmem:[%s18980_s30 + $0xb38] sm:$0xff] %v15322_v20  ;;  %15343 = vpow2.f32 %v12050_v37  ;;  %v20215_v5 = vpop.f32.mrb[78].mxu1 }
 0xb37   : > { %v15326_v18 = vpop.eup %15325  ;;  %11104 = vst [vmem:[%s18980_s30 + $0xb30] sm:$0xff] %v15324_v49  ;;  %15345 = vpow2.f32 %v12052_v28  ;;  %v20217_v19 = vpop.f32.mrb[15].mxu0 }
 0xb38   : > { %v15328_v63 = vpop.eup %15327  ;;  %11106 = vst [vmem:[%s18980_s30 + $0xb40] sm:$0xff] %v15326_v18  ;;  %15347 = vpow2.f32 %v12051_v39  ;;  %21621 = vst [vmem:[#allocation11_spill] sm:$0xff] %v20217_v19 }
 0xb39   : > { %v15330_v58 = vpop.eup %15329  ;;  %v9766_v56 = vadd.f32 1.0, %v15328_v63  ;;  %15349 = vpow2.f32 %v12053_v46 }
 0xb3a   : > { %v15332_v15 = vpop.eup %15331  ;;  %v9768_v11 = vadd.f32 1.0, %v15330_v58  ;;  %15351 = vpow2.f32 %v12057_v8  ;;  %v21622_v8 = vld [vmem:[#allocation2_spill] sm:$0xff] }
 0xb3b   : > { %v15334_v37 = vpop.eup %15333  ;;  %15353 = vrcp.f32 %v9766_v56  ;;  %v9767_v43 = vadd.f32 1.0, %v15332_v15  ;;  %v7372_v58 = vadd.f32 %v21622_v8, %v18923_v23  ;;  %v20231_v8 = vpop.f32.mrb[79].mxu1 }
 0xb3c   : > { %v15336_v51 = vpop.eup %15335  ;;  %15355 = vrcp.f32 %v9768_v11  ;;  %v9769_v28 = vadd.f32 1.0, %v15334_v37  ;;  %v7021_v11 = vadd.f32 %v19909_v27, %v18925_v3  ;;  %v7378_v27 = vadd.f32 %v19933_v14, %v18923_v23 }
 0xb3d   : > { %v15338_v38 = vpop.eup %15337  ;;  %15357 = vrcp.f32 %v9767_v43  ;;  %v9773_v39 = vadd.f32 1.0, %v15336_v51  ;;  %v7374_v51 = vadd.f32 %v19911_v12, %v18927_v34 }
 0xb3e   : > { %v15340_v20 = vpop.eup %15339  ;;  %15359 = vrcp.f32 %v9769_v28  ;;  %v9775_v49 = vadd.f32 1.0, %v15338_v38  ;;  %v12058_v12 = vmul.f32 -1.442695, %v7021_v11  ;;  %v7029_v11 = vadd.f32 %v19941_v1, %v18921_v30 }
 0xb3f   : > { %v15342_v18 = vpop.eup %15341  ;;  %15361 = vrcp.f32 %v9773_v39  ;;  %v9774_v46 = vadd.f32 1.0, %v15340_v20  ;;  %v7025_v39 = vadd.f32 %v19931_v52, %v18921_v30  ;;  %v12060_v52 = vmul.f32 -1.442695, %v7374_v51 }
 0xb40   : > { %v15344_v63 = vpop.eup %15343  ;;  %15363 = vrcp.f32 %v9775_v49  ;;  %v9776_v19 = vadd.f32 1.0, %v15342_v18  ;;  %v12059_v18 = vmul.f32 -1.442695, %v7372_v58  ;;  %v7380_v58 = vadd.f32 %v19938_v59, %v18927_v34 }
 0xb41   : > { %v15346_v56 = vpop.eup %15345  ;;  %15365 = vrcp.f32 %v9774_v46  ;;  %v9780_v15 = vadd.f32 1.0, %v15344_v63  ;;  %v7027_v63 = vadd.f32 %v19936_v40, %v18925_v3  ;;  %v12064_v14 = vmul.f32 -1.442695, %v7025_v39  ;;  %v21623_v39 = vld [vmem:[#allocation5_spill] sm:$0xff] }
 0xb42   : > { %v15348_v37 = vpop.eup %15347  ;;  %15367 = vrcp.f32 %v9776_v19  ;;  %v9782_v43 = vadd.f32 1.0, %v15346_v56  ;;  %v12066_v40 = vmul.f32 -1.442695, %v7378_v27  ;;  %v12067_v1 = vmul.f32 -1.442695, %v7380_v58 }
 0xb43   : > { %v15350_v28 = vpop.eup %15349  ;;  %15369 = vrcp.f32 %v9780_v15  ;;  %v9781_v38 = vadd.f32 1.0, %v15348_v37  ;;  %v12065_v59 = vmul.f32 -1.442695, %v7027_v63  ;;  %v21625_v63 = vld [vmem:[#allocation40_spill] sm:$0xff] }
 0xb44   : > { %v15352_v20 = vpop.eup %15351  ;;  %15371 = vrcp.f32 %v9782_v43  ;;  %v9783_v49 = vadd.f32 1.0, %v15350_v28  ;;  %v7382_v43 = vadd.f32 %v19943_v6, %v18923_v23  ;;  %v7031_v28 = vadd.f32 %v19946_v7, %v18925_v3 }
 0xb45   : > { %v15354_v19 = vpop.eup %15353  ;;  %15373 = vrcp.f32 %v9781_v38  ;;  %v9787_v46 = vadd.f32 1.0, %v15352_v20  ;;  %v7384_v20 = vadd.f32 %v21623_v39, %v18927_v34  ;;  %v12071_v6 = vmul.f32 -1.442695, %v7029_v11 }
 0xb46   : > { %v15356_v56 = vpop.eup %15355  ;;  %11110 = vst [vmem:[%s18980_s30 + $0xb60] sm:$0xff] %v15354_v19  ;;  %15375 = vrcp.f32 %v9783_v49  ;;  %v20251_v19 = vpop.f32.mrb[16].mxu0 }
 0xb47   : > { %v15358_v15 = vpop.eup %15357  ;;  %11112 = vst [vmem:[%s18980_s30 + $0xb70] sm:$0xff] %v15356_v56  ;;  %15377 = vrcp.f32 %v9787_v46  ;;  %v20253_v46 = vpop.f32.mrb[80].mxu1  ;;  %v7388_v56 = vadd.f32 %v21625_v63, %v18923_v23 }
 0xb48   : > { %v15360_v37 = vpop.eup %15359  ;;  %11111 = vst [vmem:[%s18980_s30 + $0xb68] sm:$0xff] %v15358_v15  ;;  %15379 = vpow2.f32 %v12059_v18  ;;  %v21624_v18 = vld [vmem:[#allocation39_spill] sm:$0xff]  ;;  %v20260_v58 = vpop.f32.mrb[81].mxu1 }
 0xb49   : > { %v15362_v51 = vpop.eup %15361  ;;  %11113 = vst [vmem:[%s18980_s30 + $0xb78] sm:$0xff] %v15360_v37  ;;  %15381 = vpow2.f32 %v12058_v12  ;;  %v7035_v27 = vadd.f32 %v21624_v18, %v18921_v30  ;;  %v12073_v12 = vmul.f32 -1.442695, %v7382_v43  ;;  %v20265_v37 = vpop.f32.mrb[82].mxu1  ;;  %v12074_v43 = vmul.f32 -1.442695, %v7384_v20 }
 0xb4a   : > { %v15364_v38 = vpop.eup %15363  ;;  %11117 = vst [vmem:[%s18980_s30 + $0xb98] sm:$0xff] %v15362_v51  ;;  %15383 = vpow2.f32 %v12060_v52  ;;  %v20258_v52 = vpop.f32.mrb[17].mxu0 }
 0xb4b   : > { %v15366_v49 = vpop.eup %15365  ;;  %11119 = vst [vmem:[%s18980_s30 + $0xba8] sm:$0xff] %v15364_v38  ;;  %15385 = vpow2.f32 %v12064_v14  ;;  %v12072_v14 = vmul.f32 -1.442695, %v7031_v28  ;;  %v20263_v11 = vpop.f32.mrb[18].mxu0  ;;  %v12080_v28 = vmul.f32 -1.442695, %v7388_v56 }
 0xb4c   : > { %v15368_v7 = vpop.eup %15367  ;;  %11118 = vst [vmem:[%s18980_s30 + $0xba0] sm:$0xff] %v15366_v49  ;;  %15387 = vpow2.f32 %v12066_v40  ;;  %v20268_v51 = vpop.f32.mrb[19].mxu0  ;;  %v12078_v49 = vmul.f32 -1.442695, %v7035_v27 }
 0xb4d   : > { %v15370_v15 = vpop.eup %15369  ;;  %11120 = vst [vmem:[%s18980_s30 + $0xbb0] sm:$0xff] %v15368_v7  ;;  %15389 = vpow2.f32 %v12065_v59  ;;  %v20270_v38 = vpop.f32.mrb[83].mxu1 }
 0xb4e   : > { %v15372_v40 = vpop.eup %15371  ;;  %11124 = vst [vmem:[%s18980_s30 + $0xbd0] sm:$0xff] %v15370_v15  ;;  %15391 = vpow2.f32 %v12067_v1  ;;  %v20276_v63 = vpop.f32.mrb[20].mxu0 }
 0xb4f   : > { %v15374_v39 = vpop.eup %15373  ;;  %11126 = vst [vmem:[%s18980_s30 + $0xbe0] sm:$0xff] %v15372_v40  ;;  %15393 = vpow2.f32 %v12071_v6  ;;  %21626 = vst [vmem:[#allocation10_spill] sm:$0xff] %v20276_v63  ;;  %v20278_v15 = vpop.f32.mrb[84].mxu1 }
 0xb50   : > { %v15376_v59 = vpop.eup %15375  ;;  %11125 = vst [vmem:[%s18980_s30 + $0xbd8] sm:$0xff] %v15374_v39  ;;  %15395 = vpow2.f32 %v12073_v12  ;;  %21627 = vst [vmem:[#allocation24_spill] sm:$0xff] %v20278_v15  ;;  %v20280_v27 = vpop.f32.mrb[21].mxu0 }
 0xb51   : > { %v15378_v18 = vpop.eup %15377  ;;  %11127 = vst [vmem:[%s18980_s30 + $0xbe8] sm:$0xff] %v15376_v59  ;;  %15397 = vpow2.f32 %v12072_v14  ;;  %21628 = vst [vmem:[#allocation25_spill] sm:$0xff] %v20280_v27  ;;  %v20282_v12 = vpop.f32.mrb[85].mxu1 }
 0xb52   : > { %v15380_v7 = vpop.eup %15379  ;;  %11131 = vst [vmem:[%s18980_s30 + $0xc08] sm:$0xff] %v15378_v18  ;;  %15399 = vpow2.f32 %v12074_v43  ;;  %21629 = vst [vmem:[#allocation12_spill] sm:$0xff] %v20282_v12  ;;  %v21630_v12 = vld [vmem:[#allocation41_spill] sm:$0xff] }
 0xb53   : > { %v15382_v1 = vpop.eup %15381  ;;  %v9789_v20 = vadd.f32 1.0, %v15380_v7  ;;  %15401 = vpow2.f32 %v12078_v49  ;;  %v7037_v63 = vadd.f32 %v21630_v12, %v18925_v3 }
 0xb54   : > { %v15384_v40 = vpop.eup %15383  ;;  %v9788_v6 = vadd.f32 1.0, %v15382_v1  ;;  %15403 = vpow2.f32 %v12080_v28 }
 0xb55   : > { %v15386_v56 = vpop.eup %15385  ;;  %15405 = vrcp.f32 %v9789_v20  ;;  %v9790_v14 = vadd.f32 1.0, %v15384_v40 }
 0xb56   : > { %v15388_v39 = vpop.eup %15387  ;;  %15407 = vrcp.f32 %v9788_v6  ;;  %v9794_v43 = vadd.f32 1.0, %v15386_v56  ;;  %v7390_v6 = vadd.f32 %v19971_v53, %v18927_v34  ;;  %v7041_v53 = vadd.f32 %v19989_v54, %v18925_v3 }
 0xb57   : > { %v15390_v59 = vpop.eup %15389  ;;  %15409 = vrcp.f32 %v9790_v14  ;;  %v9796_v49 = vadd.f32 1.0, %v15388_v39  ;;  %v7039_v39 = vadd.f32 %v19979_v24, %v18921_v30 }
 0xb58   : > { %v15392_v18 = vpop.eup %15391  ;;  %15411 = vrcp.f32 %v9794_v43  ;;  %v9795_v7 = vadd.f32 1.0, %v15390_v59  ;;  %v12081_v24 = vmul.f32 -1.442695, %v7390_v6 }
 0xb59   : > { %v15394_v15 = vpop.eup %15393  ;;  %15413 = vrcp.f32 %v9796_v49  ;;  %v9797_v1 = vadd.f32 1.0, %v15392_v18  ;;  %v12079_v18 = vmul.f32 -1.442695, %v7037_v63  ;;  %v20299_v63 = vpop.f32.mrb[22].mxu0 }
 0xb5a   : > { %v15396_v28 = vpop.eup %15395  ;;  %15415 = vrcp.f32 %v9795_v7  ;;  %v9801_v27 = vadd.f32 1.0, %v15394_v15  ;;  %v7392_v15 = vadd.f32 %v19981_v10, %v18923_v23  ;;  %v12085_v10 = vmul.f32 -1.442695, %v7039_v39  ;;  %v20309_v39 = vpop.f32.mrb[23].mxu0 }
 0xb5b   : > { %v15398_v20 = vpop.eup %15397  ;;  %15417 = vrcp.f32 %v9797_v1  ;;  %v9803_v40 = vadd.f32 1.0, %v15396_v28  ;;  %v7394_v1 = vadd.f32 %v19991_v36, %v18927_v34  ;;  %v7398_v36 = vadd.f32 %v20007_v31, %v18923_v23 }
 0xb5c   : > { %v15400_v56 = vpop.eup %15399  ;;  %15419 = vrcp.f32 %v9801_v27  ;;  %v9802_v14 = vadd.f32 1.0, %v15398_v20  ;;  %v7045_v20 = vadd.f32 %v20005_v2, %v18921_v30  ;;  %v12087_v6 = vmul.f32 -1.442695, %v7392_v15 }
 0xb5d   : > { %v15402_v43 = vpop.eup %15401  ;;  %15421 = vrcp.f32 %v9803_v40  ;;  %v9804_v59 = vadd.f32 1.0, %v15400_v56  ;;  %v20301_v40 = vpop.f32.mrb[86].mxu1  ;;  %v7047_v2 = vadd.f32 %v20010_v33, %v18925_v3  ;;  %v12088_v15 = vmul.f32 -1.442695, %v7394_v1 }
 0xb5e   : > { %v15404_v12 = vpop.eup %15403  ;;  %15423 = vrcp.f32 %v9802_v14  ;;  %v9808_v49 = vadd.f32 1.0, %v15402_v43  ;;  %v12086_v14 = vmul.f32 -1.442695, %v7041_v53  ;;  %v20311_v43 = vpop.f32.mrb[87].mxu1  ;;  %v21632_v53 = vld [vmem:[#allocation43_spill] sm:$0xff] }
 0xb5f   : > { %v15406_v27 = vpop.eup %15405  ;;  %15425 = vrcp.f32 %v9804_v59  ;;  %v9810_v7 = vadd.f32 1.0, %v15404_v12  ;;  %v21631_v12 = vld [vmem:[#allocation42_spill] sm:$0xff]  ;;  %v7049_v33 = vadd.f32 %v21632_v53, %v18921_v30 }
 0xb60   : > { %v15408_v28 = vpop.eup %15407  ;;  %11133 = vst [vmem:[%s18980_s30 + $0xc18] sm:$0xff] %v15406_v27  ;;  %15427 = vrcp.f32 %v9808_v49  ;;  %v7400_v31 = vadd.f32 %v21631_v12, %v18927_v34 }
 0xb61   : > { %v15410_v54 = vpop.eup %15409  ;;  %11132 = vst [vmem:[%s18980_s30 + $0xc10] sm:$0xff] %v15408_v28  ;;  %15429 = vrcp.f32 %v9810_v7  ;;  %v12094_v7 = vmul.f32 -1.442695, %v7398_v36  ;;  %v21633_v28 = vld [vmem:[#allocation44_spill] sm:$0xff]  ;;  %v20327_v36 = vpop.f32.mrb[24].mxu0 }
 0xb62   : > { %v15412_v56 = vpop.eup %15411  ;;  %11134 = vst [vmem:[%s18980_s30 + $0xc20] sm:$0xff] %v15410_v54  ;;  %15431 = vpow2.f32 %v12079_v18  ;;  %v12092_v18 = vmul.f32 -1.442695, %v7045_v20  ;;  %v12093_v54 = vmul.f32 -1.442695, %v7047_v2  ;;  %v20332_v2 = vpop.f32.mrb[25].mxu0 }
 0xb63   : > { %v15414_v59 = vpop.eup %15413  ;;  %11138 = vst [vmem:[%s18980_s30 + $0xc40] sm:$0xff] %v15412_v56  ;;  %15433 = vpow2.f32 %v12081_v24  ;;  %v7402_v24 = vadd.f32 %v21633_v28, %v18923_v23  ;;  %v21634_v56 = vld [vmem:[#allocation4_spill] sm:$0xff] }
 0xb64   : > { %v15416_v49 = vpop.eup %15415  ;;  %11140 = vst [vmem:[%s18980_s30 + $0xc50] sm:$0xff] %v15414_v59  ;;  %15435 = vpow2.f32 %v12085_v10  ;;  %v7051_v10 = vadd.f32 %v21634_v56, %v18925_v3  ;;  %v12095_v59 = vmul.f32 -1.442695, %v7400_v31 }
 0xb65   : > { %v15418_v27 = vpop.eup %15417  ;;  %11139 = vst [vmem:[%s18980_s30 + $0xc48] sm:$0xff] %v15416_v49  ;;  %15437 = vpow2.f32 %v12087_v6  ;;  %v12099_v6 = vmul.f32 -1.442695, %v7049_v33  ;;  %v20329_v49 = vpop.f32.mrb[88].mxu1 }
 0xb66   : > { %v15420_v1 = vpop.eup %15419  ;;  %11141 = vst [vmem:[%s18980_s30 + $0xc58] sm:$0xff] %v15418_v27  ;;  %15439 = vpow2.f32 %v12086_v14  ;;  %v12101_v14 = vmul.f32 -1.442695, %v7402_v24  ;;  %v20334_v27 = vpop.f32.mrb[89].mxu1  ;;  %v12100_v31 = vmul.f32 -1.442695, %v7051_v10 }
 0xb67   : > { %v15422_v20 = vpop.eup %15421  ;;  %11145 = vst [vmem:[%s18980_s30 + $0xc78] sm:$0xff] %v15420_v1  ;;  %15441 = vpow2.f32 %v12088_v15  ;;  %21635 = vst [vmem:[#allocation15_spill] sm:$0xff] %v20334_v27  ;;  %v20339_v33 = vpop.f32.mrb[90].mxu1 }
 0xb68   : > { %v15424_v12 = vpop.eup %15423  ;;  %11147 = vst [vmem:[%s18980_s30 + $0xc88] sm:$0xff] %v15422_v20  ;;  %15443 = vpow2.f32 %v12092_v18  ;;  %v20337_v18 = vpop.f32.mrb[26].mxu0  ;;  %21637 = vst [vmem:[#allocation27_spill] sm:$0xff] %v20339_v33 }
 0xb69   : > { %v15426_v53 = vpop.eup %15425  ;;  %11146 = vst [vmem:[%s18980_s30 + $0xc80] sm:$0xff] %v15424_v12  ;;  %15445 = vpow2.f32 %v12094_v7  ;;  %21636 = vst [vmem:[#allocation26_spill] sm:$0xff] %v20337_v18  ;;  %v20342_v1 = vpop.f32.mrb[27].mxu0 }
 0xb6a   : > { %v15428_v15 = vpop.eup %15427  ;;  %11148 = vst [vmem:[%s18980_s30 + $0xc90] sm:$0xff] %v15426_v53  ;;  %15447 = vpow2.f32 %v12093_v54  ;;  %21638 = vst [vmem:[#allocation28_spill] sm:$0xff] %v20342_v1  ;;  %v20344_v7 = vpop.f32.mrb[91].mxu1 }
 0xb6b   : > { %v15430_v28 = vpop.eup %15429  ;;  %11152 = vst [vmem:[%s18980_s30 + $0xcb0] sm:$0xff] %v15428_v15  ;;  %15449 = vpow2.f32 %v12095_v59  ;;  %21639 = vst [vmem:[#allocation29_spill] sm:$0xff] %v20344_v7  ;;  %v20347_v59 = vpop.f32.mrb[28].mxu0 }
 0xb6c   : > { %v15432_v24 = vpop.eup %15431  ;;  %11154 = vst [vmem:[%s18980_s30 + $0xcc0] sm:$0xff] %v15430_v28  ;;  %15451 = vpow2.f32 %v12099_v6  ;;  %21640 = vst [vmem:[#allocation30_spill] sm:$0xff] %v20347_v59  ;;  %v21641_v28 = vld [vmem:[#allocation45_spill] sm:$0xff] }
 0xb6d   : > { %v15434_v56 = vpop.eup %15433  ;;  %v9809_v20 = vadd.f32 1.0, %v15432_v24  ;;  %15453 = vpow2.f32 %v12101_v14  ;;  %v7404_v6 = vadd.f32 %v21641_v28, %v18927_v34 }
 0xb6e   : > { %v15436_v12 = vpop.eup %15435  ;;  %v9811_v54 = vadd.f32 1.0, %v15434_v56  ;;  %15455 = vpow2.f32 %v12100_v31 }
 0xb6f   : > { %v15438_v10 = vpop.eup %15437  ;;  %15457 = vrcp.f32 %v9809_v20  ;;  %v9815_v53 = vadd.f32 1.0, %v15436_v12  ;;  %v7055_v12 = vadd.f32 %v20051_v9, %v18921_v30  ;;  %v7057_v9 = vadd.f32 %v20058_v4, %v18925_v3  ;;  %v16288_v4 = vld [vmem:[%s21330_s16] sm:$0x7f] }
 0xb70   : > { %v15440_v33 = vpop.eup %15439  ;;  %15459 = vrcp.f32 %v9811_v54  ;;  %v9817_v15 = vadd.f32 1.0, %v15438_v10 }
 0xb71   : > { %v15442_v1 = vpop.eup %15441  ;;  %15461 = vrcp.f32 %v9815_v53  ;;  %v9816_v7 = vadd.f32 1.0, %v15440_v33  ;;  %v12102_v53 = vmul.f32 -1.442695, %v7404_v6  ;;  %v21642_v33 = vld [vmem:[#allocation16_spill] sm:$0xff] }
 0xb72   : > { %v15444_v18 = vpop.eup %15443  ;;  %15463 = vrcp.f32 %v9817_v15  ;;  %v9818_v14 = vadd.f32 1.0, %v15442_v1  ;;  %v6405_v59 = vsub.s32 4, %v21642_v33  ;;  %v7408_v1 = vadd.f32 %v20053_v16, %v18923_v23 }
 0xb73   : > { %v15446_v24 = vpop.eup %15445  ;;  %15465 = vrcp.f32 %v9816_v7  ;;  %v9822_v31 = vadd.f32 1.0, %v15444_v18  ;;  %v6413_v18 = vsub.s32 6, %v21642_v33 }
 0xb74   : > { %v15448_v56 = vpop.eup %15447  ;;  %15467 = vrcp.f32 %v9818_v14  ;;  %v9824_v20 = vadd.f32 1.0, %v15446_v24  ;;  %v6409_v14 = vsub.s32 5, %v21642_v33  ;;  %v12108_v33 = vmul.f32 -1.442695, %v7408_v1 }
 0xb75   : > { %v15450_v54 = vpop.eup %15449  ;;  %15469 = vrcp.f32 %v9822_v31  ;;  %v9823_v10 = vadd.f32 1.0, %v15448_v56  ;;  %v12106_v31 = vmul.f32 -1.442695, %v7055_v12  ;;  %v7410_v56 = vadd.f32 %v20060_v47, %v18927_v34 }
 0xb76   : > { %v15452_v27 = vpop.eup %15451  ;;  %15471 = vrcp.f32 %v9824_v20  ;;  %v9825_v28 = vadd.f32 1.0, %v15450_v54  ;;  %v20367_v54 = vrot.slane %v16288_v4, %v6405_v59  ;;  %v7412_v47 = vadd.f32 %v20067_v0, %v18923_v23  ;;  %v21643_v59 = vld [vmem:[#allocation46_spill] sm:$0xff] }
 0xb77   : > { %v15454_v7 = vpop.eup %15453  ;;  %15473 = vrcp.f32 %v9823_v10  ;;  %v9829_v15 = vadd.f32 1.0, %v15452_v27  ;;  %v7059_v27 = vadd.f32 %v20065_v45, %v18921_v30  ;;  %v20369_v10 = vpop.f32.mrb[92].mxu1  ;;  %v12107_v45 = vmul.f32 -1.442695, %v7057_v9  ;;  %v21644_v0 = vld [vmem:[#allocation18_spill] sm:$0xff] }
 0xb78   : > { %v15456_v6 = vpop.eup %15455  ;;  %15475 = vrcp.f32 %v9825_v28  ;;  %v9831_v24 = vadd.f32 1.0, %v15454_v7  ;;  %v20374_v28 = vrot.slane %v16288_v4, %v6413_v18  ;;  %v7061_v7 = vadd.f32 %v21643_v59, %v18925_v3 }
 0xb79   : > { %v15458_v16 = vpop.eup %15457  ;;  %15477 = vrcp.f32 %v9829_v15  ;;  %v9830_v20 = vadd.f32 1.0, %v15456_v6  ;;  %v20379_v15 = vrot.slane %v16288_v4, %v6409_v14  ;;  %v20381_v6 = vpop.f32.mrb[29].mxu0  ;;  %v12109_v23 = vmul.f32 -1.442695, %v7410_v56  ;;  %v21645_v56 = vld [vmem:[#allocation19_spill] sm:$0xff] }
 0xb7a   : > { %v15460_v12 = vpop.eup %15459  ;;  %11153 = vst [vmem:[%s18980_s30 + $0xcb8] sm:$0xff] %v15458_v16  ;;  %15479 = vrcp.f32 %v9831_v24  ;;  %v20383_v24 = vpop.f32.mrb[93].mxu1  ;;  %v7414_v18 = vadd.f32 %v21644_v0, %v18927_v34  ;;  %v12113_v9 = vmul.f32 -1.442695, %v7059_v27  ;;  %v7451_v3 = vadd.f32 %v20079_v35, %v20367_v54  ;;  %v21646_v35 = vld [vmem:[#allocation20_spill] sm:$0xff] }
 0xb7b   : > { %v15462_v30 = vpop.eup %15461  ;;  %11155 = vst [vmem:[%s18980_s30 + $0xcc8] sm:$0xff] %v15460_v12  ;;  %15481 = vrcp.f32 %v9830_v20  ;;  %v20391_v14 = vpop.f32.mrb[30].mxu0  ;;  %v7812_v34 = vadd.f32 %v21645_v56, %v20374_v28  ;;  %v7453_v27 = vadd.f32 %v21646_v35, %v20379_v15 }
 0xb7c   : > { %v15464_v1 = vpop.eup %15463  ;;  %11159 = vst [vmem:[%s18980_s30 + $0xce8] sm:$0xff] %v15462_v30  ;;  %15483 = vpow2.f32 %v12102_v53  ;;  %v20393_v20 = vpop.f32.mrb[94].mxu1  ;;  %v12115_v53 = vmul.f32 -1.442695, %v7412_v47  ;;  %v21647_v47 = vld [vmem:[#allocation6_spill] sm:$0xff] }
 0xb7d   : > { %v15466_v16 = vpop.eup %15465  ;;  %11161 = vst [vmem:[%s18980_s30 + $0xcf8] sm:$0xff] %v15464_v1  ;;  %15485 = vpow2.f32 %v12106_v31  ;;  %v12114_v31 = vmul.f32 -1.442695, %v7061_v7  ;;  %v20401_v30 = vpop.f32.mrb[31].mxu0  ;;  %v7804_v0 = vadd.f32 %v21647_v47, %v20374_v28 }
 0xb7e   : > { %v15468_v4 = vpop.eup %15467  ;;  %11160 = vst [vmem:[%s18980_s30 + $0xcf0] sm:$0xff] %v15466_v16  ;;  %15487 = vpow2.f32 %v12108_v33  ;;  %v20403_v59 = vpop.f32.mrb[95].mxu1  ;;  %v12116_v33 = vmul.f32 -1.442695, %v7414_v18 }
 0xb7f   : > { %v15470_v12 = vpop.eup %15469  ;;  %11162 = vst [vmem:[%s18980_s30 + $0xd00] sm:$0xff] %v15468_v4  ;;  %15489 = vpow2.f32 %v12107_v45  ;;  %v11676_v45 = vmul.f32 -1.442695, %v7451_v3  ;;  %v11692_v4 = vmul.f32 -1.442695, %v7812_v34 }
 0xb80   : > { %v15472_v1 = vpop.eup %15471  ;;  %11166 = vst [vmem:[%s18980_s30 + $0xd20] sm:$0xff] %v15470_v12  ;;  %15491 = vpow2.f32 %v12109_v23  ;;  %v11677_v12 = vmul.f32 -1.442695, %v7453_v27  ;;  %v11678_v18 = vmul.f32 -1.442695, %v7804_v0 }
 0xb81   : > { %v15474_v16 = vpop.eup %15473  ;;  %11168 = vst [vmem:[%s18980_s30 + $0xd30] sm:$0xff] %v15472_v1  ;;  %15493 = vpow2.f32 %v12113_v9  ;;  %v20413_v1 = vpop.f32.mrb[32].mxu0 }
 0xb82   : > { %v15476_v7 = vpop.eup %15475  ;;  %11167 = vst [vmem:[%s18980_s30 + $0xd28] sm:$0xff] %v15474_v16  ;;  %15495 = vpow2.f32 %v12115_v53  ;;  %v20415_v9 = vpop.f32.mrb[96].mxu1 }
 0xb83   : > { %v15478_v56 = vpop.eup %15477  ;;  %11169 = vst [vmem:[%s18980_s30 + $0xd38] sm:$0xff] %v15476_v7  ;;  %15497 = vpow2.f32 %v12114_v31  ;;  %v20418_v53 = vpop.f32.mrb[33].mxu0 }
 0xb84   : > { %v15480_v23 = vpop.eup %15479  ;;  %11173 = vst [vmem:[%s18980_s30 + $0xd58] sm:$0xff] %v15478_v56  ;;  %15499 = vpow2.f32 %v12116_v33  ;;  %21648 = vst [vmem:[#allocation31_spill] sm:$0xff] %v20418_v53  ;;  %v20420_v34 = vpop.f32.mrb[97].mxu1 }
 0xb85   : > { %v15482_v35 = vpop.eup %15481  ;;  %11175 = vst [vmem:[%s18980_s30 + $0xd68] sm:$0xff] %v15480_v23  ;;  %15501 = vpow2.f32 %v11676_v45  ;;  %21649 = vst [vmem:[#allocation32_spill] sm:$0xff] %v20420_v34  ;;  %v20422_v47 = vpop.f32.mrb[34].mxu0 }
 0xb86   : > { %v15484_v3 = vpop.eup %15483  ;;  %11174 = vst [vmem:[%s18980_s30 + $0xd60] sm:$0xff] %v15482_v35  ;;  %15503 = vpow2.f32 %v11692_v4  ;;  %21650 = vst [vmem:[#allocation33_spill] sm:$0xff] %v20422_v47  ;;  %v20424_v33 = vpop.f32.mrb[98].mxu1 }
 0xb87   : > { %v15486_v31 = vpop.eup %15485  ;;  %v9832_v27 = vadd.f32 1.0, %v15484_v3  ;;  %15505 = vpow2.f32 %v11677_v12  ;;  %21651 = vst [vmem:[#allocation34_spill] sm:$0xff] %v20424_v33 }
 0xb88   : > { %v15488_v0 = vpop.eup %15487  ;;  %v9836_v16 = vadd.f32 1.0, %v15486_v31  ;;  %15507 = vpow2.f32 %v11678_v18  ;;  %v21652_v18 = vld [vmem:[#allocation9_spill] sm:$0xff] }
 0xb89   : > { %v15490_v45 = vpop.eup %15489  ;;  %15509 = vrcp.f32 %v9832_v27  ;;  %v9838_v7 = vadd.f32 1.0, %v15488_v0  ;;  %v7455_v31 = vadd.f32 %v21652_v18, %v20367_v54 }
 0xb8a   : > { %v15492_v56 = vpop.eup %15491  ;;  %15511 = vrcp.f32 %v9836_v16  ;;  %v9837_v4 = vadd.f32 1.0, %v15490_v45  ;;  %v7815_v16 = vadd.f32 %v20101_v41, %v20374_v28  ;;  %v7461_v41 = vadd.f32 %v20129_v29, %v20367_v54 }
 0xb8b   : > { %v15494_v23 = vpop.eup %15493  ;;  %15513 = vrcp.f32 %v9838_v7  ;;  %v9839_v35 = vadd.f32 1.0, %v15492_v56  ;;  %v7457_v56 = vadd.f32 %v20109_v26, %v20379_v15 }
 0xb8c   : > { %v15496_v34 = vpop.eup %15495  ;;  %15515 = vrcp.f32 %v9837_v4  ;;  %v9843_v3 = vadd.f32 1.0, %v15494_v23  ;;  %v7807_v23 = vadd.f32 %v20111_v44, %v20374_v28  ;;  %v11699_v26 = vmul.f32 -1.442695, %v7815_v16 }
 0xb8d   : > { %v15498_v12 = vpop.eup %15497  ;;  %15517 = vrcp.f32 %v9839_v35  ;;  %v9845_v47 = vadd.f32 1.0, %v15496_v34  ;;  %v11684_v44 = vmul.f32 -1.442695, %v7457_v56  ;;  %v11690_v56 = vmul.f32 -1.442695, %v7461_v41 }
 0xb8e   : > { %v15500_v53 = vpop.eup %15499  ;;  %15519 = vrcp.f32 %v9843_v3  ;;  %v9844_v33 = vadd.f32 1.0, %v15498_v12  ;;  %v7828_v12 = vadd.f32 %v20131_v32, %v20374_v28  ;;  %v11685_v16 = vmul.f32 -1.442695, %v7807_v23 }
 0xb8f   : > { %v15502_v27 = vpop.eup %15501  ;;  %15521 = vrcp.f32 %v9845_v47  ;;  %v9846_v0 = vadd.f32 1.0, %v15500_v53  ;;  %v11683_v53 = vmul.f32 -1.442695, %v7455_v31  ;;  %v20441_v31 = vpop.f32.mrb[35].mxu0 }
 0xb90   : > { %v15504_v45 = vpop.eup %15503  ;;  %15523 = vrcp.f32 %v9844_v33  ;;  %v9406_v7 = vadd.f32 1.0, %v15502_v27  ;;  %v7463_v27 = vadd.f32 %v20134_v22, %v20379_v15 }
 0xb91   : > { %v15506_v34 = vpop.eup %15505  ;;  %15525 = vrcp.f32 %v9846_v0  ;;  %v9422_v4 = vadd.f32 1.0, %v15504_v45  ;;  %v20443_v0 = vpop.f32.mrb[99].mxu1  ;;  %v21653_v45 = vld [vmem:[#allocation21_spill] sm:$0xff] }
 0xb92   : > { %v15508_v35 = vpop.eup %15507  ;;  %15527 = vrcp.f32 %v9406_v7  ;;  %v9407_v47 = vadd.f32 1.0, %v15506_v34  ;;  %v7820_v32 = vadd.f32 %v21653_v45, %v20374_v28  ;;  %v21654_v34 = vld [vmem:[#allocation22_spill] sm:$0xff] }
 0xb93   : > { %v15510_v33 = vpop.eup %15509  ;;  %15529 = vrcp.f32 %v9422_v4  ;;  %v9408_v3 = vadd.f32 1.0, %v15508_v35  ;;  %v7465_v22 = vadd.f32 %v21654_v34, %v20367_v54  ;;  %v11720_v35 = vmul.f32 -1.442695, %v7828_v12  ;;  %v20465_v34 = vpop.f32.mrb[100].mxu1 }
 0xb94   : > { %v15512_v18 = vpop.eup %15511  ;;  %11176 = vst [vmem:[%s18980_s30 + $0xd70] sm:$0xff] %v15510_v33  ;;  %15531 = vrcp.f32 %v9407_v47  ;;  %v21655_v47 = vld [vmem:[#allocation13_spill] sm:$0xff] }
 0xb95   : > { %v15514_v29 = vpop.eup %15513  ;;  %11180 = vst [vmem:[%s18980_s30 + $0xd90] sm:$0xff] %v15512_v18  ;;  %15533 = vrcp.f32 %v9408_v3  ;;  %v7831_v33 = vadd.f32 %v21655_v47, %v20374_v28  ;;  %v11691_v3 = vmul.f32 -1.442695, %v7463_v27  ;;  %v11706_v18 = vmul.f32 -1.442695, %v7820_v32  ;;  %v20463_v27 = vpop.f32.mrb[36].mxu0 }
 0xb96   : > { %v15516_v7 = vpop.eup %15515  ;;  %11182 = vst [vmem:[%s18980_s30 + $0xda0] sm:$0xff] %v15514_v29  ;;  %15535 = vpow2.f32 %v11683_v53  ;;  %v7467_v53 = vadd.f32 %v20144_v21, %v20379_v15  ;;  %v21656_v29 = vld [vmem:[#allocation23_spill] sm:$0xff]  ;;  %v11697_v45 = vmul.f32 -1.442695, %v7465_v22  ;;  %v20468_v32 = vpop.f32.mrb[37].mxu0 }
 0xb97   : > { %v15518_v4 = vpop.eup %15517  ;;  %11181 = vst [vmem:[%s18980_s30 + $0xd98] sm:$0xff] %v15516_v7  ;;  %15537 = vpow2.f32 %v11699_v26  ;;  %v7823_v26 = vadd.f32 %v21656_v29, %v20374_v28  ;;  %v21657_v7 = vld [vmem:[#allocation14_spill] sm:$0xff]  ;;  %v20473_v22 = vpop.f32.mrb[38].mxu0 }
 0xb98   : > { %v15520_v23 = vpop.eup %15519  ;;  %11183 = vst [vmem:[%s18980_s30 + $0xda8] sm:$0xff] %v15518_v4  ;;  %15539 = vpow2.f32 %v11684_v44  ;;  %v7471_v44 = vadd.f32 %v21657_v7, %v20367_v54  ;;  %v20470_v4 = vpop.f32.mrb[101].mxu1 }
 0xb99   : > { %v15522_v41 = vpop.eup %15521  ;;  %11187 = vst [vmem:[%s18980_s30 + $0xdc8] sm:$0xff] %v15520_v23  ;;  %15541 = vpow2.f32 %v11685_v16  ;;  %v11727_v16 = vmul.f32 -1.442695, %v7831_v33  ;;  %v20475_v23 = vpop.f32.mrb[102].mxu1 }
 0xb9a   : > { %v15524_v12 = vpop.eup %15523  ;;  %11189 = vst [vmem:[%s18980_s30 + $0xdd8] sm:$0xff] %v15522_v41  ;;  %15543 = vpow2.f32 %v11690_v56  ;;  %v11698_v56 = vmul.f32 -1.442695, %v7467_v53  ;;  %21658 = vst [vmem:[#allocation35_spill] sm:$0xff] %v20475_v23  ;;  %v20478_v33 = vpop.f32.mrb[39].mxu0 }
 0xb9b   : > { %v15526_v21 = vpop.eup %15525  ;;  %11188 = vst [vmem:[%s18980_s30 + $0xdd0] sm:$0xff] %v15524_v12  ;;  %15545 = vpow2.f32 %v11720_v35  ;;  %v11713_v35 = vmul.f32 -1.442695, %v7823_v26  ;;  %21659 = vst [vmem:[#allocation36_spill] sm:$0xff] %v20478_v33  ;;  %v20480_v29 = vpop.f32.mrb[103].mxu1 }
 0xb9c   : > { %v15528_v47 = vpop.eup %15527  ;;  %11190 = vst [vmem:[%s18980_s30 + $0xde0] sm:$0xff] %v15526_v21  ;;  %15547 = vpow2.f32 %v11691_v3  ;;  %21660 = vst [vmem:[#allocation17_spill] sm:$0xff] %v20480_v29  ;;  %v11704_v7 = vmul.f32 -1.442695, %v7471_v44  ;;  %v20487_v33 = vpop.f32.mrb[40].mxu0 }
 0xb9d   : > { %v15530_v41 = vpop.eup %15529  ;;  %10750 = vst [vmem:[%s18980_s30 + $0x20] sm:$0xff] %v15528_v47  ;;  %15549 = vpow2.f32 %v11706_v18  ;;  %21661 = vst [vmem:[#allocation7_spill] sm:$0xff] %v20487_v33  ;;  %v20489_v29 = vpop.f32.mrb[104].mxu1 }
 0xb9e   : > { %v15532_v12 = vpop.eup %15531  ;;  %10766 = vst.msk [vmem:[%s18980_s30 + $0xa0] sm:$0xff] %vm1670_vm0, %v15530_v41  ;;  %15551 = vpow2.f32 %v11697_v45  ;;  %21662 = vst [vmem:[#allocation3_spill] sm:$0xff] %v20489_v29  ;;  %v20491_v44 = vpop.f32.mrb[41].mxu0 }
 0xb9f   : > { %v15534_v3 = vpop.eup %15533  ;;  %10751 = vst [vmem:[%s18980_s30 + $0x28] sm:$0xff] %v15532_v12  ;;  %15553 = vpow2.f32 %v11727_v16  ;;  %21663 = vst [vmem:[#allocation37_spill] sm:$0xff] %v20491_v44 }
 0xba0   : > { %v15536_v53 = vpop.eup %15535  ;;  %10752 = vst.msk [vmem:[%s18980_s30 + $0x30] sm:$0xff] %vm1670_vm0, %v15534_v3  ;;  %15555 = vpow2.f32 %v11698_v56 }
 0xba1   : > { %v15538_v21 = vpop.eup %15537  ;;  %v9413_v47 = vadd.f32 1.0, %v15536_v53  ;;  %15557 = vpow2.f32 %v11713_v35 }
 0xba2   : > { %v15540_v18 = vpop.eup %15539  ;;  %v9429_v26 = vadd.f32 1.0, %v15538_v21  ;;  %15559 = vpow2.f32 %v11704_v7 }
 0xba3   : > { %v15542_v41 = vpop.eup %15541  ;;  %15561 = vrcp.f32 %v9413_v47  ;;  %v9414_v45 = vadd.f32 1.0, %v15540_v18  ;;  %v21664_v47 = vld [vmem:[#allocation8_spill] sm:$0xff] }
 0xba4   : > { %v15544_v16 = vpop.eup %15543  ;;  %15563 = vrcp.f32 %v9429_v26  ;;  %v9415_v12 = vadd.f32 1.0, %v15542_v41  ;;  %v7844_v18 = vadd.f32 %v21664_v47, %v20374_v28  ;;  %v7473_v26 = vadd.f32 %v20169_v57, %v20379_v15 }
 0xba5   : > { %v15546_v3 = vpop.eup %15545  ;;  %15565 = vrcp.f32 %v9414_v45  ;;  %v9420_v56 = vadd.f32 1.0, %v15544_v16  ;;  %v7836_v16 = vadd.f32 %v20171_v25, %v20374_v28  ;;  %v7847_v57 = vadd.f32 %v20181_v62, %v20374_v28 }
 0xba6   : > { %v15548_v53 = vpop.eup %15547  ;;  %15567 = vrcp.f32 %v9415_v12  ;;  %v9450_v35 = vadd.f32 1.0, %v15546_v3  ;;  %v7477_v25 = vadd.f32 %v20189_v17, %v20379_v15  ;;  %v7839_v47 = vadd.f32 %v20191_v50, %v20374_v28  ;;  %v20514_v17 = vpop.f32.mrb[42].mxu0 }
 0xba7   : > { %v15550_v21 = vpop.eup %15549  ;;  %15569 = vrcp.f32 %v9420_v56  ;;  %v9421_v7 = vadd.f32 1.0, %v15548_v53  ;;  %v7475_v56 = vadd.f32 %v20179_v48, %v20367_v54  ;;  %v11734_v48 = vmul.f32 -1.442695, %v7836_v16 }
 0xba8   : > { %v15552_v33 = vpop.eup %15551  ;;  %15571 = vrcp.f32 %v9450_v35  ;;  %v9436_v29 = vadd.f32 1.0, %v15550_v21  ;;  %v11748_v35 = vmul.f32 -1.442695, %v7844_v18  ;;  %v11705_v21 = vmul.f32 -1.442695, %v7473_v26 }
 0xba9   : > { %v15554_v23 = vpop.eup %15553  ;;  %15573 = vrcp.f32 %v9421_v7  ;;  %v9427_v44 = vadd.f32 1.0, %v15552_v33  ;;  %v11711_v62 = vmul.f32 -1.442695, %v7475_v56  ;;  %v7481_v26 = vadd.f32 %v20203_v42, %v20367_v54  ;;  %v20525_v56 = vpop.f32.mrb[43].mxu0 }
 0xbaa   : > { %v15556_v41 = vpop.eup %15555  ;;  %15575 = vrcp.f32 %v9436_v29  ;;  %v9457_v45 = vadd.f32 1.0, %v15554_v23  ;;  %v11755_v16 = vmul.f32 -1.442695, %v7847_v57  ;;  %v7860_v50 = vadd.f32 %v20205_v60, %v20374_v28 }
 0xbab   : > { %v15558_v12 = vpop.eup %15557  ;;  %15577 = vrcp.f32 %v9427_v44  ;;  %v9428_v3 = vadd.f32 1.0, %v15556_v41  ;;  %v20505_v44 = vpop.f32.mrb[105].mxu1  ;;  %v7483_v42 = vadd.f32 %v20208_v61, %v20379_v15  ;;  %v7852_v60 = vadd.f32 %v20210_v55, %v20374_v28 }
 0xbac   : > { %v15560_v53 = vpop.eup %15559  ;;  %15579 = vrcp.f32 %v9457_v45  ;;  %v9443_v33 = vadd.f32 1.0, %v15558_v12  ;;  %v20516_v41 = vpop.f32.mrb[106].mxu1  ;;  %v7485_v61 = vadd.f32 %v20213_v13, %v20367_v54 }
 0xbad   : > { %v15562_v29 = vpop.eup %15561  ;;  %15581 = vrcp.f32 %v9428_v3  ;;  %v9434_v23 = vadd.f32 1.0, %v15560_v53  ;;  %v11712_v3 = vmul.f32 -1.442695, %v7477_v25  ;;  %v20527_v53 = vpop.f32.mrb[107].mxu1  ;;  %v7863_v25 = vadd.f32 %v20215_v5, %v20374_v28 }
 0xbae   : > { %v15564_v7 = vpop.eup %15563  ;;  %10757 = vst [vmem:[%s18980_s30 + $0x58] sm:$0xff] %v15562_v29  ;;  %15583 = vrcp.f32 %v9443_v33  ;;  %v11718_v29 = vmul.f32 -1.442695, %v7481_v26  ;;  %v11719_v55 = vmul.f32 -1.442695, %v7483_v42  ;;  %v20546_v5 = vpop.f32.mrb[108].mxu1 }
 0xbaf   : > { %v15566_v18 = vpop.eup %15565  ;;  %10773 = vst.msk [vmem:[%s18980_s30 + $0xd8] sm:$0xff] %vm1670_vm0, %v15564_v7  ;;  %15585 = vrcp.f32 %v9434_v23  ;;  %v11725_v13 = vmul.f32 -1.442695, %v7485_v61 }
 0xbb0   : > { %v15568_v45 = vpop.eup %15567  ;;  %10758 = vst [vmem:[%s18980_s30 + $0x60] sm:$0xff] %v15566_v18  ;;  %15587 = vpow2.f32 %v11748_v35  ;;  %v11741_v35 = vmul.f32 -1.442695, %v7839_v47  ;;  %v11762_v47 = vmul.f32 -1.442695, %v7852_v60 }
 0xbb1   : > { %v15570_v12 = vpop.eup %15569  ;;  %10759 = vst.msk [vmem:[%s18980_s30 + $0x68] sm:$0xff] %vm1670_vm0, %v15568_v45  ;;  %15589 = vpow2.f32 %v11705_v21  ;;  %v11776_v21 = vmul.f32 -1.442695, %v7860_v50  ;;  %v11783_v45 = vmul.f32 -1.442695, %v7863_v25  ;;  %v20551_v50 = vpop.f32.mrb[109].mxu1 }
 0xbb2   : > { %v15572_v33 = vpop.eup %15571  ;;  %10764 = vst [vmem:[%s18980_s30 + $0x90] sm:$0xff] %v15570_v12  ;;  %15591 = vpow2.f32 %v11734_v48  ;;  %v20557_v42 = vpop.f32.mrb[110].mxu1 }
 0xbb3   : > { %v15574_v57 = vpop.eup %15573  ;;  %10794 = vst.msk [vmem:[%s18980_s30 + $0x180] sm:$0xff] %vm1670_vm0, %v15572_v33  ;;  %15593 = vpow2.f32 %v11711_v62  ;;  %v20544_v62 = vpop.f32.mrb[44].mxu0 }
 0xbb4   : > { %v15576_v23 = vpop.eup %15575  ;;  %10765 = vst [vmem:[%s18980_s30 + $0x98] sm:$0xff] %v15574_v57  ;;  %15595 = vpow2.f32 %v11755_v16  ;;  %v20549_v16 = vpop.f32.mrb[45].mxu0 }
 0xbb5   : > { %v15578_v7 = vpop.eup %15577  ;;  %10780 = vst.msk [vmem:[%s18980_s30 + $0x110] sm:$0xff] %vm1670_vm0, %v15576_v23  ;;  %15597 = vpow2.f32 %v11712_v3  ;;  %v20555_v3 = vpop.f32.mrb[46].mxu0 }
 0xbb6   : > { %v15580_v48 = vpop.eup %15579  ;;  %10771 = vst [vmem:[%s18980_s30 + $0xc8] sm:$0xff] %v15578_v7  ;;  %15599 = vpow2.f32 %v11741_v35  ;;  %v20560_v35 = vpop.f32.mrb[47].mxu0 }
 0xbb7   : > { %v15582_v18 = vpop.eup %15581  ;;  %10801 = vst.msk [vmem:[%s18980_s30 + $0x1b8] sm:$0xff] %vm1670_vm0, %v15580_v48  ;;  %15601 = vpow2.f32 %v11718_v29  ;;  %v20562_v60 = vpop.f32.mrb[111].mxu1 }
 0xbb8   : > { %v15584_v26 = vpop.eup %15583  ;;  %10772 = vst [vmem:[%s18980_s30 + $0xd0] sm:$0xff] %v15582_v18  ;;  %15603 = vpow2.f32 %v11776_v21  ;;  %21665 = vst [vmem:[#allocation38_spill] sm:$0xff] %v20562_v60 }
 0xbb9   : > { %v15586_v12 = vpop.eup %15585  ;;  %10787 = vst.msk [vmem:[%s18980_s30 + $0x148] sm:$0xff] %vm1670_vm0, %v15584_v26  ;;  %15605 = vpow2.f32 %v11719_v55 }
 0xbba   : > { %v15588_v33 = vpop.eup %15587  ;;  %10778 = vst [vmem:[%s18980_s30 + $0x100] sm:$0xff] %v15586_v12  ;;  %15607 = vpow2.f32 %v11762_v47 }
 0xbbb   : > { %v15590_v57 = vpop.eup %15589  ;;  %v9478_v29 = vadd.f32 1.0, %v15588_v33  ;;  %15609 = vpow2.f32 %v11725_v13 }
 0xbbc   : > { %v15592_v61 = vpop.eup %15591  ;;  %v9435_v23 = vadd.f32 1.0, %v15590_v57  ;;  %15611 = vpow2.f32 %v11783_v45  ;;  %v21666_v45 = vld [vmem:[#allocation11_spill] sm:$0xff] }
 0xbbd   : > { %v15594_v21 = vpop.eup %15593  ;;  %15613 = vrcp.f32 %v9478_v29  ;;  %v9464_v25 = vadd.f32 1.0, %v15592_v61  ;;  %v7487_v57 = vadd.f32 %v21666_v45, %v20379_v15 }
 0xbbe   : > { %v15596_v7 = vpop.eup %15595  ;;  %15615 = vrcp.f32 %v9435_v23  ;;  %v9441_v55 = vadd.f32 1.0, %v15594_v21  ;;  %v7855_v23 = vadd.f32 %v20231_v8, %v20374_v28  ;;  %v7493_v8 = vadd.f32 %v20258_v52, %v20379_v15 }
 0xbbf   : > { %v15598_v48 = vpop.eup %15597  ;;  %15617 = vrcp.f32 %v9464_v25  ;;  %v9485_v18 = vadd.f32 1.0, %v15596_v7  ;;  %v7491_v7 = vadd.f32 %v20251_v19, %v20367_v54 }
 0xbc0   : > { %v15600_v47 = vpop.eup %15599  ;;  %15619 = vrcp.f32 %v9441_v55  ;;  %v9442_v26 = vadd.f32 1.0, %v15598_v48  ;;  %v11769_v19 = vmul.f32 -1.442695, %v7855_v23 }
 0xbc1   : > { %v15602_v12 = vpop.eup %15601  ;;  %15621 = vrcp.f32 %v9485_v18  ;;  %v9471_v60 = vadd.f32 1.0, %v15600_v47  ;;  %v7876_v18 = vadd.f32 %v20253_v46, %v20374_v28  ;;  %v11732_v46 = vmul.f32 -1.442695, %v7491_v7 }
 0xbc2   : > { %v15604_v33 = vpop.eup %15603  ;;  %15623 = vrcp.f32 %v9442_v26  ;;  %v9448_v13 = vadd.f32 1.0, %v15602_v12  ;;  %v11726_v26 = vmul.f32 -1.442695, %v7487_v57  ;;  %v7495_v57 = vadd.f32 %v20263_v11, %v20367_v54 }
 0xbc3   : > { %v15606_v29 = vpop.eup %15605  ;;  %15625 = vrcp.f32 %v9471_v60  ;;  %v9506_v61 = vadd.f32 1.0, %v15604_v33  ;;  %v11804_v52 = vmul.f32 -1.442695, %v7876_v18  ;;  %v7871_v7 = vadd.f32 %v20270_v38, %v20374_v28  ;;  %v21668_v38 = vld [vmem:[#allocation24_spill] sm:$0xff] }
 0xbc4   : > { %v15608_v21 = vpop.eup %15607  ;;  %15627 = vrcp.f32 %v9448_v13  ;;  %v9449_v25 = vadd.f32 1.0, %v15606_v29  ;;  %v7868_v13 = vadd.f32 %v20260_v58, %v20374_v28  ;;  %v11733_v58 = vmul.f32 -1.442695, %v7493_v8 }
 0xbc5   : > { %v15610_v55 = vpop.eup %15609  ;;  %15629 = vrcp.f32 %v9506_v61  ;;  %v9492_v48 = vadd.f32 1.0, %v15608_v21  ;;  %v7879_v61 = vadd.f32 %v20265_v37, %v20374_v28  ;;  %v7497_v21 = vadd.f32 %v20268_v51, %v20379_v15 }
 0xbc6   : > { %v15612_v47 = vpop.eup %15611  ;;  %15631 = vrcp.f32 %v9449_v25  ;;  %v9455_v60 = vadd.f32 1.0, %v15610_v55  ;;  %v11790_v11 = vmul.f32 -1.442695, %v7868_v13  ;;  %v11739_v37 = vmul.f32 -1.442695, %v7495_v57 }
 0xbc7   : > { %v15614_v12 = vpop.eup %15613  ;;  %15633 = vrcp.f32 %v9492_v48  ;;  %v9513_v33 = vadd.f32 1.0, %v15612_v47  ;;  %v21667_v48 = vld [vmem:[#allocation10_spill] sm:$0xff]  ;;  %v20594_v47 = vpop.f32.mrb[48].mxu0  ;;  %v7892_v8 = vadd.f32 %v21668_v38, %v20374_v28  ;;  %v11740_v13 = vmul.f32 -1.442695, %v7497_v21 }
 0xbc8   : > { %v15616_v45 = vpop.eup %15615  ;;  %10822 = vst.msk [vmem:[%s18980_s30 + $0x260] sm:$0xff] %vm1670_vm0, %v15614_v12  ;;  %15635 = vrcp.f32 %v9455_v60  ;;  %v7501_v18 = vadd.f32 %v21667_v48, %v20367_v54  ;;  %v20596_v60 = vpop.f32.mrb[112].mxu1 }
 0xbc9   : > { %v15618_v29 = vpop.eup %15617  ;;  %10779 = vst [vmem:[%s18980_s30 + $0x108] sm:$0xff] %v15616_v45  ;;  %15637 = vrcp.f32 %v9513_v33  ;;  %v20601_v12 = vpop.f32.mrb[49].mxu0  ;;  %v21669_v45 = vld [vmem:[#allocation25_spill] sm:$0xff]  ;;  %v11832_v48 = vmul.f32 -1.442695, %v7892_v8 }
 0xbca   : > { %v15620_v23 = vpop.eup %15619  ;;  %10808 = vst.msk [vmem:[%s18980_s30 + $0x1f0] sm:$0xff] %vm1670_vm0, %v15618_v29  ;;  %15639 = vpow2.f32 %v11726_v26  ;;  %v11811_v26 = vmul.f32 -1.442695, %v7879_v61  ;;  %v20603_v33 = vpop.f32.mrb[113].mxu1  ;;  %v11797_v61 = vmul.f32 -1.442695, %v7871_v7 }
 0xbcb   : > { %v15622_v25 = vpop.eup %15621  ;;  %10785 = vst [vmem:[%s18980_s30 + $0x138] sm:$0xff] %v15620_v23  ;;  %15641 = vpow2.f32 %v11769_v19  ;;  %v20609_v57 = vpop.f32.mrb[50].mxu0  ;;  %v11746_v21 = vmul.f32 -1.442695, %v7501_v18 }
 0xbcc   : > { %v15624_v55 = vpop.eup %15623  ;;  %10829 = vst.msk [vmem:[%s18980_s30 + $0x298] sm:$0xff] %vm1670_vm0, %v15622_v25  ;;  %15643 = vpow2.f32 %v11732_v46  ;;  %v7503_v46 = vadd.f32 %v21669_v45, %v20379_v15  ;;  %v20611_v29 = vpop.f32.mrb[114].mxu1 }
 0xbcd   : > { %v15626_v51 = vpop.eup %15625  ;;  %10786 = vst [vmem:[%s18980_s30 + $0x140] sm:$0xff] %v15624_v55  ;;  %15645 = vpow2.f32 %v11804_v52  ;;  %v20614_v23 = vpop.f32.mrb[51].mxu0 }
 0xbce   : > { %v15628_v19 = vpop.eup %15627  ;;  %10815 = vst.msk [vmem:[%s18980_s30 + $0x228] sm:$0xff] %vm1670_vm0, %v15626_v51  ;;  %15647 = vpow2.f32 %v11733_v58  ;;  %v20616_v25 = vpop.f32.mrb[115].mxu1 }
 0xbcf   : > { %v15630_v52 = vpop.eup %15629  ;;  %10792 = vst [vmem:[%s18980_s30 + $0x170] sm:$0xff] %v15628_v19  ;;  %15649 = vpow2.f32 %v11790_v11  ;;  %v11747_v11 = vmul.f32 -1.442695, %v7503_v46  ;;  %v20626_v19 = vpop.f32.mrb[52].mxu0 }
 0xbd0   : > { %v15632_v58 = vpop.eup %15631  ;;  %10850 = vst.msk [vmem:[%s18980_s30 + $0x340] sm:$0xff] %vm1670_vm0, %v15630_v52  ;;  %15651 = vpow2.f32 %v11739_v37  ;;  %v20628_v37 = vpop.f32.mrb[116].mxu1 }
 0xbd1   : > { %v15634_v55 = vpop.eup %15633  ;;  %10793 = vst [vmem:[%s18980_s30 + $0x178] sm:$0xff] %v15632_v58  ;;  %15653 = vpow2.f32 %v11811_v26  ;;  %21670 = vst [vmem:[#allocation2_spill] sm:$0xff] %v20628_v37  ;;  %v20630_v26 = vpop.f32.mrb[53].mxu0 }
 0xbd2   : > { %v15636_v51 = vpop.eup %15635  ;;  %10836 = vst.msk [vmem:[%s18980_s30 + $0x2d0] sm:$0xff] %vm1670_vm0, %v15634_v55  ;;  %15655 = vpow2.f32 %v11740_v13  ;;  %21671 = vst [vmem:[#allocation5_spill] sm:$0xff] %v20630_v26  ;;  %v20632_v8 = vpop.f32.mrb[117].mxu1 }
 0xbd3   : > { %v15638_v7 = vpop.eup %15637  ;;  %10799 = vst [vmem:[%s18980_s30 + $0x1a8] sm:$0xff] %v15636_v51  ;;  %15657 = vpow2.f32 %v11797_v61  ;;  %21672 = vst [vmem:[#allocation39_spill] sm:$0xff] %v20632_v8  ;;  %v20634_v52 = vpop.f32.mrb[54].mxu0 }
 0xbd4   : > { %v15640_v38 = vpop.eup %15639  ;;  %10857 = vst.msk [vmem:[%s18980_s30 + $0x378] sm:$0xff] %vm1670_vm0, %v15638_v7  ;;  %15659 = vpow2.f32 %v11746_v21  ;;  %21673 = vst [vmem:[#allocation40_spill] sm:$0xff] %v20634_v52 }
 0xbd5   : > { %v15642_v18 = vpop.eup %15641  ;;  %v9456_v45 = vadd.f32 1.0, %v15640_v38  ;;  %15661 = vpow2.f32 %v11832_v48 }
 0xbd6   : > { %v15644_v13 = vpop.eup %15643  ;;  %v9499_v46 = vadd.f32 1.0, %v15642_v18  ;;  %15663 = vpow2.f32 %v11747_v11  ;;  %v21674_v18 = vld [vmem:[#allocation12_spill] sm:$0xff] }
 0xbd7   : > { %v15646_v61 = vpop.eup %15645  ;;  %15665 = vrcp.f32 %v9456_v45  ;;  %v9462_v58 = vadd.f32 1.0, %v15644_v13  ;;  %v7884_v52 = vadd.f32 %v21674_v18, %v20374_v28  ;;  %v20648_v18 = vpop.f32.mrb[118].mxu1 }
 0xbd8   : > { %v15648_v21 = vpop.eup %15647  ;;  %15667 = vrcp.f32 %v9499_v46  ;;  %v9534_v55 = vadd.f32 1.0, %v15646_v61  ;;  %v7505_v46 = vadd.f32 %v20299_v63, %v20367_v54  ;;  %v7887_v63 = vadd.f32 %v20311_v43, %v20374_v28 }
 0xbd9   : > { %v15650_v51 = vpop.eup %15649  ;;  %15669 = vrcp.f32 %v9462_v58  ;;  %v9463_v7 = vadd.f32 1.0, %v15648_v21  ;;  %v7895_v21 = vadd.f32 %v20301_v40, %v20374_v28  ;;  %v7511_v40 = vadd.f32 %v20327_v36, %v20367_v54  ;;  %v20657_v36 = vpop.f32.mrb[55].mxu0 }
 0xbda   : > { %v15652_v38 = vpop.eup %15651  ;;  %15671 = vrcp.f32 %v9534_v55  ;;  %v9520_v48 = vadd.f32 1.0, %v15650_v51 }
 0xbdb   : > { %v15654_v26 = vpop.eup %15653  ;;  %15673 = vrcp.f32 %v9463_v7  ;;  %v9469_v8 = vadd.f32 1.0, %v15652_v38 }
 0xbdc   : > { %v15656_v37 = vpop.eup %15655  ;;  %15675 = vrcp.f32 %v9520_v48  ;;  %v9541_v11 = vadd.f32 1.0, %v15654_v26  ;;  %v7507_v26 = vadd.f32 %v20309_v39, %v20379_v15  ;;  %v11839_v39 = vmul.f32 -1.442695, %v7895_v21 }
 0xbdd   : > { %v15658_v45 = vpop.eup %15657  ;;  %15677 = vrcp.f32 %v9469_v8  ;;  %v9470_v13 = vadd.f32 1.0, %v15656_v37  ;;  %v11818_v8 = vmul.f32 -1.442695, %v7884_v52  ;;  %v7908_v52 = vadd.f32 %v20329_v49, %v20374_v28  ;;  %v21675_v49 = vld [vmem:[#allocation15_spill] sm:$0xff] }
 0xbde   : > { %v15660_v61 = vpop.eup %15659  ;;  %15679 = vrcp.f32 %v9541_v11  ;;  %v9527_v58 = vadd.f32 1.0, %v15658_v45  ;;  %v11753_v11 = vmul.f32 -1.442695, %v7505_v46  ;;  %v11754_v43 = vmul.f32 -1.442695, %v7507_v26 }
 0xbdf   : > { %v15662_v55 = vpop.eup %15661  ;;  %15681 = vrcp.f32 %v9470_v13  ;;  %v9476_v51 = vadd.f32 1.0, %v15660_v61  ;;  %v7513_v46 = vadd.f32 %v20332_v2, %v20379_v15  ;;  %v20659_v61 = vpop.f32.mrb[119].mxu1  ;;  %v11825_v21 = vmul.f32 -1.442695, %v7887_v63  ;;  %v21676_v2 = vld [vmem:[#allocation26_spill] sm:$0xff] }
 0xbe0   : > { %v15664_v7 = vpop.eup %15663  ;;  %15683 = vrcp.f32 %v9527_v58  ;;  %v9562_v37 = vadd.f32 1.0, %v15662_v55  ;;  %v7900_v55 = vadd.f32 %v21675_v49, %v20374_v28  ;;  %v11760_v26 = vmul.f32 -1.442695, %v7511_v40 }
 0xbe1   : > { %v15666_v38 = vpop.eup %15665  ;;  %15685 = vrcp.f32 %v9476_v51  ;;  %v9477_v48 = vadd.f32 1.0, %v15664_v7  ;;  %v7515_v7 = vadd.f32 %v21676_v2, %v20367_v54  ;;  %v20680_v2 = vpop.f32.mrb[56].mxu0 }
 0xbe2   : > { %v15668_v45 = vpop.eup %15667  ;;  %10800 = vst [vmem:[%s18980_s30 + $0x1b0] sm:$0xff] %v15666_v38  ;;  %15687 = vrcp.f32 %v9562_v37  ;;  %v11860_v38 = vmul.f32 -1.442695, %v7908_v52 }
 0xbe3   : > { %v15670_v13 = vpop.eup %15669  ;;  %10843 = vst.msk [vmem:[%s18980_s30 + $0x308] sm:$0xff] %vm1670_vm0, %v15668_v45  ;;  %15689 = vrcp.f32 %v9477_v48  ;;  %v11761_v45 = vmul.f32 -1.442695, %v7513_v46 }
 0xbe4   : > { %v15672_v58 = vpop.eup %15671  ;;  %10806 = vst [vmem:[%s18980_s30 + $0x1e0] sm:$0xff] %v15670_v13  ;;  %15691 = vpow2.f32 %v11818_v8  ;;  %v21677_v8 = vld [vmem:[#allocation27_spill] sm:$0xff] }
 0xbe5   : > { %v15674_v51 = vpop.eup %15673  ;;  %10878 = vst.msk [vmem:[%s18980_s30 + $0x420] sm:$0xff] %vm1670_vm0, %v15672_v58  ;;  %15693 = vpow2.f32 %v11753_v11  ;;  %v7911_v63 = vadd.f32 %v21677_v8, %v20374_v28  ;;  %v21678_v11 = vld [vmem:[#allocation28_spill] sm:$0xff]  ;;  %v11846_v58 = vmul.f32 -1.442695, %v7900_v55 }
 0xbe6   : > { %v15676_v37 = vpop.eup %15675  ;;  %10807 = vst [vmem:[%s18980_s30 + $0x1e8] sm:$0xff] %v15674_v51  ;;  %15695 = vpow2.f32 %v11839_v39  ;;  %v7517_v40 = vadd.f32 %v21678_v11, %v20379_v15  ;;  %v21679_v39 = vld [vmem:[#allocation29_spill] sm:$0xff]  ;;  %v11767_v51 = vmul.f32 -1.442695, %v7515_v7 }
 0xbe7   : > { %v15678_v48 = vpop.eup %15677  ;;  %10864 = vst.msk [vmem:[%s18980_s30 + $0x3b0] sm:$0xff] %vm1670_vm0, %v15676_v37  ;;  %15697 = vpow2.f32 %v11754_v43  ;;  %v7903_v52 = vadd.f32 %v21679_v39, %v20374_v28  ;;  %v20682_v43 = vpop.f32.mrb[120].mxu1  ;;  %v11867_v37 = vmul.f32 -1.442695, %v7911_v63 }
 0xbe8   : > { %v15680_v13 = vpop.eup %15679  ;;  %10813 = vst [vmem:[%s18980_s30 + $0x218] sm:$0xff] %v15678_v48  ;;  %15699 = vpow2.f32 %v11825_v21  ;;  %v20685_v21 = vpop.f32.mrb[57].mxu0 }
 0xbe9   : > { %v15682_v49 = vpop.eup %15681  ;;  %10885 = vst.msk [vmem:[%s18980_s30 + $0x458] sm:$0xff] %vm1670_vm0, %v15680_v13  ;;  %15701 = vpow2.f32 %v11760_v26  ;;  %v20687_v55 = vpop.f32.mrb[121].mxu1  ;;  %v11768_v26 = vmul.f32 -1.442695, %v7517_v40 }
 0xbea   : > { %v15684_v46 = vpop.eup %15683  ;;  %10814 = vst [vmem:[%s18980_s30 + $0x220] sm:$0xff] %v15682_v49  ;;  %15703 = vpow2.f32 %v11860_v38  ;;  %v20691_v7 = vpop.f32.mrb[58].mxu0  ;;  %v11853_v38 = vmul.f32 -1.442695, %v7903_v52 }
 0xbeb   : > { %v15686_v8 = vpop.eup %15685  ;;  %10871 = vst.msk [vmem:[%s18980_s30 + $0x3e8] sm:$0xff] %vm1670_vm0, %v15684_v46  ;;  %15705 = vpow2.f32 %v11761_v45  ;;  %21680 = vst [vmem:[#allocation41_spill] sm:$0xff] %v20691_v7  ;;  %v20693_v48 = vpop.f32.mrb[122].mxu1 }
 0xbec   : > { %21681 = vst [vmem:[#allocation42_spill] sm:$0xff] %v20693_v48  ;;  %v15688_v11 = vpop.eup %15687  ;;  %10820 = vst [vmem:[%s18980_s30 + $0x250] sm:$0xff] %v15686_v8  ;;  %15707 = vpow2.f32 %v11846_v58  ;;  %v20696_v63 = vpop.f32.mrb[59].mxu0 }
 0xbed   : > { %21682 = vst [vmem:[#allocation43_spill] sm:$0xff] %v20696_v63  ;;  %v20698_v13 = vpop.f32.mrb[123].mxu1  ;;  %v15690_v39 = vpop.eup %15689  ;;  %10906 = vst.msk [vmem:[%s18980_s30 + $0x500] sm:$0xff] %vm1670_vm0, %v15688_v11  ;;  %15709 = vpow2.f32 %v11767_v51 }
 0xbee   : > { %21683 = vst [vmem:[#allocation44_spill] sm:$0xff] %v20698_v13  ;;  %v15692_v49 = vpop.eup %15691  ;;  %10821 = vst [vmem:[%s18980_s30 + $0x258] sm:$0xff] %v15690_v39  ;;  %15711 = vpow2.f32 %v11867_v37  ;;  %v20703_v52 = vpop.f32.mrb[60].mxu0 }
 0xbef   : > { %v15694_v45 = vpop.eup %15693  ;;  %v9548_v40 = vadd.f32 1.0, %v15692_v49  ;;  %15713 = vpow2.f32 %v11768_v26  ;;  %21684 = vst [vmem:[#allocation4_spill] sm:$0xff] %v20703_v52  ;;  %v20705_v63 = vpop.f32.mrb[124].mxu1 }
 0xbf0   : > { %v15696_v46 = vpop.eup %15695  ;;  %v9483_v48 = vadd.f32 1.0, %v15694_v45  ;;  %15715 = vpow2.f32 %v11853_v38  ;;  %21685 = vst [vmem:[#allocation45_spill] sm:$0xff] %v20705_v63 }
 0xbf1   : > { %v15698_v8 = vpop.eup %15697  ;;  %15717 = vrcp.f32 %v9548_v40  ;;  %v9569_v58 = vadd.f32 1.0, %v15696_v46  ;;  %v21686_v46 = vld [vmem:[#allocation30_spill] sm:$0xff] }
 0xbf2   : > { %v15700_v13 = vpop.eup %15699  ;;  %15719 = vrcp.f32 %v9483_v48  ;;  %v9484_v11 = vadd.f32 1.0, %v15698_v8  ;;  %v7521_v52 = vadd.f32 %v21686_v46, %v20367_v54  ;;  %v7924_v48 = vadd.f32 %v20369_v10, %v20374_v28 }
 0xbf3   : > { %v15702_v51 = vpop.eup %15701  ;;  %15721 = vrcp.f32 %v9569_v58  ;;  %v9555_v39 = vadd.f32 1.0, %v15700_v13  ;;  %v7523_v58 = vadd.f32 %v20381_v6, %v20379_v15  ;;  %v7525_v10 = vadd.f32 %v20391_v14, %v20367_v54  ;;  %v20725_v14 = vpop.f32.mrb[125].mxu1 }
 0xbf4   : > { %v15704_v37 = vpop.eup %15703  ;;  %15723 = vrcp.f32 %v9484_v11  ;;  %v9490_v49 = vadd.f32 1.0, %v15702_v51  ;;  %v11888_v6 = vmul.f32 -1.442695, %v7924_v48 }
 0xbf5   : > { %v15706_v26 = vpop.eup %15705  ;;  %15725 = vrcp.f32 %v9555_v39  ;;  %v9590_v45 = vadd.f32 1.0, %v15704_v37  ;;  %v7916_v39 = vadd.f32 %v20383_v24, %v20374_v28  ;;  %v11775_v24 = vmul.f32 -1.442695, %v7523_v58 }
 0xbf6   : > { %v15708_v38 = vpop.eup %15707  ;;  %15727 = vrcp.f32 %v9490_v49  ;;  %v9491_v40 = vadd.f32 1.0, %v15706_v26  ;;  %v11774_v26 = vmul.f32 -1.442695, %v7521_v52  ;;  %v20723_v52 = vpop.f32.mrb[61].mxu0 }
 0xbf7   : > { %v15710_v7 = vpop.eup %15709  ;;  %15729 = vrcp.f32 %v9590_v45  ;;  %v9576_v63 = vadd.f32 1.0, %v15708_v38  ;;  %v11874_v48 = vmul.f32 -1.442695, %v7916_v39  ;;  %v20734_v58 = vpop.f32.mrb[62].mxu0 }
 0xbf8   : > { %v15712_v8 = vpop.eup %15711  ;;  %15731 = vrcp.f32 %v9491_v40  ;;  %v9497_v13 = vadd.f32 1.0, %v15710_v7  ;;  %v7527_v40 = vadd.f32 %v20401_v30, %v20379_v15  ;;  %v7531_v30 = vadd.f32 %v20413_v1, %v20367_v54  ;;  %v21687_v1 = vld [vmem:[#allocation31_spill] sm:$0xff] }
 0xbf9   : > { %v15714_v11 = vpop.eup %15713  ;;  %15733 = vrcp.f32 %v9576_v63  ;;  %v9597_v51 = vadd.f32 1.0, %v15712_v8  ;;  %v7927_v63 = vadd.f32 %v20393_v20, %v20374_v28  ;;  %v7919_v20 = vadd.f32 %v20403_v59, %v20374_v28 }
 0xbfa   : > { %v15716_v37 = vpop.eup %15715  ;;  %15735 = vrcp.f32 %v9497_v13  ;;  %v9498_v49 = vadd.f32 1.0, %v15714_v11  ;;  %v11781_v13 = vmul.f32 -1.442695, %v7525_v10  ;;  %v20736_v11 = vpop.f32.mrb[126].mxu1  ;;  %v7940_v59 = vadd.f32 %v20415_v9, %v20374_v28  ;;  %v21688_v9 = vld [vmem:[#allocation32_spill] sm:$0xff] }
 0xbfb   : > { %v15718_v45 = vpop.eup %15717  ;;  %15737 = vrcp.f32 %v9597_v51  ;;  %v9583_v7 = vadd.f32 1.0, %v15716_v37  ;;  %v11895_v39 = vmul.f32 -1.442695, %v7927_v63  ;;  %v20745_v10 = vpop.f32.mrb[63].mxu0  ;;  %v7932_v63 = vadd.f32 %v21688_v9, %v20374_v28 }
 0xbfc   : > { %v15720_v38 = vpop.eup %15719  ;;  %10892 = vst.msk [vmem:[%s18980_s30 + $0x490] sm:$0xff] %vm1670_vm0, %v15718_v45  ;;  %15739 = vrcp.f32 %v9498_v49  ;;  %v11782_v49 = vmul.f32 -1.442695, %v7527_v40  ;;  %v20747_v45 = vpop.f32.mrb[127].mxu1  ;;  %v21689_v40 = vld [vmem:[#allocation33_spill] sm:$0xff] }
 0xbfd   : > { %v15722_v46 = vpop.eup %15721  ;;  %10827 = vst [vmem:[%s18980_s30 + $0x288] sm:$0xff] %v15720_v38  ;;  %15741 = vrcp.f32 %v9583_v7 }
 0xbfe   : > { %v15724_v8 = vpop.eup %15723  ;;  %10913 = vst.msk [vmem:[%s18980_s30 + $0x538] sm:$0xff] %vm1670_vm0, %v15722_v46  ;;  %15743 = vpow2.f32 %v11774_v26  ;;  %v7533_v26 = vadd.f32 %v21687_v1, %v20379_v15  ;;  %v7535_v46 = vadd.f32 %v21689_v40, %v20367_v54 }
 0xbff   : > { %v15726_v51 = vpop.eup %15725  ;;  %10828 = vst [vmem:[%s18980_s30 + $0x290] sm:$0xff] %v15724_v8  ;;  %15745 = vpow2.f32 %v11888_v6  ;;  %v11881_v6 = vmul.f32 -1.442695, %v7919_v20 }
 0xc00   : > { %v15728_v37 = vpop.eup %15727  ;;  %10899 = vst.msk [vmem:[%s18980_s30 + $0x4c8] sm:$0xff] %vm1670_vm0, %v15726_v51  ;;  %15747 = vpow2.f32 %v11775_v24  ;;  %v11788_v24 = vmul.f32 -1.442695, %v7531_v30  ;;  %v11916_v51 = vmul.f32 -1.442695, %v7940_v59 }
 0xc01   : > { %v15730_v7 = vpop.eup %15729  ;;  %10834 = vst [vmem:[%s18980_s30 + $0x2c0] sm:$0xff] %v15728_v37  ;;  %15749 = vpow2.f32 %v11874_v48  ;;  %v11789_v20 = vmul.f32 -1.442695, %v7533_v26  ;;  %v11795_v30 = vmul.f32 -1.442695, %v7535_v46 }
 0xc02   : > { %v15732_v38 = vpop.eup %15731  ;;  %10934 = vst.msk [vmem:[%s18980_s30 + $0x5e0] sm:$0xff] %vm1670_vm0, %v15730_v7  ;;  %15751 = vpow2.f32 %v11781_v13  ;;  %v11902_v13 = vmul.f32 -1.442695, %v7932_v63  ;;  %v20762_v7 = vpop.f32.mrb[64].mxu0 }
 0xc03   : > { %v15734_v8 = vpop.eup %15733  ;;  %10835 = vst [vmem:[%s18980_s30 + $0x2c8] sm:$0xff] %v15732_v38  ;;  %15753 = vpow2.f32 %v11895_v39  ;;  %v20765_v59 = vpop.f32.mrb[65].mxu0 }
 0xc04   : > { %v15736_v48 = vpop.eup %15735  ;;  %10920 = vst.msk [vmem:[%s18980_s30 + $0x570] sm:$0xff] %vm1670_vm0, %v15734_v8  ;;  %15755 = vpow2.f32 %v11782_v49  ;;  %v20769_v49 = vpop.f32.mrb[66].mxu0 }
 0xc05   : > { %v15738_v37 = vpop.eup %15737  ;;  %10841 = vst [vmem:[%s18980_s30 + $0x2f8] sm:$0xff] %v15736_v48  ;;  %15757 = vpow2.f32 %v11881_v6  ;;  %v20771_v63 = vpop.f32.mrb[67].mxu0 }
 0xc06   : > { %v15740_v1 = vpop.eup %15739  ;;  %10941 = vst.msk [vmem:[%s18980_s30 + $0x618] sm:$0xff] %vm1670_vm0, %v15738_v37  ;;  %15759 = vpow2.f32 %v11788_v24  ;;  %21690 = vst [vmem:[#allocation16_spill] sm:$0xff] %v20771_v63 }
 0xc07   : > { %v15742_v39 = vpop.eup %15741  ;;  %10842 = vst [vmem:[%s18980_s30 + $0x300] sm:$0xff] %v15740_v1  ;;  %15761 = vpow2.f32 %v11916_v51 }
 0xc08   : > { %v15744_v9 = vpop.eup %15743  ;;  %10927 = vst.msk [vmem:[%s18980_s30 + $0x5a8] sm:$0xff] %vm1670_vm0, %v15742_v39  ;;  %15763 = vpow2.f32 %v11789_v20  ;;  %v20773_v39 = vpop.f32.mrb[68].mxu0 }
 0xc09   : > { %v15746_v26 = vpop.eup %15745  ;;  %v9504_v6 = vadd.f32 1.0, %v15744_v9  ;;  %15765 = vpow2.f32 %v11902_v13  ;;  %v20775_v63 = vpop.f32.mrb[69].mxu0 }
 0xc0a   : > { %v15748_v38 = vpop.eup %15747  ;;  %v9618_v24 = vadd.f32 1.0, %v15746_v26  ;;  %15767 = vpow2.f32 %v11795_v30 }
 0xc0b   : > { %v15750_v40 = vpop.eup %15749  ;;  %15769 = vrcp.f32 %v9504_v6  ;;  %v9505_v46 = vadd.f32 1.0, %v15748_v38  ;;  %v21691_v6 = vld [vmem:[#allocation34_spill] sm:$0xff] }
 0xc0c   : > { %v15752_v8 = vpop.eup %15751  ;;  %15771 = vrcp.f32 %v9618_v24  ;;  %v9604_v51 = vadd.f32 1.0, %v15750_v40  ;;  %v7943_v38 = vadd.f32 %v21691_v6, %v20374_v28  ;;  %v20779_v24 = vpop.f32.mrb[70].mxu0 }
 0xc0d   : > { %v15754_v48 = vpop.eup %15753  ;;  %15773 = vrcp.f32 %v9505_v46  ;;  %v9511_v37 = vadd.f32 1.0, %v15752_v8  ;;  %v7537_v8 = vadd.f32 %v20441_v31, %v20379_v15  ;;  %v7956_v31 = vadd.f32 %v20465_v34, %v20374_v28 }
 0xc0e   : > { %v15756_v20 = vpop.eup %15755  ;;  %15775 = vrcp.f32 %v9604_v51  ;;  %v9625_v1 = vadd.f32 1.0, %v15754_v48 }
 0xc0f   : > { %v15758_v13 = vpop.eup %15757  ;;  %15777 = vrcp.f32 %v9511_v37  ;;  %v9512_v9 = vadd.f32 1.0, %v15756_v20  ;;  %v7935_v37 = vadd.f32 %v20443_v0, %v20374_v28  ;;  %v11796_v0 = vmul.f32 -1.442695, %v7537_v8 }
 0xc10   : > { %v15760_v30 = vpop.eup %15759  ;;  %15779 = vrcp.f32 %v9625_v1  ;;  %v9611_v26 = vadd.f32 1.0, %v15758_v13  ;;  %v7541_v13 = vadd.f32 %v20463_v27, %v20367_v54  ;;  %v7545_v8 = vadd.f32 %v20473_v22, %v20367_v54 }
 0xc11   : > { %v15762_v40 = vpop.eup %15761  ;;  %15781 = vrcp.f32 %v9512_v9  ;;  %v9518_v46 = vadd.f32 1.0, %v15760_v30  ;;  %v11923_v30 = vmul.f32 -1.442695, %v7943_v38  ;;  %v11909_v27 = vmul.f32 -1.442695, %v7935_v37  ;;  %v20794_v38 = vpop.f32.mrb[71].mxu0 }
 0xc12   : > { %v15764_v51 = vpop.eup %15763  ;;  %15783 = vrcp.f32 %v9611_v26  ;;  %v9646_v48 = vadd.f32 1.0, %v15762_v40  ;;  %v11802_v34 = vmul.f32 -1.442695, %v7541_v13  ;;  %v21692_v37 = vld [vmem:[#allocation35_spill] sm:$0xff] }
 0xc13   : > { %v15766_v20 = vpop.eup %15765  ;;  %15785 = vrcp.f32 %v9518_v46  ;;  %v9519_v1 = vadd.f32 1.0, %v15764_v51  ;;  %v7543_v46 = vadd.f32 %v20468_v32, %v20379_v15 }
 0xc14   : > { %v15768_v6 = vpop.eup %15767  ;;  %15787 = vrcp.f32 %v9646_v48  ;;  %v9632_v9 = vadd.f32 1.0, %v15766_v20  ;;  %v7948_v48 = vadd.f32 %v20470_v4, %v20374_v28 }
 0xc15   : > { %v15770_v26 = vpop.eup %15769  ;;  %15789 = vrcp.f32 %v9519_v1  ;;  %v9525_v40 = vadd.f32 1.0, %v15768_v6  ;;  %v11944_v1 = vmul.f32 -1.442695, %v7956_v31  ;;  %v7959_v6 = vadd.f32 %v21692_v37, %v20374_v28 }
 0xc16   : > { %v15772_v51 = vpop.eup %15771  ;;  %10848 = vst [vmem:[%s18980_s30 + $0x330] sm:$0xff] %v15770_v26  ;;  %15791 = vrcp.f32 %v9632_v9  ;;  %v11803_v9 = vmul.f32 -1.442695, %v7543_v46  ;;  %v21693_v26 = vld [vmem:[#allocation36_spill] sm:$0xff]  ;;  %v11930_v22 = vmul.f32 -1.442695, %v7948_v48 }
 0xc17   : > { %v15774_v20 = vpop.eup %15773  ;;  %10962 = vst.msk [vmem:[%s18980_s30 + $0x6c0] sm:$0xff] %vm1670_vm0, %v15772_v51  ;;  %15793 = vrcp.f32 %v9525_v40  ;;  %v7547_v13 = vadd.f32 %v21693_v26, %v20379_v15  ;;  %v21696_v48 = vld [vmem:[#allocation3_spill] sm:$0xff] }
 0xc18   : > { %v15776_v32 = vpop.eup %15775  ;;  %10849 = vst [vmem:[%s18980_s30 + $0x338] sm:$0xff] %v15774_v20  ;;  %15795 = vpow2.f32 %v11923_v30  ;;  %v21694_v30 = vld [vmem:[#allocation17_spill] sm:$0xff]  ;;  %v11809_v20 = vmul.f32 -1.442695, %v7545_v8 }
 0xc19   : > { %v15778_v4 = vpop.eup %15777  ;;  %10948 = vst.msk [vmem:[%s18980_s30 + $0x650] sm:$0xff] %vm1670_vm0, %v15776_v32  ;;  %15797 = vpow2.f32 %v11796_v0  ;;  %v7951_v31 = vadd.f32 %v21694_v30, %v20374_v28  ;;  %v21695_v0 = vld [vmem:[#allocation7_spill] sm:$0xff]  ;;  %v20814_v32 = vpop.f32.mrb[72].mxu0 }
 0xc1a   : > { %v15780_v40 = vpop.eup %15779  ;;  %10855 = vst [vmem:[%s18980_s30 + $0x368] sm:$0xff] %v15778_v4  ;;  %15799 = vpow2.f32 %v11909_v27  ;;  %v7551_v46 = vadd.f32 %v21695_v0, %v20367_v54  ;;  %v11951_v27 = vmul.f32 -1.442695, %v7959_v6  ;;  %v7972_v4 = vadd.f32 %v21696_v48, %v20374_v28  ;;  %v20819_v26 = vpop.f32.mrb[73].mxu0 }
 0xc1b   : > { %v15782_v51 = vpop.eup %15781  ;;  %10969 = vst.msk [vmem:[%s18980_s30 + $0x6f8] sm:$0xff] %vm1670_vm0, %v15780_v40  ;;  %15801 = vpow2.f32 %v11802_v34  ;;  %v11810_v34 = vmul.f32 -1.442695, %v7547_v13  ;;  %v20823_v8 = vpop.f32.mrb[74].mxu0 }
 0xc1c   : > { %v15784_v37 = vpop.eup %15783  ;;  %10856 = vst [vmem:[%s18980_s30 + $0x370] sm:$0xff] %v15782_v51  ;;  %15803 = vpow2.f32 %v11944_v1  ;;  %v11937_v1 = vmul.f32 -1.442695, %v7951_v31  ;;  %v20826_v6 = vpop.f32.mrb[75].mxu0  ;;  %v11816_v0 = vmul.f32 -1.442695, %v7551_v46 }
 0xc1d   : > { %v15786_v40 = vpop.eup %15785  ;;  %10955 = vst.msk [vmem:[%s18980_s30 + $0x688] sm:$0xff] %vm1670_vm0, %v15784_v37  ;;  %15805 = vpow2.f32 %v11803_v9  ;;  %21697 = vst [vmem:[#allocation46_spill] sm:$0xff] %v20826_v6  ;;  %v11972_v9 = vmul.f32 -1.442695, %v7972_v4 }
 0xc1e   : > { %v15788_v30 = vpop.eup %15787  ;;  %10862 = vst [vmem:[%s18980_s30 + $0x3a0] sm:$0xff] %v15786_v40  ;;  %15807 = vpow2.f32 %v11930_v22  ;;  %v20834_v40 = vpop.f32.mrb[76].mxu0 }
 0xc1f   : > { %v15790_v51 = vpop.eup %15789  ;;  %10990 = vst.msk [vmem:[%s18980_s30 + $0x7a0] sm:$0xff] %vm1670_vm0, %v15788_v30  ;;  %15809 = vpow2.f32 %v11809_v20  ;;  %21698 = vst [vmem:[#allocation18_spill] sm:$0xff] %v20834_v40  ;;  %v20836_v20 = vpop.f32.mrb[77].mxu0 }
 0xc20   : > { %v15792_v48 = vpop.eup %15791  ;;  %10863 = vst [vmem:[%s18980_s30 + $0x3a8] sm:$0xff] %v15790_v51  ;;  %15811 = vpow2.f32 %v11951_v27  ;;  %21699 = vst [vmem:[#allocation19_spill] sm:$0xff] %v20836_v20  ;;  %v20838_v4 = vpop.f32.mrb[78].mxu0 }
 0xc21   : > { %v15794_v13 = vpop.eup %15793  ;;  %10976 = vst.msk [vmem:[%s18980_s30 + $0x730] sm:$0xff] %vm1670_vm0, %v15792_v48  ;;  %15813 = vpow2.f32 %v11810_v34  ;;  %21700 = vst [vmem:[#allocation20_spill] sm:$0xff] %v20838_v4  ;;  %v20840_v48 = vpop.f32.mrb[79].mxu0 }
 0xc22   : > { %v15796_v37 = vpop.eup %15795  ;;  %10869 = vst [vmem:[%s18980_s30 + $0x3d8] sm:$0xff] %v15794_v13  ;;  %15815 = vpow2.f32 %v11937_v1 }
 0xc23   : > { %v15798_v22 = vpop.eup %15797  ;;  %v9653_v31 = vadd.f32 1.0, %v15796_v37  ;;  %15817 = vpow2.f32 %v11816_v0 }
 0xc24   : > { %v15800_v6 = vpop.eup %15799  ;;  %v9526_v30 = vadd.f32 1.0, %v15798_v22  ;;  %15819 = vpow2.f32 %v11972_v9 }
 0xc25   : > { %v15802_v46 = vpop.eup %15801  ;;  %15821 = vrcp.f32 %v9653_v31  ;;  %v9639_v27 = vadd.f32 1.0, %v15800_v6  ;;  %v21701_v6 = vld [vmem:[#allocation37_spill] sm:$0xff] }
 0xc26   : > { %v15804_v51 = vpop.eup %15803  ;;  %15823 = vrcp.f32 %v9526_v30  ;;  %v9532_v34 = vadd.f32 1.0, %v15802_v46  ;;  %v7553_v4 = vadd.f32 %v21701_v6, %v20379_v15  ;;  %v7964_v46 = vadd.f32 %v20505_v44, %v20374_v28 }
 0xc27   : > { %v15806_v1 = vpop.eup %15805  ;;  %15825 = vrcp.f32 %v9639_v27  ;;  %v9674_v0 = vadd.f32 1.0, %v15804_v51  ;;  %v20846_v27 = vpop.f32.mrb[80].mxu0 }
 0xc28   : > { %v15808_v13 = vpop.eup %15807  ;;  %15827 = vrcp.f32 %v9532_v34  ;;  %v9533_v37 = vadd.f32 1.0, %v15806_v1  ;;  %v7555_v1 = vadd.f32 %v20514_v17, %v20367_v54 }
 0xc29   : > { %v15810_v22 = vpop.eup %15809  ;;  %15829 = vrcp.f32 %v9674_v0  ;;  %v9660_v9 = vadd.f32 1.0, %v15808_v13  ;;  %v20850_v0 = vpop.f32.mrb[81].mxu0 }
 0xc2a   : > { %v15812_v20 = vpop.eup %15811  ;;  %15831 = vrcp.f32 %v9533_v37  ;;  %v9539_v31 = vadd.f32 1.0, %v15810_v22  ;;  %21702 = vst [vmem:[#allocation6_spill] sm:$0xff] %v20850_v0  ;;  %v20854_v22 = vpop.f32.mrb[82].mxu0 }
 0xc2b   : > { %v15814_v40 = vpop.eup %15813  ;;  %15833 = vrcp.f32 %v9660_v9  ;;  %v9681_v30 = vadd.f32 1.0, %v15812_v20  ;;  %v7975_v20 = vadd.f32 %v20516_v41, %v20374_v28  ;;  %v20858_v17 = vpop.f32.mrb[83].mxu0  ;;  %v7967_v41 = vadd.f32 %v20527_v53, %v20374_v28 }
 0xc2c   : > { %v15816_v51 = vpop.eup %15815  ;;  %15835 = vrcp.f32 %v9539_v31  ;;  %v9540_v34 = vadd.f32 1.0, %v15814_v40  ;;  %v11817_v31 = vmul.f32 -1.442695, %v7553_v4  ;;  %v7557_v40 = vadd.f32 %v20525_v56, %v20379_v15 }
 0xc2d   : > { %v15818_v13 = vpop.eup %15817  ;;  %15837 = vrcp.f32 %v9681_v30  ;;  %v9667_v37 = vadd.f32 1.0, %v15816_v51  ;;  %v11958_v51 = vmul.f32 -1.442695, %v7964_v46  ;;  %v7561_v4 = vadd.f32 %v20544_v62, %v20367_v54 }
 0xc2e   : > { %v15820_v44 = vpop.eup %15819  ;;  %15839 = vrcp.f32 %v9540_v34  ;;  %v9546_v9 = vadd.f32 1.0, %v15818_v13  ;;  %v11823_v34 = vmul.f32 -1.442695, %v7555_v1  ;;  %v11979_v13 = vmul.f32 -1.442695, %v7975_v20 }
 0xc2f   : > { %v15822_v6 = vpop.eup %15821  ;;  %15841 = vrcp.f32 %v9667_v37  ;;  %v9702_v30 = vadd.f32 1.0, %v15820_v44  ;;  %v7988_v46 = vadd.f32 %v20546_v5, %v20374_v28  ;;  %v11824_v53 = vmul.f32 -1.442695, %v7557_v40 }
 0xc30   : > { %v15824_v0 = vpop.eup %15823  ;;  %10997 = vst.msk [vmem:[%s18980_s30 + $0x7d8] sm:$0xff] %vm1670_vm0, %v15822_v6  ;;  %15843 = vrcp.f32 %v9546_v9  ;;  %v7563_v1 = vadd.f32 %v20549_v16, %v20379_v15  ;;  %v11965_v62 = vmul.f32 -1.442695, %v7967_v41  ;;  %v11830_v5 = vmul.f32 -1.442695, %v7561_v4 }
 0xc31   : > { %v15826_v56 = vpop.eup %15825  ;;  %10870 = vst [vmem:[%s18980_s30 + $0x3e0] sm:$0xff] %v15824_v0  ;;  %15845 = vrcp.f32 %v9702_v30  ;;  %v7980_v0 = vadd.f32 %v20551_v50, %v20374_v28  ;;  %v7565_v9 = vadd.f32 %v20555_v3, %v20367_v54  ;;  %v12000_v40 = vmul.f32 -1.442695, %v7988_v46 }
 0xc32   : > { %v15828_v37 = vpop.eup %15827  ;;  %10983 = vst.msk [vmem:[%s18980_s30 + $0x768] sm:$0xff] %vm1670_vm0, %v15826_v56  ;;  %15847 = vpow2.f32 %v11817_v31  ;;  %v20880_v31 = vpop.f32.mrb[84].mxu0  ;;  %v7991_v6 = vadd.f32 %v20557_v42, %v20374_v28  ;;  %v7567_v3 = vadd.f32 %v20560_v35, %v20379_v15 }
 0xc33   : > { %v15830_v44 = vpop.eup %15829  ;;  %10876 = vst [vmem:[%s18980_s30 + $0x410] sm:$0xff] %v15828_v37  ;;  %15849 = vpow2.f32 %v11958_v51  ;;  %v20885_v50 = vpop.f32.mrb[85].mxu0  ;;  %v11831_v51 = vmul.f32 -1.442695, %v7563_v1  ;;  %v11986_v4 = vmul.f32 -1.442695, %v7980_v0 }
 0xc34   : > { %v15832_v20 = vpop.eup %15831  ;;  %11018 = vst.msk [vmem:[%s18980_s30 + $0x880] sm:$0xff] %vm1670_vm0, %v15830_v44  ;;  %15851 = vpow2.f32 %v11823_v34  ;;  %v20891_v41 = vpop.f32.mrb[86].mxu0  ;;  %v12007_v35 = vmul.f32 -1.442695, %v7991_v6 }
 0xc35   : > { %v15834_v16 = vpop.eup %15833  ;;  %10877 = vst [vmem:[%s18980_s30 + $0x418] sm:$0xff] %v15832_v20  ;;  %15853 = vpow2.f32 %v11979_v13  ;;  %v20894_v42 = vpop.f32.mrb[87].mxu0  ;;  %v11837_v13 = vmul.f32 -1.442695, %v7565_v9 }
 0xc36   : > { %v15836_v30 = vpop.eup %15835  ;;  %11004 = vst.msk [vmem:[%s18980_s30 + $0x810] sm:$0xff] %vm1670_vm0, %v15834_v16  ;;  %15855 = vpow2.f32 %v11824_v53  ;;  %v11838_v53 = vmul.f32 -1.442695, %v7567_v3 }
 0xc37   : > { %v15838_v34 = vpop.eup %15837  ;;  %10883 = vst [vmem:[%s18980_s30 + $0x448] sm:$0xff] %v15836_v30  ;;  %15857 = vpow2.f32 %v11965_v62  ;;  %v20904_v62 = vpop.f32.mrb[88].mxu0 }
 0xc38   : > { %v15840_v56 = vpop.eup %15839  ;;  %11025 = vst.msk [vmem:[%s18980_s30 + $0x8b8] sm:$0xff] %vm1670_vm0, %v15838_v34  ;;  %15859 = vpow2.f32 %v11830_v5  ;;  %v20906_v5 = vpop.f32.mrb[89].mxu0 }
 0xc39   : > { %v15842_v46 = vpop.eup %15841  ;;  %10884 = vst [vmem:[%s18980_s30 + $0x450] sm:$0xff] %v15840_v56  ;;  %15861 = vpow2.f32 %v12000_v40  ;;  %v20908_v40 = vpop.f32.mrb[90].mxu0 }
 0xc3a   : > { %v15844_v37 = vpop.eup %15843  ;;  %11011 = vst.msk [vmem:[%s18980_s30 + $0x848] sm:$0xff] %vm1670_vm0, %v15842_v46  ;;  %15863 = vpow2.f32 %v11831_v51  ;;  %v20910_v51 = vpop.f32.mrb[91].mxu0 }
 0xc3b   : > { %v15846_v1 = vpop.eup %15845  ;;  %10890 = vst [vmem:[%s18980_s30 + $0x480] sm:$0xff] %v15844_v37  ;;  %15865 = vpow2.f32 %v11986_v4 }
 0xc3c   : > { %v15848_v44 = vpop.eup %15847  ;;  %11046 = vst.msk [vmem:[%s18980_s30 + $0x960] sm:$0xff] %vm1670_vm0, %v15846_v1  ;;  %15867 = vpow2.f32 %v11837_v13 }
 0xc3d   : > { %v15850_v0 = vpop.eup %15849  ;;  %v9547_v20 = vadd.f32 1.0, %v15848_v44  ;;  %15869 = vpow2.f32 %v12007_v35  ;;  %v21703_v44 = vld [vmem:[#allocation38_spill] sm:$0xff] }
 0xc3e   : > { %v15852_v9 = vpop.eup %15851  ;;  %v9688_v16 = vadd.f32 1.0, %v15850_v0  ;;  %15871 = vpow2.f32 %v11838_v53  ;;  %v7983_v0 = vadd.f32 %v21703_v44, %v20374_v28  ;;  %v7996_v44 = vadd.f32 %v20603_v33, %v20374_v28 }
 0xc3f   : > { %v15854_v6 = vpop.eup %15853  ;;  %15873 = vrcp.f32 %v9547_v20  ;;  %v9553_v30 = vadd.f32 1.0, %v15852_v9  ;;  %v20914_v20 = vpop.f32.mrb[92].mxu0 }
 0xc40   : > { %v15856_v3 = vpop.eup %15855  ;;  %15875 = vrcp.f32 %v9688_v16  ;;  %v9709_v34 = vadd.f32 1.0, %v15854_v6  ;;  %v7571_v6 = vadd.f32 %v20594_v47, %v20367_v54 }
 0xc41   : > { %v15858_v4 = vpop.eup %15857  ;;  %15877 = vrcp.f32 %v9553_v30  ;;  %v9554_v56 = vadd.f32 1.0, %v15856_v3  ;;  %v20918_v30 = vpop.f32.mrb[93].mxu0 }
 0xc42   : > { %v15860_v13 = vpop.eup %15859  ;;  %15879 = vrcp.f32 %v9709_v34  ;;  %v9695_v46 = vadd.f32 1.0, %v15858_v4  ;;  %v8004_v4 = vadd.f32 %v20596_v60, %v20374_v28 }
 0xc43   : > { %v15862_v35 = vpop.eup %15861  ;;  %15881 = vrcp.f32 %v9554_v56  ;;  %v9560_v37 = vadd.f32 1.0, %v15860_v13  ;;  %v20922_v56 = vpop.f32.mrb[94].mxu0 }
 0xc44   : > { %v15864_v53 = vpop.eup %15863  ;;  %15883 = vrcp.f32 %v9695_v46  ;;  %v9730_v1 = vadd.f32 1.0, %v15862_v35  ;;  %21704 = vst [vmem:[#allocation9_spill] sm:$0xff] %v20922_v56  ;;  %v7573_v35 = vadd.f32 %v20601_v12, %v20379_v15  ;;  %v11844_v56 = vmul.f32 -1.442695, %v7571_v6 }
 0xc45   : > { %v15866_v9 = vpop.eup %15865  ;;  %15885 = vrcp.f32 %v9560_v37  ;;  %v9561_v16 = vadd.f32 1.0, %v15864_v53  ;;  %v20926_v37 = vpop.f32.mrb[95].mxu0  ;;  %v12028_v12 = vmul.f32 -1.442695, %v8004_v4  ;;  %v7577_v6 = vadd.f32 %v20614_v23, %v20379_v15 }
 0xc46   : > { %v15868_v3 = vpop.eup %15867  ;;  %15887 = vrcp.f32 %v9730_v1  ;;  %v9716_v34 = vadd.f32 1.0, %v15866_v9  ;;  %v11993_v1 = vmul.f32 -1.442695, %v7983_v0  ;;  %v11845_v33 = vmul.f32 -1.442695, %v7573_v35 }
 0xc47   : > { %v15870_v13 = vpop.eup %15869  ;;  %15889 = vrcp.f32 %v9561_v16  ;;  %v9567_v46 = vadd.f32 1.0, %v15868_v3  ;;  %v7575_v16 = vadd.f32 %v20609_v57, %v20367_v54  ;;  %v12014_v57 = vmul.f32 -1.442695, %v7996_v44 }
 0xc48   : > { %v15872_v47 = vpop.eup %15871  ;;  %15891 = vrcp.f32 %v9716_v34  ;;  %v9737_v53 = vadd.f32 1.0, %v15870_v13  ;;  %v8007_v34 = vadd.f32 %v20611_v29, %v20374_v28  ;;  %v7999_v4 = vadd.f32 %v20616_v25, %v20374_v28  ;;  %v21705_v25 = vld [vmem:[#allocation2_spill] sm:$0xff] }
 0xc49   : > { %v15874_v60 = vpop.eup %15873  ;;  %15893 = vrcp.f32 %v9567_v46  ;;  %v9568_v9 = vadd.f32 1.0, %v15872_v47  ;;  %v20942_v46 = vpop.f32.mrb[96].mxu0  ;;  %v11851_v47 = vmul.f32 -1.442695, %v7575_v16  ;;  %v7581_v35 = vadd.f32 %v20626_v19, %v20367_v54  ;;  %v21706_v19 = vld [vmem:[#allocation5_spill] sm:$0xff] }
 0xc4a   : > { %v15876_v3 = vpop.eup %15875  ;;  %10891 = vst [vmem:[%s18980_s30 + $0x488] sm:$0xff] %v15874_v60  ;;  %15895 = vrcp.f32 %v9737_v53  ;;  %v20948_v23 = vpop.f32.mrb[97].mxu0  ;;  %v8020_v44 = vadd.f32 %v21705_v25, %v20374_v28  ;;  %v7583_v16 = vadd.f32 %v21706_v19, %v20379_v15 }
 0xc4b   : > { %v15878_v0 = vpop.eup %15877  ;;  %11032 = vst.msk [vmem:[%s18980_s30 + $0x8f0] sm:$0xff] %vm1670_vm0, %v15876_v3  ;;  %15897 = vrcp.f32 %v9568_v9  ;;  %v20953_v60 = vpop.f32.mrb[98].mxu0 }
 0xc4c   : > { %v15880_v13 = vpop.eup %15879  ;;  %10897 = vst [vmem:[%s18980_s30 + $0x4b8] sm:$0xff] %v15878_v0  ;;  %15899 = vpow2.f32 %v11993_v1  ;;  %v12035_v1 = vmul.f32 -1.442695, %v8007_v34  ;;  %v20959_v3 = vpop.f32.mrb[99].mxu0  ;;  %v12021_v34 = vmul.f32 -1.442695, %v7999_v4 }
 0xc4d   : > { %v15882_v29 = vpop.eup %15881  ;;  %11053 = vst.msk [vmem:[%s18980_s30 + $0x998] sm:$0xff] %vm1670_vm0, %v15880_v13  ;;  %15901 = vpow2.f32 %v11844_v56  ;;  %v11852_v56 = vmul.f32 -1.442695, %v7577_v6  ;;  %v21707_v0 = vld [vmem:[#allocation39_spill] sm:$0xff]  ;;  %v20970_v19 = vpop.f32.mrb[100].mxu0 }
 0xc4e   : > { %v15884_v53 = vpop.eup %15883  ;;  %10898 = vst [vmem:[%s18980_s30 + $0x4c0] sm:$0xff] %v15882_v29  ;;  %15903 = vpow2.f32 %v12028_v12  ;;  %v8012_v13 = vadd.f32 %v21707_v0, %v20374_v28 }
 0xc4f   : > { %v15886_v9 = vpop.eup %15885  ;;  %11039 = vst.msk [vmem:[%s18980_s30 + $0x928] sm:$0xff] %vm1670_vm0, %v15884_v53  ;;  %15905 = vpow2.f32 %v11845_v33  ;;  %v11858_v33 = vmul.f32 -1.442695, %v7581_v35  ;;  %v12056_v53 = vmul.f32 -1.442695, %v8020_v44 }
 0xc50   : > { %v15888_v12 = vpop.eup %15887  ;;  %10904 = vst [vmem:[%s18980_s30 + $0x4f0] sm:$0xff] %v15886_v9  ;;  %15907 = vpow2.f32 %v12014_v57  ;;  %v11859_v57 = vmul.f32 -1.442695, %v7583_v16  ;;  %v12042_v9 = vmul.f32 -1.442695, %v8012_v13 }
 0xc51   : > { %v15890_v29 = vpop.eup %15889  ;;  %11074 = vst.msk [vmem:[%s18980_s30 + $0xa40] sm:$0xff] %vm1670_vm0, %v15888_v12  ;;  %15909 = vpow2.f32 %v11851_v47  ;;  %v20974_v47 = vpop.f32.mrb[101].mxu0 }
 0xc52   : > { %v15892_v6 = vpop.eup %15891  ;;  %10905 = vst [vmem:[%s18980_s30 + $0x4f8] sm:$0xff] %v15890_v29  ;;  %15911 = vpow2.f32 %v12035_v1  ;;  %v20977_v1 = vpop.f32.mrb[102].mxu0 }
 0xc53   : > { %v15894_v25 = vpop.eup %15893  ;;  %11060 = vst.msk [vmem:[%s18980_s30 + $0x9d0] sm:$0xff] %vm1670_vm0, %v15892_v6  ;;  %15913 = vpow2.f32 %v11852_v56  ;;  %21708 = vst [vmem:[#allocation21_spill] sm:$0xff] %v20977_v1  ;;  %v20979_v16 = vpop.f32.mrb[103].mxu0 }
 0xc54   : > { %v15896_v4 = vpop.eup %15895  ;;  %10911 = vst [vmem:[%s18980_s30 + $0x528] sm:$0xff] %v15894_v25  ;;  %15915 = vpow2.f32 %v12021_v34  ;;  %21709 = vst [vmem:[#allocation22_spill] sm:$0xff] %v20979_v16  ;;  %v20981_v1 = vpop.f32.mrb[104].mxu0 }
 0xc55   : > { %v15898_v12 = vpop.eup %15897  ;;  %11081 = vst.msk [vmem:[%s18980_s30 + $0xa78] sm:$0xff] %vm1670_vm0, %v15896_v4  ;;  %15917 = vpow2.f32 %v11858_v33  ;;  %v20983_v16 = vpop.f32.mrb[105].mxu0 }
 0xc56   : > { %v15900_v35 = vpop.eup %15899  ;;  %10912 = vst [vmem:[%s18980_s30 + $0x530] sm:$0xff] %v15898_v12  ;;  %15919 = vpow2.f32 %v12056_v53 }
 0xc57   : > { %v15902_v44 = vpop.eup %15901  ;;  %v9723_v56 = vadd.f32 1.0, %v15900_v35  ;;  %15921 = vpow2.f32 %v11859_v57 }
 0xc58   : > { %v15904_v34 = vpop.eup %15903  ;;  %v9574_v0 = vadd.f32 1.0, %v15902_v44  ;;  %15923 = vpow2.f32 %v12042_v9 }
 0xc59   : > { %v15906_v13 = vpop.eup %15905  ;;  %15925 = vrcp.f32 %v9723_v56  ;;  %v9758_v29 = vadd.f32 1.0, %v15904_v34  ;;  %v21710_v56 = vld [vmem:[#allocation40_spill] sm:$0xff] }
 0xc5a   : > { %v15908_v6 = vpop.eup %15907  ;;  %15927 = vrcp.f32 %v9574_v0  ;;  %v9575_v33 = vadd.f32 1.0, %v15906_v13  ;;  %v7585_v34 = vadd.f32 %v21710_v56, %v20367_v54  ;;  %v20987_v0 = vpop.f32.mrb[106].mxu0  ;;  %v8015_v56 = vadd.f32 %v20659_v61, %v20374_v28 }
 0xc5b   : > { %v15910_v25 = vpop.eup %15909  ;;  %15929 = vrcp.f32 %v9758_v29  ;;  %v9744_v4 = vadd.f32 1.0, %v15908_v6  ;;  %v8023_v6 = vadd.f32 %v20648_v18, %v20374_v28 }
 0xc5c   : > { %v15912_v53 = vpop.eup %15911  ;;  %15931 = vrcp.f32 %v9575_v33  ;;  %v9581_v12 = vadd.f32 1.0, %v15910_v25  ;;  %v20991_v33 = vpop.f32.mrb[107].mxu0  ;;  %v11865_v18 = vmul.f32 -1.442695, %v7585_v34  ;;  %v7593_v34 = vadd.f32 %v20685_v21, %v20379_v15  ;;  %v21713_v21 = vld [vmem:[#allocation41_spill] sm:$0xff] }
 0xc5d   : > { %v15914_v57 = vpop.eup %15913  ;;  %15933 = vrcp.f32 %v9744_v4  ;;  %v9765_v35 = vadd.f32 1.0, %v15912_v53  ;;  %21711 = vst [vmem:[#allocation13_spill] sm:$0xff] %v20991_v33  ;;  %v7587_v53 = vadd.f32 %v20657_v36, %v20379_v15  ;;  %v7591_v33 = vadd.f32 %v20680_v2, %v20367_v54 }
 0xc5e   : > { %v15916_v9 = vpop.eup %15915  ;;  %15935 = vrcp.f32 %v9581_v12  ;;  %v9582_v44 = vadd.f32 1.0, %v15914_v57  ;;  %v12063_v36 = vmul.f32 -1.442695, %v8023_v6  ;;  %v8028_v6 = vadd.f32 %v20687_v55, %v20374_v28  ;;  %v21714_v55 = vld [vmem:[#allocation42_spill] sm:$0xff] }
 0xc5f   : > { %v15918_v13 = vpop.eup %15917  ;;  %15937 = vrcp.f32 %v9765_v35  ;;  %v9751_v29 = vadd.f32 1.0, %v15916_v9  ;;  %v11866_v61 = vmul.f32 -1.442695, %v7587_v53  ;;  %v11872_v53 = vmul.f32 -1.442695, %v7591_v33 }
 0xc60   : > { %v15920_v25 = vpop.eup %15919  ;;  %15939 = vrcp.f32 %v9582_v44  ;;  %v9588_v4 = vadd.f32 1.0, %v15918_v13  ;;  %v11873_v33 = vmul.f32 -1.442695, %v7593_v34 }
 0xc61   : > { %v15922_v12 = vpop.eup %15921  ;;  %15941 = vrcp.f32 %v9751_v29  ;;  %v9786_v57 = vadd.f32 1.0, %v15920_v25  ;;  %v8036_v29 = vadd.f32 %v20682_v43, %v20374_v28 }
 0xc62   : > { %v15924_v35 = vpop.eup %15923  ;;  %15943 = vrcp.f32 %v9588_v4  ;;  %v9589_v9 = vadd.f32 1.0, %v15922_v12  ;;  %v21005_v4 = vpop.f32.mrb[108].mxu0  ;;  %v12049_v12 = vmul.f32 -1.442695, %v8015_v56 }
 0xc63   : > { %v15926_v44 = vpop.eup %15925  ;;  %15945 = vrcp.f32 %v9786_v57  ;;  %v9772_v13 = vadd.f32 1.0, %v15924_v35  ;;  %v21010_v43 = vpop.f32.mrb[109].mxu0  ;;  %v7595_v35 = vadd.f32 %v21713_v21, %v20367_v54  ;;  %v12084_v56 = vmul.f32 -1.442695, %v8036_v29  ;;  %v21717_v29 = vld [vmem:[#allocation44_spill] sm:$0xff] }
 0xc64   : > { %v15928_v25 = vpop.eup %15927  ;;  %11067 = vst.msk [vmem:[%s18980_s30 + $0xa08] sm:$0xff] %vm1670_vm0, %v15926_v44  ;;  %15947 = vrcp.f32 %v9589_v9  ;;  %21712 = vst [vmem:[#allocation23_spill] sm:$0xff] %v21010_v43  ;;  %v21016_v9 = vpop.f32.mrb[110].mxu0 }
 0xc65   : > { %v15930_v2 = vpop.eup %15929  ;;  %10918 = vst [vmem:[%s18980_s30 + $0x560] sm:$0xff] %v15928_v25  ;;  %15949 = vrcp.f32 %v9772_v13  ;;  %v8039_v13 = vadd.f32 %v21714_v55, %v20374_v28  ;;  %v21021_v25 = vpop.f32.mrb[111].mxu0 }
 0xc66   : > { %v15932_v57 = vpop.eup %15931  ;;  %11102 = vst.msk [vmem:[%s18980_s30 + $0xb20] sm:$0xff] %vm1670_vm0, %v15930_v2  ;;  %15951 = vpow2.f32 %v11865_v18  ;;  %21715 = vst [vmem:[#allocation14_spill] sm:$0xff] %v21021_v25  ;;  %v21716_v18 = vld [vmem:[#allocation43_spill] sm:$0xff]  ;;  %v11879_v25 = vmul.f32 -1.442695, %v7595_v35 }
 0xc67   : > { %v15934_v44 = vpop.eup %15933  ;;  %10919 = vst [vmem:[%s18980_s30 + $0x568] sm:$0xff] %v15932_v57  ;;  %15953 = vpow2.f32 %v12063_v36  ;;  %v7597_v2 = vadd.f32 %v21716_v18, %v20379_v15  ;;  %v12070_v36 = vmul.f32 -1.442695, %v8028_v6  ;;  %v8031_v57 = vadd.f32 %v21717_v29, %v20374_v28  ;;  %v21037_v6 = vpop.f32.mrb[112].mxu0 }
 0xc68   : > { %v15936_v43 = vpop.eup %15935  ;;  %11088 = vst.msk [vmem:[%s18980_s30 + $0xab0] sm:$0xff] %vm1670_vm0, %v15934_v44  ;;  %15955 = vpow2.f32 %v11866_v61  ;;  %v21718_v61 = vld [vmem:[#allocation4_spill] sm:$0xff]  ;;  %v12091_v18 = vmul.f32 -1.442695, %v8039_v13  ;;  %v21040_v35 = vpop.f32.mrb[113].mxu0 }
 0xc69   : > { %v15938_v21 = vpop.eup %15937  ;;  %10925 = vst [vmem:[%s18980_s30 + $0x598] sm:$0xff] %v15936_v43  ;;  %15957 = vpow2.f32 %v12049_v12  ;;  %v7601_v34 = vadd.f32 %v21718_v61, %v20367_v54  ;;  %v11880_v12 = vmul.f32 -1.442695, %v7597_v2  ;;  %v21044_v13 = vpop.f32.mrb[114].mxu0 }
 0xc6a   : > { %v15940_v55 = vpop.eup %15939  ;;  %11109 = vst.msk [vmem:[%s18980_s30 + $0xb58] sm:$0xff] %vm1670_vm0, %v15938_v21  ;;  %15959 = vpow2.f32 %v11872_v53  ;;  %v12077_v53 = vmul.f32 -1.442695, %v8031_v57  ;;  %21719 = vst [vmem:[#allocation8_spill] sm:$0xff] %v21044_v13 }
 0xc6b   : > { %v15942_v44 = vpop.eup %15941  ;;  %10926 = vst [vmem:[%s18980_s30 + $0x5a0] sm:$0xff] %v15940_v55  ;;  %15961 = vpow2.f32 %v12084_v56  ;;  %v11886_v56 = vmul.f32 -1.442695, %v7601_v34 }
 0xc6c   : > { %v15944_v43 = vpop.eup %15943  ;;  %11095 = vst.msk [vmem:[%s18980_s30 + $0xae8] sm:$0xff] %vm1670_vm0, %v15942_v44  ;;  %15963 = vpow2.f32 %v11873_v33  ;;  %v21047_v33 = vpop.f32.mrb[115].mxu0 }
 0xc6d   : > { %v15946_v21 = vpop.eup %15945  ;;  %10932 = vst [vmem:[%s18980_s30 + $0x5d0] sm:$0xff] %v15944_v43  ;;  %15965 = vpow2.f32 %v12070_v36  ;;  %21720 = vst [vmem:[#allocation11_spill] sm:$0xff] %v21047_v33 }
 0xc6e   : > { %v15948_v29 = vpop.eup %15947  ;;  %11130 = vst.msk [vmem:[%s18980_s30 + $0xc00] sm:$0xff] %vm1670_vm0, %v15946_v21  ;;  %15967 = vpow2.f32 %v11879_v25 }
 0xc6f   : > { %v15950_v55 = vpop.eup %15949  ;;  %10933 = vst [vmem:[%s18980_s30 + $0x5d8] sm:$0xff] %v15948_v29  ;;  %15969 = vpow2.f32 %v12091_v18  ;;  %v21051_v29 = vpop.f32.mrb[116].mxu0 }
 0xc70   : > { %v15952_v2 = vpop.eup %15951  ;;  %11116 = vst.msk [vmem:[%s18980_s30 + $0xb90] sm:$0xff] %vm1670_vm0, %v15950_v55  ;;  %15971 = vpow2.f32 %v11880_v12  ;;  %v21053_v13 = vpop.f32.mrb[117].mxu0 }
 0xc71   : > { %v15954_v36 = vpop.eup %15953  ;;  %v9595_v57 = vadd.f32 1.0, %v15952_v2  ;;  %15973 = vpow2.f32 %v12077_v53  ;;  %v21055_v53 = vpop.f32.mrb[118].mxu0 }
 0xc72   : > { %v15956_v61 = vpop.eup %15955  ;;  %v9793_v44 = vadd.f32 1.0, %v15954_v36  ;;  %15975 = vpow2.f32 %v11886_v56  ;;  %21721 = vst [vmem:[#allocation10_spill] sm:$0xff] %v21055_v53  ;;  %v21057_v36 = vpop.f32.mrb[119].mxu0 }
 0xc73   : > { %v15958_v43 = vpop.eup %15957  ;;  %15977 = vrcp.f32 %v9595_v57  ;;  %v9596_v25 = vadd.f32 1.0, %v15956_v61  ;;  %21722 = vst [vmem:[#allocation24_spill] sm:$0xff] %v21057_v36 }
 0xc74   : > { %v15960_v34 = vpop.eup %15959  ;;  %15979 = vrcp.f32 %v9793_v44  ;;  %v9779_v21 = vadd.f32 1.0, %v15958_v43  ;;  %v21723_v44 = vld [vmem:[#allocation45_spill] sm:$0xff] }
 0xc75   : > { %v15962_v18 = vpop.eup %15961  ;;  %15981 = vrcp.f32 %v9596_v25  ;;  %v9602_v33 = vadd.f32 1.0, %v15960_v34  ;;  %v8052_v43 = vadd.f32 %v21723_v44, %v20374_v28 }
 0xc76   : > { %v15964_v12 = vpop.eup %15963  ;;  %15983 = vrcp.f32 %v9779_v21  ;;  %v9814_v55 = vadd.f32 1.0, %v15962_v18  ;;  %v7603_v21 = vadd.f32 %v20723_v52, %v20379_v15  ;;  %v8055_v52 = vadd.f32 %v20736_v11, %v20374_v28 }
 0xc77   : > { %v15966_v2 = vpop.eup %15965  ;;  %15985 = vrcp.f32 %v9602_v33  ;;  %v9603_v56 = vadd.f32 1.0, %v15964_v12  ;;  %v8044_v33 = vadd.f32 %v20725_v14, %v20374_v28  ;;  %v8047_v11 = vadd.f32 %v20747_v45, %v20374_v28 }
 0xc78   : > { %v15968_v57 = vpop.eup %15967  ;;  %15987 = vrcp.f32 %v9814_v55  ;;  %v9800_v61 = vadd.f32 1.0, %v15966_v2  ;;  %v7605_v2 = vadd.f32 %v20734_v58, %v20367_v54  ;;  %v11887_v36 = vmul.f32 -1.442695, %v7603_v21 }
 0xc79   : > { %v15970_v25 = vpop.eup %15969  ;;  %15989 = vrcp.f32 %v9603_v56  ;;  %v9609_v34 = vadd.f32 1.0, %v15968_v57  ;;  %v12112_v57 = vmul.f32 -1.442695, %v8052_v43  ;;  %v7613_v28 = vadd.f32 %v20765_v59, %v20379_v15 }
 0xc7a   : > { %v15972_v18 = vpop.eup %15971  ;;  %15991 = vrcp.f32 %v9800_v61  ;;  %v9821_v53 = vadd.f32 1.0, %v15970_v25  ;;  %v21069_v61 = vpop.f32.mrb[120].mxu0  ;;  %v11893_v21 = vmul.f32 -1.442695, %v7605_v2  ;;  %v7615_v2 = vadd.f32 %v20769_v49, %v20367_v54 }
 0xc7b   : > { %v15974_v12 = vpop.eup %15973  ;;  %15993 = vrcp.f32 %v9609_v34  ;;  %v9610_v55 = vadd.f32 1.0, %v15972_v18  ;;  %v7607_v34 = vadd.f32 %v20745_v10, %v20379_v15  ;;  %v21073_v18 = vpop.f32.mrb[121].mxu0  ;;  %v7611_v10 = vadd.f32 %v20762_v7, %v20367_v54 }
 0xc7c   : > { %v15976_v44 = vpop.eup %15975  ;;  %15995 = vrcp.f32 %v9821_v53  ;;  %v9807_v56 = vadd.f32 1.0, %v15974_v12  ;;  %v12098_v53 = vmul.f32 -1.442695, %v8044_v33  ;;  %v21078_v43 = vpop.f32.mrb[122].mxu0  ;;  %v12119_v33 = vmul.f32 -1.442695, %v8055_v52 }
 0xc7d   : > { %v15978_v25 = vpop.eup %15977  ;;  %15997 = vrcp.f32 %v9610_v55  ;;  %v9616_v14 = vadd.f32 1.0, %v15976_v44  ;;  %v21084_v55 = vpop.f32.mrb[123].mxu0  ;;  %v11900_v59 = vmul.f32 -1.442695, %v7611_v10  ;;  %v11901_v49 = vmul.f32 -1.442695, %v7613_v28 }
 0xc7e   : > { %v15980_v58 = vpop.eup %15979  ;;  %10939 = vst [vmem:[%s18980_s30 + $0x608] sm:$0xff] %v15978_v25  ;;  %15999 = vrcp.f32 %v9807_v56  ;;  %v11894_v56 = vmul.f32 -1.442695, %v7607_v34  ;;  %v12105_v25 = vmul.f32 -1.442695, %v8047_v11 }
 0xc7f   : > { %v15982_v12 = vpop.eup %15981  ;;  %11137 = vst.msk [vmem:[%s18980_s30 + $0xc38] sm:$0xff] %vm1670_vm0, %v15980_v58  ;;  %16001 = vrcp.f32 %v9616_v14  ;;  %v7623_v58 = vadd.f32 %v20775_v63, %v20379_v15 }
 0xc80   : > { %v15984_v44 = vpop.eup %15983  ;;  %10940 = vst [vmem:[%s18980_s30 + $0x610] sm:$0xff] %v15982_v12  ;;  %16003 = vpow2.f32 %v12112_v57  ;;  %v21724_v57 = vld [vmem:[#allocation16_spill] sm:$0xff]  ;;  %v11907_v12 = vmul.f32 -1.442695, %v7615_v2 }
 0xc81   : > { %v15986_v45 = vpop.eup %15985  ;;  %11123 = vst.msk [vmem:[%s18980_s30 + $0xbc8] sm:$0xff] %vm1670_vm0, %v15984_v44  ;;  %16005 = vpow2.f32 %v11887_v36  ;;  %v7617_v52 = vadd.f32 %v21724_v57, %v20379_v15  ;;  %v7621_v36 = vadd.f32 %v20773_v39, %v20367_v54 }
 0xc82   : > { %v15988_v7 = vpop.eup %15987  ;;  %10946 = vst [vmem:[%s18980_s30 + $0x640] sm:$0xff] %v15986_v45  ;;  %16007 = vpow2.f32 %v12098_v53  ;;  %v21103_v53 = vpop.f32.mrb[124].mxu0 }
 0xc83   : > { %v15990_v14 = vpop.eup %15989  ;;  %11158 = vst.msk [vmem:[%s18980_s30 + $0xce0] sm:$0xff] %vm1670_vm0, %v15988_v7  ;;  %16009 = vpow2.f32 %v11893_v21  ;;  %v21107_v21 = vpop.f32.mrb[125].mxu0  ;;  %v11908_v10 = vmul.f32 -1.442695, %v7617_v52  ;;  %v11914_v63 = vmul.f32 -1.442695, %v7621_v36 }
 0xc84   : > { %v15992_v34 = vpop.eup %15991  ;;  %10947 = vst [vmem:[%s18980_s30 + $0x648] sm:$0xff] %v15990_v14  ;;  %16011 = vpow2.f32 %v12119_v33  ;;  %v21110_v44 = vpop.f32.mrb[126].mxu0 }
 0xc85   : > { %v15994_v11 = vpop.eup %15993  ;;  %11144 = vst.msk [vmem:[%s18980_s30 + $0xc70] sm:$0xff] %vm1670_vm0, %v15992_v34  ;;  %16013 = vpow2.f32 %v11894_v56  ;;  %v21114_v28 = vpop.f32.mrb[127].mxu0  ;;  %v11915_v56 = vmul.f32 -1.442695, %v7623_v58 }
 0xc86   : > { %v15996_v39 = vpop.eup %15995  ;;  %10953 = vst [vmem:[%s18980_s30 + $0x678] sm:$0xff] %v15994_v11  ;;  %16015 = vpow2.f32 %v12105_v25 }
 0xc87   : > { %v15998_v33 = vpop.eup %15997  ;;  %11165 = vst.msk [vmem:[%s18980_s30 + $0xd18] sm:$0xff] %vm1670_vm0, %v15996_v39  ;;  %16017 = vpow2.f32 %v11900_v59 }
 0xc88   : > { %v16000_v45 = vpop.eup %15999  ;;  %10954 = vst [vmem:[%s18980_s30 + $0x680] sm:$0xff] %v15998_v33  ;;  %16019 = vpow2.f32 %v11901_v49 }
 0xc89   : > { %v16002_v2 = vpop.eup %16001  ;;  %11151 = vst.msk [vmem:[%s18980_s30 + $0xca8] sm:$0xff] %vm1670_vm0, %v16000_v45  ;;  %16021 = vpow2.f32 %v11907_v12 }
 0xc8a   : > { %v16004_v7 = vpop.eup %16003  ;;  %10960 = vst [vmem:[%s18980_s30 + $0x6b0] sm:$0xff] %v16002_v2  ;;  %16023 = vpow2.f32 %v11908_v10 }
 0xc8b   : > { %v16006_v25 = vpop.eup %16005  ;;  %v9842_v57 = vadd.f32 1.0, %v16004_v7  ;;  %16025 = vpow2.f32 %v11914_v63 }
 0xc8c   : > { %v16008_v52 = vpop.eup %16007  ;;  %v9617_v14 = vadd.f32 1.0, %v16006_v25  ;;  %16027 = vpow2.f32 %v11915_v56  ;;  %v7625_v56 = vadd.f32 %v20779_v24, %v20367_v54  ;;  %v7627_v25 = vadd.f32 %v20794_v38, %v20379_v15 }
 0xc8d   : > { %v16010_v59 = vpop.eup %16009  ;;  %16029 = vrcp.f32 %v9842_v57  ;;  %v9828_v36 = vadd.f32 1.0, %v16008_v52  ;;  %v7635_v38 = vadd.f32 %v20823_v8, %v20367_v54 }
 0xc8e   : > { %v16012_v34 = vpop.eup %16011  ;;  %16031 = vrcp.f32 %v9617_v14  ;;  %v9623_v49 = vadd.f32 1.0, %v16010_v59  ;;  %v7631_v14 = vadd.f32 %v20814_v32, %v20367_v54  ;;  %v11922_v32 = vmul.f32 -1.442695, %v7627_v25 }
 0xc8f   : > { %v16014_v58 = vpop.eup %16013  ;;  %16033 = vrcp.f32 %v9828_v36  ;;  %v9849_v11 = vadd.f32 1.0, %v16012_v34  ;;  %v7633_v34 = vadd.f32 %v20819_v26, %v20379_v15 }
 0xc90   : > { %v16016_v39 = vpop.eup %16015  ;;  %16035 = vrcp.f32 %v9623_v49  ;;  %v9624_v12 = vadd.f32 1.0, %v16014_v58  ;;  %v11921_v58 = vmul.f32 -1.442695, %v7625_v56  ;;  %v11928_v26 = vmul.f32 -1.442695, %v7631_v14 }
 0xc91   : > { %v16018_v33 = vpop.eup %16017  ;;  %16037 = vrcp.f32 %v9849_v11  ;;  %v9835_v10 = vadd.f32 1.0, %v16016_v39  ;;  %v11929_v8 = vmul.f32 -1.442695, %v7633_v34  ;;  %v7647_v34 = vadd.f32 %v20840_v48, %v20379_v15 }
 0xc92   : > { %v16020_v45 = vpop.eup %16019  ;;  %16039 = vrcp.f32 %v9624_v12  ;;  %v9630_v63 = vadd.f32 1.0, %v16018_v33  ;;  %v21725_v12 = vld [vmem:[#allocation46_spill] sm:$0xff] }
 0xc93   : > { %v16022_v2 = vpop.eup %16021  ;;  %16041 = vrcp.f32 %v9835_v10  ;;  %v9631_v7 = vadd.f32 1.0, %v16020_v45  ;;  %v7637_v33 = vadd.f32 %v21725_v12, %v20379_v15  ;;  %v21726_v45 = vld [vmem:[#allocation18_spill] sm:$0xff] }
 0xc94   : > { %v16024_v57 = vpop.eup %16023  ;;  %16043 = vrcp.f32 %v9630_v63  ;;  %v9637_v52 = vadd.f32 1.0, %v16022_v2  ;;  %v7641_v63 = vadd.f32 %v21726_v45, %v20367_v54  ;;  %v21727_v2 = vld [vmem:[#allocation19_spill] sm:$0xff] }
 0xc95   : > { %v16026_v59 = vpop.eup %16025  ;;  %16045 = vrcp.f32 %v9631_v7  ;;  %v9638_v36 = vadd.f32 1.0, %v16024_v57  ;;  %v7643_v7 = vadd.f32 %v21727_v2, %v20379_v15  ;;  %v11935_v57 = vmul.f32 -1.442695, %v7635_v38 }
 0xc96   : > { %v16028_v24 = vpop.eup %16027  ;;  %16047 = vrcp.f32 %v9637_v52  ;;  %v9644_v49 = vadd.f32 1.0, %v16026_v59  ;;  %v21728_v52 = vld [vmem:[#allocation20_spill] sm:$0xff] }
 0xc97   : > { %v16030_v11 = vpop.eup %16029  ;;  %16049 = vrcp.f32 %v9638_v36  ;;  %v9645_v39 = vadd.f32 1.0, %v16028_v24  ;;  %v7645_v14 = vadd.f32 %v21728_v52, %v20367_v54  ;;  %v11936_v36 = vmul.f32 -1.442695, %v7637_v33 }
 0xc98   : > { %v16032_v10 = vpop.eup %16031  ;;  %11186 = vst.msk [vmem:[%s18980_s30 + $0xdc0] sm:$0xff] %vm1670_vm0, %v16030_v11  ;;  %16051 = vrcp.f32 %v9644_v49  ;;  %v11942_v49 = vmul.f32 -1.442695, %v7641_v63  ;;  %v11943_v11 = vmul.f32 -1.442695, %v7643_v7  ;;  %v7655_v33 = vadd.f32 %v20854_v22, %v20367_v54 }
 0xc99   : > { %v16034_v56 = vpop.eup %16033  ;;  %10961 = vst [vmem:[%s18980_s30 + $0x6b8] sm:$0xff] %v16032_v10  ;;  %16053 = vrcp.f32 %v9645_v39  ;;  %v21729_v39 = vld [vmem:[#allocation6_spill] sm:$0xff]  ;;  %v11949_v48 = vmul.f32 -1.442695, %v7645_v14 }
 0xc9a   : > { %v16036_v25 = vpop.eup %16035  ;;  %11172 = vst.msk [vmem:[%s18980_s30 + $0xd50] sm:$0xff] %vm1670_vm0, %v16034_v56  ;;  %16055 = vpow2.f32 %v11921_v58  ;;  %v7651_v58 = vadd.f32 %v20846_v27, %v20367_v54  ;;  %v11950_v27 = vmul.f32 -1.442695, %v7647_v34  ;;  %v11963_v2 = vmul.f32 -1.442695, %v7655_v33 }
 0xc9b   : > { %v16038_v59 = vpop.eup %16037  ;;  %10967 = vst [vmem:[%s18980_s30 + $0x6e8] sm:$0xff] %v16036_v25  ;;  %16057 = vpow2.f32 %v11922_v32  ;;  %v7653_v32 = vadd.f32 %v21729_v39, %v20379_v15  ;;  %v7657_v33 = vadd.f32 %v20858_v17, %v20379_v15 }
 0xc9c   : > { %v16040_v24 = vpop.eup %16039  ;;  %11193 = vst.msk [vmem:[%s18980_s30 + $0xdf8] sm:$0xff] %vm1670_vm0, %v16038_v59  ;;  %16059 = vpow2.f32 %v11928_v26  ;;  %v11956_v45 = vmul.f32 -1.442695, %v7651_v58 }
 0xc9d   : > { %v16042_v38 = vpop.eup %16041  ;;  %10968 = vst [vmem:[%s18980_s30 + $0x6f0] sm:$0xff] %v16040_v24  ;;  %16061 = vpow2.f32 %v11929_v8  ;;  %v11957_v56 = vmul.f32 -1.442695, %v7653_v32 }
 0xc9e   : > { %v16044_v12 = vpop.eup %16043  ;;  %11179 = vst.msk [vmem:[%s18980_s30 + $0xd88] sm:$0xff] %vm1670_vm0, %v16042_v38  ;;  %16063 = vpow2.f32 %v11935_v57 }
 0xc9f   : > { %v16046_v10 = vpop.eup %16045  ;;  %10974 = vst [vmem:[%s18980_s30 + $0x720] sm:$0xff] %v16044_v12  ;;  %16065 = vpow2.f32 %v11936_v36 }
 0xca0   : > { %v16048_v26 = vpop.eup %16047  ;;  %10975 = vst [vmem:[%s18980_s30 + $0x728] sm:$0xff] %v16046_v10  ;;  %16067 = vpow2.f32 %v11942_v49 }
 0xca1   : > { %v16050_v63 = vpop.eup %16049  ;;  %10981 = vst [vmem:[%s18980_s30 + $0x758] sm:$0xff] %v16048_v26  ;;  %16069 = vpow2.f32 %v11943_v11  ;;  %v7661_v26 = vadd.f32 %v20880_v31, %v20367_v54  ;;  %v7667_v31 = vadd.f32 %v20894_v42, %v20379_v15 }
 0xca2   : > { %v16052_v8 = vpop.eup %16051  ;;  %10982 = vst [vmem:[%s18980_s30 + $0x760] sm:$0xff] %v16050_v63  ;;  %16071 = vpow2.f32 %v11949_v48 }
 0xca3   : > { %v16054_v7 = vpop.eup %16053  ;;  %10988 = vst [vmem:[%s18980_s30 + $0x790] sm:$0xff] %v16052_v8  ;;  %16073 = vpow2.f32 %v11950_v27 }
 0xca4   : > { %v16056_v22 = vpop.eup %16055  ;;  %10989 = vst [vmem:[%s18980_s30 + $0x798] sm:$0xff] %v16054_v7  ;;  %16075 = vpow2.f32 %v11956_v45  ;;  %v7665_v7 = vadd.f32 %v20891_v41, %v20367_v54 }
 0xca5   : > { %v16058_v25 = vpop.eup %16057  ;;  %v9651_v57 = vadd.f32 1.0, %v16056_v22  ;;  %16077 = vpow2.f32 %v11957_v56  ;;  %v7663_v56 = vadd.f32 %v20885_v50, %v20379_v15  ;;  %v11970_v50 = vmul.f32 -1.442695, %v7661_v26 }
 0xca6   : > { %v16060_v52 = vpop.eup %16059  ;;  %v9652_v14 = vadd.f32 1.0, %v16058_v25  ;;  %16079 = vpow2.f32 %v11963_v2  ;;  %v11964_v25 = vmul.f32 -1.442695, %v7657_v33  ;;  %v11977_v42 = vmul.f32 -1.442695, %v7665_v7 }
 0xca7   : > { %v16062_v59 = vpop.eup %16061  ;;  %16081 = vrcp.f32 %v9651_v57  ;;  %v9658_v36 = vadd.f32 1.0, %v16060_v52  ;;  %v11971_v41 = vmul.f32 -1.442695, %v7663_v56 }
 0xca8   : > { %v16064_v34 = vpop.eup %16063  ;;  %16083 = vrcp.f32 %v9652_v14  ;;  %v9659_v24 = vadd.f32 1.0, %v16062_v59  ;;  %v7671_v14 = vadd.f32 %v20904_v62, %v20367_v54  ;;  %v11978_v62 = vmul.f32 -1.442695, %v7667_v31 }
 0xca9   : > { %v16066_v49 = vpop.eup %16065  ;;  %16085 = vrcp.f32 %v9658_v36  ;;  %v9665_v58 = vadd.f32 1.0, %v16064_v34  ;;  %v7673_v36 = vadd.f32 %v20906_v5, %v20379_v15 }
 0xcaa   : > { %v16068_v38 = vpop.eup %16067  ;;  %16087 = vrcp.f32 %v9659_v24  ;;  %v9666_v11 = vadd.f32 1.0, %v16066_v49  ;;  %v7675_v24 = vadd.f32 %v20908_v40, %v20367_v54  ;;  %v11984_v5 = vmul.f32 -1.442695, %v7671_v14 }
 0xcab   : > { %v16070_v39 = vpop.eup %16069  ;;  %16089 = vrcp.f32 %v9665_v58  ;;  %v9672_v32 = vadd.f32 1.0, %v16068_v38  ;;  %v7677_v58 = vadd.f32 %v20910_v51, %v20379_v15  ;;  %v11985_v40 = vmul.f32 -1.442695, %v7673_v36 }
 0xcac   : > { %v16072_v12 = vpop.eup %16071  ;;  %16091 = vrcp.f32 %v9666_v11  ;;  %v9673_v48 = vadd.f32 1.0, %v16070_v39  ;;  %v7681_v11 = vadd.f32 %v20914_v20, %v20367_v54  ;;  %v11991_v51 = vmul.f32 -1.442695, %v7675_v24 }
 0xcad   : > { %v16074_v10 = vpop.eup %16073  ;;  %16093 = vrcp.f32 %v9672_v32  ;;  %v9679_v27 = vadd.f32 1.0, %v16072_v12  ;;  %v7683_v32 = vadd.f32 %v20918_v30, %v20379_v15  ;;  %v11992_v20 = vmul.f32 -1.442695, %v7677_v58 }
 0xcae   : > { %v16076_v45 = vpop.eup %16075  ;;  %16095 = vrcp.f32 %v9673_v48  ;;  %v9680_v63 = vadd.f32 1.0, %v16074_v10  ;;  %v21730_v48 = vld [vmem:[#allocation9_spill] sm:$0xff]  ;;  %v11998_v30 = vmul.f32 -1.442695, %v7681_v11 }
 0xcaf   : > { %v16078_v8 = vpop.eup %16077  ;;  %16097 = vrcp.f32 %v9679_v27  ;;  %v9686_v2 = vadd.f32 1.0, %v16076_v45  ;;  %v7685_v33 = vadd.f32 %v21730_v48, %v20367_v54  ;;  %v7687_v27 = vadd.f32 %v20926_v37, %v20379_v15 }
 0xcb0   : > { %v16080_v17 = vpop.eup %16079  ;;  %16099 = vrcp.f32 %v9680_v63  ;;  %v9687_v22 = vadd.f32 1.0, %v16078_v8  ;;  %v11999_v63 = vmul.f32 -1.442695, %v7683_v32 }
 0xcb1   : > { %v16082_v57 = vpop.eup %16081  ;;  %16101 = vrcp.f32 %v9686_v2  ;;  %v9693_v52 = vadd.f32 1.0, %v16080_v17  ;;  %v12005_v8 = vmul.f32 -1.442695, %v7685_v33  ;;  %v12006_v7 = vmul.f32 -1.442695, %v7687_v27 }
 0xcb2   : > { %v16084_v59 = vpop.eup %16083  ;;  %10995 = vst [vmem:[%s18980_s30 + $0x7c8] sm:$0xff] %v16082_v57  ;;  %16103 = vrcp.f32 %v9687_v22  ;;  %v7697_v33 = vadd.f32 %v20959_v3, %v20379_v15 }
 0xcb3   : > { %v16086_v34 = vpop.eup %16085  ;;  %10996 = vst [vmem:[%s18980_s30 + $0x7d0] sm:$0xff] %v16084_v59  ;;  %16105 = vrcp.f32 %v9693_v52 }
 0xcb4   : > { %v16088_v49 = vpop.eup %16087  ;;  %11002 = vst [vmem:[%s18980_s30 + $0x800] sm:$0xff] %v16086_v34  ;;  %16107 = vpow2.f32 %v11964_v25 }
 0xcb5   : > { %v16090_v38 = vpop.eup %16089  ;;  %11003 = vst [vmem:[%s18980_s30 + $0x808] sm:$0xff] %v16088_v49  ;;  %16109 = vpow2.f32 %v11970_v50 }
 0xcb6   : > { %v16092_v39 = vpop.eup %16091  ;;  %11009 = vst [vmem:[%s18980_s30 + $0x838] sm:$0xff] %v16090_v38  ;;  %16111 = vpow2.f32 %v11971_v41  ;;  %v7691_v38 = vadd.f32 %v20942_v46, %v20367_v54 }
 0xcb7   : > { %v16094_v12 = vpop.eup %16093  ;;  %11010 = vst [vmem:[%s18980_s30 + $0x840] sm:$0xff] %v16092_v39  ;;  %16113 = vpow2.f32 %v11977_v42  ;;  %v7693_v39 = vadd.f32 %v20948_v23, %v20379_v15  ;;  %v7701_v23 = vadd.f32 %v20970_v19, %v20367_v54  ;;  %v12020_v19 = vmul.f32 -1.442695, %v7697_v33 }
 0xcb8   : > { %v16096_v10 = vpop.eup %16095  ;;  %11016 = vst [vmem:[%s18980_s30 + $0x870] sm:$0xff] %v16094_v12  ;;  %16115 = vpow2.f32 %v11978_v62  ;;  %v7695_v12 = vadd.f32 %v20953_v60, %v20367_v54 }
 0xcb9   : > { %v16098_v26 = vpop.eup %16097  ;;  %11017 = vst [vmem:[%s18980_s30 + $0x878] sm:$0xff] %v16096_v10  ;;  %16117 = vpow2.f32 %v11984_v5  ;;  %v12013_v60 = vmul.f32 -1.442695, %v7693_v39 }
 0xcba   : > { %v16100_v45 = vpop.eup %16099  ;;  %11023 = vst [vmem:[%s18980_s30 + $0x8a8] sm:$0xff] %v16098_v26  ;;  %16119 = vpow2.f32 %v11985_v40  ;;  %v12019_v3 = vmul.f32 -1.442695, %v7695_v12 }
 0xcbb   : > { %v16102_v56 = vpop.eup %16101  ;;  %11024 = vst [vmem:[%s18980_s30 + $0x8b0] sm:$0xff] %v16100_v45  ;;  %16121 = vpow2.f32 %v11991_v51 }
 0xcbc   : > { %v16104_v2 = vpop.eup %16103  ;;  %11030 = vst [vmem:[%s18980_s30 + $0x8e0] sm:$0xff] %v16102_v56  ;;  %16123 = vpow2.f32 %v11992_v20  ;;  %v12012_v20 = vmul.f32 -1.442695, %v7691_v38 }
 0xcbd   : > { %v16106_v17 = vpop.eup %16105  ;;  %11031 = vst [vmem:[%s18980_s30 + $0x8e8] sm:$0xff] %v16104_v2  ;;  %16125 = vpow2.f32 %v11998_v30  ;;  %v7703_v30 = vadd.f32 %v20974_v47, %v20379_v15  ;;  %v21732_v2 = vld [vmem:[#allocation22_spill] sm:$0xff]  ;;  %v12026_v47 = vmul.f32 -1.442695, %v7701_v23 }
 0xcbe   : > { %v16108_v37 = vpop.eup %16107  ;;  %11037 = vst [vmem:[%s18980_s30 + $0x918] sm:$0xff] %v16106_v17  ;;  %16127 = vpow2.f32 %v11999_v63  ;;  %v21731_v63 = vld [vmem:[#allocation21_spill] sm:$0xff] }
 0xcbf   : > { %v16110_v22 = vpop.eup %16109  ;;  %v9694_v25 = vadd.f32 1.0, %v16108_v37  ;;  %16129 = vpow2.f32 %v12005_v8  ;;  %v7705_v56 = vadd.f32 %v21731_v63, %v20367_v54  ;;  %v7711_v37 = vadd.f32 %v20981_v1, %v20367_v54 }
 0xcc0   : > { %v16112_v31 = vpop.eup %16111  ;;  %v9700_v57 = vadd.f32 1.0, %v16110_v22  ;;  %16131 = vpow2.f32 %v12006_v7  ;;  %v7707_v7 = vadd.f32 %v21732_v2, %v20379_v15 }
 0xcc1   : > { %v16114_v52 = vpop.eup %16113  ;;  %16133 = vrcp.f32 %v9694_v25  ;;  %v9701_v50 = vadd.f32 1.0, %v16112_v31  ;;  %v12027_v25 = vmul.f32 -1.442695, %v7703_v30  ;;  %v7713_v31 = vadd.f32 %v20983_v16, %v20379_v15 }
 0xcc2   : > { %v16116_v14 = vpop.eup %16115  ;;  %16135 = vrcp.f32 %v9700_v57  ;;  %v9707_v59 = vadd.f32 1.0, %v16114_v52  ;;  %v12033_v52 = vmul.f32 -1.442695, %v7705_v56  ;;  %v12034_v1 = vmul.f32 -1.442695, %v7707_v7 }
 0xcc3   : > { %v16118_v41 = vpop.eup %16117  ;;  %16137 = vrcp.f32 %v9701_v50  ;;  %v9708_v36 = vadd.f32 1.0, %v16116_v14  ;;  %v7715_v50 = vadd.f32 %v20987_v0, %v20367_v54  ;;  %v12040_v16 = vmul.f32 -1.442695, %v7711_v37 }
 0xcc4   : > { %v16120_v34 = vpop.eup %16119  ;;  %16139 = vrcp.f32 %v9707_v59  ;;  %v9714_v42 = vadd.f32 1.0, %v16118_v41  ;;  %v21733_v59 = vld [vmem:[#allocation13_spill] sm:$0xff]  ;;  %v12041_v0 = vmul.f32 -1.442695, %v7713_v31 }
 0xcc5   : > { %v16122_v24 = vpop.eup %16121  ;;  %16141 = vrcp.f32 %v9708_v36  ;;  %v9715_v49 = vadd.f32 1.0, %v16120_v34  ;;  %v7717_v41 = vadd.f32 %v21733_v59, %v20379_v15  ;;  %v7721_v34 = vadd.f32 %v21005_v4, %v20367_v54  ;;  %v21736_v59 = vld [vmem:[#allocation8_spill] sm:$0xff] }
 0xcc6   : > { %v16124_v62 = vpop.eup %16123  ;;  %16143 = vrcp.f32 %v9714_v42  ;;  %v9721_v58 = vadd.f32 1.0, %v16122_v24 }
 0xcc7   : > { %v16126_v5 = vpop.eup %16125  ;;  %16145 = vrcp.f32 %v9715_v49  ;;  %v9722_v11 = vadd.f32 1.0, %v16124_v62  ;;  %v12047_v49 = vmul.f32 -1.442695, %v7715_v50 }
 0xcc8   : > { %v16128_v40 = vpop.eup %16127  ;;  %16147 = vrcp.f32 %v9721_v58  ;;  %v9728_v32 = vadd.f32 1.0, %v16126_v5  ;;  %v12048_v58 = vmul.f32 -1.442695, %v7717_v41  ;;  %v12054_v5 = vmul.f32 -1.442695, %v7721_v34 }
 0xcc9   : > { %v16130_v51 = vpop.eup %16129  ;;  %16149 = vrcp.f32 %v9722_v11  ;;  %v9729_v48 = vadd.f32 1.0, %v16128_v40  ;;  %v7735_v41 = vadd.f32 %v21736_v59, %v20367_v54 }
 0xcca   : > { %v16132_v46 = vpop.eup %16131  ;;  %16151 = vrcp.f32 %v9728_v32  ;;  %v9735_v10 = vadd.f32 1.0, %v16130_v51 }
 0xccb   : > { %v16134_v27 = vpop.eup %16133  ;;  %16153 = vrcp.f32 %v9729_v48  ;;  %v9736_v26 = vadd.f32 1.0, %v16132_v46 }
 0xccc   : > { %v16136_v45 = vpop.eup %16135  ;;  %11038 = vst [vmem:[%s18980_s30 + $0x920] sm:$0xff] %v16134_v27  ;;  %16155 = vrcp.f32 %v9735_v10 }
 0xccd   : > { %v16138_v8 = vpop.eup %16137  ;;  %11044 = vst [vmem:[%s18980_s30 + $0x950] sm:$0xff] %v16136_v45  ;;  %16157 = vrcp.f32 %v9736_v26 }
 0xcce   : > { %v16140_v17 = vpop.eup %16139  ;;  %11045 = vst [vmem:[%s18980_s30 + $0x958] sm:$0xff] %v16138_v8  ;;  %16159 = vpow2.f32 %v12012_v20 }
 0xccf   : > { %v16142_v22 = vpop.eup %16141  ;;  %11051 = vst [vmem:[%s18980_s30 + $0x988] sm:$0xff] %v16140_v17  ;;  %16161 = vpow2.f32 %v12013_v60  ;;  %v21735_v17 = vld [vmem:[#allocation14_spill] sm:$0xff] }
 0xcd0   : > { %v16144_v57 = vpop.eup %16143  ;;  %11052 = vst [vmem:[%s18980_s30 + $0x990] sm:$0xff] %v16142_v22  ;;  %16163 = vpow2.f32 %v12019_v3  ;;  %v21734_v3 = vld [vmem:[#allocation23_spill] sm:$0xff] }
 0xcd1   : > { %v16146_v14 = vpop.eup %16145  ;;  %11058 = vst [vmem:[%s18980_s30 + $0x9c0] sm:$0xff] %v16144_v57  ;;  %16165 = vpow2.f32 %v12020_v19  ;;  %v7723_v63 = vadd.f32 %v21734_v3, %v20379_v15  ;;  %v7725_v19 = vadd.f32 %v21016_v9, %v20367_v54  ;;  %v7733_v9 = vadd.f32 %v21040_v35, %v20379_v15 }
 0xcd2   : > { %v16148_v36 = vpop.eup %16147  ;;  %11059 = vst [vmem:[%s18980_s30 + $0x9c8] sm:$0xff] %v16146_v14  ;;  %16167 = vpow2.f32 %v12026_v47  ;;  %v7727_v47 = vadd.f32 %v21735_v17, %v20379_v15 }
 0xcd3   : > { %v16150_v42 = vpop.eup %16149  ;;  %11065 = vst [vmem:[%s18980_s30 + $0x9f8] sm:$0xff] %v16148_v36  ;;  %16169 = vpow2.f32 %v12027_v25  ;;  %v7731_v25 = vadd.f32 %v21037_v6, %v20367_v54 }
 0xcd4   : > { %v16152_v24 = vpop.eup %16151  ;;  %11066 = vst [vmem:[%s18980_s30 + $0xa00] sm:$0xff] %v16150_v42  ;;  %16171 = vpow2.f32 %v12033_v52  ;;  %v12055_v52 = vmul.f32 -1.442695, %v7723_v63  ;;  %v12062_v6 = vmul.f32 -1.442695, %v7727_v47 }
 0xcd5   : > { %v16154_v62 = vpop.eup %16153  ;;  %11072 = vst [vmem:[%s18980_s30 + $0xa30] sm:$0xff] %v16152_v24  ;;  %16173 = vpow2.f32 %v12034_v1  ;;  %v12061_v1 = vmul.f32 -1.442695, %v7725_v19  ;;  %v12068_v35 = vmul.f32 -1.442695, %v7731_v25 }
 0xcd6   : > { %v16156_v38 = vpop.eup %16155  ;;  %11073 = vst [vmem:[%s18980_s30 + $0xa38] sm:$0xff] %v16154_v62  ;;  %16175 = vpow2.f32 %v12040_v16  ;;  %v21737_v16 = vld [vmem:[#allocation11_spill] sm:$0xff]  ;;  %v7743_v62 = vadd.f32 %v21053_v13, %v20379_v15 }
 0xcd7   : > { %v16158_v11 = vpop.eup %16157  ;;  %11079 = vst [vmem:[%s18980_s30 + $0xa68] sm:$0xff] %v16156_v38  ;;  %16177 = vpow2.f32 %v12041_v0  ;;  %v7737_v34 = vadd.f32 %v21737_v16, %v20379_v15  ;;  %v7741_v0 = vadd.f32 %v21051_v29, %v20367_v54  ;;  %v12075_v38 = vmul.f32 -1.442695, %v7735_v41 }
 0xcd8   : > { %v16160_v4 = vpop.eup %16159  ;;  %11080 = vst [vmem:[%s18980_s30 + $0xa70] sm:$0xff] %v16158_v11  ;;  %16179 = vpow2.f32 %v12047_v49  ;;  %v12069_v49 = vmul.f32 -1.442695, %v7733_v9  ;;  %v7755_v9 = vadd.f32 %v21078_v43, %v20367_v54 }
 0xcd9   : > { %v16162_v39 = vpop.eup %16161  ;;  %v9742_v40 = vadd.f32 1.0, %v16160_v4  ;;  %16181 = vpow2.f32 %v12048_v58  ;;  %v12076_v29 = vmul.f32 -1.442695, %v7737_v34  ;;  %v12082_v13 = vmul.f32 -1.442695, %v7741_v0 }
 0xcda   : > { %v16164_v32 = vpop.eup %16163  ;;  %v9743_v12 = vadd.f32 1.0, %v16162_v39  ;;  %16183 = vpow2.f32 %v12054_v5  ;;  %v21738_v5 = vld [vmem:[#allocation10_spill] sm:$0xff]  ;;  %v21739_v39 = vld [vmem:[#allocation24_spill] sm:$0xff]  ;;  %v7763_v34 = vadd.f32 %v21107_v21, %v20379_v15 }
 0xcdb   : > { %v16166_v51 = vpop.eup %16165  ;;  %16185 = vrcp.f32 %v9742_v40  ;;  %v9749_v48 = vadd.f32 1.0, %v16164_v32  ;;  %v7745_v11 = vadd.f32 %v21738_v5, %v20367_v54  ;;  %v7747_v40 = vadd.f32 %v21739_v39, %v20379_v15 }
 0xcdc   : > { %v16168_v33 = vpop.eup %16167  ;;  %16187 = vrcp.f32 %v9743_v12  ;;  %v9750_v46 = vadd.f32 1.0, %v16166_v51  ;;  %v7751_v12 = vadd.f32 %v21069_v61, %v20367_v54 }
 0xcdd   : > { %v16170_v10 = vpop.eup %16169  ;;  %16189 = vrcp.f32 %v9749_v48  ;;  %v9756_v20 = vadd.f32 1.0, %v16168_v33  ;;  %v12083_v48 = vmul.f32 -1.442695, %v7743_v62  ;;  %v7753_v33 = vadd.f32 %v21073_v18, %v20379_v15 }
 0xcde   : > { %v16172_v23 = vpop.eup %16171  ;;  %16191 = vrcp.f32 %v9750_v46  ;;  %v9757_v27 = vadd.f32 1.0, %v16170_v10  ;;  %v12089_v10 = vmul.f32 -1.442695, %v7745_v11  ;;  %v12096_v61 = vmul.f32 -1.442695, %v7751_v12 }
 0xcdf   : > { %v16174_v26 = vpop.eup %16173  ;;  %16193 = vrcp.f32 %v9756_v20  ;;  %v9763_v60 = vadd.f32 1.0, %v16172_v23  ;;  %v12090_v23 = vmul.f32 -1.442695, %v7747_v40 }
 0xce0   : > { %v16176_v30 = vpop.eup %16175  ;;  %16195 = vrcp.f32 %v9757_v27  ;;  %v9764_v45 = vadd.f32 1.0, %v16174_v26 }
 0xce1   : > { %v16178_v56 = vpop.eup %16177  ;;  %16197 = vrcp.f32 %v9763_v60  ;;  %v9770_v8 = vadd.f32 1.0, %v16176_v30  ;;  %v12097_v60 = vmul.f32 -1.442695, %v7753_v33 }
 0xce2   : > { %v16180_v2 = vpop.eup %16179  ;;  %16199 = vrcp.f32 %v9764_v45  ;;  %v9771_v7 = vadd.f32 1.0, %v16178_v56 }
 0xce3   : > { %v16182_v37 = vpop.eup %16181  ;;  %16201 = vrcp.f32 %v9770_v8  ;;  %v9777_v22 = vadd.f32 1.0, %v16180_v2 }
 0xce4   : > { %v16184_v31 = vpop.eup %16183  ;;  %16203 = vrcp.f32 %v9771_v7  ;;  %v9778_v57 = vadd.f32 1.0, %v16182_v37 }
 0xce5   : > { %v16186_v50 = vpop.eup %16185  ;;  %16205 = vrcp.f32 %v9777_v22  ;;  %v9784_v14 = vadd.f32 1.0, %v16184_v31 }
 0xce6   : > { %v16188_v36 = vpop.eup %16187  ;;  %11086 = vst [vmem:[%s18980_s30 + $0xaa0] sm:$0xff] %v16186_v50  ;;  %16207 = vrcp.f32 %v9778_v57 }
 0xce7   : > { %v16190_v42 = vpop.eup %16189  ;;  %11087 = vst [vmem:[%s18980_s30 + $0xaa8] sm:$0xff] %v16188_v36  ;;  %16209 = vrcp.f32 %v9784_v14  ;;  %v7761_v36 = vadd.f32 %v21103_v53, %v20367_v54 }
 0xce8   : > { %v16192_v24 = vpop.eup %16191  ;;  %11093 = vst [vmem:[%s18980_s30 + $0xad8] sm:$0xff] %v16190_v42  ;;  %16211 = vpow2.f32 %v12055_v52 }
 0xce9   : > { %v16194_v58 = vpop.eup %16193  ;;  %11094 = vst [vmem:[%s18980_s30 + $0xae0] sm:$0xff] %v16192_v24  ;;  %16213 = vpow2.f32 %v12061_v1  ;;  %v7757_v1 = vadd.f32 %v21084_v55, %v20379_v15  ;;  %v7765_v55 = vadd.f32 %v21110_v44, %v20367_v54  ;;  %v12110_v21 = vmul.f32 -1.442695, %v7761_v36 }
 0xcea   : > { %v16196_v4 = vpop.eup %16195  ;;  %11100 = vst [vmem:[%s18980_s30 + $0xb10] sm:$0xff] %v16194_v58  ;;  %16215 = vpow2.f32 %v12062_v6 }
 0xceb   : > { %v16198_v32 = vpop.eup %16197  ;;  %11101 = vst [vmem:[%s18980_s30 + $0xb18] sm:$0xff] %v16196_v4  ;;  %16217 = vpow2.f32 %v12068_v35  ;;  %v12103_v35 = vmul.f32 -1.442695, %v7755_v9  ;;  %v12104_v53 = vmul.f32 -1.442695, %v7757_v1 }
 0xcec   : > { %v16200_v51 = vpop.eup %16199  ;;  %11107 = vst [vmem:[%s18980_s30 + $0xb48] sm:$0xff] %v16198_v32  ;;  %16219 = vpow2.f32 %v12069_v49  ;;  %v7767_v49 = vadd.f32 %v21114_v28, %v20379_v15  ;;  %v12117_v44 = vmul.f32 -1.442695, %v7765_v55 }
 0xced   : > { %v16202_v46 = vpop.eup %16201  ;;  %11108 = vst [vmem:[%s18980_s30 + $0xb50] sm:$0xff] %v16200_v51  ;;  %16221 = vpow2.f32 %v12075_v38  ;;  %v12111_v38 = vmul.f32 -1.442695, %v7763_v34 }
 0xcee   : > { %v16204_v20 = vpop.eup %16203  ;;  %11114 = vst [vmem:[%s18980_s30 + $0xb80] sm:$0xff] %v16202_v46  ;;  %16223 = vpow2.f32 %v12076_v29  ;;  %v12118_v15 = vmul.f32 -1.442695, %v7767_v49 }
 0xcef   : > { %v16206_v27 = vpop.eup %16205  ;;  %11115 = vst [vmem:[%s18980_s30 + $0xb88] sm:$0xff] %v16204_v20  ;;  %16225 = vpow2.f32 %v12082_v13 }
 0xcf0   : > { %v16208_v26 = vpop.eup %16207  ;;  %11121 = vst [vmem:[%s18980_s30 + $0xbb8] sm:$0xff] %v16206_v27  ;;  %16227 = vpow2.f32 %v12083_v48 }
 0xcf1   : > { %v16210_v30 = vpop.eup %16209  ;;  %11122 = vst [vmem:[%s18980_s30 + $0xbc0] sm:$0xff] %v16208_v26  ;;  %16229 = vpow2.f32 %v12089_v10 }
 0xcf2   : > { %v16212_v18 = vpop.eup %16211  ;;  %11128 = vst [vmem:[%s18980_s30 + $0xbf0] sm:$0xff] %v16210_v30  ;;  %16231 = vpow2.f32 %v12090_v23 }
 0xcf3   : > { %v16214_v45 = vpop.eup %16213  ;;  %v9785_v3 = vadd.f32 1.0, %v16212_v18  ;;  %16233 = vpow2.f32 %v12096_v61 }
 0xcf4   : > { %v16216_v63 = vpop.eup %16215  ;;  %v9791_v56 = vadd.f32 1.0, %v16214_v45  ;;  %16235 = vpow2.f32 %v12097_v60 }
 0xcf5   : > { %v16218_v8 = vpop.eup %16217  ;;  %16237 = vrcp.f32 %v9785_v3  ;;  %v9792_v19 = vadd.f32 1.0, %v16216_v63 }
 0xcf6   : > { %v16220_v2 = vpop.eup %16219  ;;  %16239 = vrcp.f32 %v9791_v56  ;;  %v9798_v7 = vadd.f32 1.0, %v16218_v8 }
 0xcf7   : > { %v16222_v17 = vpop.eup %16221  ;;  %16241 = vrcp.f32 %v9792_v19  ;;  %v9799_v47 = vadd.f32 1.0, %v16220_v2 }
 0xcf8   : > { %v16224_v37 = vpop.eup %16223  ;;  %16243 = vrcp.f32 %v9798_v7  ;;  %v9805_v22 = vadd.f32 1.0, %v16222_v17 }
 0xcf9   : > { %v16226_v25 = vpop.eup %16225  ;;  %16245 = vrcp.f32 %v9799_v47  ;;  %v9806_v31 = vadd.f32 1.0, %v16224_v37 }
 0xcfa   : > { %v16228_v57 = vpop.eup %16227  ;;  %16247 = vrcp.f32 %v9805_v22  ;;  %v9812_v52 = vadd.f32 1.0, %v16226_v25 }
 0xcfb   : > { %v16230_v50 = vpop.eup %16229  ;;  %16249 = vrcp.f32 %v9806_v31  ;;  %v9813_v14 = vadd.f32 1.0, %v16228_v57 }
 0xcfc   : > { %v16232_v59 = vpop.eup %16231  ;;  %16251 = vrcp.f32 %v9812_v52  ;;  %v9819_v41 = vadd.f32 1.0, %v16230_v50 }
 0xcfd   : > { %v16234_v6 = vpop.eup %16233  ;;  %16253 = vrcp.f32 %v9813_v14  ;;  %v9820_v16 = vadd.f32 1.0, %v16232_v59 }
 0xcfe   : > { %v16236_v43 = vpop.eup %16235  ;;  %16255 = vrcp.f32 %v9819_v41  ;;  %v9826_v42 = vadd.f32 1.0, %v16234_v6 }
 0xcff   : > { %v16238_v0 = vpop.eup %16237  ;;  %16257 = vrcp.f32 %v9820_v16  ;;  %v9827_v24 = vadd.f32 1.0, %v16236_v43 }
 0xd00   : > { %v16240_v62 = vpop.eup %16239  ;;  %11129 = vst [vmem:[%s18980_s30 + $0xbf8] sm:$0xff] %v16238_v0  ;;  %16259 = vrcp.f32 %v9826_v42 }
 0xd01   : > { %v16242_v58 = vpop.eup %16241  ;;  %11135 = vst [vmem:[%s18980_s30 + $0xc28] sm:$0xff] %v16240_v62  ;;  %16261 = vrcp.f32 %v9827_v24 }
 0xd02   : > { %v16244_v54 = vpop.eup %16243  ;;  %11136 = vst [vmem:[%s18980_s30 + $0xc30] sm:$0xff] %v16242_v58  ;;  %16263 = vpow2.f32 %v12103_v35 }
 0xd03   : > { %v16246_v5 = vpop.eup %16245  ;;  %11142 = vst [vmem:[%s18980_s30 + $0xc60] sm:$0xff] %v16244_v54  ;;  %16265 = vpow2.f32 %v12104_v53 }
 0xd04   : > { %v16248_v28 = vpop.eup %16247  ;;  %11143 = vst [vmem:[%s18980_s30 + $0xc68] sm:$0xff] %v16246_v5  ;;  %16267 = vpow2.f32 %v12110_v21 }
 0xd05   : > { %v16250_v11 = vpop.eup %16249  ;;  %11149 = vst [vmem:[%s18980_s30 + $0xc98] sm:$0xff] %v16248_v28  ;;  %16269 = vpow2.f32 %v12111_v38 }
 0xd06   : > { %v16252_v4 = vpop.eup %16251  ;;  %11150 = vst [vmem:[%s18980_s30 + $0xca0] sm:$0xff] %v16250_v11  ;;  %16271 = vpow2.f32 %v12117_v44 }
 0xd07   : > { %v16254_v29 = vpop.eup %16253  ;;  %11156 = vst [vmem:[%s18980_s30 + $0xcd0] sm:$0xff] %v16252_v4  ;;  %16273 = vpow2.f32 %v12118_v15 }
 0xd08   : > { %v16256_v39 = vpop.eup %16255  ;;  %11157 = vst [vmem:[%s18980_s30 + $0xcd8] sm:$0xff] %v16254_v29 }
 0xd09   : > { %v16258_v40 = vpop.eup %16257  ;;  %11163 = vst [vmem:[%s18980_s30 + $0xd08] sm:$0xff] %v16256_v39 }
 0xd0a   : > { %v16260_v32 = vpop.eup %16259  ;;  %11164 = vst [vmem:[%s18980_s30 + $0xd10] sm:$0xff] %v16258_v40 }
 0xd0b   : > { %v16262_v13 = vpop.eup %16261  ;;  %11170 = vst [vmem:[%s18980_s30 + $0xd40] sm:$0xff] %v16260_v32 }
 0xd0c   : > { %v16264_v12 = vpop.eup %16263  ;;  %11171 = vst [vmem:[%s18980_s30 + $0xd48] sm:$0xff] %v16262_v13 }
 0xd0d   : > { %v16266_v51 = vpop.eup %16265  ;;  %v9833_v48 = vadd.f32 1.0, %v16264_v12 }
 0xd0e   : > { %v16268_v33 = vpop.eup %16267  ;;  %v9834_v46 = vadd.f32 1.0, %v16266_v51 }
 0xd0f   : > { %v16270_v10 = vpop.eup %16269  ;;  %16275 = vrcp.f32 %v9833_v48  ;;  %v9840_v20 = vadd.f32 1.0, %v16268_v33 }
 0xd10   : > { %v16272_v23 = vpop.eup %16271  ;;  %16277 = vrcp.f32 %v9834_v46  ;;  %v9841_v27 = vadd.f32 1.0, %v16270_v10 }
 0xd11   : > { %v16274_v61 = vpop.eup %16273  ;;  %16279 = vrcp.f32 %v9840_v20  ;;  %v9847_v26 = vadd.f32 1.0, %v16272_v23 }
 0xd12   : > { %16281 = vrcp.f32 %v9841_v27  ;;  %v9848_v60 = vadd.f32 1.0, %v16274_v61 }
 0xd13   : > { %16283 = vrcp.f32 %v9847_v26 }
 0xd14   : > { %16285 = vrcp.f32 %v9848_v60 }
 0xd19   : > { %v16276_v30 = vpop.eup %16275 }
 0xd1a   : > { %v16278_v18 = vpop.eup %16277  ;;  %11177 = vst [vmem:[%s18980_s30 + $0xd78] sm:$0xff] %v16276_v30 }
 0xd1b   : > { %v16280_v45 = vpop.eup %16279  ;;  %11178 = vst [vmem:[%s18980_s30 + $0xd80] sm:$0xff] %v16278_v18 }
 0xd1c   : > { %v16282_v3 = vpop.eup %16281  ;;  %11184 = vst [vmem:[%s18980_s30 + $0xdb0] sm:$0xff] %v16280_v45 }
 0xd1d   : > { %v16284_v63 = vpop.eup %16283  ;;  %11185 = vst [vmem:[%s18980_s30 + $0xdb8] sm:$0xff] %v16282_v3 }
 0xd1e   : > { %v16286_v56 = vpop.eup %16285  ;;  %11191 = vst [vmem:[%s18980_s30 + $0xde8] sm:$0xff] %v16284_v63 }
 0xd1f   : > { %11192 = vst [vmem:[%s18980_s30 + $0xdf0] sm:$0xff] %v16286_v56 }
 0xd20 PF: > { %s29_s27 = sadd.s32 1, %s16295_s27  }
 0xd21   : > { %p26_p4 = scmp.ge.s32.totalorder %s29_s27, 4  }
 0xd23   :  { %28 = sbr.rel (!%p26_p4) target bundleno = 4 (0x4), region = 130 }

</bundles_post_ra>
